<compile_context>
chip_gen: v7x
topology: tpu7x:2x2x1
jax: 0.10.0
libtpu: 0.0.40
codegen_flags: <defaults>
</compile_context>

<pallas_src>
import functools

import jax
import jax.numpy as jnp
from jax.experimental import pallas as pl
from jax.experimental.pallas import tpu as pltpu


def _round_up(v, m):
    return (v + m - 1) // m * m


def _pick_tn(K, N, itemsize, budget_bytes=4 * 1024 * 1024):
    """Largest multiple of 128 dividing N with a full-K weight slab <= budget."""
    tn = min(N, max(128, budget_bytes // (K * itemsize)))
    tn = max(128, (tn // 128) * 128)
    while N % tn:
        tn -= 128
    return tn


# ---------------------------------------------------------------------------
# Fused fc1+fc2 kernel: one sequential grid axis covering both layers.
#   steps [0, n1)     : h[t]           = x @ W1_slab(t) + b1_slab(t)   (f32 VMEM)
#   steps [n1, n1+n2) : out_slab(t-n1) = h @ W2_slab(t-n1) + b2_slab(t-n1)
# ---------------------------------------------------------------------------
def _fused_kernel(x_ref, w1_ref, b1_ref, w2_ref, b2_ref, o_ref, h_ref, *, n1, tn1):
    t = pl.program_id(0)

    @pl.when(t < n1)
    def _fc1():
        xb = x_ref[...].astype(w1_ref.dtype)  # tiny cast -> native bf16 MXU pass
        acc = jnp.dot(xb, w1_ref[...], preferred_element_type=jnp.float32)
        h_ref[t] = acc + b1_ref[...]          # f32 bias add, f32 scratch store

    @pl.when(t >= n1)
    def _fc2():
        # fc2 reduction split over the n1 full-K chunks held in scratch
        # (static tile-aligned slices; identical f32 accumulation).
        acc = jnp.dot(h_ref[0].astype(w2_ref.dtype), w2_ref[0:tn1, :],
                      preferred_element_type=jnp.float32)
        for kk in range(1, n1):
            acc = acc + jnp.dot(h_ref[kk].astype(w2_ref.dtype),
                                w2_ref[kk * tn1:(kk + 1) * tn1, :],
                                preferred_element_type=jnp.float32)
        o_ref[...] = (acc + b2_ref[...]).astype(o_ref.dtype)


def _fused_forward(x, pM, w1, b1, w2, b2, *, vmem_limit_bytes=32 * 1024 * 1024):
    M, K1 = x.shape
    K1w, N1 = w1.shape
    K2, N2 = w2.shape
    assert K1 == K1w and N1 == K2 and b1.shape == (1, N1) and b2.shape == (1, N2)

    tn1 = _pick_tn(K1, N1, w1.dtype.itemsize)   # bf16: 2048 -> 2 slabs of 4 MiB
    tn2 = _pick_tn(K2, N2, w2.dtype.itemsize)   # bf16:  512 -> 2 slabs of 4 MiB
    n1, n2 = N1 // tn1, N2 // tn2

    if pM != M:
        # Padded rows end up as b1 @ W2 + b2 (x-pad is 0 but bias is not);
        # harmless: rows are sliced off and nothing reduces over the batch dim.
        x = jnp.pad(x, ((0, pM - M), (0, 0)))

    kernel = functools.partial(_fused_kernel, n1=n1, tn1=tn1)
    out = pl.pallas_call(
        kernel,
        out_shape=jax.ShapeDtypeStruct((pM, N2), x.dtype),
        grid=(n1 + n2,),
        in_specs=[
            pl.BlockSpec((pM, K1), lambda t: (0, 0)),                        # x (resident)
            pl.BlockSpec((K1, tn1), lambda t: (0, jnp.minimum(t, n1 - 1))),  # W1 slab
            pl.BlockSpec((1, tn1), lambda t: (0, jnp.minimum(t, n1 - 1))),   # b1 slab
            pl.BlockSpec((K2, tn2), lambda t: (0, jnp.maximum(t - n1, 0))),  # W2 slab
            pl.BlockSpec((1, tn2), lambda t: (0, jnp.maximum(t - n1, 0))),   # b2 slab
        ],
        out_specs=pl.BlockSpec((pM, tn2), lambda t: (0, jnp.maximum(t - n1, 0))),
        scratch_shapes=[pltpu.VMEM((n1, pM, tn1), jnp.float32)],  # h, persists over steps
        compiler_params=pltpu.CompilerParams(
            dimension_semantics=("arbitrary",),   # fc2 steps depend on all fc1 steps
            vmem_limit_bytes=vmem_limit_bytes,
        ),
    )(x, w1, b1, w2, b2)
    return out[:M] if pM != M else out


# ---------------------------------------------------------------------------
# Large-batch fallback: one layer per call, weight slab stationary on the
# OUTER grid axis so weights stream from HBM exactly once regardless of batch.
# ---------------------------------------------------------------------------
def _linear_kernel(x_ref, w_ref, b_ref, o_ref):
    xb = x_ref[...].astype(w_ref.dtype)
    o_ref[...] = (jnp.dot(xb, w_ref[...], preferred_element_type=jnp.float32)
                  + b_ref[...]).astype(o_ref.dtype)


def pallas_linear(x, w, b, *, vmem_limit_bytes=32 * 1024 * 1024):
    """out[B, N] = x[B, K] @ w[K, N] + b[1, N]."""
    M, K = x.shape
    K2, N = w.shape
    assert K == K2 and b.shape == (1, N)

    pM = _round_up(M, 8)
    tm = pM if pM <= 128 else 128
    pM = _round_up(pM, tm)
    if pM != M:
        x = jnp.pad(x, ((0, pM - M), (0, 0)))

    tn = _pick_tn(K, N, w.dtype.itemsize)
    grid = (N // tn, pM // tm)  # weight-stationary: N outer, M inner
    out = pl.pallas_call(
        _linear_kernel,
        out_shape=jax.ShapeDtypeStruct((pM, N), x.dtype),
        grid=grid,
        in_specs=[
            pl.BlockSpec((tm, K), lambda j, i: (i, 0)),
            pl.BlockSpec((K, tn), lambda j, i: (0, j)),
            pl.BlockSpec((1, tn), lambda j, i: (0, j)),
        ],
        out_specs=pl.BlockSpec((tm, tn), lambda j, i: (i, j)),
        compiler_params=pltpu.CompilerParams(
            dimension_semantics=("parallel", "parallel"),
            vmem_limit_bytes=vmem_limit_bytes,
        ),
    )(x, w, b)
    return out[:M] if pM != M else out


@jax.jit
def simple_net_forward(x, params):
    """SimpleNet.forward: fc1 (1024 -> 4096) then fc2 (4096 -> 1024)."""
    M = x.shape[0]
    pM = max(_round_up(M, 8), 8)
    if pM <= 256:
        # Fused path: the (pM, 4096) f32 intermediate fits easily in VMEM.
        return _fused_forward(x, pM, params["w1"], params["b1"],
                              params["w2"], params["b2"])
    # Large-batch fallback: two weight-stationary linear kernels.
    h = pallas_linear(x, params["w1"], params["b1"])
    return pallas_linear(h, params["w2"], params["b2"])


def init_params(key, weight_dtype=jnp.bfloat16):
    """nn.Linear-style init (uniform +-1/sqrt(fan_in)); weights stored [in, out]."""
    k1, k2, k3, k4 = jax.random.split(key, 4)
    in1, out1 = 1024, 4096
    in2, out2 = 4096, 1024
    bound1 = 1.0 / float(in1) ** 0.5
    bound2 = 1.0 / float(in2) ** 0.5
    w1 = jax.random.uniform(k1, (in1, out1), jnp.float32, -bound1, bound1).astype(weight_dtype)
    b1 = jax.random.uniform(k2, (1, out1), jnp.float32, -bound1, bound1)
    w2 = jax.random.uniform(k3, (in2, out2), jnp.float32, -bound2, bound2).astype(weight_dtype)
    b2 = jax.random.uniform(k4, (1, out2), jnp.float32, -bound2, bound2)
    return {"w1": w1, "b1": b1, "w2": w2, "b2": b2}


def reference_forward(x, params):
    """Same-precision reference: bf16 operands, f32 accumulation (mirrors the kernel)."""
    wd = params["w1"].dtype
    h = jnp.dot(x.astype(wd), params["w1"], preferred_element_type=jnp.float32) + params["b1"]
    y = jnp.dot(h.astype(wd), params["w2"], preferred_element_type=jnp.float32) + params["b2"]
    return y


if __name__ == "__main__":
    key = jax.random.PRNGKey(0)
    pkey, xkey = jax.random.split(key)

    params = init_params(pkey)  # bf16 weights, f32 biases
    batch = 2                   # wrapper pads to the 8-row sublane tile internally
    x = jax.random.normal(xkey, (batch, 1024), jnp.float32)

    y = simple_net_forward(x, params)
    jax.block_until_ready(y)
    assert y.shape == (batch, 1024), y.shape
    assert y.dtype == jnp.float32, y.dtype

    ref = reference_forward(x, params)
    assert jnp.allclose(y, ref, atol=2e-2, rtol=2e-2), float(jnp.max(jnp.abs(y - ref)))

    print("KERNEL_OK")
</pallas_src>

<mosaic_0001>
module attributes {stable_mosaic.version = 11 : i64} {
  func.func @_fused_kernel(%arg0: i32, %arg1: memref<8x1024xf32, #tpu.memory_space<vmem>>, %arg2: memref<1024x2048xbf16, #tpu.memory_space<vmem>>, %arg3: memref<1x2048xf32, #tpu.memory_space<vmem>>, %arg4: memref<4096x512xbf16, #tpu.memory_space<vmem>>, %arg5: memref<1x512xf32, #tpu.memory_space<vmem>>, %arg6: memref<8x512xf32, #tpu.memory_space<vmem>>, %arg7: memref<2x8x2048xf32, #tpu.memory_space<vmem>>) attributes {dimension_semantics = [#tpu.dimension_semantics<arbitrary>], iteration_bounds = array<i64: 4>, scalar_prefetch = 0 : i64, scratch_operands = 1 : i64, tpu.core_type = #tpu.core_type<tc>, window_params = [{pipeline_mode = #tpu.pipeline_mode<synchronous>, transform_indices = @transform_0, window_bounds = array<i64: 8, 1024>}, {transform_indices = @transform_1, window_bounds = array<i64: 1024, 2048>}, {transform_indices = @transform_2, window_bounds = array<i64: 1, 2048>}, {transform_indices = @transform_3, window_bounds = array<i64: 4096, 512>}, {transform_indices = @transform_4, window_bounds = array<i64: 1, 512>}, {transform_indices = @transform_5, window_bounds = array<i64: 8, 512>}]} {
    %c2_i32 = arith.constant 2 : i32
    %0 = arith.cmpi slt, %arg0, %c2_i32 : i32
    %1 = arith.extui %0 : i1 to i32
    %c0_i32 = arith.constant 0 : i32
    %2 = arith.cmpi ne, %1, %c0_i32 : i32
    scf.if %2 {
      %c0 = arith.constant 0 : index
      %c0_2 = arith.constant 0 : index
      %6 = vector.load %arg1[%c0, %c0_2] : memref<8x1024xf32, #tpu.memory_space<vmem>>, vector<8x1024xf32>
      %7 = arith.truncf %6 : vector<8x1024xf32> to vector<8x1024xbf16>
      %c0_3 = arith.constant 0 : index
      %c0_4 = arith.constant 0 : index
      %8 = vector.load %arg2[%c0_3, %c0_4] : memref<1024x2048xbf16, #tpu.memory_space<vmem>>, vector<1024x2048xbf16>
      %cst = arith.constant dense<0.000000e+00> : vector<8x2048xf32>
      %9 = tpu.matmul %7, %8, %cst {dimension_numbers = #tpu.dot_dimension_numbers<[1], [0], [0], [1], [0, 0, 1, 1], [], []>} : vector<8x1024xbf16>, vector<1024x2048xbf16>, vector<8x2048xf32> -> vector<8x2048xf32>
      %c0_5 = arith.constant 0 : index
      %c0_6 = arith.constant 0 : index
      %10 = vector.load %arg3[%c0_5, %c0_6] : memref<1x2048xf32, #tpu.memory_space<vmem>>, vector<1x2048xf32>
      %11 = vector.broadcast %10 : vector<1x2048xf32> to vector<8x2048xf32>
      %12 = arith.addf %9, %11 : vector<8x2048xf32>
      %13 = arith.index_cast %arg0 : i32 to index
      %c0_7 = arith.constant 0 : index
      %c0_8 = arith.constant 0 : index
      %14 = vector.load %arg7[%13, %c0_7, %c0_8] : memref<2x8x2048xf32, #tpu.memory_space<vmem>>, vector<1x8x2048xf32>
      %15 = vector.shape_cast %14 : vector<1x8x2048xf32> to vector<8x2048xf32>
      %16 = vector.shape_cast %12 : vector<8x2048xf32> to vector<1x8x2048xf32>
      tpu.vector_store %arg7[%13, %c0_7, %c0_8], %16 {strides = array<i32>} : memref<2x8x2048xf32, #tpu.memory_space<vmem>>, vector<1x8x2048xf32>,
    } else {
    }
    %c2_i32_0 = arith.constant 2 : i32
    %3 = arith.cmpi sge, %arg0, %c2_i32_0 : i32
    %4 = arith.extui %3 : i1 to i32
    %c0_i32_1 = arith.constant 0 : i32
    %5 = arith.cmpi ne, %4, %c0_i32_1 : i32
    scf.if %5 {
      %c0 = arith.constant 0 : index
      %c0_2 = arith.constant 0 : index
      %c0_3 = arith.constant 0 : index
      %6 = vector.load %arg7[%c0, %c0_2, %c0_3] : memref<2x8x2048xf32, #tpu.memory_space<vmem>>, vector<1x8x2048xf32>
      %7 = vector.shape_cast %6 : vector<1x8x2048xf32> to vector<8x2048xf32>
      %8 = arith.truncf %7 : vector<8x2048xf32> to vector<8x2048xbf16>
      %c0_4 = arith.constant 0 : index
      %c0_5 = arith.constant 0 : index
      %9 = vector.load %arg4[%c0_4, %c0_5] : memref<4096x512xbf16, #tpu.memory_space<vmem>>, vector<2048x512xbf16>
      %cst = arith.constant dense<0.000000e+00> : vector<8x512xf32>
      %10 = tpu.matmul %8, %9, %cst {dimension_numbers = #tpu.dot_dimension_numbers<[1], [0], [0], [1], [0, 0, 1, 1], [], []>} : vector<8x2048xbf16>, vector<2048x512xbf16>, vector<8x512xf32> -> vector<8x512xf32>
      %c1 = arith.constant 1 : index
      %c0_6 = arith.constant 0 : index
      %c0_7 = arith.constant 0 : index
      %11 = vector.load %arg7[%c1, %c0_6, %c0_7] : memref<2x8x2048xf32, #tpu.memory_space<vmem>>, vector<1x8x2048xf32>
      %12 = vector.shape_cast %11 : vector<1x8x2048xf32> to vector<8x2048xf32>
      %13 = arith.truncf %12 : vector<8x2048xf32> to vector<8x2048xbf16>
      %c2048 = arith.constant 2048 : index
      %c0_8 = arith.constant 0 : index
      %14 = vector.load %arg4[%c2048, %c0_8] : memref<4096x512xbf16, #tpu.memory_space<vmem>>, vector<2048x512xbf16>
      %cst_9 = arith.constant dense<0.000000e+00> : vector<8x512xf32>
      %15 = tpu.matmul %13, %14, %cst_9 {dimension_numbers = #tpu.dot_dimension_numbers<[1], [0], [0], [1], [0, 0, 1, 1], [], []>} : vector<8x2048xbf16>, vector<2048x512xbf16>, vector<8x512xf32> -> vector<8x512xf32>
      %16 = arith.addf %10, %15 : vector<8x512xf32>
      %c0_10 = arith.constant 0 : index
      %c0_11 = arith.constant 0 : index
      %17 = vector.load %arg5[%c0_10, %c0_11] : memref<1x512xf32, #tpu.memory_space<vmem>>, vector<1x512xf32>
      %18 = vector.broadcast %17 : vector<1x512xf32> to vector<8x512xf32>
      %19 = arith.addf %16, %18 : vector<8x512xf32>
      %c0_12 = arith.constant 0 : index
      %c0_13 = arith.constant 0 : index
      %20 = vector.load %arg6[%c0_12, %c0_13] : memref<8x512xf32, #tpu.memory_space<vmem>>, vector<8x512xf32>
      tpu.vector_store %arg6[%c0_12, %c0_13], %19 {strides = array<i32>} : memref<8x512xf32, #tpu.memory_space<vmem>>, vector<8x512xf32>,
    } else {
    }
    return
  }
  func.func @transform_0(%arg0: i32) -> (i32, i32) {
    %c0_i32 = arith.constant 0 : i32
    %c0_i32_0 = arith.constant 0 : i32
    %c0_i32_1 = arith.constant 0 : i32
    return %c0_i32, %c0_i32_0 : i32, i32
  }
  func.func @transform_1(%arg0: i32) -> (i32, i32) {
    %c1_i32 = arith.constant 1 : i32
    %0 = arith.minsi %arg0, %c1_i32 : i32
    %c0_i32 = arith.constant 0 : i32
    %c0_i32_0 = arith.constant 0 : i32
    return %c0_i32, %0 : i32, i32
  }
  func.func @transform_2(%arg0: i32) -> (i32, i32) {
    %c1_i32 = arith.constant 1 : i32
    %0 = arith.minsi %arg0, %c1_i32 : i32
    %c0_i32 = arith.constant 0 : i32
    %c0_i32_0 = arith.constant 0 : i32
    return %c0_i32, %0 : i32, i32
  }
  func.func @transform_3(%arg0: i32) -> (i32, i32) {
    %c2_i32 = arith.constant 2 : i32
    %0 = arith.subi %arg0, %c2_i32 : i32
    %c0_i32 = arith.constant 0 : i32
    %1 = arith.maxsi %0, %c0_i32 : i32
    %c0_i32_0 = arith.constant 0 : i32
    %c0_i32_1 = arith.constant 0 : i32
    return %c0_i32_0, %1 : i32, i32
  }
  func.func @transform_4(%arg0: i32) -> (i32, i32) {
    %c2_i32 = arith.constant 2 : i32
    %0 = arith.subi %arg0, %c2_i32 : i32
    %c0_i32 = arith.constant 0 : i32
    %1 = arith.maxsi %0, %c0_i32 : i32
    %c0_i32_0 = arith.constant 0 : i32
    %c0_i32_1 = arith.constant 0 : i32
    return %c0_i32_0, %1 : i32, i32
  }
  func.func @transform_5(%arg0: i32) -> (i32, i32) {
    %c2_i32 = arith.constant 2 : i32
    %0 = arith.subi %arg0, %c2_i32 : i32
    %c0_i32 = arith.constant 0 : i32
    %1 = arith.maxsi %0, %c0_i32 : i32
    %c0_i32_0 = arith.constant 0 : i32
    %c0_i32_1 = arith.constant 0 : i32
    return %c0_i32_0, %1 : i32, i32
  }
}

</mosaic_0001>

<bundles_post_ra>
// kernel: simple_net_forward.1
= control target key start
LH: loop header
LB: loop body
LE: loop exit
PB: predicated region body
PF: predicated region fallthrough
CT: control target
= control target key end

     0   :  { %s22507_s0 = inlined_call_operand.vmem [shape: f32[8,1024], index: 0, kind: input, shape index: {}]   ;;  %s22508_s1 = inlined_call_operand.hbm [shape: bf16[1024,4096], index: 1, kind: input, shape index: {}]   ;;  %s22509_s2 = inlined_call_operand.hbm [shape: f32[1,4096], index: 2, kind: input, shape index: {}]   ;;  %s22510_s3 = inlined_call_operand.hbm [shape: bf16[4096,1024], index: 3, kind: input, shape index: {}]   ;;  %s22511_s4 = inlined_call_operand.hbm [shape: f32[1,1024], index: 4, kind: input, shape index: {}]   ;;  %s22512_s5 = inlined_call_operand.vmem [shape: f32[8,1024], index: 5, kind: output, shape index: {}]  }
   0x1   :  { %22516 = sst [smem:[#allocation16_spill]] %s22508_s1 }
   0x2   :  { %22517 = sst [smem:[#allocation17_spill]] %s22509_s2 }
   0x3   :  { %10 = vsyncpa [#allocation4], 0 }
   0x4   :  { %12 = vsyncpa [#allocation4 + $0x1], 0 }
   0x5   :  { %13 = vsyncpa [#allocation6], 0 }
   0x6   :  { %15 = vsyncpa [#allocation6 + $0x1], 0 }
   0x7   :  { %16 = vsyncpa [#allocation9], 0 }
   0x8   :  { %18 = vsyncpa [#allocation9 + $0x1], 0  ;;  %s19752_s18 = smov 0   ;;  %s19754_s19 = smov 0  }
   0x9   :  { %s19756_s20 = smov 0   ;;  %s19758_s21 = smov 0  }
   0xa   :  { %s19760_s22 = smov 0   ;;  %s19762_s23 = smov 0  }
   0xb   :  { %s19764_s24 = smov 0  }
   0xc LB: > { %22518 = sst [smem:[#allocation14_spill]] %s19706_s23  ;;  %s19786_s25 = sadd.s32 4294967295, %s19710_s24   ;;  %s19710_s24 = sphi %s19764_s24, %s22541_s24   ;;  %s19706_s23 = sphi %s19762_s23, %s22535_s23   ;;  %s19702_s22 = sphi %s19760_s22, %s22540_s22   ;;  %s19698_s21 = sphi %s19758_s21, %s22539_s21   ;;  %s19694_s20 = sphi %s19756_s20, %s22538_s20   ;;  %s19690_s19 = sphi %s19754_s19, %s22537_s19   ;;  %s19686_s18 = sphi %s19752_s18, %s22536_s18  }
   0xd   : > { %s19789_s26 = sadd.s32 1, %s19710_s24   ;;  %p49_p0 = scmp.lt.s32.totalorder %s19710_s24, 1 }
   0xe   : > { %p51_p1 = scmp.lt.s32.totalorder %s19789_s26, 1  ;;  %s56_s27 = sadd.s32 1, %s19706_s23 }
   0xf   : > { %p63_p2 = scmp.ne.s32.totalorder %s19706_s23, %s19702_s22  ;;  %p64_p3 = scmp.eq.s32.totalorder %s19710_s24, 0 }
  0x10   : > { %s19797_s28 = scalar_select %p49_p0, %s19710_s24, 1 }
  0x11   : > { %s52_s29 = scalar_select %p51_p1, %s19789_s26, 1 }
  0x12   : > { %p69_p4 = scmp.ne.s32.totalorder %s19702_s22, %s19698_s21  ;;  %p70_p5 = scmp.eq.s32.totalorder %s19786_s25, 0 }
  0x13   : > { %s53_s30 = ssub.s32 %s19797_s28, %s52_s29  ;;  %p19806_p7 = por %p64_p3, %p63_p2 }
  0x14   : > { %p54_p6 = scmp.eq.s32.totalorder %s53_s30, 0  ;;  %p19810_p8 = por %p70_p5, %p69_p4 }
  0x15   : > { %s15699_s8 = sadd.s32 4294967294, %s19789_s26  ;;  %p125_p10 = scmp.ne.s32.totalorder %s19694_s20, %s19690_s19 }
  0x16   : > { %s22520_s7 = scalar_select %p19810_p8, 1, 0 }
  0x17   : > { %s19816_s9 = scalar_select %p54_p6, %s19706_s23, %s56_s27  }
  0x18   : > { %p113_p9 = scmp.gt.s32.totalorder %s15699_s8, 0  ;;  %p131_p11 = scmp.ne.s32.totalorder %s19690_s19, %s19686_s18 }
  0x19   : > { %22521 = sst [smem:[#allocation15_spill]] %s19816_s9  ;;  %p19827_p12 = por %p125_p10, %p64_p3 }
  0x1a   : > { %s22543_s8 = smov (!%p113_p9, %s15699_s8), 0  ;;  %p19831_p13 = por %p131_p11, %p70_p5 }
  0x1b   : > { %p17920_p0 = scmp.lt.s32.totalorder %s19710_s24, 4  ;;  %s19837_s13 = sand.u32 1, %s19706_s23  }
  0x1c   : > { %s22523_s12 = scalar_select %p19831_p13, 1, 0 }
  0x1d   : > { %s245_s14 = sand.u32 1, %s19710_s24   ;;  %s15706_s15 = sshll.u32 %s19837_s13, 13 }
  0x1e   : > { %p19845_p1 = pnand %p17920_p0, %p19806_p7  ;;  %s226_s17 = scalar_lea.vmem [#allocation3], %s15706_s15 }
  0x1f   : > { %s235_s18 = sshll.u32 %s226_s17, 4  ;;  %s15709_s21 = sshll.u32 %s19837_s13, 4  ;;  %s19849_s18 = int_to_ptr.vmem [resolvable:$true] %s235_s18 }
  0x20   : > { %s17783_s27 = sshll.u32 %s19797_s28, 8  ;;  %s22525_s2 = sld [smem:[#allocation17_spill]] }
  0x21   : > { %s249_s6 = scalar_lea.vmem [#allocation5], %s15709_s21  ;;  %p19862_p2 = pnand %p17920_p0, %p19827_p12 }
  0x22   : > { %s259_s9 = sshll.u32 %s249_s6, 4  ;;  %s19869_s17 = scalar_lea.sflag [#allocation6], %s245_s14  ;;  %s19866_s9 = int_to_ptr.vmem [resolvable:$true] %s259_s9 }
  0x23   : > { %p19522_p5 = pneg %p19845_p1 }
  0x26   : > { %s19856_s10 = scalar_lea.hbm %s22525_s2, %s17783_s27  ;;  %s19525_s27 = scalar_lea.hbm %s22525_s2, 512 }
  0x27   : > { %s19520_s29 = scalar_lea.hbm %s19856_s10, 256  ;;  %p19526_p9 = scmp.lt.u32.totalorder %s19856_s10, %s22525_s2 }
  0x28   : > { %p19521_p4 = scmp.ne.s32.totalorder %s19856_s10, %s19520_s29  ;;  %p19527_p10 = scmp.lt.u32.totalorder %s19525_s27, %s19520_s29 }
  0x29   : > { %p19529_p12 = scmp.lt.u32.totalorder %s19520_s29, %s19856_s10 }
  0x2a   : > { %p19523_p6 = pnand %p19522_p5, %p19521_p4  ;;  %p19528_p11 = por %p19527_p10, %p19526_p9 }
  0x2c   : > { %p19524_p7 = pneg %p19523_p6  ;;  %p19530_p0 = por %p19529_p12, %p19528_p11 }
  0x2e   : > { %p19531_p3 = pnand %p19530_p0, %p19524_p7 }
  0x30   : > { %19534 = shalt.err (!%p19531_p3)
}
  0x31   : > { %s19535_s14 = scalar_lea.vmem %s19866_s9, 256  ;;  %s19712_s21 = smov [#allocation5]  }
  0x32   : > { %p19536_p4 = scmp.ne.s32.totalorder %s19866_s9, %s19535_s14  ;;  %s19540_s11 = sshll.u32 %s19712_s21, 4  ;;  %s19541_s11 = int_to_ptr.vmem [resolvable:$false] %s19540_s11 }
  0x33   : > { %s19542_s30 = scalar_lea.vmem %s19541_s11, 512  ;;  %p19543_p8 = scmp.lt.s32.totalorder %s19866_s9, %s19541_s11 }
  0x34   : > { %p19538_p6 = pnand %p19536_p4, %p19522_p5  ;;  %p19544_p9 = scmp.lt.s32.totalorder %s19542_s30, %s19535_s14 }
  0x36   : > { %p19539_p13 = pneg %p19538_p6  ;;  %p19545_p10 = por %p19544_p9, %p19543_p8 }
  0x38   : > { %p19546_p11 = pnand %p19545_p10, %p19539_p13 }
  0x3a   : > { %19549 = shalt.err (!%p19546_p11)
}
  0x3b   : > { %17913 = dma.hbm_to_vmem [thread:$0]  (!%p19845_p1), %s19856_s10, 256, %s19866_s9, %s19869_s17  }
  0x3c   : > { %p310_p3 = scmp.lt.s32.totalorder %s19710_s24, 5  ;;  %s17782_s29 = sshll.u32 %s19797_s28, 10 }
  0x3d   : > { %p22527_p7 = scmp.ge.s32.totalorder %s19710_s24, 1  ;;  %s22529_s1 = sld [smem:[#allocation16_spill]] }
  0x3e   : > { %s223_s11 = scalar_lea.sflag [#allocation4], %s19837_s13 }
  0x3f   : > { %p19901_p12 = pnand %p22527_p7, %p310_p3 }
  0x41   : > { %s22528_s27 = scalar_select %p19901_p12, 1, 0 }
  0x43   : > { %s19908_s21 = scalar_lea.hbm %s22529_s1, %s17782_s29  ;;  %s19555_s10 = scalar_lea.hbm %s22529_s1, 262144 }
  0x44   : > { %s19550_s30 = scalar_lea.hbm %s19908_s21, 131072  ;;  %p19556_p4 = scmp.lt.u32.totalorder %s19908_s21, %s22529_s1 }
  0x45   : > { %p19551_p8 = scmp.ne.s32.totalorder %s19908_s21, %s19550_s30  ;;  %p19557_p6 = scmp.lt.u32.totalorder %s19555_s10, %s19550_s30 }
  0x46   : > { %p19559_p10 = scmp.lt.u32.totalorder %s19550_s30, %s19908_s21 }
  0x47   : > { %p19553_p13 = pnand %p19551_p8, %p19522_p5  ;;  %p19558_p9 = por %p19557_p6, %p19556_p4 }
  0x49   : > { %p19554_p0 = pneg %p19553_p13  ;;  %p19560_p11 = por %p19559_p10, %p19558_p9 }
  0x4b   : > { %p19561_p3 = pnand %p19560_p11, %p19554_p0 }
  0x4d   : > { %19564 = shalt.err (!%p19561_p3)
}
  0x4e   : > { %s19565_s29 = scalar_lea.vmem %s19849_s18, 131072  ;;  %s19713_s6 = smov [#allocation3]  }
  0x4f   : > { %p19566_p7 = scmp.ne.s32.totalorder %s19849_s18, %s19565_s29  ;;  %s19570_s14 = sshll.u32 %s19713_s6, 4  ;;  %s19571_s14 = int_to_ptr.vmem [resolvable:$false] %s19570_s14 }
  0x50   : > { %s19572_s2 = scalar_lea.vmem %s19571_s14, 262144  ;;  %p19573_p12 = scmp.lt.s32.totalorder %s19849_s18, %s19571_s14 }
  0x51   : > { %p19568_p8 = pnand %p19566_p7, %p19522_p5  ;;  %p19574_p4 = scmp.lt.s32.totalorder %s19572_s2, %s19565_s29 }
  0x53   : > { %p19569_p13 = pneg %p19568_p8  ;;  %p19575_p6 = por %p19574_p4, %p19573_p12 }
  0x55   : > { %p19576_p9 = pnand %p19575_p6, %p19569_p13 }
  0x57   : > { %19579 = shalt.err (!%p19576_p9)
}
  0x58   : > { %s19714_s23 = smov 2048   ;;  %s19715_s30 = smov 1024  }
  0x59   : > { %s19716_s28 = smov 64   ;;  %s15698_s9 = sadd.s32 4294967294, %s19710_s24 }
  0x5a   : > { %17910 = dma.hbm_to_vmem [thread:$0]  (!%p19845_p1), %s19908_s21, 131072, %s19849_s18, %s223_s11, %s19714_s23, %s19715_s30, %s19716_s28  }
  0x5b   : > { %s19938_s10 = sand.u32 1, %s19694_s20   ;;  %p110_p5 = scmp.gt.s32.totalorder %s15698_s9, 0 }
  0x5c   : > { %s15712_s29 = sshll.u32 %s19938_s10, 13  ;;  %s22530_s24 = sadd.s32 1, %s19694_s20 }
  0x5d   : > { %s22545_s9 = smov (!%p110_p5, %s15698_s9), 0  ;;  %s270_s6 = scalar_lea.vmem [#allocation7], %s15712_s29 }
  0x5e   : > { %s280_s14 = sshll.u32 %s270_s6, 4  ;;  %s115_s2 = ssub.s32 %s22545_s9, %s22543_s8  ;;  %s19951_s14 = int_to_ptr.vmem [resolvable:$true] %s280_s14 }
  0x5f   : > { %s17784_s1 = sshll.u32 %s22545_s9, 8  ;;  %p116_p12 = scmp.eq.s32.totalorder %s115_s2, 0 }
  0x60   : > { %s19949_s18 = scalar_lea.hbm %s22510_s3, %s17784_s1  ;;  %p19582_p0 = pneg %p19862_p2 }
  0x61   : > { %s19956_s21 = scalar_select %p116_p12, %s19694_s20, %s22530_s24  }
  0x62   : > { %s19580_s11 = scalar_lea.hbm %s19949_s18, 131072  ;;  %s19585_s23 = scalar_lea.hbm %s22510_s3, 262144 }
  0x63   : > { %p19581_p1 = scmp.ne.s32.totalorder %s19949_s18, %s19580_s11  ;;  %p19586_p3 = scmp.lt.u32.totalorder %s19949_s18, %s22510_s3 }
  0x64   : > { %p19587_p7 = scmp.lt.u32.totalorder %s19585_s23, %s19580_s11  ;;  %p19589_p13 = scmp.lt.u32.totalorder %s19580_s11, %s19949_s18 }
  0x65   : > { %p19583_p10 = pnand %p19582_p0, %p19581_p1 }
  0x66   : > { %p19588_p8 = por %p19587_p7, %p19586_p3 }
  0x67   : > { %p19584_p11 = pneg %p19583_p10 }
  0x68   : > { %p19590_p4 = por %p19589_p13, %p19588_p8 }
  0x6a   : > { %p19591_p6 = pnand %p19590_p4, %p19584_p11 }
  0x6c   : > { %19594 = shalt.err (!%p19591_p6)
}
  0x6d   : > { %s19595_s29 = scalar_lea.vmem %s19951_s14, 131072  ;;  %s19717_s6 = smov [#allocation7]  }
  0x6e   : > { %p19596_p9 = scmp.ne.s32.totalorder %s19951_s14, %s19595_s29  ;;  %s19600_s2 = sshll.u32 %s19717_s6, 4  ;;  %s19601_s2 = int_to_ptr.vmem [resolvable:$false] %s19600_s2 }
  0x6f   : > { %s19602_s16 = scalar_lea.vmem %s19601_s2, 262144  ;;  %p19603_p1 = scmp.lt.s32.totalorder %s19951_s14, %s19601_s2 }
  0x70   : > { %p19598_p5 = pnand %p19596_p9, %p19582_p0  ;;  %p19604_p10 = scmp.lt.s32.totalorder %s19602_s16, %s19595_s29 }
  0x72   : > { %p19599_p12 = pneg %p19598_p5  ;;  %p19605_p3 = por %p19604_p10, %p19603_p1 }
  0x74   : > { %p19606_p7 = pnand %p19605_p3, %p19599_p12 }
  0x76   : > { %19609 = shalt.err (!%p19606_p7)
}
  0x77   : > { %s19718_s13 = smov 512   ;;  %s19719_s24 = smov 256  }
  0x78   : > { %s19720_s11 = smov 16   ;;  %s15716_s8 = sshll.u32 %s19938_s10, 2 }
  0x79   : > { %17916 = dma.hbm_to_vmem [thread:$0]  (!%p19862_p2), %s19949_s18, 131072, %s19951_s14, %s19869_s17, %s19718_s13, %s19719_s24, %s19720_s11  }
  0x7a   : > { %s17785_s1 = sshll.u32 %s22545_s9, 6  ;;  %s294_s29 = scalar_lea.vmem [#allocation8], %s15716_s8 }
  0x7b   : > { %s19989_s28 = scalar_lea.hbm %s22511_s4, %s17785_s1  ;;  %s305_s6 = sshll.u32 %s294_s29, 4  ;;  %s306_s6 = int_to_ptr.vmem [resolvable:$true] %s305_s6 }
  0x7c   : > { %s291_s2 = scalar_lea.sflag [#allocation9], %s19938_s10  ;;  %s19610_s16 = scalar_lea.hbm %s19989_s28, 64 }
  0x7d   : > { %p19611_p11 = scmp.ne.s32.totalorder %s19989_s28, %s19610_s16  ;;  %s19615_s14 = scalar_lea.hbm %s22511_s4, 128 }
  0x7e   : > { %p19616_p4 = scmp.lt.u32.totalorder %s19989_s28, %s22511_s4  ;;  %p19617_p6 = scmp.lt.u32.totalorder %s19615_s14, %s19610_s16 }
  0x7f   : > { %p19613_p8 = pnand %p19611_p11, %p19582_p0  ;;  %p19619_p5 = scmp.lt.u32.totalorder %s19610_s16, %s19989_s28 }
  0x80   : > { %p19618_p9 = por %p19617_p6, %p19616_p4 }
  0x81   : > { %p19614_p13 = pneg %p19613_p8 }
  0x82   : > { %p19620_p12 = por %p19619_p5, %p19618_p9 }
  0x84   : > { %p19621_p1 = pnand %p19620_p12, %p19614_p13 }
  0x86   : > { %19624 = shalt.err (!%p19621_p1)
}
  0x87   : > { %s19625_s10 = scalar_lea.vmem %s306_s6, 64  ;;  %s19721_s24 = smov [#allocation8]  }
  0x88   : > { %p19626_p10 = scmp.ne.s32.totalorder %s306_s6, %s19625_s10  ;;  %s19630_s11 = sshll.u32 %s19721_s24, 4  ;;  %s19631_s11 = int_to_ptr.vmem [resolvable:$false] %s19630_s11 }
  0x89   : > { %s19632_s8 = scalar_lea.vmem %s19631_s11, 128  ;;  %p19633_p11 = scmp.lt.s32.totalorder %s306_s6, %s19631_s11 }
  0x8a   : > { %p19628_p3 = pnand %p19626_p10, %p19582_p0  ;;  %p19634_p8 = scmp.lt.s32.totalorder %s19632_s8, %s19625_s10 }
  0x8c   : > { %p19629_p7 = pneg %p19628_p3  ;;  %p19635_p4 = por %p19634_p8, %p19633_p11 }
  0x8e   : > { %p19636_p6 = pnand %p19635_p4, %p19629_p7 }
  0x90   : > { %19639 = shalt.err (!%p19636_p6)
}
  0x91   : > { %17919 = dma.hbm_to_vmem [thread:$0]  (!%p19862_p2), %s19989_s28, 64, %s306_s6, %s291_s2  }
  0x92   : > { %p22531_p13 = scmp.ne.s32.totalorder %s22528_s27, 0 }
  0x93   : > { %s316_s1 = sand.u32 (!%p22531_p13), 1, %s19702_s22   ;;  %p22532_p0 = scmp.ne.s32.totalorder (!%p22531_p13), %s22520_s7, 0 }
  0x94   : > { %314 = sbr.rel (%p22531_p13) target bundleno = 2658 (0xa62), region = 40  ;;  %s15721_s23 = sshll.u32 (!%p22531_p13), %s316_s1, 13 }
  0x95   : > { %s317_s30 = scalar_lea.sflag (!%p22531_p13), [#allocation4], %s316_s1  ;;  %s20014_s29 = scalar_lea.vmem (!%p22531_p13), [#allocation3], %s15721_s23 }
  0x9b   : > { %19669 = dma.done.wait (%p22532_p0), %s317_s30, 131072  }
  0x9c   : > { %19671 = vsyncadd (%p22532_p0), %s317_s30, 4294836224  ;;  %s325_s15 = sand.u32 1, %s19786_s25   ;;  %s15722_s16 = sshll.u32 %s316_s1, 4 }
  0x9d   : > { %s326_s28 = scalar_lea.sflag [#allocation6], %s325_s15  ;;  %s20021_s6 = scalar_lea.vmem [#allocation5], %s15722_s16 }
  0x9e   : > { %19673 = dma.done.wait (%p22532_p0), %s326_s28, 256  }
  0x9f   : > { %19675 = vsyncadd (%p22532_p0), %s326_s28, 4294967040  ;;  %s336_s27 = sand.u32 1, %s19690_s19   ;;  %p22533_p2 = scmp.ne.s32.totalorder %s22523_s12, 0 }
  0xa0   : > { %s15723_s2 = sshll.u32 %s336_s27, 13 }
  0xa1   : > { %s20028_s17 = scalar_lea.vmem [#allocation7], %s15723_s2 }
  0xa2   : > { %19677 = dma.done.wait (%p22533_p2), %s326_s28, 131072  }
  0xa3   : > { %19679 = vsyncadd (%p22533_p2), %s326_s28, 4294836224  ;;  %s15724_s9 = sshll.u32 %s336_s27, 2  ;;  %s344_s14 = scalar_lea.sflag [#allocation9], %s336_s27 }
  0xa4   : > { %s20034_s18 = scalar_lea.vmem [#allocation8], %s15724_s9 }
  0xa5   : > { %19681 = dma.done.wait (%p22533_p2), %s344_s14, 64  }
  0xa6   : > { %19683 = vsyncadd (%p22533_p2), %s344_s14, 4294967232  ;;  %s15725_s7 = sadd.s32 4294967294, %s19786_s25  ;;  %p15728_p12 = scmp.ge.s32.totalorder %s19786_s25, 2 }
  0xa7   : > { %p407_p9 = scmp.gt.s32.totalorder %s15725_s7, 0  ;;  %v438_v0 = vld [vmem:[%s20014_s29] sm:$0xff] (!%p15728_p12)  ;;  %v439_v2 = vld [vmem:[%s20014_s29 + $0x8] sm:$0xff] (!%p15728_p12)  ;;  %s17786_s12 = sshll.u32 (!%p15728_p12), %s19786_s25, 7 }
  0xa8   : > { %v446_v1 = vld [vmem:[%s20014_s29 + $0x40] sm:$0xff] (!%p15728_p12)  ;;  %v447_v4 = vld [vmem:[%s20014_s29 + $0x48] sm:$0xff] (!%p15728_p12)  ;;  %s20613_s1 = scalar_lea.vmem (!%p15728_p12), [#allocation2], %s17786_s12 }
  0xa9   : > { %s22547_s7 = smov (!%p407_p9, %s15725_s7), 0  ;;  %421 = sbr.rel (%p15728_p12) target bundleno = 1412 (0x584), region = 60 }
  0xaa   : > { %s15726_s13 = sshll.u32 %s22547_s7, 2  ;;  %v15730_v3 = vcombine.high (!%p15728_p12), %v438_v0, %v446_v1  ;;  %v15729_v5 = vcombine.low (!%p15728_p12), %v438_v0, %v446_v1  ;;  %v454_v6 = vld [vmem:[%s20014_s29 + $0x80] sm:$0xff] (!%p15728_p12)  ;;  %v15732_v8 = vcombine.high (!%p15728_p12), %v439_v2, %v447_v4  ;;  %v15731_v9 = vcombine.low (!%p15728_p12), %v439_v2, %v447_v4  ;;  %v455_v11 = vld [vmem:[%s20014_s29 + $0x88] sm:$0xff] (!%p15728_p12) }
  0xab   : > { %p410_p5 = scmp.lt.s32.totalorder %s15726_s13, 7  ;;  %v462_v7 = vld [vmem:[%s20014_s29 + $0xc0] sm:$0xff] (!%p15728_p12)  ;;  %v463_v12 = vld [vmem:[%s20014_s29 + $0xc8] sm:$0xff] (!%p15728_p12) }
  0xac   : > { %v15746_v10 = vcombine.high (!%p15728_p12), %v454_v6, %v462_v7  ;;  %v470_v13 = vld [vmem:[%s20014_s29 + $0x100] sm:$0xff] (!%p15728_p12)  ;;  %6666 = vmatprep.subr.bf16.mxu0 (!%p15728_p12), %v15730_v3  ;;  %v15748_v14 = vcombine.high (!%p15728_p12), %v455_v11, %v463_v12  ;;  %v471_v16 = vld [vmem:[%s20014_s29 + $0x108] sm:$0xff] (!%p15728_p12)  ;;  %6830 = vmatprep.subr.bf16.mxu1 (!%p15728_p12), %v15732_v8  ;;  %v15745_v18 = vcombine.low (!%p15728_p12), %v454_v6, %v462_v7 }
  0xad   : > { %s22549_s13 = smov (!%p410_p5, %s15726_s13), 7  ;;  %v478_v15 = vld [vmem:[%s20014_s29 + $0x140] sm:$0xff] (!%p15728_p12)  ;;  %v479_v17 = vld [vmem:[%s20014_s29 + $0x148] sm:$0xff] (!%p15728_p12)  ;;  %6667 = vmatpush1.bf16.msra.mxu0 (!%p15728_p12), %v15729_v5  ;;  %6831 = vmatpush1.bf16.msra.mxu1 (!%p15728_p12), %v15731_v9  ;;  %v15747_v19 = vcombine.low (!%p15728_p12), %v455_v11, %v463_v12 }
  0xae   : > { %s15727_s10 = sshll.u32 %s22549_s13, 3  ;;  %6668 = vmatprep.subr.bf16.mxu0 (!%p15728_p12), %v15746_v10  ;;  %v15762_v20 = vcombine.high (!%p15728_p12), %v470_v13, %v478_v15  ;;  %6832 = vmatprep.subr.bf16.mxu1 (!%p15728_p12), %v15748_v14  ;;  %v15764_v21 = vcombine.high (!%p15728_p12), %v471_v16, %v479_v17  ;;  %v486_v22 = vld [vmem:[%s20014_s29 + $0x180] sm:$0xff] (!%p15728_p12)  ;;  %v487_v24 = vld [vmem:[%s20014_s29 + $0x188] sm:$0xff] (!%p15728_p12)  ;;  %v15761_v26 = vcombine.low (!%p15728_p12), %v470_v13, %v478_v15 }
  0xaf   : > { %s20044_s8 = scalar_lea.vmem %s22512_s5, %s15727_s10  ;;  %v494_v23 = vld [vmem:[%s20014_s29 + $0x1c0] sm:$0xff] (!%p15728_p12)  ;;  %v495_v25 = vld [vmem:[%s20014_s29 + $0x1c8] sm:$0xff] (!%p15728_p12)  ;;  %v15763_v27 = vcombine.low (!%p15728_p12), %v471_v16, %v479_v17 }
  0xb0   : > { %v15778_v28 = vcombine.high %v486_v22, %v494_v23  ;;  %v15780_v29 = vcombine.high %v487_v24, %v495_v25  ;;  %v502_v30 = vld [vmem:[%s20014_s29 + $0x200] sm:$0xff]  ;;  %v503_v32 = vld [vmem:[%s20014_s29 + $0x208] sm:$0xff]  ;;  %v15777_v34 = vcombine.low %v486_v22, %v494_v23  ;;  %v15779_v35 = vcombine.low %v487_v24, %v495_v25 }
  0xb1   : > { %6669 = vmatpush1.bf16.msra.mxu0 %v15745_v18  ;;  %6833 = vmatpush1.bf16.msra.mxu1 %v15747_v19  ;;  %v510_v31 = vld [vmem:[%s20014_s29 + $0x240] sm:$0xff]  ;;  %v511_v33 = vld [vmem:[%s20014_s29 + $0x248] sm:$0xff] }
  0xb2   : > { %6670 = vmatprep.subr.bf16.mxu0 %v15762_v20  ;;  %6834 = vmatprep.subr.bf16.mxu1 %v15764_v21  ;;  %v15794_v36 = vcombine.high %v502_v30, %v510_v31  ;;  %v15796_v37 = vcombine.high %v503_v32, %v511_v33  ;;  %v518_v38 = vld [vmem:[%s20014_s29 + $0x280] sm:$0xff]  ;;  %v519_v40 = vld [vmem:[%s20014_s29 + $0x288] sm:$0xff]  ;;  %v15793_v42 = vcombine.low %v502_v30, %v510_v31 }
  0xb3   : > { %v526_v39 = vld [vmem:[%s20014_s29 + $0x2c0] sm:$0xff]  ;;  %v527_v41 = vld [vmem:[%s20014_s29 + $0x2c8] sm:$0xff]  ;;  %v15795_v43 = vcombine.low %v503_v32, %v511_v33 }
  0xb4   : > { %v15810_v44 = vcombine.high %v518_v38, %v526_v39  ;;  %v15812_v45 = vcombine.high %v519_v40, %v527_v41  ;;  %v534_v46 = vld [vmem:[%s20014_s29 + $0x300] sm:$0xff]  ;;  %v535_v48 = vld [vmem:[%s20014_s29 + $0x308] sm:$0xff]  ;;  %v15809_v50 = vcombine.low %v518_v38, %v526_v39  ;;  %v15811_v51 = vcombine.low %v519_v40, %v527_v41 }
  0xb5   : > { %6671 = vmatpush1.bf16.msra.mxu0 %v15761_v26  ;;  %6835 = vmatpush1.bf16.msra.mxu1 %v15763_v27  ;;  %v542_v47 = vld [vmem:[%s20014_s29 + $0x340] sm:$0xff]  ;;  %v543_v49 = vld [vmem:[%s20014_s29 + $0x348] sm:$0xff] }
  0xb6   : > { %6672 = vmatprep.subr.bf16.mxu0 %v15778_v28  ;;  %6836 = vmatprep.subr.bf16.mxu1 %v15780_v29  ;;  %v15826_v52 = vcombine.high %v534_v46, %v542_v47  ;;  %v423_v53 = vld [vmem:[%s22507_s0 + $0x8] sm:$0xff]  ;;  %v15828_v54 = vcombine.high %v535_v48, %v543_v49  ;;  %v550_v55 = vld [vmem:[%s20014_s29 + $0x380] sm:$0xff]  ;;  %v15825_v60 = vcombine.low %v534_v46, %v542_v47 }
  0xb7   : > { %v558_v56 = vld [vmem:[%s20014_s29 + $0x3c0] sm:$0xff]  ;;  %v20080_v57 = vpack.c.bf16 %v423_v53, %v423_v53  ;;  %v551_v58 = vld [vmem:[%s20014_s29 + $0x388] sm:$0xff]  ;;  %v15827_v61 = vcombine.low %v535_v48, %v543_v49 }
  0xb8   : > { %v559_v59 = vld [vmem:[%s20014_s29 + $0x3c8] sm:$0xff]  ;;  %v15842_v62 = vcombine.high %v550_v55, %v558_v56  ;;  %v566_v0 = vld [vmem:[%s20014_s29 + $0x400] sm:$0xff]  ;;  %v15841_v4 = vcombine.low %v550_v55, %v558_v56 }
  0xb9   : > { %6673 = vmatpush1.bf16.msra.mxu0 %v15777_v34  ;;  %6837 = vmatpush1.bf16.msra.mxu1 %v15779_v35  ;;  %v15844_v63 = vcombine.high %v551_v58, %v559_v59  ;;  %v574_v1 = vld [vmem:[%s20014_s29 + $0x440] sm:$0xff]  ;;  %v567_v2 = vld [vmem:[%s20014_s29 + $0x408] sm:$0xff]  ;;  %v15843_v5 = vcombine.low %v551_v58, %v559_v59 }
  0xba   : > { %6674 = vmatprep.subr.bf16.mxu0 %v15794_v36  ;;  %6838 = vmatprep.subr.bf16.mxu1 %v15796_v37  ;;  %v575_v3 = vld [vmem:[%s20014_s29 + $0x448] sm:$0xff]  ;;  %v15858_v6 = vcombine.high %v566_v0, %v574_v1  ;;  %v582_v8 = vld [vmem:[%s20014_s29 + $0x480] sm:$0xff]  ;;  %v15857_v12 = vcombine.low %v566_v0, %v574_v1 }
  0xbb   : > { %6698 = vmatprep.mubr.bf16.mxu0 %v20080_v57  ;;  %6862 = vmatprep.mubr.bf16.mxu1 %v20080_v57  ;;  %v15860_v7 = vcombine.high %v567_v2, %v575_v3  ;;  %v590_v9 = vld [vmem:[%s20014_s29 + $0x4c0] sm:$0xff]  ;;  %v583_v10 = vld [vmem:[%s20014_s29 + $0x488] sm:$0xff]  ;;  %v15859_v13 = vcombine.low %v567_v2, %v575_v3 }
  0xbc   : > { %v591_v11 = vld [vmem:[%s20014_s29 + $0x4c8] sm:$0xff]  ;;  %v15874_v14 = vcombine.high %v582_v8, %v590_v9  ;;  %v598_v16 = vld [vmem:[%s20014_s29 + $0x500] sm:$0xff]  ;;  %v15873_v20 = vcombine.low %v582_v8, %v590_v9 }
  0xbd   : > { %6675 = vmatpush1.bf16.msra.mxu0 %v15793_v42  ;;  %6839 = vmatpush1.bf16.msra.mxu1 %v15795_v43  ;;  %v15876_v15 = vcombine.high %v583_v10, %v591_v11  ;;  %v606_v17 = vld [vmem:[%s20014_s29 + $0x540] sm:$0xff]  ;;  %v599_v18 = vld [vmem:[%s20014_s29 + $0x508] sm:$0xff]  ;;  %v15875_v21 = vcombine.low %v583_v10, %v591_v11 }
  0xbe   : > { %6676 = vmatprep.subr.bf16.mxu0 %v15810_v44  ;;  %6840 = vmatprep.subr.bf16.mxu1 %v15812_v45  ;;  %v607_v19 = vld [vmem:[%s20014_s29 + $0x548] sm:$0xff]  ;;  %v15890_v22 = vcombine.high %v598_v16, %v606_v17  ;;  %v614_v24 = vld [vmem:[%s20014_s29 + $0x580] sm:$0xff]  ;;  %v15889_v28 = vcombine.low %v598_v16, %v606_v17 }
  0xbf   : > { %v15892_v23 = vcombine.high %v599_v18, %v607_v19  ;;  %v622_v25 = vld [vmem:[%s20014_s29 + $0x5c0] sm:$0xff]  ;;  %v615_v26 = vld [vmem:[%s20014_s29 + $0x588] sm:$0xff]  ;;  %v15891_v29 = vcombine.low %v599_v18, %v607_v19 }
  0xc0   : > { %v623_v27 = vld [vmem:[%s20014_s29 + $0x5c8] sm:$0xff]  ;;  %v15906_v30 = vcombine.high %v614_v24, %v622_v25  ;;  %v630_v32 = vld [vmem:[%s20014_s29 + $0x600] sm:$0xff]  ;;  %v15905_v36 = vcombine.low %v614_v24, %v622_v25 }
  0xc1   : > { %6677 = vmatpush1.bf16.msra.mxu0 %v15809_v50  ;;  %6841 = vmatpush1.bf16.msra.mxu1 %v15811_v51  ;;  %v15908_v31 = vcombine.high %v615_v26, %v623_v27  ;;  %v638_v33 = vld [vmem:[%s20014_s29 + $0x640] sm:$0xff]  ;;  %v631_v34 = vld [vmem:[%s20014_s29 + $0x608] sm:$0xff]  ;;  %v15907_v37 = vcombine.low %v615_v26, %v623_v27 }
  0xc2   : > { %6678 = vmatprep.subr.bf16.mxu0 %v15826_v52  ;;  %6842 = vmatprep.subr.bf16.mxu1 %v15828_v54  ;;  %v639_v35 = vld [vmem:[%s20014_s29 + $0x648] sm:$0xff]  ;;  %v15922_v38 = vcombine.high %v630_v32, %v638_v33  ;;  %v646_v40 = vld [vmem:[%s20014_s29 + $0x680] sm:$0xff]  ;;  %v15921_v44 = vcombine.low %v630_v32, %v638_v33 }
  0xc3   : > { %v15924_v39 = vcombine.high %v631_v34, %v639_v35  ;;  %v654_v41 = vld [vmem:[%s20014_s29 + $0x6c0] sm:$0xff]  ;;  %v647_v42 = vld [vmem:[%s20014_s29 + $0x688] sm:$0xff]  ;;  %v15923_v45 = vcombine.low %v631_v34, %v639_v35 }
  0xc4   : > { %v655_v43 = vld [vmem:[%s20014_s29 + $0x6c8] sm:$0xff]  ;;  %v15938_v46 = vcombine.high %v646_v40, %v654_v41  ;;  %v662_v48 = vld [vmem:[%s20014_s29 + $0x700] sm:$0xff]  ;;  %v15937_v52 = vcombine.low %v646_v40, %v654_v41 }
  0xc5   : > { %6679 = vmatpush1.bf16.msra.mxu0 %v15825_v60  ;;  %6843 = vmatpush1.bf16.msra.mxu1 %v15827_v61  ;;  %v15940_v47 = vcombine.high %v647_v42, %v655_v43  ;;  %v670_v49 = vld [vmem:[%s20014_s29 + $0x740] sm:$0xff]  ;;  %v663_v50 = vld [vmem:[%s20014_s29 + $0x708] sm:$0xff]  ;;  %v15939_v53 = vcombine.low %v647_v42, %v655_v43 }
  0xc6   : > { %6680 = vmatprep.subr.bf16.mxu0 %v15842_v62  ;;  %6844 = vmatprep.subr.bf16.mxu1 %v15844_v63  ;;  %v671_v51 = vld [vmem:[%s20014_s29 + $0x748] sm:$0xff]  ;;  %v15954_v54 = vcombine.high %v662_v48, %v670_v49  ;;  %v678_v56 = vld [vmem:[%s20014_s29 + $0x780] sm:$0xff]  ;;  %v15953_v61 = vcombine.low %v662_v48, %v670_v49 }
  0xc7   : > { %v15956_v55 = vcombine.high %v663_v50, %v671_v51  ;;  %v686_v58 = vld [vmem:[%s20014_s29 + $0x7c0] sm:$0xff]  ;;  %v679_v59 = vld [vmem:[%s20014_s29 + $0x788] sm:$0xff]  ;;  %v15955_v62 = vcombine.low %v663_v50, %v671_v51 }
  0xc8   : > { %v687_v60 = vld [vmem:[%s20014_s29 + $0x7c8] sm:$0xff]  ;;  %v15970_v63 = vcombine.high %v678_v56, %v686_v58  ;;  %v694_v1 = vld [vmem:[%s20014_s29 + $0x800] sm:$0xff] }
  0xc9   : > { %6681 = vmatpush1.bf16.msra.mxu0 %v15841_v4  ;;  %6845 = vmatpush1.bf16.msra.mxu1 %v15843_v5  ;;  %v15972_v0 = vcombine.high %v679_v59, %v687_v60  ;;  %v702_v2 = vld [vmem:[%s20014_s29 + $0x840] sm:$0xff]  ;;  %v695_v3 = vld [vmem:[%s20014_s29 + $0x808] sm:$0xff]  ;;  %v15969_v5 = vcombine.low %v678_v56, %v686_v58 }
  0xca   : > { %6682 = vmatprep.subr.bf16.mxu0 %v15858_v6  ;;  %6846 = vmatprep.subr.bf16.mxu1 %v15860_v7  ;;  %v703_v4 = vld [vmem:[%s20014_s29 + $0x848] sm:$0xff]  ;;  %v422_v6 = vld [vmem:[%s22507_s0] sm:$0xff]  ;;  %v15971_v7 = vcombine.low %v679_v59, %v687_v60  ;;  %v15986_v8 = vcombine.high %v694_v1, %v702_v2  ;;  %v15985_v16 = vcombine.low %v694_v1, %v702_v2 }
  0xcb   : > { %v15988_v9 = vcombine.high %v695_v3, %v703_v4  ;;  %v710_v10 = vld [vmem:[%s20014_s29 + $0x880] sm:$0xff]  ;;  %v15987_v17 = vcombine.low %v695_v3, %v703_v4  ;;  %v735_v24 = vld [vmem:[%s20014_s29 + $0x948] sm:$0xff] }
  0xcc   : > { %v718_v11 = vld [vmem:[%s20014_s29 + $0x8c0] sm:$0xff]  ;;  %v751_v32 = vld [vmem:[%s20014_s29 + $0x9c8] sm:$0xff] }
  0xcd   : > { %6683 = vmatpush1.bf16.msra.mxu0 %v15857_v12  ;;  %6847 = vmatpush1.bf16.msra.mxu1 %v15859_v13  ;;  %v20127_v12 = vpack.c.bf16 %v422_v6, %v422_v6  ;;  %v711_v13 = vld [vmem:[%s20014_s29 + $0x888] sm:$0xff]  ;;  %v16002_v18 = vcombine.high %v710_v10, %v718_v11  ;;  %v16001_v25 = vcombine.low %v710_v10, %v718_v11  ;;  %v822_v6 = vld [vmem:[%s20014_s29 + $0xc00] sm:$0xff] }
  0xce   : > { %6684 = vmatprep.subr.bf16.mxu0 %v15874_v14  ;;  %6848 = vmatprep.subr.bf16.mxu1 %v15876_v15  ;;  %v719_v14 = vld [vmem:[%s20014_s29 + $0x8c8] sm:$0xff]  ;;  %v425_v15 = vld [vmem:[%s22507_s0 + $0x18] sm:$0xff] }
  0xcf   : > { %v16004_v19 = vcombine.high %v711_v13, %v719_v14  ;;  %v16003_v26 = vcombine.low %v711_v13, %v719_v14  ;;  %v767_v40 = vld [vmem:[%s20014_s29 + $0xa48] sm:$0xff] }
  0xd0   : > { %v783_v48 = vld [vmem:[%s20014_s29 + $0xac8] sm:$0xff] }
  0xd1   : > { %6685 = vmatpush1.bf16.msra.mxu0 %v15873_v20  ;;  %6849 = vmatpush1.bf16.msra.mxu1 %v15875_v21  ;;  %v726_v20 = vld [vmem:[%s20014_s29 + $0x900] sm:$0xff]  ;;  %v799_v56 = vld [vmem:[%s20014_s29 + $0xb48] sm:$0xff] }
  0xd2   : > { %6686 = vmatprep.subr.bf16.mxu0 %v15890_v22  ;;  %6850 = vmatprep.subr.bf16.mxu1 %v15892_v23  ;;  %v734_v21 = vld [vmem:[%s20014_s29 + $0x940] sm:$0xff]  ;;  %v20136_v22 = vpack.c.bf16 %v425_v15, %v425_v15  ;;  %v727_v23 = vld [vmem:[%s20014_s29 + $0x908] sm:$0xff] }
  0xd3   : > { %v16018_v27 = vcombine.high %v726_v20, %v734_v21  ;;  %v16017_v33 = vcombine.low %v726_v20, %v734_v21  ;;  %v16019_v34 = vcombine.low %v727_v23, %v735_v24  ;;  %v815_v1 = vld [vmem:[%s20014_s29 + $0xbc8] sm:$0xff]  ;;  %v838_v15 = vld [vmem:[%s20014_s29 + $0xc80] sm:$0xff] }
  0xd5   : > { %6687 = vmatpush1.bf16.msra.mxu0 %v15889_v28  ;;  %6851 = vmatpush1.bf16.msra.mxu1 %v15891_v29  ;;  %v16020_v28 = vcombine.high %v727_v23, %v735_v24  ;;  %v742_v29 = vld [vmem:[%s20014_s29 + $0x980] sm:$0xff] }
  0xd6   : > { %6688 = vmatprep.subr.bf16.mxu0 %v15906_v30  ;;  %6852 = vmatprep.subr.bf16.mxu1 %v15908_v31  ;;  %v750_v30 = vld [vmem:[%s20014_s29 + $0x9c0] sm:$0xff]  ;;  %v743_v31 = vld [vmem:[%s20014_s29 + $0x988] sm:$0xff] }
  0xd7   : > { %v16034_v35 = vcombine.high %v742_v29, %v750_v30  ;;  %v16033_v41 = vcombine.low %v742_v29, %v750_v30  ;;  %v16035_v42 = vcombine.low %v743_v31, %v751_v32  ;;  %v854_v24 = vld [vmem:[%s20014_s29 + $0xd00] sm:$0xff] }
  0xd9   : > { %6689 = vmatpush1.bf16.msra.mxu0 %v15905_v36  ;;  %6853 = vmatpush1.bf16.msra.mxu1 %v15907_v37  ;;  %v16036_v36 = vcombine.high %v743_v31, %v751_v32  ;;  %v758_v37 = vld [vmem:[%s20014_s29 + $0xa00] sm:$0xff] }
  0xda   : > { %6690 = vmatprep.subr.bf16.mxu0 %v15922_v38  ;;  %6854 = vmatprep.subr.bf16.mxu1 %v15924_v39  ;;  %v766_v38 = vld [vmem:[%s20014_s29 + $0xa40] sm:$0xff]  ;;  %v759_v39 = vld [vmem:[%s20014_s29 + $0xa08] sm:$0xff] }
  0xdb   : > { %v16050_v43 = vcombine.high %v758_v37, %v766_v38  ;;  %v16049_v49 = vcombine.low %v758_v37, %v766_v38  ;;  %v16051_v50 = vcombine.low %v759_v39, %v767_v40  ;;  %v870_v32 = vld [vmem:[%s20014_s29 + $0xd80] sm:$0xff] }
  0xdd   : > { %6691 = vmatpush1.bf16.msra.mxu0 %v15921_v44  ;;  %6855 = vmatpush1.bf16.msra.mxu1 %v15923_v45  ;;  %v16052_v44 = vcombine.high %v759_v39, %v767_v40  ;;  %v774_v45 = vld [vmem:[%s20014_s29 + $0xa80] sm:$0xff] }
  0xde   : > { %6692 = vmatprep.subr.bf16.mxu0 %v15938_v46  ;;  %6856 = vmatprep.subr.bf16.mxu1 %v15940_v47  ;;  %v782_v46 = vld [vmem:[%s20014_s29 + $0xac0] sm:$0xff]  ;;  %v775_v47 = vld [vmem:[%s20014_s29 + $0xa88] sm:$0xff] }
  0xdf   : > { %v16066_v51 = vcombine.high %v774_v45, %v782_v46  ;;  %v16065_v58 = vcombine.low %v774_v45, %v782_v46  ;;  %v16067_v59 = vcombine.low %v775_v47, %v783_v48  ;;  %v886_v40 = vld [vmem:[%s20014_s29 + $0xe00] sm:$0xff] }
  0xe1   : > { %6693 = vmatpush1.bf16.msra.mxu0 %v15937_v52  ;;  %6857 = vmatpush1.bf16.msra.mxu1 %v15939_v53  ;;  %v16068_v52 = vcombine.high %v775_v47, %v783_v48  ;;  %v790_v53 = vld [vmem:[%s20014_s29 + $0xb00] sm:$0xff] }
  0xe2   : > { %6694 = vmatprep.subr.bf16.mxu0 %v15954_v54  ;;  %6858 = vmatprep.subr.bf16.mxu1 %v15956_v55  ;;  %v798_v54 = vld [vmem:[%s20014_s29 + $0xb40] sm:$0xff]  ;;  %v791_v55 = vld [vmem:[%s20014_s29 + $0xb08] sm:$0xff] }
  0xe3   : > { %v16082_v60 = vcombine.high %v790_v53, %v798_v54  ;;  %v16081_v2 = vcombine.low %v790_v53, %v798_v54  ;;  %v16083_v3 = vcombine.low %v791_v55, %v799_v56  ;;  %v902_v48 = vld [vmem:[%s20014_s29 + $0xe80] sm:$0xff] }
  0xe5   : > { %6695 = vmatpush1.bf16.msra.mxu0 %v15953_v61  ;;  %6859 = vmatpush1.bf16.msra.mxu1 %v15955_v62  ;;  %v16084_v61 = vcombine.high %v791_v55, %v799_v56  ;;  %v806_v62 = vld [vmem:[%s20014_s29 + $0xb80] sm:$0xff] }
  0xe6   : > { %6696 = vmatprep.subr.bf16.mxu0 %v15970_v63  ;;  %6860 = vmatprep.subr.bf16.mxu1 %v15972_v0  ;;  %v814_v63 = vld [vmem:[%s20014_s29 + $0xbc0] sm:$0xff]  ;;  %v807_v0 = vld [vmem:[%s20014_s29 + $0xb88] sm:$0xff] }
  0xe7   : > { %v16098_v4 = vcombine.high %v806_v62, %v814_v63  ;;  %v16097_v10 = vcombine.low %v806_v62, %v814_v63  ;;  %v16099_v11 = vcombine.low %v807_v0, %v815_v1  ;;  %v918_v56 = vld [vmem:[%s20014_s29 + $0xf00] sm:$0xff] }
  0xe9   : > { %6697 = vmatpush1.bf16.msra.mxu0 %v15969_v5  ;;  %6861 = vmatpush1.bf16.msra.mxu1 %v15971_v7  ;;  %v16100_v5 = vcombine.high %v807_v0, %v815_v1  ;;  %v830_v7 = vld [vmem:[%s20014_s29 + $0xc40] sm:$0xff] }
  0xea   : > { %6707 = vmatprep.subr.bf16.mxu0 %v15986_v8  ;;  %6871 = vmatprep.subr.bf16.mxu1 %v15988_v9  ;;  %v823_v8 = vld [vmem:[%s20014_s29 + $0xc08] sm:$0xff]  ;;  %v16114_v13 = vcombine.high %v822_v6, %v830_v7  ;;  %v934_v1 = vld [vmem:[%s20014_s29 + $0xf80] sm:$0xff] }
  0xeb   : > { %v831_v9 = vld [vmem:[%s20014_s29 + $0xc48] sm:$0xff] }
  0xec   : > { %6699 = vmatmul.mubr.bf16.vlgmr.msra.gmra.mrb[0].mxu0 %v20127_v12  ;;  %6863 = vmatmul.mubr.bf16.vlgmr.msra.gmra.mrb[0].mxu1 %v20127_v12  ;;  %v16116_v14 = vcombine.high %v823_v8, %v831_v9  ;;  %v16115_v20 = vcombine.low %v823_v8, %v831_v9  ;;  %v950_v9 = vld [vmem:[%s20014_s29 + $0x1000] sm:$0xff] }
  0xed   : > { %6708 = vmatpush1.bf16.msra.mxu0 %v15985_v16  ;;  %6872 = vmatpush1.bf16.msra.mxu1 %v15987_v17  ;;  %v846_v16 = vld [vmem:[%s20014_s29 + $0xcc0] sm:$0xff]  ;;  %v839_v17 = vld [vmem:[%s20014_s29 + $0xc88] sm:$0xff] }
  0xee   : > { %6709 = vmatprep.subr.bf16.mxu0 %v16002_v18  ;;  %6873 = vmatprep.subr.bf16.mxu1 %v16004_v19  ;;  %v847_v18 = vld [vmem:[%s20014_s29 + $0xcc8] sm:$0xff]  ;;  %v16113_v19 = vcombine.low %v822_v6, %v830_v7  ;;  %v16130_v21 = vcombine.high %v838_v15, %v846_v16 }
  0xef   : > { %6739 = vmatprep.mubr.bf16.mxu0 %v20136_v22  ;;  %6903 = vmatprep.mubr.bf16.mxu1 %v20136_v22  ;;  %v16132_v23 = vcombine.high %v839_v17, %v847_v18  ;;  %v16131_v29 = vcombine.low %v839_v17, %v847_v18 }
  0xf1   : > { %6710 = vmatpush1.bf16.msra.mxu0 %v16001_v25  ;;  %6874 = vmatpush1.bf16.msra.mxu1 %v16003_v26  ;;  %v862_v25 = vld [vmem:[%s20014_s29 + $0xd40] sm:$0xff]  ;;  %v855_v26 = vld [vmem:[%s20014_s29 + $0xd08] sm:$0xff] }
  0xf2   : > { %6711 = vmatprep.subr.bf16.mxu0 %v16018_v27  ;;  %6875 = vmatprep.subr.bf16.mxu1 %v16020_v28  ;;  %v863_v27 = vld [vmem:[%s20014_s29 + $0xd48] sm:$0xff]  ;;  %v16129_v28 = vcombine.low %v838_v15, %v846_v16  ;;  %v16146_v30 = vcombine.high %v854_v24, %v862_v25  ;;  %v424_v15 = vld [vmem:[%s22507_s0 + $0x10] sm:$0xff] }
  0xf3   : > { %v16148_v31 = vcombine.high %v855_v26, %v863_v27  ;;  %v16147_v37 = vcombine.low %v855_v26, %v863_v27 }
  0xf5   : > { %6712 = vmatpush1.bf16.msra.mxu0 %v16017_v33  ;;  %6876 = vmatpush1.bf16.msra.mxu1 %v16019_v34  ;;  %v878_v33 = vld [vmem:[%s20014_s29 + $0xdc0] sm:$0xff]  ;;  %v871_v34 = vld [vmem:[%s20014_s29 + $0xd88] sm:$0xff] }
  0xf6   : > { %6713 = vmatprep.subr.bf16.mxu0 %v16034_v35  ;;  %6877 = vmatprep.subr.bf16.mxu1 %v16036_v36  ;;  %v879_v35 = vld [vmem:[%s20014_s29 + $0xdc8] sm:$0xff]  ;;  %v16145_v36 = vcombine.low %v854_v24, %v862_v25  ;;  %v16162_v38 = vcombine.high %v870_v32, %v878_v33 }
  0xf7   : > { %v16164_v39 = vcombine.high %v871_v34, %v879_v35  ;;  %v16163_v45 = vcombine.low %v871_v34, %v879_v35  ;;  %v975_v24 = vld [vmem:[%s20014_s29 + $0x10c8] sm:$0xff] }
  0xf8   : > { %v427_v25 = vld [vmem:[%s22507_s0 + $0x28] sm:$0xff] }
  0xf9   : > { %6714 = vmatpush1.bf16.msra.mxu0 %v16033_v41  ;;  %6878 = vmatpush1.bf16.msra.mxu1 %v16035_v42  ;;  %v894_v41 = vld [vmem:[%s20014_s29 + $0xe40] sm:$0xff]  ;;  %v887_v42 = vld [vmem:[%s20014_s29 + $0xe08] sm:$0xff] }
  0xfa   : > { %6715 = vmatprep.subr.bf16.mxu0 %v16050_v43  ;;  %6879 = vmatprep.subr.bf16.mxu1 %v16052_v44  ;;  %v895_v43 = vld [vmem:[%s20014_s29 + $0xe48] sm:$0xff]  ;;  %v16161_v44 = vcombine.low %v870_v32, %v878_v33  ;;  %v16178_v46 = vcombine.high %v886_v40, %v894_v41  ;;  %v20214_v32 = vpack.c.bf16 %v427_v25, %v427_v25 }
  0xfb   : > { %v16180_v47 = vcombine.high %v887_v42, %v895_v43  ;;  %v16179_v53 = vcombine.low %v887_v42, %v895_v43  ;;  %v983_v33 = vld [vmem:[%s20014_s29 + $0x1108] sm:$0xff] }
  0xfc   : > { %v991_v34 = vld [vmem:[%s20014_s29 + $0x1148] sm:$0xff] }
  0xfd   : > { %6716 = vmatpush1.bf16.msra.mxu0 %v16049_v49  ;;  %6880 = vmatpush1.bf16.msra.mxu1 %v16051_v50  ;;  %v910_v49 = vld [vmem:[%s20014_s29 + $0xec0] sm:$0xff]  ;;  %v903_v50 = vld [vmem:[%s20014_s29 + $0xe88] sm:$0xff] }
  0xfe   : > { %6717 = vmatprep.subr.bf16.mxu0 %v16066_v51  ;;  %6881 = vmatprep.subr.bf16.mxu1 %v16068_v52  ;;  %v911_v51 = vld [vmem:[%s20014_s29 + $0xec8] sm:$0xff]  ;;  %v16177_v52 = vcombine.low %v886_v40, %v894_v41  ;;  %v16194_v54 = vcombine.high %v902_v48, %v910_v49  ;;  %v1006_v40 = vld [vmem:[%s20014_s29 + $0x11c0] sm:$0xff] }
  0xff   : > { %v16196_v55 = vcombine.high %v903_v50, %v911_v51  ;;  %v16195_v62 = vcombine.low %v903_v50, %v911_v51  ;;  %v999_v41 = vld [vmem:[%s20014_s29 + $0x1188] sm:$0xff] }
 0x100   : > { %v1007_v42 = vld [vmem:[%s20014_s29 + $0x11c8] sm:$0xff] }
 0x101   : > { %6718 = vmatpush1.bf16.msra.mxu0 %v16065_v58  ;;  %6882 = vmatpush1.bf16.msra.mxu1 %v16067_v59  ;;  %v926_v58 = vld [vmem:[%s20014_s29 + $0xf40] sm:$0xff]  ;;  %v919_v59 = vld [vmem:[%s20014_s29 + $0xf08] sm:$0xff] }
 0x102   : > { %6719 = vmatprep.subr.bf16.mxu0 %v16082_v60  ;;  %6883 = vmatprep.subr.bf16.mxu1 %v16084_v61  ;;  %v927_v60 = vld [vmem:[%s20014_s29 + $0xf48] sm:$0xff]  ;;  %v16193_v61 = vcombine.low %v902_v48, %v910_v49  ;;  %v16210_v63 = vcombine.high %v918_v56, %v926_v58  ;;  %v1022_v48 = vld [vmem:[%s20014_s29 + $0x1240] sm:$0xff] }
 0x103   : > { %v16212_v0 = vcombine.high %v919_v59, %v927_v60  ;;  %v16211_v6 = vcombine.low %v919_v59, %v927_v60  ;;  %v1015_v49 = vld [vmem:[%s20014_s29 + $0x1208] sm:$0xff] }
 0x104   : > { %v1023_v50 = vld [vmem:[%s20014_s29 + $0x1248] sm:$0xff] }
 0x105   : > { %6720 = vmatpush1.bf16.msra.mxu0 %v16081_v2  ;;  %6884 = vmatpush1.bf16.msra.mxu1 %v16083_v3  ;;  %v942_v2 = vld [vmem:[%s20014_s29 + $0xfc0] sm:$0xff]  ;;  %v935_v3 = vld [vmem:[%s20014_s29 + $0xf88] sm:$0xff] }
 0x106   : > { %6721 = vmatprep.subr.bf16.mxu0 %v16098_v4  ;;  %6885 = vmatprep.subr.bf16.mxu1 %v16100_v5  ;;  %v943_v4 = vld [vmem:[%s20014_s29 + $0xfc8] sm:$0xff]  ;;  %v16209_v5 = vcombine.low %v918_v56, %v926_v58  ;;  %v16226_v7 = vcombine.high %v934_v1, %v942_v2  ;;  %v1038_v56 = vld [vmem:[%s20014_s29 + $0x12c0] sm:$0xff] }
 0x107   : > { %v16228_v8 = vcombine.high %v935_v3, %v943_v4  ;;  %v16227_v16 = vcombine.low %v935_v3, %v943_v4  ;;  %v1031_v58 = vld [vmem:[%s20014_s29 + $0x1288] sm:$0xff] }
 0x108   : > { %v1039_v59 = vld [vmem:[%s20014_s29 + $0x12c8] sm:$0xff] }
 0x109   : > { %6722 = vmatpush1.bf16.msra.mxu0 %v16097_v10  ;;  %6886 = vmatpush1.bf16.msra.mxu1 %v16099_v11  ;;  %v958_v10 = vld [vmem:[%s20014_s29 + $0x1040] sm:$0xff]  ;;  %v951_v11 = vld [vmem:[%s20014_s29 + $0x1008] sm:$0xff] }
 0x10a   : > { %6723 = vmatprep.subr.bf16.mxu0 %v16114_v13  ;;  %6887 = vmatprep.subr.bf16.mxu1 %v16116_v14  ;;  %v959_v13 = vld [vmem:[%s20014_s29 + $0x1048] sm:$0xff]  ;;  %v16225_v14 = vcombine.low %v934_v1, %v942_v2  ;;  %v16242_v17 = vcombine.high %v950_v9, %v958_v10  ;;  %v16241_v26 = vcombine.low %v950_v9, %v958_v10  ;;  %v1054_v1 = vld [vmem:[%s20014_s29 + $0x1340] sm:$0xff] }
 0x10b   : > { %v16244_v18 = vcombine.high %v951_v11, %v959_v13  ;;  %v16243_v27 = vcombine.low %v951_v11, %v959_v13  ;;  %v1047_v2 = vld [vmem:[%s20014_s29 + $0x1308] sm:$0xff]  ;;  %v1070_v9 = vld [vmem:[%s20014_s29 + $0x13c0] sm:$0xff] }
 0x10c   : > { %v1055_v3 = vld [vmem:[%s20014_s29 + $0x1348] sm:$0xff] }
 0x10d   : > { %6724 = vmatpush1.bf16.msra.mxu0 %v16113_v19  ;;  %6888 = vmatpush1.bf16.msra.mxu1 %v16115_v20  ;;  %v966_v19 = vld [vmem:[%s20014_s29 + $0x1080] sm:$0xff]  ;;  %v1063_v10 = vld [vmem:[%s20014_s29 + $0x1388] sm:$0xff] }
 0x10e   : > { %6725 = vmatprep.subr.bf16.mxu0 %v16130_v21  ;;  %6889 = vmatprep.subr.bf16.mxu1 %v16132_v23  ;;  %v974_v20 = vld [vmem:[%s20014_s29 + $0x10c0] sm:$0xff]  ;;  %v20205_v21 = vpack.c.bf16 %v424_v15, %v424_v15  ;;  %v967_v23 = vld [vmem:[%s20014_s29 + $0x1088] sm:$0xff] }
 0x10f   : > { %v16257_v35 = vcombine.low %v966_v19, %v974_v20  ;;  %v1071_v11 = vld [vmem:[%s20014_s29 + $0x13c8] sm:$0xff] }
 0x111   : > { %6726 = vmatpush1.bf16.msra.mxu0 %v16129_v28  ;;  %6890 = vmatpush1.bf16.msra.mxu1 %v16131_v29  ;;  %v16258_v28 = vcombine.high %v966_v19, %v974_v20  ;;  %v16260_v29 = vcombine.high %v967_v23, %v975_v24  ;;  %v1079_v19 = vld [vmem:[%s20014_s29 + $0x1408] sm:$0xff] }
 0x112   : > { %6727 = vmatprep.subr.bf16.mxu0 %v16146_v30  ;;  %6891 = vmatprep.subr.bf16.mxu1 %v16148_v31  ;;  %v982_v30 = vld [vmem:[%s20014_s29 + $0x1100] sm:$0xff]  ;;  %v1087_v20 = vld [vmem:[%s20014_s29 + $0x1448] sm:$0xff] }
 0x113   : > { %v990_v31 = vld [vmem:[%s20014_s29 + $0x1140] sm:$0xff] }
 0x114   : > { %v16273_v43 = vcombine.low %v982_v30, %v990_v31 }
 0x115   : > { %6728 = vmatpush1.bf16.msra.mxu0 %v16145_v36  ;;  %6892 = vmatpush1.bf16.msra.mxu1 %v16147_v37  ;;  %v16259_v36 = vcombine.low %v967_v23, %v975_v24  ;;  %v16274_v37 = vcombine.high %v982_v30, %v990_v31  ;;  %v16355_v24 = vcombine.low %v1063_v10, %v1071_v11  ;;  %v1103_v30 = vld [vmem:[%s20014_s29 + $0x14c8] sm:$0xff] }
 0x116   : > { %6729 = vmatprep.subr.bf16.mxu0 %v16162_v38  ;;  %6893 = vmatprep.subr.bf16.mxu1 %v16164_v39  ;;  %v16276_v38 = vcombine.high %v983_v33, %v991_v34  ;;  %v998_v39 = vld [vmem:[%s20014_s29 + $0x1180] sm:$0xff] }
 0x117   : > { %v16289_v51 = vcombine.low %v998_v39, %v1006_v40 }
 0x119   : > { %6730 = vmatpush1.bf16.msra.mxu0 %v16161_v44  ;;  %6894 = vmatpush1.bf16.msra.mxu1 %v16163_v45  ;;  %v16275_v44 = vcombine.low %v983_v33, %v991_v34  ;;  %v16290_v45 = vcombine.high %v998_v39, %v1006_v40  ;;  %v16371_v33 = vcombine.low %v1079_v19, %v1087_v20  ;;  %v1119_v39 = vld [vmem:[%s20014_s29 + $0x1548] sm:$0xff] }
 0x11a   : > { %6731 = vmatprep.subr.bf16.mxu0 %v16178_v46  ;;  %6895 = vmatprep.subr.bf16.mxu1 %v16180_v47  ;;  %v16292_v46 = vcombine.high %v999_v41, %v1007_v42  ;;  %v1014_v47 = vld [vmem:[%s20014_s29 + $0x1200] sm:$0xff] }
 0x11b   : > { %v16305_v60 = vcombine.low %v1014_v47, %v1022_v48 }
 0x11d   : > { %6732 = vmatpush1.bf16.msra.mxu0 %v16177_v52  ;;  %6896 = vmatpush1.bf16.msra.mxu1 %v16179_v53  ;;  %v16291_v52 = vcombine.low %v999_v41, %v1007_v42  ;;  %v16306_v53 = vcombine.high %v1014_v47, %v1022_v48  ;;  %v1135_v47 = vld [vmem:[%s20014_s29 + $0x15c8] sm:$0xff] }
 0x11e   : > { %6733 = vmatprep.subr.bf16.mxu0 %v16194_v54  ;;  %6897 = vmatprep.subr.bf16.mxu1 %v16196_v55  ;;  %v16308_v54 = vcombine.high %v1015_v49, %v1023_v50  ;;  %v1030_v55 = vld [vmem:[%s20014_s29 + $0x1280] sm:$0xff] }
 0x11f   : > { %v16321_v4 = vcombine.low %v1030_v55, %v1038_v56 }
 0x121   : > { %6734 = vmatpush1.bf16.msra.mxu0 %v16193_v61  ;;  %6898 = vmatpush1.bf16.msra.mxu1 %v16195_v62  ;;  %v16307_v61 = vcombine.low %v1015_v49, %v1023_v50  ;;  %v16322_v62 = vcombine.high %v1030_v55, %v1038_v56  ;;  %v1151_v55 = vld [vmem:[%s20014_s29 + $0x1648] sm:$0xff] }
 0x122   : > { %6735 = vmatprep.subr.bf16.mxu0 %v16210_v63  ;;  %6899 = vmatprep.subr.bf16.mxu1 %v16212_v0  ;;  %v16324_v63 = vcombine.high %v1031_v58, %v1039_v59  ;;  %v1046_v0 = vld [vmem:[%s20014_s29 + $0x1300] sm:$0xff] }
 0x123   : > { %v16337_v13 = vcombine.low %v1046_v0, %v1054_v1 }
 0x125   : > { %6736 = vmatpush1.bf16.msra.mxu0 %v16209_v5  ;;  %6900 = vmatpush1.bf16.msra.mxu1 %v16211_v6  ;;  %v16323_v5 = vcombine.low %v1031_v58, %v1039_v59  ;;  %v16338_v6 = vcombine.high %v1046_v0, %v1054_v1  ;;  %v1167_v0 = vld [vmem:[%s20014_s29 + $0x16c8] sm:$0xff] }
 0x126   : > { %6737 = vmatprep.subr.bf16.mxu0 %v16226_v7  ;;  %6901 = vmatprep.subr.bf16.mxu1 %v16228_v8  ;;  %v16340_v7 = vcombine.high %v1047_v2, %v1055_v3  ;;  %v1062_v8 = vld [vmem:[%s20014_s29 + $0x1380] sm:$0xff] }
 0x127   : > { %v16354_v15 = vcombine.high %v1062_v8, %v1070_v9  ;;  %v16353_v23 = vcombine.low %v1062_v8, %v1070_v9  ;;  %v1183_v8 = vld [vmem:[%s20014_s29 + $0x1748] sm:$0xff] }
 0x129   : > { %6738 = vmatpush1.bf16.msra.mxu0 %v16225_v14  ;;  %6902 = vmatpush1.bf16.msra.mxu1 %v16227_v16  ;;  %v16339_v14 = vcombine.low %v1047_v2, %v1055_v3  ;;  %v16356_v16 = vcombine.high %v1063_v10, %v1071_v11 }
 0x12a   : > { %6748 = vmatprep.subr.bf16.mxu0 %v16242_v17  ;;  %6912 = vmatprep.subr.bf16.mxu1 %v16244_v18  ;;  %v1078_v17 = vld [vmem:[%s20014_s29 + $0x1400] sm:$0xff] }
 0x12b   : > { %v1086_v18 = vld [vmem:[%s20014_s29 + $0x1440] sm:$0xff] }
 0x12c   : > { %6740 = vmatmul.mubr.bf16.vlgmr.msra.gmra.mrb[0].mxu0 %v20205_v21  ;;  %6904 = vmatmul.mubr.bf16.vlgmr.msra.gmra.mrb[0].mxu1 %v20205_v21  ;;  %v16370_v25 = vcombine.high %v1078_v17, %v1086_v18  ;;  %v16369_v31 = vcombine.low %v1078_v17, %v1086_v18  ;;  %v1199_v17 = vld [vmem:[%s20014_s29 + $0x17c8] sm:$0xff] }
 0x12d   : > { %6749 = vmatpush1.bf16.msra.mxu0 %v16241_v26  ;;  %6913 = vmatpush1.bf16.msra.mxu1 %v16243_v27  ;;  %v16372_v26 = vcombine.high %v1079_v19, %v1087_v20  ;;  %v1094_v27 = vld [vmem:[%s20014_s29 + $0x1480] sm:$0xff] }
 0x12e   : > { %6750 = vmatprep.subr.bf16.mxu0 %v16258_v28  ;;  %6914 = vmatprep.subr.bf16.mxu1 %v16260_v29  ;;  %v1102_v28 = vld [vmem:[%s20014_s29 + $0x14c0] sm:$0xff]  ;;  %v1095_v29 = vld [vmem:[%s20014_s29 + $0x1488] sm:$0xff] }
 0x12f   : > { %6780 = vmatprep.mubr.bf16.mxu0 %v20214_v32  ;;  %6944 = vmatprep.mubr.bf16.mxu1 %v20214_v32  ;;  %v16386_v34 = vcombine.high %v1094_v27, %v1102_v28  ;;  %v16385_v40 = vcombine.low %v1094_v27, %v1102_v28  ;;  %v16387_v41 = vcombine.low %v1095_v29, %v1103_v30  ;;  %v1215_v27 = vld [vmem:[%s20014_s29 + $0x1848] sm:$0xff] }
 0x131   : > { %6751 = vmatpush1.bf16.msra.mxu0 %v16257_v35  ;;  %6915 = vmatpush1.bf16.msra.mxu1 %v16259_v36  ;;  %v16388_v35 = vcombine.high %v1095_v29, %v1103_v30  ;;  %v1110_v36 = vld [vmem:[%s20014_s29 + $0x1500] sm:$0xff] }
 0x132   : > { %6752 = vmatprep.subr.bf16.mxu0 %v16274_v37  ;;  %6916 = vmatprep.subr.bf16.mxu1 %v16276_v38  ;;  %v1118_v37 = vld [vmem:[%s20014_s29 + $0x1540] sm:$0xff]  ;;  %v1111_v38 = vld [vmem:[%s20014_s29 + $0x1508] sm:$0xff] }
 0x133   : > { %v16402_v42 = vcombine.high %v1110_v36, %v1118_v37  ;;  %v16401_v48 = vcombine.low %v1110_v36, %v1118_v37  ;;  %v16403_v49 = vcombine.low %v1111_v38, %v1119_v39  ;;  %v426_v29 = vld [vmem:[%s22507_s0 + $0x20] sm:$0xff]  ;;  %v1223_v37 = vld [vmem:[%s20014_s29 + $0x1888] sm:$0xff] }
 0x134   : > { %v20283_v36 = vpack.c.bf16 %v426_v29, %v426_v29 }
 0x135   : > { %6753 = vmatpush1.bf16.msra.mxu0 %v16273_v43  ;;  %6917 = vmatpush1.bf16.msra.mxu1 %v16275_v44  ;;  %v16404_v43 = vcombine.high %v1111_v38, %v1119_v39  ;;  %v1126_v44 = vld [vmem:[%s20014_s29 + $0x1580] sm:$0xff]  ;;  %v1231_v38 = vld [vmem:[%s20014_s29 + $0x18c8] sm:$0xff]  ;;  %v429_v39 = vld [vmem:[%s22507_s0 + $0x38] sm:$0xff] }
 0x136   : > { %6754 = vmatprep.subr.bf16.mxu0 %v16290_v45  ;;  %6918 = vmatprep.subr.bf16.mxu1 %v16292_v46  ;;  %v1134_v45 = vld [vmem:[%s20014_s29 + $0x15c0] sm:$0xff]  ;;  %v1127_v46 = vld [vmem:[%s20014_s29 + $0x1588] sm:$0xff] }
 0x137   : > { %v16418_v50 = vcombine.high %v1126_v44, %v1134_v45  ;;  %v16417_v56 = vcombine.low %v1126_v44, %v1134_v45  ;;  %v16419_v58 = vcombine.low %v1127_v46, %v1135_v47  ;;  %v1238_v44 = vld [vmem:[%s20014_s29 + $0x1900] sm:$0xff] }
 0x138   : > { %v1246_v45 = vld [vmem:[%s20014_s29 + $0x1940] sm:$0xff] }
 0x139   : > { %6755 = vmatpush1.bf16.msra.mxu0 %v16289_v51  ;;  %6919 = vmatpush1.bf16.msra.mxu1 %v16291_v52  ;;  %v16420_v51 = vcombine.high %v1127_v46, %v1135_v47  ;;  %v1142_v52 = vld [vmem:[%s20014_s29 + $0x1600] sm:$0xff]  ;;  %v20292_v46 = vpack.c.bf16 %v429_v39, %v429_v39  ;;  %v1239_v47 = vld [vmem:[%s20014_s29 + $0x1908] sm:$0xff] }
 0x13a   : > { %6756 = vmatprep.subr.bf16.mxu0 %v16306_v53  ;;  %6920 = vmatprep.subr.bf16.mxu1 %v16308_v54  ;;  %v1150_v53 = vld [vmem:[%s20014_s29 + $0x1640] sm:$0xff]  ;;  %v1143_v54 = vld [vmem:[%s20014_s29 + $0x1608] sm:$0xff] }
 0x13b   : > { %v16434_v59 = vcombine.high %v1142_v52, %v1150_v53  ;;  %v16433_v1 = vcombine.low %v1142_v52, %v1150_v53  ;;  %v16435_v2 = vcombine.low %v1143_v54, %v1151_v55  ;;  %v1254_v53 = vld [vmem:[%s20014_s29 + $0x1980] sm:$0xff] }
 0x13d   : > { %6757 = vmatpush1.bf16.msra.mxu0 %v16305_v60  ;;  %6921 = vmatpush1.bf16.msra.mxu1 %v16307_v61  ;;  %v16436_v60 = vcombine.high %v1143_v54, %v1151_v55  ;;  %v1158_v61 = vld [vmem:[%s20014_s29 + $0x1680] sm:$0xff]  ;;  %v1255_v55 = vld [vmem:[%s20014_s29 + $0x1988] sm:$0xff] }
 0x13e   : > { %6758 = vmatprep.subr.bf16.mxu0 %v16322_v62  ;;  %6922 = vmatprep.subr.bf16.mxu1 %v16324_v63  ;;  %v1166_v62 = vld [vmem:[%s20014_s29 + $0x16c0] sm:$0xff]  ;;  %v1159_v63 = vld [vmem:[%s20014_s29 + $0x1688] sm:$0xff] }
 0x13f   : > { %v16450_v3 = vcombine.high %v1158_v61, %v1166_v62  ;;  %v16449_v9 = vcombine.low %v1158_v61, %v1166_v62  ;;  %v16451_v10 = vcombine.low %v1159_v63, %v1167_v0  ;;  %v1262_v54 = vld [vmem:[%s20014_s29 + $0x19c0] sm:$0xff] }
 0x140   : > { %v1270_v62 = vld [vmem:[%s20014_s29 + $0x1a00] sm:$0xff] }
 0x141   : > { %6759 = vmatpush1.bf16.msra.mxu0 %v16321_v4  ;;  %6923 = vmatpush1.bf16.msra.mxu1 %v16323_v5  ;;  %v16452_v4 = vcombine.high %v1159_v63, %v1167_v0  ;;  %v1174_v5 = vld [vmem:[%s20014_s29 + $0x1700] sm:$0xff]  ;;  %v1271_v0 = vld [vmem:[%s20014_s29 + $0x1a08] sm:$0xff] }
 0x142   : > { %6760 = vmatprep.subr.bf16.mxu0 %v16338_v6  ;;  %6924 = vmatprep.subr.bf16.mxu1 %v16340_v7  ;;  %v1182_v6 = vld [vmem:[%s20014_s29 + $0x1740] sm:$0xff]  ;;  %v1175_v7 = vld [vmem:[%s20014_s29 + $0x1708] sm:$0xff] }
 0x143   : > { %v16466_v11 = vcombine.high %v1174_v5, %v1182_v6  ;;  %v16465_v18 = vcombine.low %v1174_v5, %v1182_v6  ;;  %v16467_v19 = vcombine.low %v1175_v7, %v1183_v8  ;;  %v1278_v63 = vld [vmem:[%s20014_s29 + $0x1a40] sm:$0xff] }
 0x144   : > { %v1286_v6 = vld [vmem:[%s20014_s29 + $0x1a80] sm:$0xff] }
 0x145   : > { %6761 = vmatpush1.bf16.msra.mxu0 %v16337_v13  ;;  %6925 = vmatpush1.bf16.msra.mxu1 %v16339_v14  ;;  %v16468_v13 = vcombine.high %v1175_v7, %v1183_v8  ;;  %v1190_v14 = vld [vmem:[%s20014_s29 + $0x1780] sm:$0xff]  ;;  %v1287_v8 = vld [vmem:[%s20014_s29 + $0x1a88] sm:$0xff] }
 0x146   : > { %6762 = vmatprep.subr.bf16.mxu0 %v16354_v15  ;;  %6926 = vmatprep.subr.bf16.mxu1 %v16356_v16  ;;  %v1198_v15 = vld [vmem:[%s20014_s29 + $0x17c0] sm:$0xff]  ;;  %v1191_v16 = vld [vmem:[%s20014_s29 + $0x1788] sm:$0xff] }
 0x147   : > { %v16482_v20 = vcombine.high %v1190_v14, %v1198_v15  ;;  %v16481_v28 = vcombine.low %v1190_v14, %v1198_v15  ;;  %v16483_v30 = vcombine.low %v1191_v16, %v1199_v17  ;;  %v1294_v7 = vld [vmem:[%s20014_s29 + $0x1ac0] sm:$0xff] }
 0x148   : > { %v1302_v15 = vld [vmem:[%s20014_s29 + $0x1b00] sm:$0xff] }
 0x149   : > { %6763 = vmatpush1.bf16.msra.mxu0 %v16353_v23  ;;  %6927 = vmatpush1.bf16.msra.mxu1 %v16355_v24  ;;  %v16484_v23 = vcombine.high %v1191_v16, %v1199_v17  ;;  %v1206_v24 = vld [vmem:[%s20014_s29 + $0x1800] sm:$0xff]  ;;  %v1303_v17 = vld [vmem:[%s20014_s29 + $0x1b08] sm:$0xff] }
 0x14a   : > { %6764 = vmatprep.subr.bf16.mxu0 %v16370_v25  ;;  %6928 = vmatprep.subr.bf16.mxu1 %v16372_v26  ;;  %v1214_v25 = vld [vmem:[%s20014_s29 + $0x1840] sm:$0xff]  ;;  %v1207_v26 = vld [vmem:[%s20014_s29 + $0x1808] sm:$0xff] }
 0x14b   : > { %v1310_v16 = vld [vmem:[%s20014_s29 + $0x1b40] sm:$0xff] }
 0x14c   : > { %v16593_v29 = vcombine.low %v1302_v15, %v1310_v16 }
 0x14d   : > { %6765 = vmatpush1.bf16.msra.mxu0 %v16369_v31  ;;  %6929 = vmatpush1.bf16.msra.mxu1 %v16371_v33  ;;  %v16498_v31 = vcombine.high %v1206_v24, %v1214_v25  ;;  %v16500_v33 = vcombine.high %v1207_v26, %v1215_v27 }
 0x14e   : > { %6766 = vmatprep.subr.bf16.mxu0 %v16386_v34  ;;  %6930 = vmatprep.subr.bf16.mxu1 %v16388_v35  ;;  %v1222_v34 = vld [vmem:[%s20014_s29 + $0x1880] sm:$0xff] }
 0x14f   : > { %v1230_v35 = vld [vmem:[%s20014_s29 + $0x18c0] sm:$0xff] }
 0x151   : > { %6767 = vmatpush1.bf16.msra.mxu0 %v16385_v40  ;;  %6931 = vmatpush1.bf16.msra.mxu1 %v16387_v41  ;;  %v16497_v40 = vcombine.low %v1206_v24, %v1214_v25  ;;  %v16499_v41 = vcombine.low %v1207_v26, %v1215_v27  ;;  %v1318_v25 = vld [vmem:[%s20014_s29 + $0x1b80] sm:$0xff]  ;;  %v1319_v27 = vld [vmem:[%s20014_s29 + $0x1b88] sm:$0xff] }
 0x152   : > { %6768 = vmatprep.subr.bf16.mxu0 %v16402_v42  ;;  %6932 = vmatprep.subr.bf16.mxu1 %v16404_v43  ;;  %v16514_v42 = vcombine.high %v1222_v34, %v1230_v35  ;;  %v16516_v43 = vcombine.high %v1223_v37, %v1231_v38  ;;  %v1326_v26 = vld [vmem:[%s20014_s29 + $0x1bc0] sm:$0xff] }
 0x153   : > { %v16609_v39 = vcombine.low %v1318_v25, %v1326_v26 }
 0x155   : > { %6769 = vmatpush1.bf16.msra.mxu0 %v16401_v48  ;;  %6933 = vmatpush1.bf16.msra.mxu1 %v16403_v49  ;;  %v1247_v48 = vld [vmem:[%s20014_s29 + $0x1948] sm:$0xff]  ;;  %v16513_v49 = vcombine.low %v1222_v34, %v1230_v35  ;;  %v1334_v34 = vld [vmem:[%s20014_s29 + $0x1c00] sm:$0xff] }
 0x156   : > { %6770 = vmatprep.subr.bf16.mxu0 %v16418_v50  ;;  %6934 = vmatprep.subr.bf16.mxu1 %v16420_v51  ;;  %v16515_v50 = vcombine.low %v1223_v37, %v1231_v38  ;;  %v16530_v51 = vcombine.high %v1238_v44, %v1246_v45  ;;  %v16532_v52 = vcombine.high %v1239_v47, %v1247_v48  ;;  %v1342_v35 = vld [vmem:[%s20014_s29 + $0x1c40] sm:$0xff]  ;;  %v1335_v37 = vld [vmem:[%s20014_s29 + $0x1c08] sm:$0xff] }
 0x157   : > { %v1343_v38 = vld [vmem:[%s20014_s29 + $0x1c48] sm:$0xff] }
 0x159   : > { %6771 = vmatpush1.bf16.msra.mxu0 %v16417_v56  ;;  %6935 = vmatpush1.bf16.msra.mxu1 %v16419_v58  ;;  %v1263_v56 = vld [vmem:[%s20014_s29 + $0x19c8] sm:$0xff]  ;;  %v16529_v58 = vcombine.low %v1238_v44, %v1246_v45  ;;  %v1358_v44 = vld [vmem:[%s20014_s29 + $0x1cc0] sm:$0xff] }
 0x15a   : > { %6772 = vmatprep.subr.bf16.mxu0 %v16434_v59  ;;  %6936 = vmatprep.subr.bf16.mxu1 %v16436_v60  ;;  %v16531_v59 = vcombine.low %v1239_v47, %v1247_v48  ;;  %v16546_v60 = vcombine.high %v1254_v53, %v1262_v54  ;;  %v16548_v61 = vcombine.high %v1255_v55, %v1263_v56  ;;  %v1351_v45 = vld [vmem:[%s20014_s29 + $0x1c88] sm:$0xff] }
 0x15b   : > { %v1359_v47 = vld [vmem:[%s20014_s29 + $0x1cc8] sm:$0xff]  ;;  %v16625_v48 = vcombine.low %v1334_v34, %v1342_v35 }
 0x15d   : > { %6773 = vmatpush1.bf16.msra.mxu0 %v16433_v1  ;;  %6937 = vmatpush1.bf16.msra.mxu1 %v16435_v2  ;;  %v1279_v1 = vld [vmem:[%s20014_s29 + $0x1a48] sm:$0xff]  ;;  %v16545_v2 = vcombine.low %v1254_v53, %v1262_v54  ;;  %v1374_v53 = vld [vmem:[%s20014_s29 + $0x1d40] sm:$0xff] }
 0x15e   : > { %6774 = vmatprep.subr.bf16.mxu0 %v16450_v3  ;;  %6938 = vmatprep.subr.bf16.mxu1 %v16452_v4  ;;  %v16547_v3 = vcombine.low %v1255_v55, %v1263_v56  ;;  %v16562_v4 = vcombine.high %v1270_v62, %v1278_v63  ;;  %v16564_v5 = vcombine.high %v1271_v0, %v1279_v1  ;;  %v1367_v54 = vld [vmem:[%s20014_s29 + $0x1d08] sm:$0xff] }
 0x15f   : > { %v1375_v55 = vld [vmem:[%s20014_s29 + $0x1d48] sm:$0xff] }
 0x161   : > { %6775 = vmatpush1.bf16.msra.mxu0 %v16449_v9  ;;  %6939 = vmatpush1.bf16.msra.mxu1 %v16451_v10  ;;  %v1295_v9 = vld [vmem:[%s20014_s29 + $0x1ac8] sm:$0xff]  ;;  %v16561_v10 = vcombine.low %v1270_v62, %v1278_v63  ;;  %v1390_v62 = vld [vmem:[%s20014_s29 + $0x1dc0] sm:$0xff] }
 0x162   : > { %6776 = vmatprep.subr.bf16.mxu0 %v16466_v11  ;;  %6940 = vmatprep.subr.bf16.mxu1 %v16468_v13  ;;  %v16563_v11 = vcombine.low %v1271_v0, %v1279_v1  ;;  %v16578_v13 = vcombine.high %v1286_v6, %v1294_v7  ;;  %v16580_v14 = vcombine.high %v1287_v8, %v1295_v9  ;;  %v1383_v63 = vld [vmem:[%s20014_s29 + $0x1d88] sm:$0xff] }
 0x163   : > { %v1391_v0 = vld [vmem:[%s20014_s29 + $0x1dc8] sm:$0xff] }
 0x165   : > { %6777 = vmatpush1.bf16.msra.mxu0 %v16465_v18  ;;  %6941 = vmatpush1.bf16.msra.mxu1 %v16467_v19  ;;  %v1311_v18 = vld [vmem:[%s20014_s29 + $0x1b48] sm:$0xff]  ;;  %v16577_v19 = vcombine.low %v1286_v6, %v1294_v7  ;;  %v1406_v6 = vld [vmem:[%s20014_s29 + $0x1e40] sm:$0xff] }
 0x166   : > { %6778 = vmatprep.subr.bf16.mxu0 %v16482_v20  ;;  %6942 = vmatprep.subr.bf16.mxu1 %v16484_v23  ;;  %v16579_v20 = vcombine.low %v1287_v8, %v1295_v9  ;;  %v16594_v23 = vcombine.high %v1302_v15, %v1310_v16  ;;  %v16596_v24 = vcombine.high %v1303_v17, %v1311_v18  ;;  %v1399_v7 = vld [vmem:[%s20014_s29 + $0x1e08] sm:$0xff]  ;;  %v1422_v15 = vld [vmem:[%s20014_s29 + $0x1ec0] sm:$0xff] }
 0x167   : > { %v1407_v8 = vld [vmem:[%s20014_s29 + $0x1e48] sm:$0xff] }
 0x168   : > { %v1415_v16 = vld [vmem:[%s20014_s29 + $0x1e88] sm:$0xff] }
 0x169   : > { %6779 = vmatpush1.bf16.msra.mxu0 %v16481_v28  ;;  %6943 = vmatpush1.bf16.msra.mxu1 %v16483_v30  ;;  %v1327_v28 = vld [vmem:[%s20014_s29 + $0x1bc8] sm:$0xff]  ;;  %v16595_v30 = vcombine.low %v1303_v17, %v1311_v18 }
 0x16a   : > { %6789 = vmatprep.subr.bf16.mxu0 %v16498_v31  ;;  %6953 = vmatprep.subr.bf16.mxu1 %v16500_v33  ;;  %v16610_v31 = vcombine.high %v1318_v25, %v1326_v26  ;;  %v16612_v33 = vcombine.high %v1319_v27, %v1327_v28  ;;  %v1423_v17 = vld [vmem:[%s20014_s29 + $0x1ec8] sm:$0xff]  ;;  %v1438_v25 = vld [vmem:[%s20014_s29 + $0x1f40] sm:$0xff] }
 0x16b   : > { %v1431_v26 = vld [vmem:[%s20014_s29 + $0x1f08] sm:$0xff] }
 0x16c   : > { %6781 = vmatmul.mubr.bf16.vlgmr.msra.gmra.mrb[0].mxu0 %v20283_v36  ;;  %6945 = vmatmul.mubr.bf16.vlgmr.msra.gmra.mrb[0].mxu1 %v20283_v36 }
 0x16d   : > { %6790 = vmatpush1.bf16.msra.mxu0 %v16497_v40  ;;  %6954 = vmatpush1.bf16.msra.mxu1 %v16499_v41  ;;  %v16611_v40 = vcombine.low %v1319_v27, %v1327_v28  ;;  %v16626_v41 = vcombine.high %v1334_v34, %v1342_v35  ;;  %v1439_v27 = vld [vmem:[%s20014_s29 + $0x1f48] sm:$0xff]  ;;  %v1454_v34 = vld [vmem:[%s20014_s29 + $0x1fc0] sm:$0xff] }
 0x16e   : > { %6791 = vmatprep.subr.bf16.mxu0 %v16514_v42  ;;  %6955 = vmatprep.subr.bf16.mxu1 %v16516_v43  ;;  %v16628_v42 = vcombine.high %v1335_v37, %v1343_v38  ;;  %v1350_v43 = vld [vmem:[%s20014_s29 + $0x1c80] sm:$0xff]  ;;  %v1447_v35 = vld [vmem:[%s20014_s29 + $0x1f88] sm:$0xff] }
 0x16f   : > { %6821 = vmatprep.mubr.bf16.mxu0 %v20292_v46  ;;  %6985 = vmatprep.mubr.bf16.mxu1 %v20292_v46  ;;  %v16641_v56 = vcombine.low %v1350_v43, %v1358_v44 }
 0x171   : > { %6792 = vmatpush1.bf16.msra.mxu0 %v16513_v49  ;;  %6956 = vmatpush1.bf16.msra.mxu1 %v16515_v50  ;;  %v16627_v49 = vcombine.low %v1335_v37, %v1343_v38  ;;  %v16642_v50 = vcombine.high %v1350_v43, %v1358_v44  ;;  %v1455_v37 = vld [vmem:[%s20014_s29 + $0x1fc8] sm:$0xff]  ;;  %v448_v43 = vld [vmem:[%s20014_s29 + $0x50] sm:$0xff]  ;;  %v441_v44 = vld [vmem:[%s20014_s29 + $0x18] sm:$0xff] }
 0x172   : > { %6793 = vmatprep.subr.bf16.mxu0 %v16530_v51  ;;  %6957 = vmatprep.subr.bf16.mxu1 %v16532_v52  ;;  %v16644_v51 = vcombine.high %v1351_v45, %v1359_v47  ;;  %v1366_v52 = vld [vmem:[%s20014_s29 + $0x1d00] sm:$0xff] }
 0x173   : > { %v16657_v1 = vcombine.low %v1366_v52, %v1374_v53 }
 0x175   : > { %6794 = vmatpush1.bf16.msra.mxu0 %v16529_v58  ;;  %6958 = vmatpush1.bf16.msra.mxu1 %v16531_v59  ;;  %v16643_v58 = vcombine.low %v1351_v45, %v1359_v47  ;;  %v16658_v59 = vcombine.high %v1366_v52, %v1374_v53  ;;  %v449_v45 = vld [vmem:[%s20014_s29 + $0x58] sm:$0xff]  ;;  %v456_v52 = vld [vmem:[%s20014_s29 + $0x90] sm:$0xff] }
 0x176   : > { %6795 = vmatprep.subr.bf16.mxu0 %v16546_v60  ;;  %6959 = vmatprep.subr.bf16.mxu1 %v16548_v61  ;;  %v16660_v60 = vcombine.high %v1367_v54, %v1375_v55  ;;  %v1382_v61 = vld [vmem:[%s20014_s29 + $0x1d80] sm:$0xff]  ;;  %v464_v53 = vld [vmem:[%s20014_s29 + $0xd0] sm:$0xff] }
 0x177   : > { %v16673_v9 = vcombine.low %v1382_v61, %v1390_v62 }
 0x179   : > { %6796 = vmatpush1.bf16.msra.mxu0 %v16545_v2  ;;  %6960 = vmatpush1.bf16.msra.mxu1 %v16547_v3  ;;  %v16659_v2 = vcombine.low %v1367_v54, %v1375_v55  ;;  %v16674_v3 = vcombine.high %v1382_v61, %v1390_v62  ;;  %v457_v55 = vld [vmem:[%s20014_s29 + $0x98] sm:$0xff]  ;;  %v472_v62 = vld [vmem:[%s20014_s29 + $0x110] sm:$0xff] }
 0x17a   : > { %6797 = vmatprep.subr.bf16.mxu0 %v16562_v4  ;;  %6961 = vmatprep.subr.bf16.mxu1 %v16564_v5  ;;  %v16676_v4 = vcombine.high %v1383_v63, %v1391_v0  ;;  %v1398_v5 = vld [vmem:[%s20014_s29 + $0x1e00] sm:$0xff] }
 0x17b   : > { %v16689_v18 = vcombine.low %v1398_v5, %v1406_v6 }
 0x17d   : > { %6798 = vmatpush1.bf16.msra.mxu0 %v16561_v10  ;;  %6962 = vmatpush1.bf16.msra.mxu1 %v16563_v11  ;;  %v16675_v10 = vcombine.low %v1383_v63, %v1391_v0  ;;  %v16690_v11 = vcombine.high %v1398_v5, %v1406_v6  ;;  %v480_v63 = vld [vmem:[%s20014_s29 + $0x150] sm:$0xff]  ;;  %v473_v0 = vld [vmem:[%s20014_s29 + $0x118] sm:$0xff] }
 0x17e   : > { %6799 = vmatprep.subr.bf16.mxu0 %v16578_v13  ;;  %6963 = vmatprep.subr.bf16.mxu1 %v16580_v14  ;;  %v16692_v13 = vcombine.high %v1399_v7, %v1407_v8  ;;  %v1414_v14 = vld [vmem:[%s20014_s29 + $0x1e80] sm:$0xff]  ;;  %v488_v6 = vld [vmem:[%s20014_s29 + $0x190] sm:$0xff] }
 0x17f   : > { %v16705_v28 = vcombine.low %v1414_v14, %v1422_v15 }
 0x181   : > { %6800 = vmatpush1.bf16.msra.mxu0 %v16577_v19  ;;  %6964 = vmatpush1.bf16.msra.mxu1 %v16579_v20  ;;  %v16691_v19 = vcombine.low %v1399_v7, %v1407_v8  ;;  %v16706_v20 = vcombine.high %v1414_v14, %v1422_v15  ;;  %v496_v7 = vld [vmem:[%s20014_s29 + $0x1d0] sm:$0xff]  ;;  %v489_v8 = vld [vmem:[%s20014_s29 + $0x198] sm:$0xff] }
 0x182   : > { %6801 = vmatprep.subr.bf16.mxu0 %v16594_v23  ;;  %6965 = vmatprep.subr.bf16.mxu1 %v16596_v24  ;;  %v16708_v23 = vcombine.high %v1415_v16, %v1423_v17  ;;  %v1430_v24 = vld [vmem:[%s20014_s29 + $0x1f00] sm:$0xff]  ;;  %v504_v15 = vld [vmem:[%s20014_s29 + $0x210] sm:$0xff] }
 0x183   : > { %v16721_v38 = vcombine.low %v1430_v24, %v1438_v25 }
 0x185   : > { %6802 = vmatpush1.bf16.msra.mxu0 %v16593_v29  ;;  %6966 = vmatpush1.bf16.msra.mxu1 %v16595_v30  ;;  %v16707_v29 = vcombine.low %v1415_v16, %v1423_v17  ;;  %v16722_v30 = vcombine.high %v1430_v24, %v1438_v25  ;;  %v512_v16 = vld [vmem:[%s20014_s29 + $0x250] sm:$0xff]  ;;  %v505_v17 = vld [vmem:[%s20014_s29 + $0x218] sm:$0xff] }
 0x186   : > { %6803 = vmatprep.subr.bf16.mxu0 %v16610_v31  ;;  %6967 = vmatprep.subr.bf16.mxu1 %v16612_v33  ;;  %v16724_v31 = vcombine.high %v1431_v26, %v1439_v27  ;;  %v1446_v33 = vld [vmem:[%s20014_s29 + $0x1f80] sm:$0xff]  ;;  %v520_v25 = vld [vmem:[%s20014_s29 + $0x290] sm:$0xff] }
 0x187   : > { %v16737_v47 = vcombine.low %v1446_v33, %v1454_v34 }
 0x189   : > { %6804 = vmatpush1.bf16.msra.mxu0 %v16609_v39  ;;  %6968 = vmatpush1.bf16.msra.mxu1 %v16611_v40  ;;  %v16723_v39 = vcombine.low %v1431_v26, %v1439_v27  ;;  %v16738_v40 = vcombine.high %v1446_v33, %v1454_v34  ;;  %v528_v26 = vld [vmem:[%s20014_s29 + $0x2d0] sm:$0xff]  ;;  %v521_v27 = vld [vmem:[%s20014_s29 + $0x298] sm:$0xff] }
 0x18a   : > { %6805 = vmatprep.subr.bf16.mxu0 %v16626_v41  ;;  %6969 = vmatprep.subr.bf16.mxu1 %v16628_v42  ;;  %v16740_v41 = vcombine.high %v1447_v35, %v1455_v37  ;;  %v440_v42 = vld [vmem:[%s20014_s29 + $0x10] sm:$0xff] }
 0x18b   : > { %v536_v34 = vld [vmem:[%s20014_s29 + $0x310] sm:$0xff] }
 0x18d   : > { %6806 = vmatpush1.bf16.msra.mxu0 %v16625_v48  ;;  %6970 = vmatpush1.bf16.msra.mxu1 %v16627_v49  ;;  %v428_v48 = vld [vmem:[%s22507_s0 + $0x30] sm:$0xff]  ;;  %v16739_v49 = vcombine.low %v1447_v35, %v1455_v37  ;;  %v537_v37 = vld [vmem:[%s20014_s29 + $0x318] sm:$0xff] }
 0x18e   : > { %6807 = vmatprep.subr.bf16.mxu0 %v16642_v50  ;;  %6971 = vmatprep.subr.bf16.mxu1 %v16644_v51  ;;  %v15734_v50 = vcombine.high %v440_v42, %v448_v43  ;;  %v15736_v51 = vcombine.high %v441_v44, %v449_v45  ;;  %v20361_v54 = vpack.c.bf16 %v428_v48, %v428_v48  ;;  %v544_v35 = vld [vmem:[%s20014_s29 + $0x350] sm:$0xff] }
 0x18f   : > { %v15829_v48 = vcombine.low %v536_v34, %v544_v35 }
 0x191   : > { %6808 = vmatpush1.bf16.msra.mxu0 %v16641_v56  ;;  %6972 = vmatpush1.bf16.msra.mxu1 %v16643_v58  ;;  %v465_v56 = vld [vmem:[%s20014_s29 + $0xd8] sm:$0xff]  ;;  %v15733_v58 = vcombine.low %v440_v42, %v448_v43  ;;  %v552_v43 = vld [vmem:[%s20014_s29 + $0x390] sm:$0xff] }
 0x192   : > { %6809 = vmatprep.subr.bf16.mxu0 %v16658_v59  ;;  %6973 = vmatprep.subr.bf16.mxu1 %v16660_v60  ;;  %v15735_v59 = vcombine.low %v441_v44, %v449_v45  ;;  %v15750_v60 = vcombine.high %v456_v52, %v464_v53  ;;  %v15752_v61 = vcombine.high %v457_v55, %v465_v56  ;;  %v560_v44 = vld [vmem:[%s20014_s29 + $0x3d0] sm:$0xff]  ;;  %v553_v45 = vld [vmem:[%s20014_s29 + $0x398] sm:$0xff] }
 0x195   : > { %6810 = vmatpush1.bf16.msra.mxu0 %v16657_v1  ;;  %6974 = vmatpush1.bf16.msra.mxu1 %v16659_v2  ;;  %v481_v1 = vld [vmem:[%s20014_s29 + $0x158] sm:$0xff]  ;;  %v15749_v2 = vcombine.low %v456_v52, %v464_v53  ;;  %v568_v52 = vld [vmem:[%s20014_s29 + $0x410] sm:$0xff] }
 0x196   : > { %6811 = vmatprep.subr.bf16.mxu0 %v16674_v3  ;;  %6975 = vmatprep.subr.bf16.mxu1 %v16676_v4  ;;  %v15751_v3 = vcombine.low %v457_v55, %v465_v56  ;;  %v15766_v4 = vcombine.high %v472_v62, %v480_v63  ;;  %v15768_v5 = vcombine.high %v473_v0, %v481_v1  ;;  %v576_v53 = vld [vmem:[%s20014_s29 + $0x450] sm:$0xff]  ;;  %v569_v55 = vld [vmem:[%s20014_s29 + $0x418] sm:$0xff] }
 0x197   : > { %v577_v56 = vld [vmem:[%s20014_s29 + $0x458] sm:$0xff] }
 0x199   : > { %6812 = vmatpush1.bf16.msra.mxu0 %v16673_v9  ;;  %6976 = vmatpush1.bf16.msra.mxu1 %v16675_v10  ;;  %v497_v9 = vld [vmem:[%s20014_s29 + $0x1d8] sm:$0xff]  ;;  %v15765_v10 = vcombine.low %v472_v62, %v480_v63  ;;  %v584_v62 = vld [vmem:[%s20014_s29 + $0x490] sm:$0xff] }
 0x19a   : > { %6813 = vmatprep.subr.bf16.mxu0 %v16690_v11  ;;  %6977 = vmatprep.subr.bf16.mxu1 %v16692_v13  ;;  %v15767_v11 = vcombine.low %v473_v0, %v481_v1  ;;  %v15782_v13 = vcombine.high %v488_v6, %v496_v7  ;;  %v15784_v14 = vcombine.high %v489_v8, %v497_v9  ;;  %v592_v63 = vld [vmem:[%s20014_s29 + $0x4d0] sm:$0xff]  ;;  %v585_v0 = vld [vmem:[%s20014_s29 + $0x498] sm:$0xff] }
 0x19b   : > { %v593_v1 = vld [vmem:[%s20014_s29 + $0x4d8] sm:$0xff] }
 0x19d   : > { %6814 = vmatpush1.bf16.msra.mxu0 %v16689_v18  ;;  %6978 = vmatpush1.bf16.msra.mxu1 %v16691_v19  ;;  %v513_v18 = vld [vmem:[%s20014_s29 + $0x258] sm:$0xff]  ;;  %v15781_v19 = vcombine.low %v488_v6, %v496_v7  ;;  %v600_v6 = vld [vmem:[%s20014_s29 + $0x510] sm:$0xff] }
 0x19e   : > { %6815 = vmatprep.subr.bf16.mxu0 %v16706_v20  ;;  %6979 = vmatprep.subr.bf16.mxu1 %v16708_v23  ;;  %v15783_v20 = vcombine.low %v489_v8, %v497_v9  ;;  %v15798_v23 = vcombine.high %v504_v15, %v512_v16  ;;  %v15800_v24 = vcombine.high %v505_v17, %v513_v18  ;;  %v608_v7 = vld [vmem:[%s20014_s29 + $0x550] sm:$0xff]  ;;  %v601_v8 = vld [vmem:[%s20014_s29 + $0x518] sm:$0xff] }
 0x19f   : > { %v609_v9 = vld [vmem:[%s20014_s29 + $0x558] sm:$0xff] }
 0x1a1   : > { %6816 = vmatpush1.bf16.msra.mxu0 %v16705_v28  ;;  %6980 = vmatpush1.bf16.msra.mxu1 %v16707_v29  ;;  %v529_v28 = vld [vmem:[%s20014_s29 + $0x2d8] sm:$0xff]  ;;  %v15797_v29 = vcombine.low %v504_v15, %v512_v16  ;;  %v616_v15 = vld [vmem:[%s20014_s29 + $0x590] sm:$0xff] }
 0x1a2   : > { %6817 = vmatprep.subr.bf16.mxu0 %v16722_v30  ;;  %6981 = vmatprep.subr.bf16.mxu1 %v16724_v31  ;;  %v15799_v30 = vcombine.low %v505_v17, %v513_v18  ;;  %v15814_v31 = vcombine.high %v520_v25, %v528_v26  ;;  %v15816_v33 = vcombine.high %v521_v27, %v529_v28  ;;  %v624_v16 = vld [vmem:[%s20014_s29 + $0x5d0] sm:$0xff]  ;;  %v617_v17 = vld [vmem:[%s20014_s29 + $0x598] sm:$0xff] }
 0x1a3   : > { %v625_v18 = vld [vmem:[%s20014_s29 + $0x5d8] sm:$0xff] }
 0x1a5   : > { %6818 = vmatpush1.bf16.msra.mxu0 %v16721_v38  ;;  %6982 = vmatpush1.bf16.msra.mxu1 %v16723_v39  ;;  %v545_v38 = vld [vmem:[%s20014_s29 + $0x358] sm:$0xff]  ;;  %v15813_v39 = vcombine.low %v520_v25, %v528_v26  ;;  %v632_v25 = vld [vmem:[%s20014_s29 + $0x610] sm:$0xff] }
 0x1a6   : > { %6819 = vmatprep.subr.bf16.mxu0 %v16738_v40  ;;  %6983 = vmatprep.subr.bf16.mxu1 %v16740_v41  ;;  %v15815_v40 = vcombine.low %v521_v27, %v529_v28  ;;  %v15830_v41 = vcombine.high %v536_v34, %v544_v35  ;;  %v15832_v42 = vcombine.high %v537_v37, %v545_v38  ;;  %v640_v26 = vld [vmem:[%s20014_s29 + $0x650] sm:$0xff]  ;;  %v633_v27 = vld [vmem:[%s20014_s29 + $0x618] sm:$0xff] }
 0x1a7   : > { %v641_v28 = vld [vmem:[%s20014_s29 + $0x658] sm:$0xff]  ;;  %v648_v34 = vld [vmem:[%s20014_s29 + $0x690] sm:$0xff] }
 0x1a8   : > { %v656_v35 = vld [vmem:[%s20014_s29 + $0x6d0] sm:$0xff] }
 0x1a9   : > { %6820 = vmatpush1.bf16.msra.mxu0 %v16737_v47  ;;  %6984 = vmatpush1.bf16.msra.mxu1 %v16739_v49  ;;  %v561_v47 = vld [vmem:[%s20014_s29 + $0x3d8] sm:$0xff]  ;;  %v15831_v49 = vcombine.low %v537_v37, %v545_v38 }
 0x1aa   : > { %6994 = vmatprep.subr.bf16.mxu0 %v15734_v50  ;;  %7158 = vmatprep.subr.bf16.mxu1 %v15736_v51  ;;  %v15846_v50 = vcombine.high %v552_v43, %v560_v44  ;;  %v15848_v51 = vcombine.high %v553_v45, %v561_v47  ;;  %v649_v37 = vld [vmem:[%s20014_s29 + $0x698] sm:$0xff] }
 0x1ab   : > { %v657_v38 = vld [vmem:[%s20014_s29 + $0x6d8] sm:$0xff] }
 0x1ac   : > { %6822 = vmatmul.mubr.bf16.vlgmr.msra.gmra.mrb[0].mxu0 %v20361_v54  ;;  %6986 = vmatmul.mubr.bf16.vlgmr.msra.gmra.mrb[0].mxu1 %v20361_v54 }
 0x1ad   : > { %6995 = vmatpush1.bf16.msra.mxu0 %v15733_v58  ;;  %7159 = vmatpush1.bf16.msra.mxu1 %v15735_v59  ;;  %v15845_v58 = vcombine.low %v552_v43, %v560_v44  ;;  %v15847_v59 = vcombine.low %v553_v45, %v561_v47  ;;  %v664_v43 = vld [vmem:[%s20014_s29 + $0x710] sm:$0xff]  ;;  %v665_v45 = vld [vmem:[%s20014_s29 + $0x718] sm:$0xff] }
 0x1ae   : > { %6996 = vmatprep.subr.bf16.mxu0 %v15750_v60  ;;  %7160 = vmatprep.subr.bf16.mxu1 %v15752_v61  ;;  %v15862_v60 = vcombine.high %v568_v52, %v576_v53  ;;  %v15864_v61 = vcombine.high %v569_v55, %v577_v56  ;;  %v672_v44 = vld [vmem:[%s20014_s29 + $0x750] sm:$0xff]  ;;  %v673_v47 = vld [vmem:[%s20014_s29 + $0x758] sm:$0xff] }
 0x1af   : > { %7026 = vmatprep.mubr.bf16.mxu0 %v20080_v57  ;;  %7190 = vmatprep.mubr.bf16.mxu1 %v20080_v57 }
 0x1b1   : > { %6997 = vmatpush1.bf16.msra.mxu0 %v15749_v2  ;;  %7161 = vmatpush1.bf16.msra.mxu1 %v15751_v3  ;;  %v15861_v2 = vcombine.low %v568_v52, %v576_v53  ;;  %v15863_v3 = vcombine.low %v569_v55, %v577_v56  ;;  %v680_v52 = vld [vmem:[%s20014_s29 + $0x790] sm:$0xff]  ;;  %v681_v55 = vld [vmem:[%s20014_s29 + $0x798] sm:$0xff] }
 0x1b2   : > { %6998 = vmatprep.subr.bf16.mxu0 %v15766_v4  ;;  %7162 = vmatprep.subr.bf16.mxu1 %v15768_v5  ;;  %v15878_v4 = vcombine.high %v584_v62, %v592_v63  ;;  %v15880_v5 = vcombine.high %v585_v0, %v593_v1  ;;  %v688_v53 = vld [vmem:[%s20014_s29 + $0x7d0] sm:$0xff]  ;;  %v689_v56 = vld [vmem:[%s20014_s29 + $0x7d8] sm:$0xff] }
 0x1b5   : > { %6999 = vmatpush1.bf16.msra.mxu0 %v15765_v10  ;;  %7163 = vmatpush1.bf16.msra.mxu1 %v15767_v11  ;;  %v15877_v10 = vcombine.low %v584_v62, %v592_v63  ;;  %v15879_v11 = vcombine.low %v585_v0, %v593_v1  ;;  %v696_v62 = vld [vmem:[%s20014_s29 + $0x810] sm:$0xff]  ;;  %v697_v0 = vld [vmem:[%s20014_s29 + $0x818] sm:$0xff] }
 0x1b6   : > { %7000 = vmatprep.subr.bf16.mxu0 %v15782_v13  ;;  %7164 = vmatprep.subr.bf16.mxu1 %v15784_v14  ;;  %v15894_v13 = vcombine.high %v600_v6, %v608_v7  ;;  %v15896_v14 = vcombine.high %v601_v8, %v609_v9  ;;  %v704_v63 = vld [vmem:[%s20014_s29 + $0x850] sm:$0xff]  ;;  %v705_v1 = vld [vmem:[%s20014_s29 + $0x858] sm:$0xff] }
 0x1b9   : > { %7001 = vmatpush1.bf16.msra.mxu0 %v15781_v19  ;;  %7165 = vmatpush1.bf16.msra.mxu1 %v15783_v20  ;;  %v15893_v19 = vcombine.low %v600_v6, %v608_v7  ;;  %v15895_v20 = vcombine.low %v601_v8, %v609_v9  ;;  %v712_v6 = vld [vmem:[%s20014_s29 + $0x890] sm:$0xff]  ;;  %v713_v8 = vld [vmem:[%s20014_s29 + $0x898] sm:$0xff] }
 0x1ba   : > { %7002 = vmatprep.subr.bf16.mxu0 %v15798_v23  ;;  %7166 = vmatprep.subr.bf16.mxu1 %v15800_v24  ;;  %v15910_v23 = vcombine.high %v616_v15, %v624_v16  ;;  %v15912_v24 = vcombine.high %v617_v17, %v625_v18  ;;  %v720_v7 = vld [vmem:[%s20014_s29 + $0x8d0] sm:$0xff]  ;;  %v721_v9 = vld [vmem:[%s20014_s29 + $0x8d8] sm:$0xff] }
 0x1bd   : > { %7003 = vmatpush1.bf16.msra.mxu0 %v15797_v29  ;;  %7167 = vmatpush1.bf16.msra.mxu1 %v15799_v30  ;;  %v15909_v29 = vcombine.low %v616_v15, %v624_v16  ;;  %v15911_v30 = vcombine.low %v617_v17, %v625_v18  ;;  %v728_v15 = vld [vmem:[%s20014_s29 + $0x910] sm:$0xff]  ;;  %v729_v17 = vld [vmem:[%s20014_s29 + $0x918] sm:$0xff] }
 0x1be   : > { %7004 = vmatprep.subr.bf16.mxu0 %v15814_v31  ;;  %7168 = vmatprep.subr.bf16.mxu1 %v15816_v33  ;;  %v15926_v31 = vcombine.high %v632_v25, %v640_v26  ;;  %v15928_v33 = vcombine.high %v633_v27, %v641_v28  ;;  %v736_v16 = vld [vmem:[%s20014_s29 + $0x950] sm:$0xff]  ;;  %v737_v18 = vld [vmem:[%s20014_s29 + $0x958] sm:$0xff] }
 0x1c1   : > { %7005 = vmatpush1.bf16.msra.mxu0 %v15813_v39  ;;  %7169 = vmatpush1.bf16.msra.mxu1 %v15815_v40  ;;  %v15925_v39 = vcombine.low %v632_v25, %v640_v26  ;;  %v15927_v40 = vcombine.low %v633_v27, %v641_v28  ;;  %v744_v25 = vld [vmem:[%s20014_s29 + $0x990] sm:$0xff]  ;;  %v745_v27 = vld [vmem:[%s20014_s29 + $0x998] sm:$0xff] }
 0x1c2   : > { %7006 = vmatprep.subr.bf16.mxu0 %v15830_v41  ;;  %7170 = vmatprep.subr.bf16.mxu1 %v15832_v42  ;;  %v15942_v41 = vcombine.high %v648_v34, %v656_v35  ;;  %v15944_v42 = vcombine.high %v649_v37, %v657_v38  ;;  %v752_v26 = vld [vmem:[%s20014_s29 + $0x9d0] sm:$0xff]  ;;  %v753_v28 = vld [vmem:[%s20014_s29 + $0x9d8] sm:$0xff] }
 0x1c5   : > { %7007 = vmatpush1.bf16.msra.mxu0 %v15829_v48  ;;  %7171 = vmatpush1.bf16.msra.mxu1 %v15831_v49  ;;  %v15941_v48 = vcombine.low %v648_v34, %v656_v35  ;;  %v15943_v49 = vcombine.low %v649_v37, %v657_v38  ;;  %v760_v34 = vld [vmem:[%s20014_s29 + $0xa10] sm:$0xff]  ;;  %v761_v37 = vld [vmem:[%s20014_s29 + $0xa18] sm:$0xff] }
 0x1c6   : > { %7008 = vmatprep.subr.bf16.mxu0 %v15846_v50  ;;  %7172 = vmatprep.subr.bf16.mxu1 %v15848_v51  ;;  %v15958_v50 = vcombine.high %v664_v43, %v672_v44  ;;  %v15960_v51 = vcombine.high %v665_v45, %v673_v47  ;;  %v768_v35 = vld [vmem:[%s20014_s29 + $0xa50] sm:$0xff]  ;;  %v769_v38 = vld [vmem:[%s20014_s29 + $0xa58] sm:$0xff] }
 0x1c9   : > { %7009 = vmatpush1.bf16.msra.mxu0 %v15845_v58  ;;  %7173 = vmatpush1.bf16.msra.mxu1 %v15847_v59  ;;  %v15957_v58 = vcombine.low %v664_v43, %v672_v44  ;;  %v15959_v59 = vcombine.low %v665_v45, %v673_v47  ;;  %v776_v43 = vld [vmem:[%s20014_s29 + $0xa90] sm:$0xff]  ;;  %v777_v45 = vld [vmem:[%s20014_s29 + $0xa98] sm:$0xff] }
 0x1ca   : > { %7010 = vmatprep.subr.bf16.mxu0 %v15862_v60  ;;  %7174 = vmatprep.subr.bf16.mxu1 %v15864_v61  ;;  %v15974_v60 = vcombine.high %v680_v52, %v688_v53  ;;  %v15976_v61 = vcombine.high %v681_v55, %v689_v56  ;;  %v784_v44 = vld [vmem:[%s20014_s29 + $0xad0] sm:$0xff]  ;;  %v785_v47 = vld [vmem:[%s20014_s29 + $0xad8] sm:$0xff] }
 0x1cd   : > { %7011 = vmatpush1.bf16.msra.mxu0 %v15861_v2  ;;  %7175 = vmatpush1.bf16.msra.mxu1 %v15863_v3  ;;  %v15973_v2 = vcombine.low %v680_v52, %v688_v53  ;;  %v15975_v3 = vcombine.low %v681_v55, %v689_v56  ;;  %v792_v52 = vld [vmem:[%s20014_s29 + $0xb10] sm:$0xff]  ;;  %v793_v55 = vld [vmem:[%s20014_s29 + $0xb18] sm:$0xff] }
 0x1ce   : > { %7012 = vmatprep.subr.bf16.mxu0 %v15878_v4  ;;  %7176 = vmatprep.subr.bf16.mxu1 %v15880_v5  ;;  %v15990_v4 = vcombine.high %v696_v62, %v704_v63  ;;  %v15992_v5 = vcombine.high %v697_v0, %v705_v1  ;;  %v800_v53 = vld [vmem:[%s20014_s29 + $0xb50] sm:$0xff]  ;;  %v801_v56 = vld [vmem:[%s20014_s29 + $0xb58] sm:$0xff] }
 0x1d1   : > { %7013 = vmatpush1.bf16.msra.mxu0 %v15877_v10  ;;  %7177 = vmatpush1.bf16.msra.mxu1 %v15879_v11  ;;  %v15989_v10 = vcombine.low %v696_v62, %v704_v63  ;;  %v15991_v11 = vcombine.low %v697_v0, %v705_v1  ;;  %v808_v62 = vld [vmem:[%s20014_s29 + $0xb90] sm:$0xff]  ;;  %v809_v0 = vld [vmem:[%s20014_s29 + $0xb98] sm:$0xff] }
 0x1d2   : > { %7014 = vmatprep.subr.bf16.mxu0 %v15894_v13  ;;  %7178 = vmatprep.subr.bf16.mxu1 %v15896_v14  ;;  %v16006_v13 = vcombine.high %v712_v6, %v720_v7  ;;  %v16008_v14 = vcombine.high %v713_v8, %v721_v9  ;;  %v816_v63 = vld [vmem:[%s20014_s29 + $0xbd0] sm:$0xff]  ;;  %v817_v1 = vld [vmem:[%s20014_s29 + $0xbd8] sm:$0xff] }
 0x1d5   : > { %7015 = vmatpush1.bf16.msra.mxu0 %v15893_v19  ;;  %7179 = vmatpush1.bf16.msra.mxu1 %v15895_v20  ;;  %v16005_v19 = vcombine.low %v712_v6, %v720_v7  ;;  %v16007_v20 = vcombine.low %v713_v8, %v721_v9  ;;  %v824_v6 = vld [vmem:[%s20014_s29 + $0xc10] sm:$0xff]  ;;  %v825_v8 = vld [vmem:[%s20014_s29 + $0xc18] sm:$0xff] }
 0x1d6   : > { %7016 = vmatprep.subr.bf16.mxu0 %v15910_v23  ;;  %7180 = vmatprep.subr.bf16.mxu1 %v15912_v24  ;;  %v16022_v23 = vcombine.high %v728_v15, %v736_v16  ;;  %v16024_v24 = vcombine.high %v729_v17, %v737_v18  ;;  %v832_v7 = vld [vmem:[%s20014_s29 + $0xc50] sm:$0xff]  ;;  %v833_v9 = vld [vmem:[%s20014_s29 + $0xc58] sm:$0xff] }
 0x1d9   : > { %7017 = vmatpush1.bf16.msra.mxu0 %v15909_v29  ;;  %7181 = vmatpush1.bf16.msra.mxu1 %v15911_v30  ;;  %v16021_v29 = vcombine.low %v728_v15, %v736_v16  ;;  %v16023_v30 = vcombine.low %v729_v17, %v737_v18  ;;  %v840_v15 = vld [vmem:[%s20014_s29 + $0xc90] sm:$0xff]  ;;  %v841_v17 = vld [vmem:[%s20014_s29 + $0xc98] sm:$0xff] }
 0x1da   : > { %7018 = vmatprep.subr.bf16.mxu0 %v15926_v31  ;;  %7182 = vmatprep.subr.bf16.mxu1 %v15928_v33  ;;  %v16038_v31 = vcombine.high %v744_v25, %v752_v26  ;;  %v16040_v33 = vcombine.high %v745_v27, %v753_v28  ;;  %v848_v16 = vld [vmem:[%s20014_s29 + $0xcd0] sm:$0xff]  ;;  %v849_v18 = vld [vmem:[%s20014_s29 + $0xcd8] sm:$0xff] }
 0x1dd   : > { %7019 = vmatpush1.bf16.msra.mxu0 %v15925_v39  ;;  %7183 = vmatpush1.bf16.msra.mxu1 %v15927_v40  ;;  %v16037_v39 = vcombine.low %v744_v25, %v752_v26  ;;  %v16039_v40 = vcombine.low %v745_v27, %v753_v28  ;;  %v856_v25 = vld [vmem:[%s20014_s29 + $0xd10] sm:$0xff]  ;;  %v857_v27 = vld [vmem:[%s20014_s29 + $0xd18] sm:$0xff] }
 0x1de   : > { %7020 = vmatprep.subr.bf16.mxu0 %v15942_v41  ;;  %7184 = vmatprep.subr.bf16.mxu1 %v15944_v42  ;;  %v16054_v41 = vcombine.high %v760_v34, %v768_v35  ;;  %v16056_v42 = vcombine.high %v761_v37, %v769_v38  ;;  %v864_v26 = vld [vmem:[%s20014_s29 + $0xd50] sm:$0xff]  ;;  %v865_v28 = vld [vmem:[%s20014_s29 + $0xd58] sm:$0xff] }
 0x1e1   : > { %7021 = vmatpush1.bf16.msra.mxu0 %v15941_v48  ;;  %7185 = vmatpush1.bf16.msra.mxu1 %v15943_v49  ;;  %v16053_v48 = vcombine.low %v760_v34, %v768_v35  ;;  %v16055_v49 = vcombine.low %v761_v37, %v769_v38  ;;  %v872_v34 = vld [vmem:[%s20014_s29 + $0xd90] sm:$0xff]  ;;  %v873_v37 = vld [vmem:[%s20014_s29 + $0xd98] sm:$0xff] }
 0x1e2   : > { %7022 = vmatprep.subr.bf16.mxu0 %v15958_v50  ;;  %7186 = vmatprep.subr.bf16.mxu1 %v15960_v51  ;;  %v16070_v50 = vcombine.high %v776_v43, %v784_v44  ;;  %v16072_v51 = vcombine.high %v777_v45, %v785_v47  ;;  %v880_v35 = vld [vmem:[%s20014_s29 + $0xdd0] sm:$0xff]  ;;  %v881_v38 = vld [vmem:[%s20014_s29 + $0xdd8] sm:$0xff] }
 0x1e5   : > { %7023 = vmatpush1.bf16.msra.mxu0 %v15957_v58  ;;  %7187 = vmatpush1.bf16.msra.mxu1 %v15959_v59  ;;  %v16069_v58 = vcombine.low %v776_v43, %v784_v44  ;;  %v16071_v59 = vcombine.low %v777_v45, %v785_v47  ;;  %v888_v43 = vld [vmem:[%s20014_s29 + $0xe10] sm:$0xff]  ;;  %v889_v45 = vld [vmem:[%s20014_s29 + $0xe18] sm:$0xff] }
 0x1e6   : > { %7024 = vmatprep.subr.bf16.mxu0 %v15974_v60  ;;  %7188 = vmatprep.subr.bf16.mxu1 %v15976_v61  ;;  %v16086_v60 = vcombine.high %v792_v52, %v800_v53  ;;  %v16088_v61 = vcombine.high %v793_v55, %v801_v56  ;;  %v896_v44 = vld [vmem:[%s20014_s29 + $0xe50] sm:$0xff]  ;;  %v897_v47 = vld [vmem:[%s20014_s29 + $0xe58] sm:$0xff] }
 0x1e9   : > { %7025 = vmatpush1.bf16.msra.mxu0 %v15973_v2  ;;  %7189 = vmatpush1.bf16.msra.mxu1 %v15975_v3  ;;  %v16085_v2 = vcombine.low %v792_v52, %v800_v53  ;;  %v16087_v3 = vcombine.low %v793_v55, %v801_v56  ;;  %v904_v52 = vld [vmem:[%s20014_s29 + $0xe90] sm:$0xff]  ;;  %v905_v55 = vld [vmem:[%s20014_s29 + $0xe98] sm:$0xff] }
 0x1ea   : > { %7035 = vmatprep.subr.bf16.mxu0 %v15990_v4  ;;  %7199 = vmatprep.subr.bf16.mxu1 %v15992_v5  ;;  %v16102_v4 = vcombine.high %v808_v62, %v816_v63  ;;  %v16104_v5 = vcombine.high %v809_v0, %v817_v1  ;;  %v912_v53 = vld [vmem:[%s20014_s29 + $0xed0] sm:$0xff]  ;;  %v913_v56 = vld [vmem:[%s20014_s29 + $0xed8] sm:$0xff] }
 0x1ec   : > { %7027 = vmatmul.mubr.bf16.vlgmr.msra.gmra.mrb[4].mxu0 %v20127_v12  ;;  %7191 = vmatmul.mubr.bf16.vlgmr.msra.gmra.mrb[4].mxu1 %v20127_v12 }
 0x1ed   : > { %7036 = vmatpush1.bf16.msra.mxu0 %v15989_v10  ;;  %7200 = vmatpush1.bf16.msra.mxu1 %v15991_v11  ;;  %v16101_v10 = vcombine.low %v808_v62, %v816_v63  ;;  %v16103_v11 = vcombine.low %v809_v0, %v817_v1  ;;  %v920_v62 = vld [vmem:[%s20014_s29 + $0xf10] sm:$0xff]  ;;  %v921_v0 = vld [vmem:[%s20014_s29 + $0xf18] sm:$0xff] }
 0x1ee   : > { %7037 = vmatprep.subr.bf16.mxu0 %v16006_v13  ;;  %7201 = vmatprep.subr.bf16.mxu1 %v16008_v14  ;;  %v16118_v13 = vcombine.high %v824_v6, %v832_v7  ;;  %v16120_v14 = vcombine.high %v825_v8, %v833_v9  ;;  %v928_v63 = vld [vmem:[%s20014_s29 + $0xf50] sm:$0xff]  ;;  %v929_v1 = vld [vmem:[%s20014_s29 + $0xf58] sm:$0xff] }
 0x1ef   : > { %7067 = vmatprep.mubr.bf16.mxu0 %v20136_v22  ;;  %7231 = vmatprep.mubr.bf16.mxu1 %v20136_v22 }
 0x1f1   : > { %7038 = vmatpush1.bf16.msra.mxu0 %v16005_v19  ;;  %7202 = vmatpush1.bf16.msra.mxu1 %v16007_v20  ;;  %v16117_v19 = vcombine.low %v824_v6, %v832_v7  ;;  %v16119_v20 = vcombine.low %v825_v8, %v833_v9  ;;  %v936_v6 = vld [vmem:[%s20014_s29 + $0xf90] sm:$0xff]  ;;  %v937_v8 = vld [vmem:[%s20014_s29 + $0xf98] sm:$0xff] }
 0x1f2   : > { %7039 = vmatprep.subr.bf16.mxu0 %v16022_v23  ;;  %7203 = vmatprep.subr.bf16.mxu1 %v16024_v24  ;;  %v16134_v23 = vcombine.high %v840_v15, %v848_v16  ;;  %v16136_v24 = vcombine.high %v841_v17, %v849_v18  ;;  %v944_v7 = vld [vmem:[%s20014_s29 + $0xfd0] sm:$0xff]  ;;  %v945_v9 = vld [vmem:[%s20014_s29 + $0xfd8] sm:$0xff] }
 0x1f5   : > { %7040 = vmatpush1.bf16.msra.mxu0 %v16021_v29  ;;  %7204 = vmatpush1.bf16.msra.mxu1 %v16023_v30  ;;  %v16133_v29 = vcombine.low %v840_v15, %v848_v16  ;;  %v16135_v30 = vcombine.low %v841_v17, %v849_v18  ;;  %v952_v15 = vld [vmem:[%s20014_s29 + $0x1010] sm:$0xff]  ;;  %v953_v17 = vld [vmem:[%s20014_s29 + $0x1018] sm:$0xff] }
 0x1f6   : > { %7041 = vmatprep.subr.bf16.mxu0 %v16038_v31  ;;  %7205 = vmatprep.subr.bf16.mxu1 %v16040_v33  ;;  %v16150_v31 = vcombine.high %v856_v25, %v864_v26  ;;  %v16152_v33 = vcombine.high %v857_v27, %v865_v28  ;;  %v960_v16 = vld [vmem:[%s20014_s29 + $0x1050] sm:$0xff]  ;;  %v961_v18 = vld [vmem:[%s20014_s29 + $0x1058] sm:$0xff] }
 0x1f9   : > { %7042 = vmatpush1.bf16.msra.mxu0 %v16037_v39  ;;  %7206 = vmatpush1.bf16.msra.mxu1 %v16039_v40  ;;  %v16149_v39 = vcombine.low %v856_v25, %v864_v26  ;;  %v16151_v40 = vcombine.low %v857_v27, %v865_v28  ;;  %v968_v25 = vld [vmem:[%s20014_s29 + $0x1090] sm:$0xff]  ;;  %v969_v27 = vld [vmem:[%s20014_s29 + $0x1098] sm:$0xff] }
 0x1fa   : > { %7043 = vmatprep.subr.bf16.mxu0 %v16054_v41  ;;  %7207 = vmatprep.subr.bf16.mxu1 %v16056_v42  ;;  %v16166_v41 = vcombine.high %v872_v34, %v880_v35  ;;  %v16168_v42 = vcombine.high %v873_v37, %v881_v38  ;;  %v976_v26 = vld [vmem:[%s20014_s29 + $0x10d0] sm:$0xff]  ;;  %v977_v28 = vld [vmem:[%s20014_s29 + $0x10d8] sm:$0xff] }
 0x1fd   : > { %7044 = vmatpush1.bf16.msra.mxu0 %v16053_v48  ;;  %7208 = vmatpush1.bf16.msra.mxu1 %v16055_v49  ;;  %v16165_v48 = vcombine.low %v872_v34, %v880_v35  ;;  %v16167_v49 = vcombine.low %v873_v37, %v881_v38  ;;  %v984_v34 = vld [vmem:[%s20014_s29 + $0x1110] sm:$0xff]  ;;  %v985_v37 = vld [vmem:[%s20014_s29 + $0x1118] sm:$0xff] }
 0x1fe   : > { %7045 = vmatprep.subr.bf16.mxu0 %v16070_v50  ;;  %7209 = vmatprep.subr.bf16.mxu1 %v16072_v51  ;;  %v16182_v50 = vcombine.high %v888_v43, %v896_v44  ;;  %v16184_v51 = vcombine.high %v889_v45, %v897_v47  ;;  %v992_v35 = vld [vmem:[%s20014_s29 + $0x1150] sm:$0xff]  ;;  %v993_v38 = vld [vmem:[%s20014_s29 + $0x1158] sm:$0xff] }
 0x201   : > { %7046 = vmatpush1.bf16.msra.mxu0 %v16069_v58  ;;  %7210 = vmatpush1.bf16.msra.mxu1 %v16071_v59  ;;  %v16181_v58 = vcombine.low %v888_v43, %v896_v44  ;;  %v16183_v59 = vcombine.low %v889_v45, %v897_v47  ;;  %v1000_v43 = vld [vmem:[%s20014_s29 + $0x1190] sm:$0xff]  ;;  %v1001_v45 = vld [vmem:[%s20014_s29 + $0x1198] sm:$0xff] }
 0x202   : > { %7047 = vmatprep.subr.bf16.mxu0 %v16086_v60  ;;  %7211 = vmatprep.subr.bf16.mxu1 %v16088_v61  ;;  %v16198_v60 = vcombine.high %v904_v52, %v912_v53  ;;  %v16200_v61 = vcombine.high %v905_v55, %v913_v56  ;;  %v1008_v44 = vld [vmem:[%s20014_s29 + $0x11d0] sm:$0xff]  ;;  %v1009_v47 = vld [vmem:[%s20014_s29 + $0x11d8] sm:$0xff] }
 0x205   : > { %7048 = vmatpush1.bf16.msra.mxu0 %v16085_v2  ;;  %7212 = vmatpush1.bf16.msra.mxu1 %v16087_v3  ;;  %v16197_v2 = vcombine.low %v904_v52, %v912_v53  ;;  %v16199_v3 = vcombine.low %v905_v55, %v913_v56  ;;  %v1016_v52 = vld [vmem:[%s20014_s29 + $0x1210] sm:$0xff]  ;;  %v1017_v55 = vld [vmem:[%s20014_s29 + $0x1218] sm:$0xff] }
 0x206   : > { %7049 = vmatprep.subr.bf16.mxu0 %v16102_v4  ;;  %7213 = vmatprep.subr.bf16.mxu1 %v16104_v5  ;;  %v16214_v4 = vcombine.high %v920_v62, %v928_v63  ;;  %v16216_v5 = vcombine.high %v921_v0, %v929_v1  ;;  %v1024_v53 = vld [vmem:[%s20014_s29 + $0x1250] sm:$0xff]  ;;  %v1025_v56 = vld [vmem:[%s20014_s29 + $0x1258] sm:$0xff] }
 0x209   : > { %7050 = vmatpush1.bf16.msra.mxu0 %v16101_v10  ;;  %7214 = vmatpush1.bf16.msra.mxu1 %v16103_v11  ;;  %v16213_v10 = vcombine.low %v920_v62, %v928_v63  ;;  %v16215_v11 = vcombine.low %v921_v0, %v929_v1  ;;  %v1032_v62 = vld [vmem:[%s20014_s29 + $0x1290] sm:$0xff]  ;;  %v1033_v0 = vld [vmem:[%s20014_s29 + $0x1298] sm:$0xff] }
 0x20a   : > { %7051 = vmatprep.subr.bf16.mxu0 %v16118_v13  ;;  %7215 = vmatprep.subr.bf16.mxu1 %v16120_v14  ;;  %v16230_v13 = vcombine.high %v936_v6, %v944_v7  ;;  %v16232_v14 = vcombine.high %v937_v8, %v945_v9  ;;  %v1040_v63 = vld [vmem:[%s20014_s29 + $0x12d0] sm:$0xff]  ;;  %v1041_v1 = vld [vmem:[%s20014_s29 + $0x12d8] sm:$0xff] }
 0x20d   : > { %7052 = vmatpush1.bf16.msra.mxu0 %v16117_v19  ;;  %7216 = vmatpush1.bf16.msra.mxu1 %v16119_v20  ;;  %v16229_v19 = vcombine.low %v936_v6, %v944_v7  ;;  %v16231_v20 = vcombine.low %v937_v8, %v945_v9  ;;  %v1048_v6 = vld [vmem:[%s20014_s29 + $0x1310] sm:$0xff]  ;;  %v1049_v8 = vld [vmem:[%s20014_s29 + $0x1318] sm:$0xff] }
 0x20e   : > { %7053 = vmatprep.subr.bf16.mxu0 %v16134_v23  ;;  %7217 = vmatprep.subr.bf16.mxu1 %v16136_v24  ;;  %v16246_v23 = vcombine.high %v952_v15, %v960_v16  ;;  %v16248_v24 = vcombine.high %v953_v17, %v961_v18  ;;  %v1056_v7 = vld [vmem:[%s20014_s29 + $0x1350] sm:$0xff]  ;;  %v1057_v9 = vld [vmem:[%s20014_s29 + $0x1358] sm:$0xff] }
 0x211   : > { %7054 = vmatpush1.bf16.msra.mxu0 %v16133_v29  ;;  %7218 = vmatpush1.bf16.msra.mxu1 %v16135_v30  ;;  %v16245_v29 = vcombine.low %v952_v15, %v960_v16  ;;  %v16247_v30 = vcombine.low %v953_v17, %v961_v18  ;;  %v1064_v15 = vld [vmem:[%s20014_s29 + $0x1390] sm:$0xff]  ;;  %v1065_v17 = vld [vmem:[%s20014_s29 + $0x1398] sm:$0xff] }
 0x212   : > { %7055 = vmatprep.subr.bf16.mxu0 %v16150_v31  ;;  %7219 = vmatprep.subr.bf16.mxu1 %v16152_v33  ;;  %v16262_v31 = vcombine.high %v968_v25, %v976_v26  ;;  %v16264_v33 = vcombine.high %v969_v27, %v977_v28  ;;  %v1072_v16 = vld [vmem:[%s20014_s29 + $0x13d0] sm:$0xff]  ;;  %v1073_v18 = vld [vmem:[%s20014_s29 + $0x13d8] sm:$0xff] }
 0x215   : > { %7056 = vmatpush1.bf16.msra.mxu0 %v16149_v39  ;;  %7220 = vmatpush1.bf16.msra.mxu1 %v16151_v40  ;;  %v16261_v39 = vcombine.low %v968_v25, %v976_v26  ;;  %v16263_v40 = vcombine.low %v969_v27, %v977_v28  ;;  %v1080_v25 = vld [vmem:[%s20014_s29 + $0x1410] sm:$0xff]  ;;  %v1081_v27 = vld [vmem:[%s20014_s29 + $0x1418] sm:$0xff] }
 0x216   : > { %7057 = vmatprep.subr.bf16.mxu0 %v16166_v41  ;;  %7221 = vmatprep.subr.bf16.mxu1 %v16168_v42  ;;  %v16278_v41 = vcombine.high %v984_v34, %v992_v35  ;;  %v16280_v42 = vcombine.high %v985_v37, %v993_v38  ;;  %v1088_v26 = vld [vmem:[%s20014_s29 + $0x1450] sm:$0xff]  ;;  %v1089_v28 = vld [vmem:[%s20014_s29 + $0x1458] sm:$0xff] }
 0x219   : > { %7058 = vmatpush1.bf16.msra.mxu0 %v16165_v48  ;;  %7222 = vmatpush1.bf16.msra.mxu1 %v16167_v49  ;;  %v16277_v48 = vcombine.low %v984_v34, %v992_v35  ;;  %v16279_v49 = vcombine.low %v985_v37, %v993_v38  ;;  %v1096_v34 = vld [vmem:[%s20014_s29 + $0x1490] sm:$0xff]  ;;  %v1097_v37 = vld [vmem:[%s20014_s29 + $0x1498] sm:$0xff] }
 0x21a   : > { %7059 = vmatprep.subr.bf16.mxu0 %v16182_v50  ;;  %7223 = vmatprep.subr.bf16.mxu1 %v16184_v51  ;;  %v16294_v50 = vcombine.high %v1000_v43, %v1008_v44  ;;  %v16296_v51 = vcombine.high %v1001_v45, %v1009_v47  ;;  %v1104_v35 = vld [vmem:[%s20014_s29 + $0x14d0] sm:$0xff]  ;;  %v1105_v38 = vld [vmem:[%s20014_s29 + $0x14d8] sm:$0xff] }
 0x21d   : > { %7060 = vmatpush1.bf16.msra.mxu0 %v16181_v58  ;;  %7224 = vmatpush1.bf16.msra.mxu1 %v16183_v59  ;;  %v16293_v58 = vcombine.low %v1000_v43, %v1008_v44  ;;  %v16295_v59 = vcombine.low %v1001_v45, %v1009_v47  ;;  %v1112_v43 = vld [vmem:[%s20014_s29 + $0x1510] sm:$0xff]  ;;  %v1113_v45 = vld [vmem:[%s20014_s29 + $0x1518] sm:$0xff] }
 0x21e   : > { %7061 = vmatprep.subr.bf16.mxu0 %v16198_v60  ;;  %7225 = vmatprep.subr.bf16.mxu1 %v16200_v61  ;;  %v16310_v60 = vcombine.high %v1016_v52, %v1024_v53  ;;  %v16312_v61 = vcombine.high %v1017_v55, %v1025_v56  ;;  %v1120_v44 = vld [vmem:[%s20014_s29 + $0x1550] sm:$0xff]  ;;  %v1121_v47 = vld [vmem:[%s20014_s29 + $0x1558] sm:$0xff] }
 0x221   : > { %7062 = vmatpush1.bf16.msra.mxu0 %v16197_v2  ;;  %7226 = vmatpush1.bf16.msra.mxu1 %v16199_v3  ;;  %v16309_v2 = vcombine.low %v1016_v52, %v1024_v53  ;;  %v16311_v3 = vcombine.low %v1017_v55, %v1025_v56  ;;  %v1128_v52 = vld [vmem:[%s20014_s29 + $0x1590] sm:$0xff]  ;;  %v1129_v55 = vld [vmem:[%s20014_s29 + $0x1598] sm:$0xff] }
 0x222   : > { %7063 = vmatprep.subr.bf16.mxu0 %v16214_v4  ;;  %7227 = vmatprep.subr.bf16.mxu1 %v16216_v5  ;;  %v16326_v4 = vcombine.high %v1032_v62, %v1040_v63  ;;  %v16328_v5 = vcombine.high %v1033_v0, %v1041_v1  ;;  %v1136_v53 = vld [vmem:[%s20014_s29 + $0x15d0] sm:$0xff]  ;;  %v1137_v56 = vld [vmem:[%s20014_s29 + $0x15d8] sm:$0xff] }
 0x225   : > { %7064 = vmatpush1.bf16.msra.mxu0 %v16213_v10  ;;  %7228 = vmatpush1.bf16.msra.mxu1 %v16215_v11  ;;  %v16325_v10 = vcombine.low %v1032_v62, %v1040_v63  ;;  %v16327_v11 = vcombine.low %v1033_v0, %v1041_v1  ;;  %v1144_v62 = vld [vmem:[%s20014_s29 + $0x1610] sm:$0xff]  ;;  %v1145_v0 = vld [vmem:[%s20014_s29 + $0x1618] sm:$0xff] }
 0x226   : > { %7065 = vmatprep.subr.bf16.mxu0 %v16230_v13  ;;  %7229 = vmatprep.subr.bf16.mxu1 %v16232_v14  ;;  %v16342_v13 = vcombine.high %v1048_v6, %v1056_v7  ;;  %v16344_v14 = vcombine.high %v1049_v8, %v1057_v9  ;;  %v1152_v63 = vld [vmem:[%s20014_s29 + $0x1650] sm:$0xff]  ;;  %v1153_v1 = vld [vmem:[%s20014_s29 + $0x1658] sm:$0xff] }
 0x229   : > { %7066 = vmatpush1.bf16.msra.mxu0 %v16229_v19  ;;  %7230 = vmatpush1.bf16.msra.mxu1 %v16231_v20  ;;  %v16341_v19 = vcombine.low %v1048_v6, %v1056_v7  ;;  %v16343_v20 = vcombine.low %v1049_v8, %v1057_v9  ;;  %v1160_v6 = vld [vmem:[%s20014_s29 + $0x1690] sm:$0xff]  ;;  %v1161_v8 = vld [vmem:[%s20014_s29 + $0x1698] sm:$0xff] }
 0x22a   : > { %7076 = vmatprep.subr.bf16.mxu0 %v16246_v23  ;;  %7240 = vmatprep.subr.bf16.mxu1 %v16248_v24  ;;  %v16358_v23 = vcombine.high %v1064_v15, %v1072_v16  ;;  %v16360_v24 = vcombine.high %v1065_v17, %v1073_v18  ;;  %v1168_v7 = vld [vmem:[%s20014_s29 + $0x16d0] sm:$0xff]  ;;  %v1169_v9 = vld [vmem:[%s20014_s29 + $0x16d8] sm:$0xff] }
 0x22c   : > { %7068 = vmatmul.mubr.bf16.vlgmr.msra.gmra.mrb[4].mxu0 %v20205_v21  ;;  %7232 = vmatmul.mubr.bf16.vlgmr.msra.gmra.mrb[4].mxu1 %v20205_v21 }
 0x22d   : > { %7077 = vmatpush1.bf16.msra.mxu0 %v16245_v29  ;;  %7241 = vmatpush1.bf16.msra.mxu1 %v16247_v30  ;;  %v16357_v29 = vcombine.low %v1064_v15, %v1072_v16  ;;  %v16359_v30 = vcombine.low %v1065_v17, %v1073_v18  ;;  %v1176_v15 = vld [vmem:[%s20014_s29 + $0x1710] sm:$0xff]  ;;  %v1177_v17 = vld [vmem:[%s20014_s29 + $0x1718] sm:$0xff] }
 0x22e   : > { %7078 = vmatprep.subr.bf16.mxu0 %v16262_v31  ;;  %7242 = vmatprep.subr.bf16.mxu1 %v16264_v33  ;;  %v16374_v31 = vcombine.high %v1080_v25, %v1088_v26  ;;  %v16376_v33 = vcombine.high %v1081_v27, %v1089_v28  ;;  %v1184_v16 = vld [vmem:[%s20014_s29 + $0x1750] sm:$0xff]  ;;  %v1185_v18 = vld [vmem:[%s20014_s29 + $0x1758] sm:$0xff] }
 0x22f   : > { %7108 = vmatprep.mubr.bf16.mxu0 %v20214_v32  ;;  %7272 = vmatprep.mubr.bf16.mxu1 %v20214_v32 }
 0x231   : > { %7079 = vmatpush1.bf16.msra.mxu0 %v16261_v39  ;;  %7243 = vmatpush1.bf16.msra.mxu1 %v16263_v40  ;;  %v16373_v39 = vcombine.low %v1080_v25, %v1088_v26  ;;  %v16375_v40 = vcombine.low %v1081_v27, %v1089_v28  ;;  %v1192_v25 = vld [vmem:[%s20014_s29 + $0x1790] sm:$0xff]  ;;  %v1193_v27 = vld [vmem:[%s20014_s29 + $0x1798] sm:$0xff] }
 0x232   : > { %7080 = vmatprep.subr.bf16.mxu0 %v16278_v41  ;;  %7244 = vmatprep.subr.bf16.mxu1 %v16280_v42  ;;  %v16390_v41 = vcombine.high %v1096_v34, %v1104_v35  ;;  %v16392_v42 = vcombine.high %v1097_v37, %v1105_v38  ;;  %v1200_v26 = vld [vmem:[%s20014_s29 + $0x17d0] sm:$0xff]  ;;  %v1201_v28 = vld [vmem:[%s20014_s29 + $0x17d8] sm:$0xff] }
 0x235   : > { %7081 = vmatpush1.bf16.msra.mxu0 %v16277_v48  ;;  %7245 = vmatpush1.bf16.msra.mxu1 %v16279_v49  ;;  %v16389_v48 = vcombine.low %v1096_v34, %v1104_v35  ;;  %v16391_v49 = vcombine.low %v1097_v37, %v1105_v38  ;;  %v1208_v34 = vld [vmem:[%s20014_s29 + $0x1810] sm:$0xff]  ;;  %v1209_v37 = vld [vmem:[%s20014_s29 + $0x1818] sm:$0xff] }
 0x236   : > { %7082 = vmatprep.subr.bf16.mxu0 %v16294_v50  ;;  %7246 = vmatprep.subr.bf16.mxu1 %v16296_v51  ;;  %v16406_v50 = vcombine.high %v1112_v43, %v1120_v44  ;;  %v16408_v51 = vcombine.high %v1113_v45, %v1121_v47  ;;  %v1216_v35 = vld [vmem:[%s20014_s29 + $0x1850] sm:$0xff]  ;;  %v1217_v38 = vld [vmem:[%s20014_s29 + $0x1858] sm:$0xff] }
 0x239   : > { %7083 = vmatpush1.bf16.msra.mxu0 %v16293_v58  ;;  %7247 = vmatpush1.bf16.msra.mxu1 %v16295_v59  ;;  %v16405_v58 = vcombine.low %v1112_v43, %v1120_v44  ;;  %v16407_v59 = vcombine.low %v1113_v45, %v1121_v47  ;;  %v1224_v43 = vld [vmem:[%s20014_s29 + $0x1890] sm:$0xff]  ;;  %v1225_v45 = vld [vmem:[%s20014_s29 + $0x1898] sm:$0xff] }
 0x23a   : > { %7084 = vmatprep.subr.bf16.mxu0 %v16310_v60  ;;  %7248 = vmatprep.subr.bf16.mxu1 %v16312_v61  ;;  %v16422_v60 = vcombine.high %v1128_v52, %v1136_v53  ;;  %v16424_v61 = vcombine.high %v1129_v55, %v1137_v56  ;;  %v1232_v44 = vld [vmem:[%s20014_s29 + $0x18d0] sm:$0xff]  ;;  %v1233_v47 = vld [vmem:[%s20014_s29 + $0x18d8] sm:$0xff] }
 0x23d   : > { %7085 = vmatpush1.bf16.msra.mxu0 %v16309_v2  ;;  %7249 = vmatpush1.bf16.msra.mxu1 %v16311_v3  ;;  %v16421_v2 = vcombine.low %v1128_v52, %v1136_v53  ;;  %v16423_v3 = vcombine.low %v1129_v55, %v1137_v56  ;;  %v1240_v52 = vld [vmem:[%s20014_s29 + $0x1910] sm:$0xff]  ;;  %v1241_v55 = vld [vmem:[%s20014_s29 + $0x1918] sm:$0xff] }
 0x23e   : > { %7086 = vmatprep.subr.bf16.mxu0 %v16326_v4  ;;  %7250 = vmatprep.subr.bf16.mxu1 %v16328_v5  ;;  %v16438_v4 = vcombine.high %v1144_v62, %v1152_v63  ;;  %v16440_v5 = vcombine.high %v1145_v0, %v1153_v1  ;;  %v1248_v53 = vld [vmem:[%s20014_s29 + $0x1950] sm:$0xff]  ;;  %v1249_v56 = vld [vmem:[%s20014_s29 + $0x1958] sm:$0xff] }
 0x241   : > { %7087 = vmatpush1.bf16.msra.mxu0 %v16325_v10  ;;  %7251 = vmatpush1.bf16.msra.mxu1 %v16327_v11  ;;  %v16437_v10 = vcombine.low %v1144_v62, %v1152_v63  ;;  %v16439_v11 = vcombine.low %v1145_v0, %v1153_v1  ;;  %v1256_v62 = vld [vmem:[%s20014_s29 + $0x1990] sm:$0xff]  ;;  %v1257_v0 = vld [vmem:[%s20014_s29 + $0x1998] sm:$0xff] }
 0x242   : > { %7088 = vmatprep.subr.bf16.mxu0 %v16342_v13  ;;  %7252 = vmatprep.subr.bf16.mxu1 %v16344_v14  ;;  %v16454_v13 = vcombine.high %v1160_v6, %v1168_v7  ;;  %v16456_v14 = vcombine.high %v1161_v8, %v1169_v9  ;;  %v1264_v63 = vld [vmem:[%s20014_s29 + $0x19d0] sm:$0xff]  ;;  %v1265_v1 = vld [vmem:[%s20014_s29 + $0x19d8] sm:$0xff] }
 0x245   : > { %7089 = vmatpush1.bf16.msra.mxu0 %v16341_v19  ;;  %7253 = vmatpush1.bf16.msra.mxu1 %v16343_v20  ;;  %v16453_v19 = vcombine.low %v1160_v6, %v1168_v7  ;;  %v16455_v20 = vcombine.low %v1161_v8, %v1169_v9  ;;  %v16552_v6 = vcombine.high %v1257_v0, %v1265_v1  ;;  %v1272_v7 = vld [vmem:[%s20014_s29 + $0x1a10] sm:$0xff]  ;;  %v1273_v9 = vld [vmem:[%s20014_s29 + $0x1a18] sm:$0xff] }
 0x246   : > { %7090 = vmatprep.subr.bf16.mxu0 %v16358_v23  ;;  %7254 = vmatprep.subr.bf16.mxu1 %v16360_v24  ;;  %v16470_v23 = vcombine.high %v1176_v15, %v1184_v16  ;;  %v16472_v24 = vcombine.high %v1177_v17, %v1185_v18  ;;  %v1280_v8 = vld [vmem:[%s20014_s29 + $0x1a50] sm:$0xff] }
 0x249   : > { %7091 = vmatpush1.bf16.msra.mxu0 %v16357_v29  ;;  %7255 = vmatpush1.bf16.msra.mxu1 %v16359_v30  ;;  %v16469_v29 = vcombine.low %v1176_v15, %v1184_v16  ;;  %v16471_v30 = vcombine.low %v1177_v17, %v1185_v18  ;;  %v16566_v15 = vcombine.high %v1272_v7, %v1280_v8  ;;  %v1288_v17 = vld [vmem:[%s20014_s29 + $0x1a90] sm:$0xff] }
 0x24a   : > { %7092 = vmatprep.subr.bf16.mxu0 %v16374_v31  ;;  %7256 = vmatprep.subr.bf16.mxu1 %v16376_v33  ;;  %v16486_v31 = vcombine.high %v1192_v25, %v1200_v26  ;;  %v16488_v33 = vcombine.high %v1193_v27, %v1201_v28  ;;  %v1296_v18 = vld [vmem:[%s20014_s29 + $0x1ad0] sm:$0xff] }
 0x24d   : > { %7093 = vmatpush1.bf16.msra.mxu0 %v16373_v39  ;;  %7257 = vmatpush1.bf16.msra.mxu1 %v16375_v40  ;;  %v16485_v39 = vcombine.low %v1192_v25, %v1200_v26  ;;  %v16487_v40 = vcombine.low %v1193_v27, %v1201_v28  ;;  %v1462_v25 = vld [vmem:[%s20021_s6] sm:$0xff] }
 0x24e   : > { %7094 = vmatprep.subr.bf16.mxu0 %v16390_v41  ;;  %7258 = vmatprep.subr.bf16.mxu1 %v16392_v42  ;;  %v16502_v41 = vcombine.high %v1208_v34, %v1216_v35  ;;  %v16504_v42 = vcombine.high %v1209_v37, %v1217_v38 }
 0x251   : > { %7095 = vmatpush1.bf16.msra.mxu0 %v16389_v48  ;;  %7259 = vmatpush1.bf16.msra.mxu1 %v16391_v49  ;;  %v16501_v48 = vcombine.low %v1208_v34, %v1216_v35  ;;  %v16503_v49 = vcombine.low %v1209_v37, %v1217_v38  ;;  %v1312_v34 = vld [vmem:[%s20014_s29 + $0x1b50] sm:$0xff]  ;;  %v1305_v37 = vld [vmem:[%s20014_s29 + $0x1b18] sm:$0xff] }
 0x252   : > { %7096 = vmatprep.subr.bf16.mxu0 %v16406_v50  ;;  %7260 = vmatprep.subr.bf16.mxu1 %v16408_v51  ;;  %v16518_v50 = vcombine.high %v1224_v43, %v1232_v44  ;;  %v16520_v51 = vcombine.high %v1225_v45, %v1233_v47  ;;  %v1313_v38 = vld [vmem:[%s20014_s29 + $0x1b58] sm:$0xff] }
 0x255   : > { %7097 = vmatpush1.bf16.msra.mxu0 %v16405_v58  ;;  %7261 = vmatpush1.bf16.msra.mxu1 %v16407_v59  ;;  %v16517_v58 = vcombine.low %v1224_v43, %v1232_v44  ;;  %v16519_v59 = vcombine.low %v1225_v45, %v1233_v47  ;;  %v16600_v47 = vcombine.high %v1305_v37, %v1313_v38 }
 0x256   : > { %7098 = vmatprep.subr.bf16.mxu0 %v16422_v60  ;;  %7262 = vmatprep.subr.bf16.mxu1 %v16424_v61  ;;  %v16534_v60 = vcombine.high %v1240_v52, %v1248_v53  ;;  %v16536_v61 = vcombine.high %v1241_v55, %v1249_v56 }
 0x259   : > { %7099 = vmatpush1.bf16.msra.mxu0 %v16421_v2  ;;  %7263 = vmatpush1.bf16.msra.mxu1 %v16423_v3  ;;  %v1466_v2 = vlaneseq  ;;  %v16533_v3 = vcombine.low %v1240_v52, %v1248_v53  ;;  %v1321_v53 = vld [vmem:[%s20014_s29 + $0x1b98] sm:$0xff] }
 0x25a   : > { %7100 = vmatprep.subr.bf16.mxu0 %v16438_v4  ;;  %7264 = vmatprep.subr.bf16.mxu1 %v16440_v5  ;;  %v16535_v4 = vcombine.low %v1241_v55, %v1249_v56  ;;  %v16550_v5 = vcombine.high %v1256_v62, %v1264_v63  ;;  %v1329_v55 = vld [vmem:[%s20014_s29 + $0x1bd8] sm:$0xff] }
 0x25d   : > { %7101 = vmatpush1.bf16.msra.mxu0 %v16437_v10  ;;  %7265 = vmatpush1.bf16.msra.mxu1 %v16439_v11  ;;  %v1281_v10 = vld [vmem:[%s20014_s29 + $0x1a58] sm:$0xff]  ;;  %v20585_v11 = vshrl.u32 %v1466_v2, 7 }
 0x25e   : > { %7102 = vmatprep.subr.bf16.mxu0 %v16454_v13  ;;  %7266 = vmatprep.subr.bf16.mxu1 %v16456_v14  ;;  %v16549_v13 = vcombine.low %v1256_v62, %v1264_v63  ;;  %v16551_v14 = vcombine.low %v1257_v0, %v1265_v1  ;;  %v16568_v16 = vcombine.high %v1273_v9, %v1281_v10 }
 0x25f   : > { %v1476_v26 = vsub.s32 2, %v20585_v11  ;;  %v1472_v27 = vsub.s32 1, %v20585_v11  ;;  %v16567_v28 = vcombine.low %v1273_v9, %v1281_v10  ;;  %v16599_v1 = vcombine.low %v1305_v37, %v1313_v38 }
 0x260   : > { %v16615_v10 = vcombine.low %v1321_v53, %v1329_v55 }
 0x261   : > { %7103 = vmatpush1.bf16.msra.mxu0 %v16453_v19  ;;  %7267 = vmatpush1.bf16.msra.mxu1 %v16455_v20  ;;  %v1468_v19 = vsub.s32 0, %v20585_v11  ;;  %v1289_v20 = vld [vmem:[%s20014_s29 + $0x1a98] sm:$0xff] }
 0x262   : > { %7104 = vmatprep.subr.bf16.mxu0 %v16470_v23  ;;  %7268 = vmatprep.subr.bf16.mxu1 %v16472_v24  ;;  %v1297_v23 = vld [vmem:[%s20014_s29 + $0x1ad8] sm:$0xff]  ;;  %v16565_v24 = vcombine.low %v1272_v7, %v1280_v8 }
 0x263   : > { %v1469_v35 = vrot.slane %v1462_v25, %v1468_v19  ;;  %v16583_v43 = vcombine.low %v1289_v20, %v1297_v23  ;;  %v1337_v7 = vld [vmem:[%s20014_s29 + $0x1c18] sm:$0xff] }
 0x264   : > { %v1345_v8 = vld [vmem:[%s20014_s29 + $0x1c58] sm:$0xff] }
 0x265   : > { %7105 = vmatpush1.bf16.msra.mxu0 %v16469_v29  ;;  %7269 = vmatpush1.bf16.msra.mxu1 %v16471_v30  ;;  %v1480_v29 = vsub.s32 3, %v20585_v11  ;;  %v16582_v30 = vcombine.high %v1288_v17, %v1296_v18 }
 0x266   : > { %7106 = vmatprep.subr.bf16.mxu0 %v16486_v31  ;;  %7270 = vmatprep.subr.bf16.mxu1 %v16488_v33  ;;  %v16584_v31 = vcombine.high %v1289_v20, %v1297_v23  ;;  %v1304_v33 = vld [vmem:[%s20014_s29 + $0x1b10] sm:$0xff]  ;;  %v16631_v23 = vcombine.low %v1337_v7, %v1345_v8 }
 0x267   : > { %v16598_v44 = vcombine.high %v1304_v33, %v1312_v34 }
 0x269   : > { %7107 = vmatpush1.bf16.msra.mxu0 %v16485_v39  ;;  %7271 = vmatpush1.bf16.msra.mxu1 %v16487_v40  ;;  %v1477_v39 = vrot.slane %v1462_v25, %v1476_v26  ;;  %v1473_v40 = vrot.slane %v1462_v25, %v1472_v27 }
 0x26a   : > { %7117 = vmatprep.subr.bf16.mxu0 %v16502_v41  ;;  %7281 = vmatprep.subr.bf16.mxu1 %v16504_v42  ;;  %v16581_v41 = vcombine.low %v1288_v17, %v1296_v18  ;;  %v1481_v42 = vrot.slane %v1462_v25, %v1480_v29  ;;  %v1353_v17 = vld [vmem:[%s20014_s29 + $0x1c98] sm:$0xff] }
 0x26b   : > { %v1361_v18 = vld [vmem:[%s20014_s29 + $0x1cd8] sm:$0xff] }
 0x26c   : > { %7109 = vmatmul.mubr.bf16.vlgmr.msra.gmra.mrb[4].mxu0 %v20283_v36  ;;  %7273 = vmatmul.mubr.bf16.vlgmr.msra.gmra.mrb[4].mxu1 %v20283_v36  ;;  %v16648_v25 = vcombine.high %v1353_v17, %v1361_v18 }
 0x26d   : > { %7118 = vmatpush1.bf16.msra.mxu0 %v16501_v48  ;;  %7282 = vmatpush1.bf16.msra.mxu1 %v16503_v49  ;;  %v1320_v48 = vld [vmem:[%s20014_s29 + $0x1b90] sm:$0xff] }
 0x26e   : > { %7119 = vmatprep.subr.bf16.mxu0 %v16518_v50  ;;  %7283 = vmatprep.subr.bf16.mxu1 %v16520_v51  ;;  %v1328_v49 = vld [vmem:[%s20014_s29 + $0x1bd0] sm:$0xff] }
 0x26f   : > { %7149 = vmatprep.mubr.bf16.mxu0 %v20292_v46  ;;  %7313 = vmatprep.mubr.bf16.mxu1 %v20292_v46  ;;  %v16614_v2 = vcombine.high %v1320_v48, %v1328_v49  ;;  %v16613_v9 = vcombine.low %v1320_v48, %v1328_v49  ;;  %v1400_v48 = vld [vmem:[%s20014_s29 + $0x1e10] sm:$0xff] }
 0x270   : > { %v1408_v49 = vld [vmem:[%s20014_s29 + $0x1e50] sm:$0xff] }
 0x271   : > { %7120 = vmatpush1.bf16.msra.mxu0 %v16517_v58  ;;  %7284 = vmatpush1.bf16.msra.mxu1 %v16519_v59 }
 0x272   : > { %7121 = vmatprep.subr.bf16.mxu0 %v16534_v60  ;;  %7285 = vmatprep.subr.bf16.mxu1 %v16536_v61  ;;  %v16597_v61 = vcombine.low %v1304_v33, %v1312_v34  ;;  %v1377_v33 = vld [vmem:[%s20014_s29 + $0x1d58] sm:$0xff] }
 0x275   : > { %7122 = vmatpush1.bf16.msra.mxu0 %v16533_v3  ;;  %7286 = vmatpush1.bf16.msra.mxu1 %v16535_v4  ;;  %v16616_v4 = vcombine.high %v1321_v53, %v1329_v55  ;;  %v16694_v55 = vcombine.high %v1400_v48, %v1408_v49 }
 0x276   : > { %7123 = vmatprep.subr.bf16.mxu0 %v16550_v5  ;;  %7287 = vmatprep.subr.bf16.mxu1 %v16552_v6  ;;  %v1336_v5 = vld [vmem:[%s20014_s29 + $0x1c10] sm:$0xff] }
 0x277   : > { %v1344_v6 = vld [vmem:[%s20014_s29 + $0x1c50] sm:$0xff] }
 0x278   : > { %v16629_v20 = vcombine.low %v1336_v5, %v1344_v6 }
 0x279   : > { %7124 = vmatpush1.bf16.msra.mxu0 %v16549_v13  ;;  %7288 = vmatpush1.bf16.msra.mxu1 %v16551_v14  ;;  %v16630_v13 = vcombine.high %v1336_v5, %v1344_v6  ;;  %v16632_v14 = vcombine.high %v1337_v7, %v1345_v8  ;;  %v1441_v5 = vld [vmem:[%s20014_s29 + $0x1f58] sm:$0xff] }
 0x27a   : > { %7125 = vmatprep.subr.bf16.mxu0 %v16566_v15  ;;  %7289 = vmatprep.subr.bf16.mxu1 %v16568_v16  ;;  %v1352_v15 = vld [vmem:[%s20014_s29 + $0x1c90] sm:$0xff] }
 0x27b   : > { %v1360_v16 = vld [vmem:[%s20014_s29 + $0x1cd0] sm:$0xff] }
 0x27c   : > { %v16645_v34 = vcombine.low %v1352_v15, %v1360_v16 }
 0x27d   : > { %7126 = vmatpush1.bf16.msra.mxu0 %v16565_v24  ;;  %7290 = vmatpush1.bf16.msra.mxu1 %v16567_v28  ;;  %v16646_v24 = vcombine.high %v1352_v15, %v1360_v16  ;;  %v1368_v28 = vld [vmem:[%s20014_s29 + $0x1d10] sm:$0xff]  ;;  %v1457_v15 = vld [vmem:[%s20014_s29 + $0x1fd8] sm:$0xff] }
 0x27e   : > { %7127 = vmatprep.subr.bf16.mxu0 %v16582_v30  ;;  %7291 = vmatprep.subr.bf16.mxu1 %v16584_v31  ;;  %v1376_v30 = vld [vmem:[%s20014_s29 + $0x1d50] sm:$0xff]  ;;  %v1369_v31 = vld [vmem:[%s20014_s29 + $0x1d18] sm:$0xff] }
 0x27f   : > { %v6823_v45 = vpop.f32.mrb[0].mxu0  ;;  %v6987_v51 = vpop.f32.mrb[0].mxu1  ;;  %v16662_v37 = vcombine.high %v1368_v28, %v1376_v30  ;;  %v16664_v38 = vcombine.high %v1369_v31, %v1377_v33 }
 0x280   : > { %v17787_v50 = vadd.f32 %v6823_v45, %v1469_v35  ;;  %v6825_v52 = vpop.f32.mrb[1].mxu0  ;;  %v17789_v56 = vadd.f32 %v6987_v51, %v1477_v39  ;;  %v6989_v59 = vpop.f32.mrb[1].mxu1  ;;  %v16647_v35 = vcombine.low %v1353_v17, %v1361_v18  ;;  %v1384_v39 = vld [vmem:[%s20014_s29 + $0x1d90] sm:$0xff]  ;;  %v1409_v51 = vld [vmem:[%s20014_s29 + $0x1e58] sm:$0xff] }
 0x281   : > { %v17788_v58 = vadd.f32 %v6825_v52, %v1473_v40  ;;  %v6827_v60 = vpop.f32.mrb[2].mxu0  ;;  %7128 = vmatpush1.bf16.msra.mxu0 %v16581_v41  ;;  %v17790_v62 = vadd.f32 %v6989_v59, %v1481_v42  ;;  %v6991_v63 = vpop.f32.mrb[2].mxu1  ;;  %7292 = vmatpush1.bf16.msra.mxu1 %v16583_v43  ;;  %v1392_v40 = vld [vmem:[%s20014_s29 + $0x1dd0] sm:$0xff]  ;;  %v1385_v41 = vld [vmem:[%s20014_s29 + $0x1d98] sm:$0xff]  ;;  %v16661_v43 = vcombine.low %v1368_v28, %v1376_v30  ;;  %v451_v28 = vld [vmem:[%s20014_s29 + $0x68] sm:$0xff] }
 0x282   : > { %7981 = vst [vmem:[%s20613_s1] sm:$0xff] %v17787_v50  ;;  %v6828_v0 = vpop.f32.mrb[3].mxu0  ;;  %7129 = vmatprep.subr.bf16.mxu0 %v16598_v44  ;;  %7983 = vst [vmem:[%s20613_s1 + $0x10] sm:$0xff] %v17789_v56  ;;  %v6992_v3 = vpop.f32.mrb[3].mxu1  ;;  %7293 = vmatprep.subr.bf16.mxu1 %v16600_v47  ;;  %v1393_v42 = vld [vmem:[%s20014_s29 + $0x1dd8] sm:$0xff]  ;;  %v16663_v44 = vcombine.low %v1369_v31, %v1377_v33  ;;  %v16678_v45 = vcombine.high %v1384_v39, %v1392_v40  ;;  %v1424_v59 = vld [vmem:[%s20014_s29 + $0x1ed0] sm:$0xff] }
 0x283   : > { %7982 = vst [vmem:[%s20613_s1 + $0x8] sm:$0xff] %v17788_v58  ;;  %7984 = vst [vmem:[%s20613_s1 + $0x18] sm:$0xff] %v17790_v62  ;;  %v16680_v47 = vcombine.high %v1385_v41, %v1393_v42  ;;  %v1401_v50 = vld [vmem:[%s20014_s29 + $0x1e18] sm:$0xff]  ;;  %v16677_v52 = vcombine.low %v1384_v39, %v1392_v40  ;;  %v16679_v53 = vcombine.low %v1385_v41, %v1393_v42  ;;  %v1416_v58 = vld [vmem:[%s20014_s29 + $0x1e90] sm:$0xff] }
 0x284   : > { %v16696_v56 = vcombine.high %v1401_v50, %v1409_v51  ;;  %v1417_v60 = vld [vmem:[%s20014_s29 + $0x1e98] sm:$0xff]  ;;  %v16693_v62 = vcombine.low %v1400_v48, %v1408_v49  ;;  %v16695_v63 = vcombine.low %v1401_v50, %v1409_v51  ;;  %v16710_v0 = vcombine.high %v1416_v58, %v1424_v59  ;;  %v1440_v3 = vld [vmem:[%s20014_s29 + $0x1f50] sm:$0xff]  ;;  %v467_v39 = vld [vmem:[%s20014_s29 + $0xe8] sm:$0xff] }
 0x285   : > { %7130 = vmatpush1.bf16.msra.mxu0 %v16597_v61  ;;  %7294 = vmatpush1.bf16.msra.mxu1 %v16599_v1  ;;  %v1425_v61 = vld [vmem:[%s20014_s29 + $0x1ed8] sm:$0xff]  ;;  %v16709_v6 = vcombine.low %v1416_v58, %v1424_v59  ;;  %v483_v48 = vld [vmem:[%s20014_s29 + $0x168] sm:$0xff] }
 0x286   : > { %7131 = vmatprep.subr.bf16.mxu0 %v16614_v2  ;;  %7295 = vmatprep.subr.bf16.mxu1 %v16616_v4  ;;  %v16712_v1 = vcombine.high %v1417_v60, %v1425_v61  ;;  %v1432_v2 = vld [vmem:[%s20014_s29 + $0x1f10] sm:$0xff]  ;;  %v1433_v4 = vld [vmem:[%s20014_s29 + $0x1f18] sm:$0xff]  ;;  %v16711_v7 = vcombine.low %v1417_v60, %v1425_v61  ;;  %v499_v58 = vld [vmem:[%s20014_s29 + $0x1e8] sm:$0xff] }
 0x287   : > { %v16726_v8 = vcombine.high %v1432_v2, %v1440_v3  ;;  %v16725_v16 = vcombine.low %v1432_v2, %v1440_v3  ;;  %v16727_v17 = vcombine.low %v1433_v4, %v1441_v5  ;;  %v515_v2 = vld [vmem:[%s20014_s29 + $0x268] sm:$0xff] }
 0x289   : > { %7132 = vmatpush1.bf16.msra.mxu0 %v16613_v9  ;;  %7296 = vmatpush1.bf16.msra.mxu1 %v16615_v10  ;;  %v16728_v9 = vcombine.high %v1433_v4, %v1441_v5  ;;  %v1448_v10 = vld [vmem:[%s20014_s29 + $0x1f90] sm:$0xff] }
 0x28a   : > { %7133 = vmatprep.subr.bf16.mxu0 %v16630_v13  ;;  %7297 = vmatprep.subr.bf16.mxu1 %v16632_v14  ;;  %v1456_v13 = vld [vmem:[%s20014_s29 + $0x1fd0] sm:$0xff]  ;;  %v1449_v14 = vld [vmem:[%s20014_s29 + $0x1f98] sm:$0xff] }
 0x28b   : > { %v16742_v18 = vcombine.high %v1448_v10, %v1456_v13  ;;  %v16741_v30 = vcombine.low %v1448_v10, %v1456_v13  ;;  %v16743_v31 = vcombine.low %v1449_v14, %v1457_v15  ;;  %v531_v10 = vld [vmem:[%s20014_s29 + $0x2e8] sm:$0xff] }
 0x28d   : > { %7134 = vmatpush1.bf16.msra.mxu0 %v16629_v20  ;;  %7298 = vmatpush1.bf16.msra.mxu1 %v16631_v23  ;;  %v16744_v20 = vcombine.high %v1449_v14, %v1457_v15  ;;  %v442_v23 = vld [vmem:[%s20014_s29 + $0x20] sm:$0xff] }
 0x28e   : > { %7135 = vmatprep.subr.bf16.mxu0 %v16646_v24  ;;  %7299 = vmatprep.subr.bf16.mxu1 %v16648_v25  ;;  %v450_v24 = vld [vmem:[%s20014_s29 + $0x60] sm:$0xff]  ;;  %v443_v25 = vld [vmem:[%s20014_s29 + $0x28] sm:$0xff] }
 0x28f   : > { %v15738_v33 = vcombine.high %v442_v23, %v450_v24  ;;  %v15737_v40 = vcombine.low %v442_v23, %v450_v24  ;;  %v15739_v41 = vcombine.low %v443_v25, %v451_v28  ;;  %v547_v23 = vld [vmem:[%s20014_s29 + $0x368] sm:$0xff] }
 0x291   : > { %7136 = vmatpush1.bf16.msra.mxu0 %v16645_v34  ;;  %7300 = vmatpush1.bf16.msra.mxu1 %v16647_v35  ;;  %v15740_v34 = vcombine.high %v443_v25, %v451_v28  ;;  %v458_v35 = vld [vmem:[%s20014_s29 + $0xa0] sm:$0xff] }
 0x292   : > { %7137 = vmatprep.subr.bf16.mxu0 %v16662_v37  ;;  %7301 = vmatprep.subr.bf16.mxu1 %v16664_v38  ;;  %v466_v37 = vld [vmem:[%s20014_s29 + $0xe0] sm:$0xff]  ;;  %v459_v38 = vld [vmem:[%s20014_s29 + $0xa8] sm:$0xff] }
 0x293   : > { %v15754_v42 = vcombine.high %v458_v35, %v466_v37  ;;  %v15753_v49 = vcombine.low %v458_v35, %v466_v37  ;;  %v15755_v50 = vcombine.low %v459_v38, %v467_v39  ;;  %v563_v35 = vld [vmem:[%s20014_s29 + $0x3e8] sm:$0xff] }
 0x295   : > { %7138 = vmatpush1.bf16.msra.mxu0 %v16661_v43  ;;  %7302 = vmatpush1.bf16.msra.mxu1 %v16663_v44  ;;  %v15756_v43 = vcombine.high %v459_v38, %v467_v39  ;;  %v474_v44 = vld [vmem:[%s20014_s29 + $0x120] sm:$0xff] }
 0x296   : > { %7139 = vmatprep.subr.bf16.mxu0 %v16678_v45  ;;  %7303 = vmatprep.subr.bf16.mxu1 %v16680_v47  ;;  %v482_v45 = vld [vmem:[%s20014_s29 + $0x160] sm:$0xff]  ;;  %v475_v47 = vld [vmem:[%s20014_s29 + $0x128] sm:$0xff] }
 0x297   : > { %v15770_v51 = vcombine.high %v474_v44, %v482_v45  ;;  %v15769_v59 = vcombine.low %v474_v44, %v482_v45  ;;  %v15771_v60 = vcombine.low %v475_v47, %v483_v48  ;;  %v579_v44 = vld [vmem:[%s20014_s29 + $0x468] sm:$0xff] }
 0x299   : > { %7140 = vmatpush1.bf16.msra.mxu0 %v16677_v52  ;;  %7304 = vmatpush1.bf16.msra.mxu1 %v16679_v53  ;;  %v15772_v52 = vcombine.high %v475_v47, %v483_v48  ;;  %v490_v53 = vld [vmem:[%s20014_s29 + $0x1a0] sm:$0xff] }
 0x29a   : > { %7141 = vmatprep.subr.bf16.mxu0 %v16694_v55  ;;  %7305 = vmatprep.subr.bf16.mxu1 %v16696_v56  ;;  %v498_v55 = vld [vmem:[%s20014_s29 + $0x1e0] sm:$0xff]  ;;  %v491_v56 = vld [vmem:[%s20014_s29 + $0x1a8] sm:$0xff] }
 0x29b   : > { %v15786_v61 = vcombine.high %v490_v53, %v498_v55  ;;  %v15785_v3 = vcombine.low %v490_v53, %v498_v55  ;;  %v15787_v4 = vcombine.low %v491_v56, %v499_v58  ;;  %v595_v53 = vld [vmem:[%s20014_s29 + $0x4e8] sm:$0xff] }
 0x29d   : > { %7142 = vmatpush1.bf16.msra.mxu0 %v16693_v62  ;;  %7306 = vmatpush1.bf16.msra.mxu1 %v16695_v63  ;;  %v15788_v62 = vcombine.high %v491_v56, %v499_v58  ;;  %v506_v63 = vld [vmem:[%s20014_s29 + $0x220] sm:$0xff] }
 0x29e   : > { %7143 = vmatprep.subr.bf16.mxu0 %v16710_v0  ;;  %7307 = vmatprep.subr.bf16.mxu1 %v16712_v1  ;;  %v514_v0 = vld [vmem:[%s20014_s29 + $0x260] sm:$0xff]  ;;  %v507_v1 = vld [vmem:[%s20014_s29 + $0x228] sm:$0xff] }
 0x29f   : > { %v15802_v5 = vcombine.high %v506_v63, %v514_v0  ;;  %v15801_v13 = vcombine.low %v506_v63, %v514_v0  ;;  %v15803_v14 = vcombine.low %v507_v1, %v515_v2  ;;  %v611_v63 = vld [vmem:[%s20014_s29 + $0x568] sm:$0xff] }
 0x2a1   : > { %7144 = vmatpush1.bf16.msra.mxu0 %v16709_v6  ;;  %7308 = vmatpush1.bf16.msra.mxu1 %v16711_v7  ;;  %v15804_v6 = vcombine.high %v507_v1, %v515_v2  ;;  %v522_v7 = vld [vmem:[%s20014_s29 + $0x2a0] sm:$0xff] }
 0x2a2   : > { %7145 = vmatprep.subr.bf16.mxu0 %v16726_v8  ;;  %7309 = vmatprep.subr.bf16.mxu1 %v16728_v9  ;;  %v530_v8 = vld [vmem:[%s20014_s29 + $0x2e0] sm:$0xff]  ;;  %v523_v9 = vld [vmem:[%s20014_s29 + $0x2a8] sm:$0xff] }
 0x2a3   : > { %v15818_v15 = vcombine.high %v522_v7, %v530_v8  ;;  %v15817_v24 = vcombine.low %v522_v7, %v530_v8  ;;  %v15819_v25 = vcombine.low %v523_v9, %v531_v10  ;;  %v627_v7 = vld [vmem:[%s20014_s29 + $0x5e8] sm:$0xff] }
 0x2a5   : > { %7146 = vmatpush1.bf16.msra.mxu0 %v16725_v16  ;;  %7310 = vmatpush1.bf16.msra.mxu1 %v16727_v17  ;;  %v15820_v16 = vcombine.high %v523_v9, %v531_v10  ;;  %v538_v17 = vld [vmem:[%s20014_s29 + $0x320] sm:$0xff] }
 0x2a6   : > { %7147 = vmatprep.subr.bf16.mxu0 %v16742_v18  ;;  %7311 = vmatprep.subr.bf16.mxu1 %v16744_v20  ;;  %v546_v18 = vld [vmem:[%s20014_s29 + $0x360] sm:$0xff]  ;;  %v539_v20 = vld [vmem:[%s20014_s29 + $0x328] sm:$0xff] }
 0x2a7   : > { %v15834_v28 = vcombine.high %v538_v17, %v546_v18  ;;  %v15833_v37 = vcombine.low %v538_v17, %v546_v18  ;;  %v15835_v38 = vcombine.low %v539_v20, %v547_v23  ;;  %v643_v17 = vld [vmem:[%s20014_s29 + $0x668] sm:$0xff] }
 0x2a9   : > { %7148 = vmatpush1.bf16.msra.mxu0 %v16741_v30  ;;  %7312 = vmatpush1.bf16.msra.mxu1 %v16743_v31  ;;  %v15836_v30 = vcombine.high %v539_v20, %v547_v23  ;;  %v554_v31 = vld [vmem:[%s20014_s29 + $0x3a0] sm:$0xff] }
 0x2aa   : > { %7322 = vmatprep.subr.bf16.mxu0 %v15738_v33  ;;  %7486 = vmatprep.subr.bf16.mxu1 %v15740_v34  ;;  %v562_v33 = vld [vmem:[%s20014_s29 + $0x3e0] sm:$0xff]  ;;  %v555_v34 = vld [vmem:[%s20014_s29 + $0x3a8] sm:$0xff] }
 0x2ab   : > { %v15850_v39 = vcombine.high %v554_v31, %v562_v33  ;;  %v15849_v45 = vcombine.low %v554_v31, %v562_v33  ;;  %v15851_v47 = vcombine.low %v555_v34, %v563_v35  ;;  %v659_v31 = vld [vmem:[%s20014_s29 + $0x6e8] sm:$0xff] }
 0x2ac   : > { %7150 = vmatmul.mubr.bf16.vlgmr.msra.gmra.mrb[4].mxu0 %v20361_v54  ;;  %7314 = vmatmul.mubr.bf16.vlgmr.msra.gmra.mrb[4].mxu1 %v20361_v54 }
 0x2ad   : > { %7323 = vmatpush1.bf16.msra.mxu0 %v15737_v40  ;;  %7487 = vmatpush1.bf16.msra.mxu1 %v15739_v41  ;;  %v15852_v40 = vcombine.high %v555_v34, %v563_v35  ;;  %v570_v41 = vld [vmem:[%s20014_s29 + $0x420] sm:$0xff] }
 0x2ae   : > { %7324 = vmatprep.subr.bf16.mxu0 %v15754_v42  ;;  %7488 = vmatprep.subr.bf16.mxu1 %v15756_v43  ;;  %v578_v42 = vld [vmem:[%s20014_s29 + $0x460] sm:$0xff]  ;;  %v571_v43 = vld [vmem:[%s20014_s29 + $0x428] sm:$0xff] }
 0x2af   : > { %7354 = vmatprep.mubr.bf16.mxu0 %v20080_v57  ;;  %7518 = vmatprep.mubr.bf16.mxu1 %v20080_v57  ;;  %v15866_v48 = vcombine.high %v570_v41, %v578_v42  ;;  %v15865_v55 = vcombine.low %v570_v41, %v578_v42  ;;  %v15867_v56 = vcombine.low %v571_v43, %v579_v44  ;;  %v675_v41 = vld [vmem:[%s20014_s29 + $0x768] sm:$0xff] }
 0x2b1   : > { %7325 = vmatpush1.bf16.msra.mxu0 %v15753_v49  ;;  %7489 = vmatpush1.bf16.msra.mxu1 %v15755_v50  ;;  %v15868_v49 = vcombine.high %v571_v43, %v579_v44  ;;  %v586_v50 = vld [vmem:[%s20014_s29 + $0x4a0] sm:$0xff] }
 0x2b2   : > { %7326 = vmatprep.subr.bf16.mxu0 %v15770_v51  ;;  %7490 = vmatprep.subr.bf16.mxu1 %v15772_v52  ;;  %v594_v51 = vld [vmem:[%s20014_s29 + $0x4e0] sm:$0xff]  ;;  %v587_v52 = vld [vmem:[%s20014_s29 + $0x4a8] sm:$0xff] }
 0x2b3   : > { %v15882_v58 = vcombine.high %v586_v50, %v594_v51  ;;  %v15881_v0 = vcombine.low %v586_v50, %v594_v51  ;;  %v15883_v1 = vcombine.low %v587_v52, %v595_v53  ;;  %v691_v50 = vld [vmem:[%s20014_s29 + $0x7e8] sm:$0xff] }
 0x2b5   : > { %7327 = vmatpush1.bf16.msra.mxu0 %v15769_v59  ;;  %7491 = vmatpush1.bf16.msra.mxu1 %v15771_v60  ;;  %v15884_v59 = vcombine.high %v587_v52, %v595_v53  ;;  %v602_v60 = vld [vmem:[%s20014_s29 + $0x520] sm:$0xff] }
 0x2b6   : > { %7328 = vmatprep.subr.bf16.mxu0 %v15786_v61  ;;  %7492 = vmatprep.subr.bf16.mxu1 %v15788_v62  ;;  %v610_v61 = vld [vmem:[%s20014_s29 + $0x560] sm:$0xff]  ;;  %v603_v62 = vld [vmem:[%s20014_s29 + $0x528] sm:$0xff] }
 0x2b7   : > { %v15898_v2 = vcombine.high %v602_v60, %v610_v61  ;;  %v15897_v8 = vcombine.low %v602_v60, %v610_v61  ;;  %v15899_v9 = vcombine.low %v603_v62, %v611_v63  ;;  %v707_v60 = vld [vmem:[%s20014_s29 + $0x868] sm:$0xff] }
 0x2b9   : > { %7329 = vmatpush1.bf16.msra.mxu0 %v15785_v3  ;;  %7493 = vmatpush1.bf16.msra.mxu1 %v15787_v4  ;;  %v15900_v3 = vcombine.high %v603_v62, %v611_v63  ;;  %v618_v4 = vld [vmem:[%s20014_s29 + $0x5a0] sm:$0xff] }
 0x2ba   : > { %7330 = vmatprep.subr.bf16.mxu0 %v15802_v5  ;;  %7494 = vmatprep.subr.bf16.mxu1 %v15804_v6  ;;  %v626_v5 = vld [vmem:[%s20014_s29 + $0x5e0] sm:$0xff]  ;;  %v619_v6 = vld [vmem:[%s20014_s29 + $0x5a8] sm:$0xff] }
 0x2bb   : > { %v15914_v10 = vcombine.high %v618_v4, %v626_v5  ;;  %v15913_v18 = vcombine.low %v618_v4, %v626_v5  ;;  %v15915_v20 = vcombine.low %v619_v6, %v627_v7  ;;  %v723_v4 = vld [vmem:[%s20014_s29 + $0x8e8] sm:$0xff] }
 0x2bd   : > { %7331 = vmatpush1.bf16.msra.mxu0 %v15801_v13  ;;  %7495 = vmatpush1.bf16.msra.mxu1 %v15803_v14  ;;  %v15916_v13 = vcombine.high %v619_v6, %v627_v7  ;;  %v634_v14 = vld [vmem:[%s20014_s29 + $0x620] sm:$0xff] }
 0x2be   : > { %7332 = vmatprep.subr.bf16.mxu0 %v15818_v15  ;;  %7496 = vmatprep.subr.bf16.mxu1 %v15820_v16  ;;  %v642_v15 = vld [vmem:[%s20014_s29 + $0x660] sm:$0xff]  ;;  %v635_v16 = vld [vmem:[%s20014_s29 + $0x628] sm:$0xff] }
 0x2bf   : > { %v15930_v23 = vcombine.high %v634_v14, %v642_v15  ;;  %v15929_v33 = vcombine.low %v634_v14, %v642_v15  ;;  %v15931_v34 = vcombine.low %v635_v16, %v643_v17  ;;  %v739_v14 = vld [vmem:[%s20014_s29 + $0x968] sm:$0xff] }
 0x2c1   : > { %7333 = vmatpush1.bf16.msra.mxu0 %v15817_v24  ;;  %7497 = vmatpush1.bf16.msra.mxu1 %v15819_v25  ;;  %v15932_v24 = vcombine.high %v635_v16, %v643_v17  ;;  %v650_v25 = vld [vmem:[%s20014_s29 + $0x6a0] sm:$0xff] }
 0x2c2   : > { %7334 = vmatprep.subr.bf16.mxu0 %v15834_v28  ;;  %7498 = vmatprep.subr.bf16.mxu1 %v15836_v30  ;;  %v658_v28 = vld [vmem:[%s20014_s29 + $0x6e0] sm:$0xff]  ;;  %v651_v30 = vld [vmem:[%s20014_s29 + $0x6a8] sm:$0xff] }
 0x2c3   : > { %v15946_v35 = vcombine.high %v650_v25, %v658_v28  ;;  %v15945_v42 = vcombine.low %v650_v25, %v658_v28  ;;  %v15947_v43 = vcombine.low %v651_v30, %v659_v31  ;;  %v755_v25 = vld [vmem:[%s20014_s29 + $0x9e8] sm:$0xff] }
 0x2c5   : > { %7335 = vmatpush1.bf16.msra.mxu0 %v15833_v37  ;;  %7499 = vmatpush1.bf16.msra.mxu1 %v15835_v38  ;;  %v15948_v37 = vcombine.high %v651_v30, %v659_v31  ;;  %v666_v38 = vld [vmem:[%s20014_s29 + $0x720] sm:$0xff] }
 0x2c6   : > { %7336 = vmatprep.subr.bf16.mxu0 %v15850_v39  ;;  %7500 = vmatprep.subr.bf16.mxu1 %v15852_v40  ;;  %v674_v39 = vld [vmem:[%s20014_s29 + $0x760] sm:$0xff]  ;;  %v667_v40 = vld [vmem:[%s20014_s29 + $0x728] sm:$0xff] }
 0x2c7   : > { %v15962_v44 = vcombine.high %v666_v38, %v674_v39  ;;  %v15961_v51 = vcombine.low %v666_v38, %v674_v39  ;;  %v15963_v52 = vcombine.low %v667_v40, %v675_v41  ;;  %v771_v38 = vld [vmem:[%s20014_s29 + $0xa68] sm:$0xff] }
 0x2c9   : > { %7337 = vmatpush1.bf16.msra.mxu0 %v15849_v45  ;;  %7501 = vmatpush1.bf16.msra.mxu1 %v15851_v47  ;;  %v15964_v45 = vcombine.high %v667_v40, %v675_v41  ;;  %v682_v47 = vld [vmem:[%s20014_s29 + $0x7a0] sm:$0xff] }
 0x2ca   : > { %7338 = vmatprep.subr.bf16.mxu0 %v15866_v48  ;;  %7502 = vmatprep.subr.bf16.mxu1 %v15868_v49  ;;  %v690_v48 = vld [vmem:[%s20014_s29 + $0x7e0] sm:$0xff]  ;;  %v683_v49 = vld [vmem:[%s20014_s29 + $0x7a8] sm:$0xff] }
 0x2cb   : > { %v15978_v53 = vcombine.high %v682_v47, %v690_v48  ;;  %v15977_v61 = vcombine.low %v682_v47, %v690_v48  ;;  %v15979_v62 = vcombine.low %v683_v49, %v691_v50  ;;  %v787_v47 = vld [vmem:[%s20014_s29 + $0xae8] sm:$0xff] }
 0x2cd   : > { %7339 = vmatpush1.bf16.msra.mxu0 %v15865_v55  ;;  %7503 = vmatpush1.bf16.msra.mxu1 %v15867_v56  ;;  %v15980_v55 = vcombine.high %v683_v49, %v691_v50  ;;  %v698_v56 = vld [vmem:[%s20014_s29 + $0x820] sm:$0xff] }
 0x2ce   : > { %7340 = vmatprep.subr.bf16.mxu0 %v15882_v58  ;;  %7504 = vmatprep.subr.bf16.mxu1 %v15884_v59  ;;  %v706_v58 = vld [vmem:[%s20014_s29 + $0x860] sm:$0xff]  ;;  %v699_v59 = vld [vmem:[%s20014_s29 + $0x828] sm:$0xff] }
 0x2cf   : > { %v15994_v63 = vcombine.high %v698_v56, %v706_v58  ;;  %v15993_v5 = vcombine.low %v698_v56, %v706_v58  ;;  %v15995_v6 = vcombine.low %v699_v59, %v707_v60  ;;  %v803_v56 = vld [vmem:[%s20014_s29 + $0xb68] sm:$0xff] }
 0x2d1   : > { %7341 = vmatpush1.bf16.msra.mxu0 %v15881_v0  ;;  %7505 = vmatpush1.bf16.msra.mxu1 %v15883_v1  ;;  %v15996_v0 = vcombine.high %v699_v59, %v707_v60  ;;  %v714_v1 = vld [vmem:[%s20014_s29 + $0x8a0] sm:$0xff] }
 0x2d2   : > { %7342 = vmatprep.subr.bf16.mxu0 %v15898_v2  ;;  %7506 = vmatprep.subr.bf16.mxu1 %v15900_v3  ;;  %v722_v2 = vld [vmem:[%s20014_s29 + $0x8e0] sm:$0xff]  ;;  %v715_v3 = vld [vmem:[%s20014_s29 + $0x8a8] sm:$0xff] }
 0x2d3   : > { %v16010_v7 = vcombine.high %v714_v1, %v722_v2  ;;  %v16009_v15 = vcombine.low %v714_v1, %v722_v2  ;;  %v16011_v16 = vcombine.low %v715_v3, %v723_v4  ;;  %v819_v1 = vld [vmem:[%s20014_s29 + $0xbe8] sm:$0xff] }
 0x2d5   : > { %7343 = vmatpush1.bf16.msra.mxu0 %v15897_v8  ;;  %7507 = vmatpush1.bf16.msra.mxu1 %v15899_v9  ;;  %v16012_v8 = vcombine.high %v715_v3, %v723_v4  ;;  %v730_v9 = vld [vmem:[%s20014_s29 + $0x920] sm:$0xff] }
 0x2d6   : > { %7344 = vmatprep.subr.bf16.mxu0 %v15914_v10  ;;  %7508 = vmatprep.subr.bf16.mxu1 %v15916_v13  ;;  %v738_v10 = vld [vmem:[%s20014_s29 + $0x960] sm:$0xff]  ;;  %v731_v13 = vld [vmem:[%s20014_s29 + $0x928] sm:$0xff] }
 0x2d7   : > { %v16026_v17 = vcombine.high %v730_v9, %v738_v10  ;;  %v16025_v28 = vcombine.low %v730_v9, %v738_v10  ;;  %v16027_v30 = vcombine.low %v731_v13, %v739_v14  ;;  %v835_v9 = vld [vmem:[%s20014_s29 + $0xc68] sm:$0xff] }
 0x2d9   : > { %7345 = vmatpush1.bf16.msra.mxu0 %v15913_v18  ;;  %7509 = vmatpush1.bf16.msra.mxu1 %v15915_v20  ;;  %v16028_v18 = vcombine.high %v731_v13, %v739_v14  ;;  %v746_v20 = vld [vmem:[%s20014_s29 + $0x9a0] sm:$0xff] }
 0x2da   : > { %7346 = vmatprep.subr.bf16.mxu0 %v15930_v23  ;;  %7510 = vmatprep.subr.bf16.mxu1 %v15932_v24  ;;  %v754_v23 = vld [vmem:[%s20014_s29 + $0x9e0] sm:$0xff]  ;;  %v747_v24 = vld [vmem:[%s20014_s29 + $0x9a8] sm:$0xff] }
 0x2db   : > { %v16042_v31 = vcombine.high %v746_v20, %v754_v23  ;;  %v16041_v39 = vcombine.low %v746_v20, %v754_v23  ;;  %v16043_v40 = vcombine.low %v747_v24, %v755_v25  ;;  %v851_v20 = vld [vmem:[%s20014_s29 + $0xce8] sm:$0xff] }
 0x2dd   : > { %7347 = vmatpush1.bf16.msra.mxu0 %v15929_v33  ;;  %7511 = vmatpush1.bf16.msra.mxu1 %v15931_v34  ;;  %v16044_v33 = vcombine.high %v747_v24, %v755_v25  ;;  %v762_v34 = vld [vmem:[%s20014_s29 + $0xa20] sm:$0xff] }
 0x2de   : > { %7348 = vmatprep.subr.bf16.mxu0 %v15946_v35  ;;  %7512 = vmatprep.subr.bf16.mxu1 %v15948_v37  ;;  %v770_v35 = vld [vmem:[%s20014_s29 + $0xa60] sm:$0xff]  ;;  %v763_v37 = vld [vmem:[%s20014_s29 + $0xa28] sm:$0xff] }
 0x2df   : > { %v16058_v41 = vcombine.high %v762_v34, %v770_v35  ;;  %v16057_v48 = vcombine.low %v762_v34, %v770_v35  ;;  %v16059_v49 = vcombine.low %v763_v37, %v771_v38  ;;  %v867_v34 = vld [vmem:[%s20014_s29 + $0xd68] sm:$0xff] }
 0x2e1   : > { %7349 = vmatpush1.bf16.msra.mxu0 %v15945_v42  ;;  %7513 = vmatpush1.bf16.msra.mxu1 %v15947_v43  ;;  %v16060_v42 = vcombine.high %v763_v37, %v771_v38  ;;  %v778_v43 = vld [vmem:[%s20014_s29 + $0xaa0] sm:$0xff] }
 0x2e2   : > { %7350 = vmatprep.subr.bf16.mxu0 %v15962_v44  ;;  %7514 = vmatprep.subr.bf16.mxu1 %v15964_v45  ;;  %v786_v44 = vld [vmem:[%s20014_s29 + $0xae0] sm:$0xff]  ;;  %v779_v45 = vld [vmem:[%s20014_s29 + $0xaa8] sm:$0xff] }
 0x2e3   : > { %v16074_v50 = vcombine.high %v778_v43, %v786_v44  ;;  %v16073_v58 = vcombine.low %v778_v43, %v786_v44  ;;  %v16075_v59 = vcombine.low %v779_v45, %v787_v47  ;;  %v883_v43 = vld [vmem:[%s20014_s29 + $0xde8] sm:$0xff] }
 0x2e5   : > { %7351 = vmatpush1.bf16.msra.mxu0 %v15961_v51  ;;  %7515 = vmatpush1.bf16.msra.mxu1 %v15963_v52  ;;  %v16076_v51 = vcombine.high %v779_v45, %v787_v47  ;;  %v794_v52 = vld [vmem:[%s20014_s29 + $0xb20] sm:$0xff] }
 0x2e6   : > { %7352 = vmatprep.subr.bf16.mxu0 %v15978_v53  ;;  %7516 = vmatprep.subr.bf16.mxu1 %v15980_v55  ;;  %v802_v53 = vld [vmem:[%s20014_s29 + $0xb60] sm:$0xff]  ;;  %v795_v55 = vld [vmem:[%s20014_s29 + $0xb28] sm:$0xff] }
 0x2e7   : > { %v16090_v60 = vcombine.high %v794_v52, %v802_v53  ;;  %v16089_v2 = vcombine.low %v794_v52, %v802_v53  ;;  %v16091_v3 = vcombine.low %v795_v55, %v803_v56  ;;  %v899_v52 = vld [vmem:[%s20014_s29 + $0xe68] sm:$0xff] }
 0x2e9   : > { %7353 = vmatpush1.bf16.msra.mxu0 %v15977_v61  ;;  %7517 = vmatpush1.bf16.msra.mxu1 %v15979_v62  ;;  %v16092_v61 = vcombine.high %v795_v55, %v803_v56  ;;  %v810_v62 = vld [vmem:[%s20014_s29 + $0xba0] sm:$0xff] }
 0x2ea   : > { %7363 = vmatprep.subr.bf16.mxu0 %v15994_v63  ;;  %7527 = vmatprep.subr.bf16.mxu1 %v15996_v0  ;;  %v818_v63 = vld [vmem:[%s20014_s29 + $0xbe0] sm:$0xff]  ;;  %v811_v0 = vld [vmem:[%s20014_s29 + $0xba8] sm:$0xff] }
 0x2eb   : > { %v16106_v4 = vcombine.high %v810_v62, %v818_v63  ;;  %v16105_v10 = vcombine.low %v810_v62, %v818_v63  ;;  %v16107_v13 = vcombine.low %v811_v0, %v819_v1  ;;  %v915_v62 = vld [vmem:[%s20014_s29 + $0xee8] sm:$0xff] }
 0x2ec   : > { %7355 = vmatmul.mubr.bf16.vlgmr.msra.gmra.mrb[8].mxu0 %v20127_v12  ;;  %7519 = vmatmul.mubr.bf16.vlgmr.msra.gmra.mrb[8].mxu1 %v20127_v12 }
 0x2ed   : > { %7364 = vmatpush1.bf16.msra.mxu0 %v15993_v5  ;;  %7528 = vmatpush1.bf16.msra.mxu1 %v15995_v6  ;;  %v16108_v5 = vcombine.high %v811_v0, %v819_v1  ;;  %v826_v6 = vld [vmem:[%s20014_s29 + $0xc20] sm:$0xff] }
 0x2ee   : > { %7365 = vmatprep.subr.bf16.mxu0 %v16010_v7  ;;  %7529 = vmatprep.subr.bf16.mxu1 %v16012_v8  ;;  %v834_v7 = vld [vmem:[%s20014_s29 + $0xc60] sm:$0xff]  ;;  %v827_v8 = vld [vmem:[%s20014_s29 + $0xc28] sm:$0xff] }
 0x2ef   : > { %7395 = vmatprep.mubr.bf16.mxu0 %v20136_v22  ;;  %7559 = vmatprep.mubr.bf16.mxu1 %v20136_v22  ;;  %v16122_v14 = vcombine.high %v826_v6, %v834_v7  ;;  %v16121_v23 = vcombine.low %v826_v6, %v834_v7  ;;  %v16123_v24 = vcombine.low %v827_v8, %v835_v9  ;;  %v931_v6 = vld [vmem:[%s20014_s29 + $0xf68] sm:$0xff] }
 0x2f1   : > { %7366 = vmatpush1.bf16.msra.mxu0 %v16009_v15  ;;  %7530 = vmatpush1.bf16.msra.mxu1 %v16011_v16  ;;  %v16124_v15 = vcombine.high %v827_v8, %v835_v9  ;;  %v842_v16 = vld [vmem:[%s20014_s29 + $0xca0] sm:$0xff] }
 0x2f2   : > { %7367 = vmatprep.subr.bf16.mxu0 %v16026_v17  ;;  %7531 = vmatprep.subr.bf16.mxu1 %v16028_v18  ;;  %v850_v17 = vld [vmem:[%s20014_s29 + $0xce0] sm:$0xff]  ;;  %v843_v18 = vld [vmem:[%s20014_s29 + $0xca8] sm:$0xff] }
 0x2f3   : > { %v16138_v25 = vcombine.high %v842_v16, %v850_v17  ;;  %v16137_v35 = vcombine.low %v842_v16, %v850_v17  ;;  %v16139_v37 = vcombine.low %v843_v18, %v851_v20  ;;  %v947_v16 = vld [vmem:[%s20014_s29 + $0xfe8] sm:$0xff] }
 0x2f5   : > { %7368 = vmatpush1.bf16.msra.mxu0 %v16025_v28  ;;  %7532 = vmatpush1.bf16.msra.mxu1 %v16027_v30  ;;  %v16140_v28 = vcombine.high %v843_v18, %v851_v20  ;;  %v858_v30 = vld [vmem:[%s20014_s29 + $0xd20] sm:$0xff] }
 0x2f6   : > { %7369 = vmatprep.subr.bf16.mxu0 %v16042_v31  ;;  %7533 = vmatprep.subr.bf16.mxu1 %v16044_v33  ;;  %v866_v31 = vld [vmem:[%s20014_s29 + $0xd60] sm:$0xff]  ;;  %v859_v33 = vld [vmem:[%s20014_s29 + $0xd28] sm:$0xff] }
 0x2f7   : > { %v16154_v38 = vcombine.high %v858_v30, %v866_v31  ;;  %v16153_v44 = vcombine.low %v858_v30, %v866_v31  ;;  %v16155_v45 = vcombine.low %v859_v33, %v867_v34  ;;  %v963_v30 = vld [vmem:[%s20014_s29 + $0x1068] sm:$0xff] }
 0x2f9   : > { %7370 = vmatpush1.bf16.msra.mxu0 %v16041_v39  ;;  %7534 = vmatpush1.bf16.msra.mxu1 %v16043_v40  ;;  %v16156_v39 = vcombine.high %v859_v33, %v867_v34  ;;  %v874_v40 = vld [vmem:[%s20014_s29 + $0xda0] sm:$0xff] }
 0x2fa   : > { %7371 = vmatprep.subr.bf16.mxu0 %v16058_v41  ;;  %7535 = vmatprep.subr.bf16.mxu1 %v16060_v42  ;;  %v882_v41 = vld [vmem:[%s20014_s29 + $0xde0] sm:$0xff]  ;;  %v875_v42 = vld [vmem:[%s20014_s29 + $0xda8] sm:$0xff] }
 0x2fb   : > { %v16170_v47 = vcombine.high %v874_v40, %v882_v41  ;;  %v16169_v53 = vcombine.low %v874_v40, %v882_v41  ;;  %v16171_v55 = vcombine.low %v875_v42, %v883_v43  ;;  %v979_v40 = vld [vmem:[%s20014_s29 + $0x10e8] sm:$0xff] }
 0x2fd   : > { %7372 = vmatpush1.bf16.msra.mxu0 %v16057_v48  ;;  %7536 = vmatpush1.bf16.msra.mxu1 %v16059_v49  ;;  %v16172_v48 = vcombine.high %v875_v42, %v883_v43  ;;  %v890_v49 = vld [vmem:[%s20014_s29 + $0xe20] sm:$0xff] }
 0x2fe   : > { %7373 = vmatprep.subr.bf16.mxu0 %v16074_v50  ;;  %7537 = vmatprep.subr.bf16.mxu1 %v16076_v51  ;;  %v898_v50 = vld [vmem:[%s20014_s29 + $0xe60] sm:$0xff]  ;;  %v891_v51 = vld [vmem:[%s20014_s29 + $0xe28] sm:$0xff] }
 0x2ff   : > { %v16186_v56 = vcombine.high %v890_v49, %v898_v50  ;;  %v16185_v63 = vcombine.low %v890_v49, %v898_v50  ;;  %v16187_v0 = vcombine.low %v891_v51, %v899_v52  ;;  %v995_v49 = vld [vmem:[%s20014_s29 + $0x1168] sm:$0xff] }
 0x301   : > { %7374 = vmatpush1.bf16.msra.mxu0 %v16073_v58  ;;  %7538 = vmatpush1.bf16.msra.mxu1 %v16075_v59  ;;  %v16188_v58 = vcombine.high %v891_v51, %v899_v52  ;;  %v906_v59 = vld [vmem:[%s20014_s29 + $0xea0] sm:$0xff] }
 0x302   : > { %7375 = vmatprep.subr.bf16.mxu0 %v16090_v60  ;;  %7539 = vmatprep.subr.bf16.mxu1 %v16092_v61  ;;  %v914_v60 = vld [vmem:[%s20014_s29 + $0xee0] sm:$0xff]  ;;  %v907_v61 = vld [vmem:[%s20014_s29 + $0xea8] sm:$0xff] }
 0x303   : > { %v16202_v1 = vcombine.high %v906_v59, %v914_v60  ;;  %v16201_v7 = vcombine.low %v906_v59, %v914_v60  ;;  %v16203_v8 = vcombine.low %v907_v61, %v915_v62  ;;  %v1011_v59 = vld [vmem:[%s20014_s29 + $0x11e8] sm:$0xff] }
 0x305   : > { %7376 = vmatpush1.bf16.msra.mxu0 %v16089_v2  ;;  %7540 = vmatpush1.bf16.msra.mxu1 %v16091_v3  ;;  %v16204_v2 = vcombine.high %v907_v61, %v915_v62  ;;  %v922_v3 = vld [vmem:[%s20014_s29 + $0xf20] sm:$0xff] }
 0x306   : > { %7377 = vmatprep.subr.bf16.mxu0 %v16106_v4  ;;  %7541 = vmatprep.subr.bf16.mxu1 %v16108_v5  ;;  %v930_v4 = vld [vmem:[%s20014_s29 + $0xf60] sm:$0xff]  ;;  %v923_v5 = vld [vmem:[%s20014_s29 + $0xf28] sm:$0xff] }
 0x307   : > { %v16218_v9 = vcombine.high %v922_v3, %v930_v4  ;;  %v16217_v17 = vcombine.low %v922_v3, %v930_v4  ;;  %v16219_v18 = vcombine.low %v923_v5, %v931_v6  ;;  %v1027_v3 = vld [vmem:[%s20014_s29 + $0x1268] sm:$0xff] }
 0x309   : > { %7378 = vmatpush1.bf16.msra.mxu0 %v16105_v10  ;;  %7542 = vmatpush1.bf16.msra.mxu1 %v16107_v13  ;;  %v16220_v10 = vcombine.high %v923_v5, %v931_v6  ;;  %v938_v13 = vld [vmem:[%s20014_s29 + $0xfa0] sm:$0xff] }
 0x30a   : > { %7379 = vmatprep.subr.bf16.mxu0 %v16122_v14  ;;  %7543 = vmatprep.subr.bf16.mxu1 %v16124_v15  ;;  %v946_v14 = vld [vmem:[%s20014_s29 + $0xfe0] sm:$0xff]  ;;  %v939_v15 = vld [vmem:[%s20014_s29 + $0xfa8] sm:$0xff] }
 0x30b   : > { %v16234_v20 = vcombine.high %v938_v13, %v946_v14  ;;  %v16233_v31 = vcombine.low %v938_v13, %v946_v14  ;;  %v16235_v33 = vcombine.low %v939_v15, %v947_v16  ;;  %v1043_v13 = vld [vmem:[%s20014_s29 + $0x12e8] sm:$0xff] }
 0x30d   : > { %7380 = vmatpush1.bf16.msra.mxu0 %v16121_v23  ;;  %7544 = vmatpush1.bf16.msra.mxu1 %v16123_v24  ;;  %v16236_v23 = vcombine.high %v939_v15, %v947_v16  ;;  %v954_v24 = vld [vmem:[%s20014_s29 + $0x1020] sm:$0xff] }
 0x30e   : > { %7381 = vmatprep.subr.bf16.mxu0 %v16138_v25  ;;  %7545 = vmatprep.subr.bf16.mxu1 %v16140_v28  ;;  %v962_v25 = vld [vmem:[%s20014_s29 + $0x1060] sm:$0xff]  ;;  %v955_v28 = vld [vmem:[%s20014_s29 + $0x1028] sm:$0xff] }
 0x30f   : > { %v16250_v34 = vcombine.high %v954_v24, %v962_v25  ;;  %v16249_v41 = vcombine.low %v954_v24, %v962_v25  ;;  %v16251_v42 = vcombine.low %v955_v28, %v963_v30  ;;  %v1059_v24 = vld [vmem:[%s20014_s29 + $0x1368] sm:$0xff] }
 0x311   : > { %7382 = vmatpush1.bf16.msra.mxu0 %v16137_v35  ;;  %7546 = vmatpush1.bf16.msra.mxu1 %v16139_v37  ;;  %v16252_v35 = vcombine.high %v955_v28, %v963_v30  ;;  %v970_v37 = vld [vmem:[%s20014_s29 + $0x10a0] sm:$0xff] }
 0x312   : > { %7383 = vmatprep.subr.bf16.mxu0 %v16154_v38  ;;  %7547 = vmatprep.subr.bf16.mxu1 %v16156_v39  ;;  %v978_v38 = vld [vmem:[%s20014_s29 + $0x10e0] sm:$0xff]  ;;  %v971_v39 = vld [vmem:[%s20014_s29 + $0x10a8] sm:$0xff] }
 0x313   : > { %v16266_v43 = vcombine.high %v970_v37, %v978_v38  ;;  %v16265_v50 = vcombine.low %v970_v37, %v978_v38  ;;  %v16267_v51 = vcombine.low %v971_v39, %v979_v40  ;;  %v1075_v37 = vld [vmem:[%s20014_s29 + $0x13e8] sm:$0xff] }
 0x315   : > { %7384 = vmatpush1.bf16.msra.mxu0 %v16153_v44  ;;  %7548 = vmatpush1.bf16.msra.mxu1 %v16155_v45  ;;  %v16268_v44 = vcombine.high %v971_v39, %v979_v40  ;;  %v986_v45 = vld [vmem:[%s20014_s29 + $0x1120] sm:$0xff] }
 0x316   : > { %7385 = vmatprep.subr.bf16.mxu0 %v16170_v47  ;;  %7549 = vmatprep.subr.bf16.mxu1 %v16172_v48  ;;  %v994_v47 = vld [vmem:[%s20014_s29 + $0x1160] sm:$0xff]  ;;  %v987_v48 = vld [vmem:[%s20014_s29 + $0x1128] sm:$0xff] }
 0x317   : > { %v16282_v52 = vcombine.high %v986_v45, %v994_v47  ;;  %v16281_v60 = vcombine.low %v986_v45, %v994_v47  ;;  %v16283_v61 = vcombine.low %v987_v48, %v995_v49  ;;  %v1091_v45 = vld [vmem:[%s20014_s29 + $0x1468] sm:$0xff] }
 0x319   : > { %7386 = vmatpush1.bf16.msra.mxu0 %v16169_v53  ;;  %7550 = vmatpush1.bf16.msra.mxu1 %v16171_v55  ;;  %v16284_v53 = vcombine.high %v987_v48, %v995_v49  ;;  %v1002_v55 = vld [vmem:[%s20014_s29 + $0x11a0] sm:$0xff] }
 0x31a   : > { %7387 = vmatprep.subr.bf16.mxu0 %v16186_v56  ;;  %7551 = vmatprep.subr.bf16.mxu1 %v16188_v58  ;;  %v1010_v56 = vld [vmem:[%s20014_s29 + $0x11e0] sm:$0xff]  ;;  %v1003_v58 = vld [vmem:[%s20014_s29 + $0x11a8] sm:$0xff] }
 0x31b   : > { %v16298_v62 = vcombine.high %v1002_v55, %v1010_v56  ;;  %v16297_v4 = vcombine.low %v1002_v55, %v1010_v56  ;;  %v16299_v5 = vcombine.low %v1003_v58, %v1011_v59  ;;  %v1107_v55 = vld [vmem:[%s20014_s29 + $0x14e8] sm:$0xff] }
 0x31d   : > { %7388 = vmatpush1.bf16.msra.mxu0 %v16185_v63  ;;  %7552 = vmatpush1.bf16.msra.mxu1 %v16187_v0  ;;  %v16300_v63 = vcombine.high %v1003_v58, %v1011_v59  ;;  %v1018_v0 = vld [vmem:[%s20014_s29 + $0x1220] sm:$0xff] }
 0x31e   : > { %7389 = vmatprep.subr.bf16.mxu0 %v16202_v1  ;;  %7553 = vmatprep.subr.bf16.mxu1 %v16204_v2  ;;  %v1026_v1 = vld [vmem:[%s20014_s29 + $0x1260] sm:$0xff]  ;;  %v1019_v2 = vld [vmem:[%s20014_s29 + $0x1228] sm:$0xff] }
 0x31f   : > { %v16314_v6 = vcombine.high %v1018_v0, %v1026_v1  ;;  %v16313_v14 = vcombine.low %v1018_v0, %v1026_v1  ;;  %v16315_v15 = vcombine.low %v1019_v2, %v1027_v3  ;;  %v1123_v0 = vld [vmem:[%s20014_s29 + $0x1568] sm:$0xff] }
 0x321   : > { %7390 = vmatpush1.bf16.msra.mxu0 %v16201_v7  ;;  %7554 = vmatpush1.bf16.msra.mxu1 %v16203_v8  ;;  %v16316_v7 = vcombine.high %v1019_v2, %v1027_v3  ;;  %v1034_v8 = vld [vmem:[%s20014_s29 + $0x12a0] sm:$0xff] }
 0x322   : > { %7391 = vmatprep.subr.bf16.mxu0 %v16218_v9  ;;  %7555 = vmatprep.subr.bf16.mxu1 %v16220_v10  ;;  %v1042_v9 = vld [vmem:[%s20014_s29 + $0x12e0] sm:$0xff]  ;;  %v1035_v10 = vld [vmem:[%s20014_s29 + $0x12a8] sm:$0xff] }
 0x323   : > { %v16330_v16 = vcombine.high %v1034_v8, %v1042_v9  ;;  %v16329_v25 = vcombine.low %v1034_v8, %v1042_v9  ;;  %v16331_v28 = vcombine.low %v1035_v10, %v1043_v13  ;;  %v1139_v8 = vld [vmem:[%s20014_s29 + $0x15e8] sm:$0xff] }
 0x325   : > { %7392 = vmatpush1.bf16.msra.mxu0 %v16217_v17  ;;  %7556 = vmatpush1.bf16.msra.mxu1 %v16219_v18  ;;  %v16332_v17 = vcombine.high %v1035_v10, %v1043_v13  ;;  %v1050_v18 = vld [vmem:[%s20014_s29 + $0x1320] sm:$0xff] }
 0x326   : > { %7393 = vmatprep.subr.bf16.mxu0 %v16234_v20  ;;  %7557 = vmatprep.subr.bf16.mxu1 %v16236_v23  ;;  %v1058_v20 = vld [vmem:[%s20014_s29 + $0x1360] sm:$0xff]  ;;  %v1051_v23 = vld [vmem:[%s20014_s29 + $0x1328] sm:$0xff] }
 0x327   : > { %v16346_v30 = vcombine.high %v1050_v18, %v1058_v20  ;;  %v16345_v38 = vcombine.low %v1050_v18, %v1058_v20  ;;  %v16347_v39 = vcombine.low %v1051_v23, %v1059_v24  ;;  %v1155_v18 = vld [vmem:[%s20014_s29 + $0x1668] sm:$0xff] }
 0x329   : > { %7394 = vmatpush1.bf16.msra.mxu0 %v16233_v31  ;;  %7558 = vmatpush1.bf16.msra.mxu1 %v16235_v33  ;;  %v16348_v31 = vcombine.high %v1051_v23, %v1059_v24  ;;  %v1066_v33 = vld [vmem:[%s20014_s29 + $0x13a0] sm:$0xff] }
 0x32a   : > { %7404 = vmatprep.subr.bf16.mxu0 %v16250_v34  ;;  %7568 = vmatprep.subr.bf16.mxu1 %v16252_v35  ;;  %v1074_v34 = vld [vmem:[%s20014_s29 + $0x13e0] sm:$0xff]  ;;  %v1067_v35 = vld [vmem:[%s20014_s29 + $0x13a8] sm:$0xff] }
 0x32b   : > { %v16362_v40 = vcombine.high %v1066_v33, %v1074_v34  ;;  %v16361_v47 = vcombine.low %v1066_v33, %v1074_v34  ;;  %v16363_v48 = vcombine.low %v1067_v35, %v1075_v37  ;;  %v1171_v33 = vld [vmem:[%s20014_s29 + $0x16e8] sm:$0xff] }
 0x32c   : > { %7396 = vmatmul.mubr.bf16.vlgmr.msra.gmra.mrb[8].mxu0 %v20205_v21  ;;  %7560 = vmatmul.mubr.bf16.vlgmr.msra.gmra.mrb[8].mxu1 %v20205_v21 }
 0x32d   : > { %7405 = vmatpush1.bf16.msra.mxu0 %v16249_v41  ;;  %7569 = vmatpush1.bf16.msra.mxu1 %v16251_v42  ;;  %v16364_v41 = vcombine.high %v1067_v35, %v1075_v37  ;;  %v1082_v42 = vld [vmem:[%s20014_s29 + $0x1420] sm:$0xff] }
 0x32e   : > { %7406 = vmatprep.subr.bf16.mxu0 %v16266_v43  ;;  %7570 = vmatprep.subr.bf16.mxu1 %v16268_v44  ;;  %v1090_v43 = vld [vmem:[%s20014_s29 + $0x1460] sm:$0xff]  ;;  %v1083_v44 = vld [vmem:[%s20014_s29 + $0x1428] sm:$0xff] }
 0x32f   : > { %7436 = vmatprep.mubr.bf16.mxu0 %v20214_v32  ;;  %7600 = vmatprep.mubr.bf16.mxu1 %v20214_v32  ;;  %v16378_v49 = vcombine.high %v1082_v42, %v1090_v43  ;;  %v16377_v56 = vcombine.low %v1082_v42, %v1090_v43  ;;  %v16379_v58 = vcombine.low %v1083_v44, %v1091_v45  ;;  %v1187_v42 = vld [vmem:[%s20014_s29 + $0x1768] sm:$0xff] }
 0x331   : > { %7407 = vmatpush1.bf16.msra.mxu0 %v16265_v50  ;;  %7571 = vmatpush1.bf16.msra.mxu1 %v16267_v51  ;;  %v16380_v50 = vcombine.high %v1083_v44, %v1091_v45  ;;  %v1098_v51 = vld [vmem:[%s20014_s29 + $0x14a0] sm:$0xff] }
 0x332   : > { %7408 = vmatprep.subr.bf16.mxu0 %v16282_v52  ;;  %7572 = vmatprep.subr.bf16.mxu1 %v16284_v53  ;;  %v1106_v52 = vld [vmem:[%s20014_s29 + $0x14e0] sm:$0xff]  ;;  %v1099_v53 = vld [vmem:[%s20014_s29 + $0x14a8] sm:$0xff] }
 0x333   : > { %v16394_v59 = vcombine.high %v1098_v51, %v1106_v52  ;;  %v16393_v1 = vcombine.low %v1098_v51, %v1106_v52  ;;  %v16395_v2 = vcombine.low %v1099_v53, %v1107_v55  ;;  %v1203_v51 = vld [vmem:[%s20014_s29 + $0x17e8] sm:$0xff] }
 0x335   : > { %7409 = vmatpush1.bf16.msra.mxu0 %v16281_v60  ;;  %7573 = vmatpush1.bf16.msra.mxu1 %v16283_v61  ;;  %v16396_v60 = vcombine.high %v1099_v53, %v1107_v55  ;;  %v1114_v61 = vld [vmem:[%s20014_s29 + $0x1520] sm:$0xff] }
 0x336   : > { %7410 = vmatprep.subr.bf16.mxu0 %v16298_v62  ;;  %7574 = vmatprep.subr.bf16.mxu1 %v16300_v63  ;;  %v1122_v62 = vld [vmem:[%s20014_s29 + $0x1560] sm:$0xff]  ;;  %v1115_v63 = vld [vmem:[%s20014_s29 + $0x1528] sm:$0xff] }
 0x337   : > { %v16410_v3 = vcombine.high %v1114_v61, %v1122_v62  ;;  %v16409_v9 = vcombine.low %v1114_v61, %v1122_v62  ;;  %v16411_v10 = vcombine.low %v1115_v63, %v1123_v0  ;;  %v1219_v61 = vld [vmem:[%s20014_s29 + $0x1868] sm:$0xff] }
 0x339   : > { %7411 = vmatpush1.bf16.msra.mxu0 %v16297_v4  ;;  %7575 = vmatpush1.bf16.msra.mxu1 %v16299_v5  ;;  %v16412_v4 = vcombine.high %v1115_v63, %v1123_v0  ;;  %v1130_v5 = vld [vmem:[%s20014_s29 + $0x15a0] sm:$0xff] }
 0x33a   : > { %7412 = vmatprep.subr.bf16.mxu0 %v16314_v6  ;;  %7576 = vmatprep.subr.bf16.mxu1 %v16316_v7  ;;  %v1138_v6 = vld [vmem:[%s20014_s29 + $0x15e0] sm:$0xff]  ;;  %v1131_v7 = vld [vmem:[%s20014_s29 + $0x15a8] sm:$0xff] }
 0x33b   : > { %v16426_v13 = vcombine.high %v1130_v5, %v1138_v6  ;;  %v16425_v20 = vcombine.low %v1130_v5, %v1138_v6  ;;  %v16427_v23 = vcombine.low %v1131_v7, %v1139_v8  ;;  %v1235_v5 = vld [vmem:[%s20014_s29 + $0x18e8] sm:$0xff] }
 0x33d   : > { %7413 = vmatpush1.bf16.msra.mxu0 %v16313_v14  ;;  %7577 = vmatpush1.bf16.msra.mxu1 %v16315_v15  ;;  %v16428_v14 = vcombine.high %v1131_v7, %v1139_v8  ;;  %v1146_v15 = vld [vmem:[%s20014_s29 + $0x1620] sm:$0xff] }
 0x33e   : > { %7414 = vmatprep.subr.bf16.mxu0 %v16330_v16  ;;  %7578 = vmatprep.subr.bf16.mxu1 %v16332_v17  ;;  %v1154_v16 = vld [vmem:[%s20014_s29 + $0x1660] sm:$0xff]  ;;  %v1147_v17 = vld [vmem:[%s20014_s29 + $0x1628] sm:$0xff] }
 0x33f   : > { %v16442_v24 = vcombine.high %v1146_v15, %v1154_v16  ;;  %v16441_v34 = vcombine.low %v1146_v15, %v1154_v16  ;;  %v16443_v35 = vcombine.low %v1147_v17, %v1155_v18  ;;  %v1251_v15 = vld [vmem:[%s20014_s29 + $0x1968] sm:$0xff] }
 0x341   : > { %7415 = vmatpush1.bf16.msra.mxu0 %v16329_v25  ;;  %7579 = vmatpush1.bf16.msra.mxu1 %v16331_v28  ;;  %v16444_v25 = vcombine.high %v1147_v17, %v1155_v18  ;;  %v1162_v28 = vld [vmem:[%s20014_s29 + $0x16a0] sm:$0xff] }
 0x342   : > { %7416 = vmatprep.subr.bf16.mxu0 %v16346_v30  ;;  %7580 = vmatprep.subr.bf16.mxu1 %v16348_v31  ;;  %v1170_v30 = vld [vmem:[%s20014_s29 + $0x16e0] sm:$0xff]  ;;  %v1163_v31 = vld [vmem:[%s20014_s29 + $0x16a8] sm:$0xff] }
 0x343   : > { %v16458_v37 = vcombine.high %v1162_v28, %v1170_v30  ;;  %v16457_v43 = vcombine.low %v1162_v28, %v1170_v30  ;;  %v16459_v44 = vcombine.low %v1163_v31, %v1171_v33  ;;  %v1267_v28 = vld [vmem:[%s20014_s29 + $0x19e8] sm:$0xff] }
 0x345   : > { %7417 = vmatpush1.bf16.msra.mxu0 %v16345_v38  ;;  %7581 = vmatpush1.bf16.msra.mxu1 %v16347_v39  ;;  %v16460_v38 = vcombine.high %v1163_v31, %v1171_v33  ;;  %v1178_v39 = vld [vmem:[%s20014_s29 + $0x1720] sm:$0xff] }
 0x346   : > { %7418 = vmatprep.subr.bf16.mxu0 %v16362_v40  ;;  %7582 = vmatprep.subr.bf16.mxu1 %v16364_v41  ;;  %v1186_v40 = vld [vmem:[%s20014_s29 + $0x1760] sm:$0xff]  ;;  %v1179_v41 = vld [vmem:[%s20014_s29 + $0x1728] sm:$0xff] }
 0x347   : > { %v16474_v45 = vcombine.high %v1178_v39, %v1186_v40  ;;  %v16473_v52 = vcombine.low %v1178_v39, %v1186_v40  ;;  %v16475_v53 = vcombine.low %v1179_v41, %v1187_v42  ;;  %v1283_v39 = vld [vmem:[%s20014_s29 + $0x1a68] sm:$0xff] }
 0x349   : > { %7419 = vmatpush1.bf16.msra.mxu0 %v16361_v47  ;;  %7583 = vmatpush1.bf16.msra.mxu1 %v16363_v48  ;;  %v16476_v47 = vcombine.high %v1179_v41, %v1187_v42  ;;  %v1194_v48 = vld [vmem:[%s20014_s29 + $0x17a0] sm:$0xff] }
 0x34a   : > { %7420 = vmatprep.subr.bf16.mxu0 %v16378_v49  ;;  %7584 = vmatprep.subr.bf16.mxu1 %v16380_v50  ;;  %v1202_v49 = vld [vmem:[%s20014_s29 + $0x17e0] sm:$0xff]  ;;  %v1195_v50 = vld [vmem:[%s20014_s29 + $0x17a8] sm:$0xff] }
 0x34b   : > { %v16490_v55 = vcombine.high %v1194_v48, %v1202_v49  ;;  %v16489_v62 = vcombine.low %v1194_v48, %v1202_v49  ;;  %v16491_v63 = vcombine.low %v1195_v50, %v1203_v51  ;;  %v1291_v48 = vld [vmem:[%s20014_s29 + $0x1aa8] sm:$0xff] }
 0x34c   : > { %v1299_v49 = vld [vmem:[%s20014_s29 + $0x1ae8] sm:$0xff] }
 0x34d   : > { %7421 = vmatpush1.bf16.msra.mxu0 %v16377_v56  ;;  %7585 = vmatpush1.bf16.msra.mxu1 %v16379_v58  ;;  %v16492_v56 = vcombine.high %v1195_v50, %v1203_v51  ;;  %v1210_v58 = vld [vmem:[%s20014_s29 + $0x1820] sm:$0xff]  ;;  %v1492_v51 = vsub.s32 6, %v20585_v11 }
 0x34e   : > { %7422 = vmatprep.subr.bf16.mxu0 %v16394_v59  ;;  %7586 = vmatprep.subr.bf16.mxu1 %v16396_v60  ;;  %v1218_v59 = vld [vmem:[%s20014_s29 + $0x1860] sm:$0xff]  ;;  %v1211_v60 = vld [vmem:[%s20014_s29 + $0x1828] sm:$0xff] }
 0x34f   : > { %v16506_v0 = vcombine.high %v1210_v58, %v1218_v59  ;;  %v16505_v6 = vcombine.low %v1210_v58, %v1218_v59  ;;  %v16507_v7 = vcombine.low %v1211_v60, %v1219_v61  ;;  %v16588_v58 = vcombine.high %v1291_v48, %v1299_v49  ;;  %v1306_v59 = vld [vmem:[%s20014_s29 + $0x1b20] sm:$0xff] }
 0x351   : > { %7423 = vmatpush1.bf16.msra.mxu0 %v16393_v1  ;;  %7587 = vmatpush1.bf16.msra.mxu1 %v16395_v2  ;;  %v16508_v1 = vcombine.high %v1211_v60, %v1219_v61  ;;  %v1226_v2 = vld [vmem:[%s20014_s29 + $0x18a0] sm:$0xff] }
 0x352   : > { %7424 = vmatprep.subr.bf16.mxu0 %v16410_v3  ;;  %7588 = vmatprep.subr.bf16.mxu1 %v16412_v4  ;;  %v1234_v3 = vld [vmem:[%s20014_s29 + $0x18e0] sm:$0xff]  ;;  %v1227_v4 = vld [vmem:[%s20014_s29 + $0x18a8] sm:$0xff] }
 0x353   : > { %v16522_v8 = vcombine.high %v1226_v2, %v1234_v3  ;;  %v16521_v16 = vcombine.low %v1226_v2, %v1234_v3  ;;  %v16523_v17 = vcombine.low %v1227_v4, %v1235_v5  ;;  %v1314_v60 = vld [vmem:[%s20014_s29 + $0x1b60] sm:$0xff] }
 0x354   : > { %v17983_v61 = vld [vmem:[%s20021_s6] sm:$0xff] }
 0x355   : > { %7425 = vmatpush1.bf16.msra.mxu0 %v16409_v9  ;;  %7589 = vmatpush1.bf16.msra.mxu1 %v16411_v10  ;;  %v16524_v9 = vcombine.high %v1227_v4, %v1235_v5  ;;  %v1242_v10 = vld [vmem:[%s20014_s29 + $0x1920] sm:$0xff]  ;;  %v16587_v5 = vcombine.low %v1291_v48, %v1299_v49 }
 0x356   : > { %7426 = vmatprep.subr.bf16.mxu0 %v16426_v13  ;;  %7590 = vmatprep.subr.bf16.mxu1 %v16428_v14  ;;  %v1250_v13 = vld [vmem:[%s20014_s29 + $0x1960] sm:$0xff]  ;;  %v1243_v14 = vld [vmem:[%s20014_s29 + $0x1928] sm:$0xff] }
 0x357   : > { %v16538_v18 = vcombine.high %v1242_v10, %v1250_v13  ;;  %v16537_v30 = vcombine.low %v1242_v10, %v1250_v13  ;;  %v16539_v31 = vcombine.low %v1243_v14, %v1251_v15  ;;  %v1330_v10 = vld [vmem:[%s20014_s29 + $0x1be0] sm:$0xff] }
 0x358   : > { %v1354_v48 = vld [vmem:[%s20014_s29 + $0x1ca0] sm:$0xff] }
 0x359   : > { %7427 = vmatpush1.bf16.msra.mxu0 %v16425_v20  ;;  %7591 = vmatpush1.bf16.msra.mxu1 %v16427_v23  ;;  %v16540_v20 = vcombine.high %v1243_v14, %v1251_v15  ;;  %v1258_v23 = vld [vmem:[%s20014_s29 + $0x19a0] sm:$0xff] }
 0x35a   : > { %7428 = vmatprep.subr.bf16.mxu0 %v16442_v24  ;;  %7592 = vmatprep.subr.bf16.mxu1 %v16444_v25  ;;  %v1266_v24 = vld [vmem:[%s20014_s29 + $0x19e0] sm:$0xff]  ;;  %v1259_v25 = vld [vmem:[%s20014_s29 + $0x19a8] sm:$0xff] }
 0x35b   : > { %v16554_v33 = vcombine.high %v1258_v23, %v1266_v24  ;;  %v16553_v40 = vcombine.low %v1258_v23, %v1266_v24  ;;  %v16555_v41 = vcombine.low %v1259_v25, %v1267_v28  ;;  %v1362_v49 = vld [vmem:[%s20014_s29 + $0x1ce0] sm:$0xff] }
 0x35d   : > { %7429 = vmatpush1.bf16.msra.mxu0 %v16441_v34  ;;  %7593 = vmatpush1.bf16.msra.mxu1 %v16443_v35  ;;  %v16556_v34 = vcombine.high %v1259_v25, %v1267_v28  ;;  %v1274_v35 = vld [vmem:[%s20014_s29 + $0x1a20] sm:$0xff]  ;;  %v16601_v25 = vcombine.low %v1306_v59, %v1314_v60 }
 0x35e   : > { %7430 = vmatprep.subr.bf16.mxu0 %v16458_v37  ;;  %7594 = vmatprep.subr.bf16.mxu1 %v16460_v38  ;;  %v1282_v37 = vld [vmem:[%s20014_s29 + $0x1a60] sm:$0xff]  ;;  %v1275_v38 = vld [vmem:[%s20014_s29 + $0x1a28] sm:$0xff] }
 0x35f   : > { %v16570_v42 = vcombine.high %v1274_v35, %v1282_v37  ;;  %v16569_v50 = vcombine.low %v1274_v35, %v1282_v37 }
 0x361   : > { %7431 = vmatpush1.bf16.msra.mxu0 %v16457_v43  ;;  %7595 = vmatpush1.bf16.msra.mxu1 %v16459_v44  ;;  %v16572_v43 = vcombine.high %v1275_v38, %v1283_v39  ;;  %v1290_v44 = vld [vmem:[%s20014_s29 + $0x1aa0] sm:$0xff] }
 0x362   : > { %7432 = vmatprep.subr.bf16.mxu0 %v16474_v45  ;;  %7596 = vmatprep.subr.bf16.mxu1 %v16476_v47  ;;  %v1298_v45 = vld [vmem:[%s20014_s29 + $0x1ae0] sm:$0xff]  ;;  %v1484_v47 = vsub.s32 4, %v20585_v11 }
 0x363   : > { %v16585_v3 = vcombine.low %v1290_v44, %v1298_v45 }
 0x365   : > { %7433 = vmatpush1.bf16.msra.mxu0 %v16473_v52  ;;  %7597 = vmatpush1.bf16.msra.mxu1 %v16475_v53  ;;  %v1488_v52 = vsub.s32 5, %v20585_v11  ;;  %v16571_v53 = vcombine.low %v1275_v38, %v1283_v39  ;;  %v1338_v38 = vld [vmem:[%s20014_s29 + $0x1c20] sm:$0xff] }
 0x366   : > { %7434 = vmatprep.subr.bf16.mxu0 %v16490_v55  ;;  %7598 = vmatprep.subr.bf16.mxu1 %v16492_v56  ;;  %v1496_v55 = vsub.s32 7, %v20585_v11  ;;  %v16586_v56 = vcombine.high %v1290_v44, %v1298_v45  ;;  %v1346_v39 = vld [vmem:[%s20014_s29 + $0x1c60] sm:$0xff] }
 0x367   : > { %v1489_v2 = vrot.slane %v17983_v61, %v1488_v52  ;;  %v16634_v44 = vcombine.high %v1338_v38, %v1346_v39 }
 0x368   : > { %v1497_v4 = vrot.slane %v17983_v61, %v1496_v55 }
 0x369   : > { %7435 = vmatpush1.bf16.msra.mxu0 %v16489_v62  ;;  %7599 = vmatpush1.bf16.msra.mxu1 %v16491_v63  ;;  %v1485_v62 = vrot.slane %v17983_v61, %v1484_v47  ;;  %v1307_v63 = vld [vmem:[%s20014_s29 + $0x1b28] sm:$0xff] }
 0x36a   : > { %7445 = vmatprep.subr.bf16.mxu0 %v16506_v0  ;;  %7609 = vmatprep.subr.bf16.mxu1 %v16508_v1  ;;  %v1315_v0 = vld [vmem:[%s20014_s29 + $0x1b68] sm:$0xff]  ;;  %v1493_v1 = vrot.slane %v17983_v61, %v1492_v51  ;;  %v1370_v61 = vld [vmem:[%s20014_s29 + $0x1d20] sm:$0xff] }
 0x36c   : > { %7437 = vmatmul.mubr.bf16.vlgmr.msra.gmra.mrb[8].mxu0 %v20283_v36  ;;  %7601 = vmatmul.mubr.bf16.vlgmr.msra.gmra.mrb[8].mxu1 %v20283_v36 }
 0x36d   : > { %7446 = vmatpush1.bf16.msra.mxu0 %v16505_v6  ;;  %7610 = vmatpush1.bf16.msra.mxu1 %v16507_v7  ;;  %v16602_v6 = vcombine.high %v1306_v59, %v1314_v60  ;;  %v16650_v59 = vcombine.high %v1354_v48, %v1362_v49 }
 0x36e   : > { %7447 = vmatprep.subr.bf16.mxu0 %v16522_v8  ;;  %7611 = vmatprep.subr.bf16.mxu1 %v16524_v9  ;;  %v16604_v8 = vcombine.high %v1307_v63, %v1315_v0  ;;  %v1322_v9 = vld [vmem:[%s20014_s29 + $0x1ba0] sm:$0xff] }
 0x36f   : > { %7477 = vmatprep.mubr.bf16.mxu0 %v20292_v46  ;;  %7641 = vmatprep.mubr.bf16.mxu1 %v20292_v46 }
 0x371   : > { %7448 = vmatpush1.bf16.msra.mxu0 %v16521_v16  ;;  %7612 = vmatpush1.bf16.msra.mxu1 %v16523_v17  ;;  %v1323_v16 = vld [vmem:[%s20014_s29 + $0x1ba8] sm:$0xff] }
 0x372   : > { %7449 = vmatprep.subr.bf16.mxu0 %v16538_v18  ;;  %7613 = vmatprep.subr.bf16.mxu1 %v16540_v20  ;;  %v1331_v17 = vld [vmem:[%s20014_s29 + $0x1be8] sm:$0xff] }
 0x373   : > { %v16620_v37 = vcombine.high %v1323_v16, %v1331_v17 }
 0x375   : > { %7450 = vmatpush1.bf16.msra.mxu0 %v16537_v30  ;;  %7614 = vmatpush1.bf16.msra.mxu1 %v16539_v31 }
 0x376   : > { %7451 = vmatprep.subr.bf16.mxu0 %v16554_v33  ;;  %7615 = vmatprep.subr.bf16.mxu1 %v16556_v34  ;;  %v16603_v33 = vcombine.low %v1307_v63, %v1315_v0  ;;  %v16618_v34 = vcombine.high %v1322_v9, %v1330_v10  ;;  %v1371_v63 = vld [vmem:[%s20014_s29 + $0x1d28] sm:$0xff] }
 0x377   : > { %v1379_v0 = vld [vmem:[%s20014_s29 + $0x1d68] sm:$0xff] }
 0x379   : > { %7452 = vmatpush1.bf16.msra.mxu0 %v16553_v40  ;;  %7616 = vmatpush1.bf16.msra.mxu1 %v16555_v41  ;;  %v1339_v40 = vld [vmem:[%s20014_s29 + $0x1c28] sm:$0xff] }
 0x37a   : > { %7453 = vmatprep.subr.bf16.mxu0 %v16570_v42  ;;  %7617 = vmatprep.subr.bf16.mxu1 %v16572_v43  ;;  %v1347_v41 = vld [vmem:[%s20014_s29 + $0x1c68] sm:$0xff]  ;;  %v16617_v42 = vcombine.low %v1322_v9, %v1330_v10  ;;  %v16619_v43 = vcombine.low %v1323_v16, %v1331_v17  ;;  %v16667_v10 = vcombine.low %v1371_v63, %v1379_v0  ;;  %v1410_v16 = vld [vmem:[%s20014_s29 + $0x1e60] sm:$0xff] }
 0x37b   : > { %v16636_v45 = vcombine.high %v1339_v40, %v1347_v41  ;;  %v1403_v17 = vld [vmem:[%s20014_s29 + $0x1e28] sm:$0xff] }
 0x37d   : > { %7454 = vmatpush1.bf16.msra.mxu0 %v16569_v50  ;;  %7618 = vmatpush1.bf16.msra.mxu1 %v16571_v53  ;;  %v1355_v50 = vld [vmem:[%s20014_s29 + $0x1ca8] sm:$0xff] }
 0x37e   : > { %7455 = vmatprep.subr.bf16.mxu0 %v16586_v56  ;;  %7619 = vmatprep.subr.bf16.mxu1 %v16588_v58  ;;  %v1363_v53 = vld [vmem:[%s20014_s29 + $0x1ce8] sm:$0xff]  ;;  %v16633_v56 = vcombine.low %v1338_v38, %v1346_v39  ;;  %v16635_v58 = vcombine.low %v1339_v40, %v1347_v41  ;;  %v1434_v39 = vld [vmem:[%s20014_s29 + $0x1f20] sm:$0xff] }
 0x37f   : > { %v7151_v7 = vpop.f32.mrb[4].mxu0  ;;  %v7315_v14 = vpop.f32.mrb[4].mxu1  ;;  %v16652_v60 = vcombine.high %v1355_v50, %v1363_v53  ;;  %v1442_v40 = vld [vmem:[%s20014_s29 + $0x1f60] sm:$0xff]  ;;  %v1435_v41 = vld [vmem:[%s20014_s29 + $0x1f28] sm:$0xff] }
 0x380   : > { %v17791_v13 = vadd.f32 %v7151_v7, %v1485_v62  ;;  %v7153_v15 = vpop.f32.mrb[5].mxu0  ;;  %v17793_v18 = vadd.f32 %v7315_v14, %v1493_v1  ;;  %v7317_v23 = vpop.f32.mrb[5].mxu1  ;;  %v1378_v62 = vld [vmem:[%s20014_s29 + $0x1d60] sm:$0xff]  ;;  %v16649_v1 = vcombine.low %v1354_v48, %v1362_v49  ;;  %v1387_v7 = vld [vmem:[%s20014_s29 + $0x1da8] sm:$0xff] }
 0x381   : > { %v17792_v20 = vadd.f32 %v7153_v15, %v1489_v2  ;;  %v7155_v24 = vpop.f32.mrb[6].mxu0  ;;  %7456 = vmatpush1.bf16.msra.mxu0 %v16585_v3  ;;  %v17794_v28 = vadd.f32 %v7317_v23, %v1497_v4  ;;  %v7319_v30 = vpop.f32.mrb[6].mxu1  ;;  %7620 = vmatpush1.bf16.msra.mxu1 %v16587_v5  ;;  %v16651_v2 = vcombine.low %v1355_v50, %v1363_v53  ;;  %v1386_v5 = vld [vmem:[%s20014_s29 + $0x1da0] sm:$0xff]  ;;  %v1451_v53 = vld [vmem:[%s20014_s29 + $0x1fa8] sm:$0xff] }
 0x382   : > { %7985 = vst [vmem:[%s20613_s1 + $0x20] sm:$0xff] %v17791_v13  ;;  %v7156_v31 = vpop.f32.mrb[7].mxu0  ;;  %7457 = vmatprep.subr.bf16.mxu0 %v16602_v6  ;;  %7987 = vst [vmem:[%s20613_s1 + $0x30] sm:$0xff] %v17793_v18  ;;  %v7320_v35 = vpop.f32.mrb[7].mxu1  ;;  %7621 = vmatprep.subr.bf16.mxu1 %v16604_v8  ;;  %v16666_v3 = vcombine.high %v1370_v61, %v1378_v62  ;;  %v16668_v4 = vcombine.high %v1371_v63, %v1379_v0  ;;  %v1394_v6 = vld [vmem:[%s20014_s29 + $0x1de0] sm:$0xff]  ;;  %v1395_v8 = vld [vmem:[%s20014_s29 + $0x1de8] sm:$0xff] }
 0x383   : > { %7986 = vst [vmem:[%s20613_s1 + $0x28] sm:$0xff] %v17792_v20  ;;  %7988 = vst [vmem:[%s20613_s1 + $0x38] sm:$0xff] %v17794_v28  ;;  %v16665_v9 = vcombine.low %v1370_v61, %v1378_v62  ;;  %v16682_v13 = vcombine.high %v1386_v5, %v1394_v6  ;;  %v16684_v14 = vcombine.high %v1387_v7, %v1395_v8  ;;  %v1402_v15 = vld [vmem:[%s20014_s29 + $0x1e20] sm:$0xff]  ;;  %v1411_v18 = vld [vmem:[%s20014_s29 + $0x1e68] sm:$0xff] }
 0x384   : > { %v16681_v20 = vcombine.low %v1386_v5, %v1394_v6  ;;  %v16683_v23 = vcombine.low %v1387_v7, %v1395_v8  ;;  %v16698_v24 = vcombine.high %v1402_v15, %v1410_v16  ;;  %v1418_v28 = vld [vmem:[%s20014_s29 + $0x1ea0] sm:$0xff]  ;;  %v1419_v31 = vld [vmem:[%s20014_s29 + $0x1ea8] sm:$0xff]  ;;  %v16699_v35 = vcombine.low %v1403_v17, %v1411_v18  ;;  %v444_v62 = vld [vmem:[%s20014_s29 + $0x30] sm:$0xff] }
 0x385   : > { %7458 = vmatpush1.bf16.msra.mxu0 %v16601_v25  ;;  %7622 = vmatpush1.bf16.msra.mxu1 %v16603_v33  ;;  %v16700_v25 = vcombine.high %v1403_v17, %v1411_v18  ;;  %v1426_v30 = vld [vmem:[%s20014_s29 + $0x1ee0] sm:$0xff]  ;;  %v1427_v33 = vld [vmem:[%s20014_s29 + $0x1ee8] sm:$0xff]  ;;  %v452_v63 = vld [vmem:[%s20014_s29 + $0x70] sm:$0xff] }
 0x386   : > { %7459 = vmatprep.subr.bf16.mxu0 %v16618_v34  ;;  %7623 = vmatprep.subr.bf16.mxu1 %v16620_v37  ;;  %v16697_v34 = vcombine.low %v1402_v15, %v1410_v16  ;;  %v16714_v37 = vcombine.high %v1418_v28, %v1426_v30  ;;  %v16716_v38 = vcombine.high %v1419_v31, %v1427_v33  ;;  %v1450_v49 = vld [vmem:[%s20014_s29 + $0x1fa0] sm:$0xff]  ;;  %v445_v0 = vld [vmem:[%s20014_s29 + $0x38] sm:$0xff]  ;;  %v460_v6 = vld [vmem:[%s20014_s29 + $0xb0] sm:$0xff] }
 0x387   : > { %v1458_v50 = vld [vmem:[%s20014_s29 + $0x1fe0] sm:$0xff]  ;;  %v468_v7 = vld [vmem:[%s20014_s29 + $0xf0] sm:$0xff]  ;;  %v461_v8 = vld [vmem:[%s20014_s29 + $0xb8] sm:$0xff] }
 0x388   : > { %v476_v16 = vld [vmem:[%s20014_s29 + $0x130] sm:$0xff]  ;;  %v477_v18 = vld [vmem:[%s20014_s29 + $0x138] sm:$0xff] }
 0x389   : > { %7460 = vmatpush1.bf16.msra.mxu0 %v16617_v42  ;;  %7624 = vmatpush1.bf16.msra.mxu1 %v16619_v43  ;;  %v1443_v42 = vld [vmem:[%s20014_s29 + $0x1f68] sm:$0xff]  ;;  %v16713_v43 = vcombine.low %v1418_v28, %v1426_v30  ;;  %v484_v17 = vld [vmem:[%s20014_s29 + $0x170] sm:$0xff] }
 0x38a   : > { %7461 = vmatprep.subr.bf16.mxu0 %v16634_v44  ;;  %7625 = vmatprep.subr.bf16.mxu1 %v16636_v45  ;;  %v16715_v44 = vcombine.low %v1419_v31, %v1427_v33  ;;  %v16730_v45 = vcombine.high %v1434_v39, %v1442_v40  ;;  %v16732_v48 = vcombine.high %v1435_v41, %v1443_v42  ;;  %v492_v30 = vld [vmem:[%s20014_s29 + $0x1b0] sm:$0xff]  ;;  %v493_v33 = vld [vmem:[%s20014_s29 + $0x1b8] sm:$0xff] }
 0x38b   : > { %v500_v31 = vld [vmem:[%s20014_s29 + $0x1f0] sm:$0xff] }
 0x38d   : > { %7462 = vmatpush1.bf16.msra.mxu0 %v16633_v56  ;;  %7626 = vmatpush1.bf16.msra.mxu1 %v16635_v58  ;;  %v1459_v56 = vld [vmem:[%s20014_s29 + $0x1fe8] sm:$0xff]  ;;  %v16729_v58 = vcombine.low %v1434_v39, %v1442_v40  ;;  %v508_v40 = vld [vmem:[%s20014_s29 + $0x230] sm:$0xff] }
 0x38e   : > { %7463 = vmatprep.subr.bf16.mxu0 %v16650_v59  ;;  %7627 = vmatprep.subr.bf16.mxu1 %v16652_v60  ;;  %v16731_v59 = vcombine.low %v1435_v41, %v1443_v42  ;;  %v16746_v60 = vcombine.high %v1450_v49, %v1458_v50  ;;  %v16748_v61 = vcombine.high %v1451_v53, %v1459_v56  ;;  %v516_v41 = vld [vmem:[%s20014_s29 + $0x270] sm:$0xff]  ;;  %v509_v42 = vld [vmem:[%s20014_s29 + $0x238] sm:$0xff] }
 0x391   : > { %7464 = vmatpush1.bf16.msra.mxu0 %v16649_v1  ;;  %7628 = vmatpush1.bf16.msra.mxu1 %v16651_v2  ;;  %v453_v1 = vld [vmem:[%s20014_s29 + $0x78] sm:$0xff]  ;;  %v16745_v2 = vcombine.low %v1450_v49, %v1458_v50  ;;  %v524_v49 = vld [vmem:[%s20014_s29 + $0x2b0] sm:$0xff] }
 0x392   : > { %7465 = vmatprep.subr.bf16.mxu0 %v16666_v3  ;;  %7629 = vmatprep.subr.bf16.mxu1 %v16668_v4  ;;  %v16747_v3 = vcombine.low %v1451_v53, %v1459_v56  ;;  %v15742_v4 = vcombine.high %v444_v62, %v452_v63  ;;  %v15744_v5 = vcombine.high %v445_v0, %v453_v1  ;;  %v532_v50 = vld [vmem:[%s20014_s29 + $0x2f0] sm:$0xff]  ;;  %v525_v53 = vld [vmem:[%s20014_s29 + $0x2b8] sm:$0xff] }
 0x393   : > { %v533_v56 = vld [vmem:[%s20014_s29 + $0x2f8] sm:$0xff] }
 0x395   : > { %7466 = vmatpush1.bf16.msra.mxu0 %v16665_v9  ;;  %7630 = vmatpush1.bf16.msra.mxu1 %v16667_v10  ;;  %v469_v9 = vld [vmem:[%s20014_s29 + $0xf8] sm:$0xff]  ;;  %v15741_v10 = vcombine.low %v444_v62, %v452_v63  ;;  %v540_v62 = vld [vmem:[%s20014_s29 + $0x330] sm:$0xff] }
 0x396   : > { %7467 = vmatprep.subr.bf16.mxu0 %v16682_v13  ;;  %7631 = vmatprep.subr.bf16.mxu1 %v16684_v14  ;;  %v15743_v13 = vcombine.low %v445_v0, %v453_v1  ;;  %v15758_v14 = vcombine.high %v460_v6, %v468_v7  ;;  %v15760_v15 = vcombine.high %v461_v8, %v469_v9  ;;  %v548_v63 = vld [vmem:[%s20014_s29 + $0x370] sm:$0xff]  ;;  %v541_v0 = vld [vmem:[%s20014_s29 + $0x338] sm:$0xff] }
 0x397   : > { %v549_v1 = vld [vmem:[%s20014_s29 + $0x378] sm:$0xff] }
 0x399   : > { %7468 = vmatpush1.bf16.msra.mxu0 %v16681_v20  ;;  %7632 = vmatpush1.bf16.msra.mxu1 %v16683_v23  ;;  %v485_v20 = vld [vmem:[%s20014_s29 + $0x178] sm:$0xff]  ;;  %v15757_v23 = vcombine.low %v460_v6, %v468_v7  ;;  %v556_v6 = vld [vmem:[%s20014_s29 + $0x3b0] sm:$0xff] }
 0x39a   : > { %7469 = vmatprep.subr.bf16.mxu0 %v16698_v24  ;;  %7633 = vmatprep.subr.bf16.mxu1 %v16700_v25  ;;  %v15759_v24 = vcombine.low %v461_v8, %v469_v9  ;;  %v15774_v25 = vcombine.high %v476_v16, %v484_v17  ;;  %v15776_v28 = vcombine.high %v477_v18, %v485_v20  ;;  %v564_v7 = vld [vmem:[%s20014_s29 + $0x3f0] sm:$0xff]  ;;  %v557_v8 = vld [vmem:[%s20014_s29 + $0x3b8] sm:$0xff] }
 0x39b   : > { %v565_v9 = vld [vmem:[%s20014_s29 + $0x3f8] sm:$0xff] }
 0x39d   : > { %7470 = vmatpush1.bf16.msra.mxu0 %v16697_v34  ;;  %7634 = vmatpush1.bf16.msra.mxu1 %v16699_v35  ;;  %v501_v34 = vld [vmem:[%s20014_s29 + $0x1f8] sm:$0xff]  ;;  %v15773_v35 = vcombine.low %v476_v16, %v484_v17  ;;  %v572_v16 = vld [vmem:[%s20014_s29 + $0x430] sm:$0xff] }
 0x39e   : > { %7471 = vmatprep.subr.bf16.mxu0 %v16714_v37  ;;  %7635 = vmatprep.subr.bf16.mxu1 %v16716_v38  ;;  %v15775_v37 = vcombine.low %v477_v18, %v485_v20  ;;  %v15790_v38 = vcombine.high %v492_v30, %v500_v31  ;;  %v15792_v39 = vcombine.high %v493_v33, %v501_v34  ;;  %v580_v17 = vld [vmem:[%s20014_s29 + $0x470] sm:$0xff]  ;;  %v573_v18 = vld [vmem:[%s20014_s29 + $0x438] sm:$0xff] }
 0x39f   : > { %v581_v20 = vld [vmem:[%s20014_s29 + $0x478] sm:$0xff] }
 0x3a1   : > { %7472 = vmatpush1.bf16.msra.mxu0 %v16713_v43  ;;  %7636 = vmatpush1.bf16.msra.mxu1 %v16715_v44  ;;  %v517_v43 = vld [vmem:[%s20014_s29 + $0x278] sm:$0xff]  ;;  %v15789_v44 = vcombine.low %v492_v30, %v500_v31  ;;  %v588_v30 = vld [vmem:[%s20014_s29 + $0x4b0] sm:$0xff] }
 0x3a2   : > { %7473 = vmatprep.subr.bf16.mxu0 %v16730_v45  ;;  %7637 = vmatprep.subr.bf16.mxu1 %v16732_v48  ;;  %v15806_v45 = vcombine.high %v508_v40, %v516_v41  ;;  %v15808_v48 = vcombine.high %v509_v42, %v517_v43  ;;  %v596_v31 = vld [vmem:[%s20014_s29 + $0x4f0] sm:$0xff] }
 0x3a5   : > { %7474 = vmatpush1.bf16.msra.mxu0 %v16729_v58  ;;  %7638 = vmatpush1.bf16.msra.mxu1 %v16731_v59  ;;  %v15805_v58 = vcombine.low %v508_v40, %v516_v41  ;;  %v15807_v59 = vcombine.low %v509_v42, %v517_v43  ;;  %v604_v40 = vld [vmem:[%s20014_s29 + $0x530] sm:$0xff]  ;;  %v605_v42 = vld [vmem:[%s20014_s29 + $0x538] sm:$0xff] }
 0x3a6   : > { %7475 = vmatprep.subr.bf16.mxu0 %v16746_v60  ;;  %7639 = vmatprep.subr.bf16.mxu1 %v16748_v61  ;;  %v15822_v60 = vcombine.high %v524_v49, %v532_v50  ;;  %v15824_v61 = vcombine.high %v525_v53, %v533_v56  ;;  %v612_v41 = vld [vmem:[%s20014_s29 + $0x570] sm:$0xff]  ;;  %v613_v43 = vld [vmem:[%s20014_s29 + $0x578] sm:$0xff] }
 0x3a9   : > { %7476 = vmatpush1.bf16.msra.mxu0 %v16745_v2  ;;  %7640 = vmatpush1.bf16.msra.mxu1 %v16747_v3  ;;  %v15821_v2 = vcombine.low %v524_v49, %v532_v50  ;;  %v15823_v3 = vcombine.low %v525_v53, %v533_v56  ;;  %v620_v49 = vld [vmem:[%s20014_s29 + $0x5b0] sm:$0xff]  ;;  %v621_v53 = vld [vmem:[%s20014_s29 + $0x5b8] sm:$0xff] }
 0x3aa   : > { %7650 = vmatprep.subr.bf16.mxu0 %v15742_v4  ;;  %7814 = vmatprep.subr.bf16.mxu1 %v15744_v5  ;;  %v15838_v4 = vcombine.high %v540_v62, %v548_v63  ;;  %v15840_v5 = vcombine.high %v541_v0, %v549_v1  ;;  %v628_v50 = vld [vmem:[%s20014_s29 + $0x5f0] sm:$0xff]  ;;  %v629_v56 = vld [vmem:[%s20014_s29 + $0x5f8] sm:$0xff] }
 0x3ac   : > { %7478 = vmatmul.mubr.bf16.vlgmr.msra.gmra.mrb[8].mxu0 %v20361_v54  ;;  %7642 = vmatmul.mubr.bf16.vlgmr.msra.gmra.mrb[8].mxu1 %v20361_v54 }
 0x3ad   : > { %7651 = vmatpush1.bf16.msra.mxu0 %v15741_v10  ;;  %7815 = vmatpush1.bf16.msra.mxu1 %v15743_v13  ;;  %v15837_v10 = vcombine.low %v540_v62, %v548_v63  ;;  %v15839_v13 = vcombine.low %v541_v0, %v549_v1  ;;  %v636_v62 = vld [vmem:[%s20014_s29 + $0x630] sm:$0xff]  ;;  %v637_v0 = vld [vmem:[%s20014_s29 + $0x638] sm:$0xff] }
 0x3ae   : > { %7652 = vmatprep.subr.bf16.mxu0 %v15758_v14  ;;  %7816 = vmatprep.subr.bf16.mxu1 %v15760_v15  ;;  %v15854_v14 = vcombine.high %v556_v6, %v564_v7  ;;  %v15856_v15 = vcombine.high %v557_v8, %v565_v9  ;;  %v644_v63 = vld [vmem:[%s20014_s29 + $0x670] sm:$0xff]  ;;  %v645_v1 = vld [vmem:[%s20014_s29 + $0x678] sm:$0xff] }
 0x3af   : > { %7682 = vmatprep.mubr.bf16.mxu0 %v20080_v57  ;;  %7846 = vmatprep.mubr.bf16.mxu1 %v20080_v57  ;;  %v15791_v57 = vcombine.low %v493_v33, %v501_v34  ;;  %v589_v33 = vld [vmem:[%s20014_s29 + $0x4b8] sm:$0xff] }
 0x3b0   : > { %v597_v34 = vld [vmem:[%s20014_s29 + $0x4f8] sm:$0xff] }
 0x3b1   : > { %7653 = vmatpush1.bf16.msra.mxu0 %v15757_v23  ;;  %7817 = vmatpush1.bf16.msra.mxu1 %v15759_v24  ;;  %v15853_v23 = vcombine.low %v556_v6, %v564_v7  ;;  %v15855_v24 = vcombine.low %v557_v8, %v565_v9  ;;  %v652_v6 = vld [vmem:[%s20014_s29 + $0x6b0] sm:$0xff]  ;;  %v653_v8 = vld [vmem:[%s20014_s29 + $0x6b8] sm:$0xff] }
 0x3b2   : > { %7654 = vmatprep.subr.bf16.mxu0 %v15774_v25  ;;  %7818 = vmatprep.subr.bf16.mxu1 %v15776_v28  ;;  %v15870_v25 = vcombine.high %v572_v16, %v580_v17  ;;  %v15872_v28 = vcombine.high %v573_v18, %v581_v20  ;;  %v660_v7 = vld [vmem:[%s20014_s29 + $0x6f0] sm:$0xff]  ;;  %v661_v9 = vld [vmem:[%s20014_s29 + $0x6f8] sm:$0xff] }
 0x3b5   : > { %7655 = vmatpush1.bf16.msra.mxu0 %v15773_v35  ;;  %7819 = vmatpush1.bf16.msra.mxu1 %v15775_v37  ;;  %v15869_v35 = vcombine.low %v572_v16, %v580_v17  ;;  %v15871_v37 = vcombine.low %v573_v18, %v581_v20  ;;  %v668_v16 = vld [vmem:[%s20014_s29 + $0x730] sm:$0xff]  ;;  %v669_v18 = vld [vmem:[%s20014_s29 + $0x738] sm:$0xff] }
 0x3b6   : > { %7656 = vmatprep.subr.bf16.mxu0 %v15790_v38  ;;  %7820 = vmatprep.subr.bf16.mxu1 %v15792_v39  ;;  %v15886_v38 = vcombine.high %v588_v30, %v596_v31  ;;  %v15888_v39 = vcombine.high %v589_v33, %v597_v34  ;;  %v676_v17 = vld [vmem:[%s20014_s29 + $0x770] sm:$0xff]  ;;  %v677_v20 = vld [vmem:[%s20014_s29 + $0x778] sm:$0xff] }
 0x3b9   : > { %7657 = vmatpush1.bf16.msra.mxu0 %v15789_v44  ;;  %7821 = vmatpush1.bf16.msra.mxu1 %v15791_v57  ;;  %v15885_v44 = vcombine.low %v588_v30, %v596_v31  ;;  %v15887_v57 = vcombine.low %v589_v33, %v597_v34  ;;  %v684_v30 = vld [vmem:[%s20014_s29 + $0x7b0] sm:$0xff]  ;;  %v685_v33 = vld [vmem:[%s20014_s29 + $0x7b8] sm:$0xff] }
 0x3ba   : > { %7658 = vmatprep.subr.bf16.mxu0 %v15806_v45  ;;  %7822 = vmatprep.subr.bf16.mxu1 %v15808_v48  ;;  %v15902_v45 = vcombine.high %v604_v40, %v612_v41  ;;  %v15904_v48 = vcombine.high %v605_v42, %v613_v43  ;;  %v692_v31 = vld [vmem:[%s20014_s29 + $0x7f0] sm:$0xff]  ;;  %v693_v34 = vld [vmem:[%s20014_s29 + $0x7f8] sm:$0xff] }
 0x3bd   : > { %7659 = vmatpush1.bf16.msra.mxu0 %v15805_v58  ;;  %7823 = vmatpush1.bf16.msra.mxu1 %v15807_v59  ;;  %v15901_v58 = vcombine.low %v604_v40, %v612_v41  ;;  %v15903_v59 = vcombine.low %v605_v42, %v613_v43  ;;  %v700_v40 = vld [vmem:[%s20014_s29 + $0x830] sm:$0xff]  ;;  %v701_v42 = vld [vmem:[%s20014_s29 + $0x838] sm:$0xff] }
 0x3be   : > { %7660 = vmatprep.subr.bf16.mxu0 %v15822_v60  ;;  %7824 = vmatprep.subr.bf16.mxu1 %v15824_v61  ;;  %v15918_v60 = vcombine.high %v620_v49, %v628_v50  ;;  %v15920_v61 = vcombine.high %v621_v53, %v629_v56  ;;  %v708_v41 = vld [vmem:[%s20014_s29 + $0x870] sm:$0xff]  ;;  %v709_v43 = vld [vmem:[%s20014_s29 + $0x878] sm:$0xff] }
 0x3c1   : > { %7661 = vmatpush1.bf16.msra.mxu0 %v15821_v2  ;;  %7825 = vmatpush1.bf16.msra.mxu1 %v15823_v3  ;;  %v15917_v2 = vcombine.low %v620_v49, %v628_v50  ;;  %v15919_v3 = vcombine.low %v621_v53, %v629_v56  ;;  %v716_v49 = vld [vmem:[%s20014_s29 + $0x8b0] sm:$0xff]  ;;  %v717_v53 = vld [vmem:[%s20014_s29 + $0x8b8] sm:$0xff] }
 0x3c2   : > { %7662 = vmatprep.subr.bf16.mxu0 %v15838_v4  ;;  %7826 = vmatprep.subr.bf16.mxu1 %v15840_v5  ;;  %v15934_v4 = vcombine.high %v636_v62, %v644_v63  ;;  %v15936_v5 = vcombine.high %v637_v0, %v645_v1  ;;  %v724_v50 = vld [vmem:[%s20014_s29 + $0x8f0] sm:$0xff]  ;;  %v725_v56 = vld [vmem:[%s20014_s29 + $0x8f8] sm:$0xff] }
 0x3c5   : > { %7663 = vmatpush1.bf16.msra.mxu0 %v15837_v10  ;;  %7827 = vmatpush1.bf16.msra.mxu1 %v15839_v13  ;;  %v15933_v10 = vcombine.low %v636_v62, %v644_v63  ;;  %v15935_v13 = vcombine.low %v637_v0, %v645_v1  ;;  %v732_v62 = vld [vmem:[%s20014_s29 + $0x930] sm:$0xff]  ;;  %v733_v0 = vld [vmem:[%s20014_s29 + $0x938] sm:$0xff] }
 0x3c6   : > { %7664 = vmatprep.subr.bf16.mxu0 %v15854_v14  ;;  %7828 = vmatprep.subr.bf16.mxu1 %v15856_v15  ;;  %v15950_v14 = vcombine.high %v652_v6, %v660_v7  ;;  %v15952_v15 = vcombine.high %v653_v8, %v661_v9  ;;  %v740_v63 = vld [vmem:[%s20014_s29 + $0x970] sm:$0xff]  ;;  %v741_v1 = vld [vmem:[%s20014_s29 + $0x978] sm:$0xff] }
 0x3c9   : > { %7665 = vmatpush1.bf16.msra.mxu0 %v15853_v23  ;;  %7829 = vmatpush1.bf16.msra.mxu1 %v15855_v24  ;;  %v15949_v23 = vcombine.low %v652_v6, %v660_v7  ;;  %v15951_v24 = vcombine.low %v653_v8, %v661_v9  ;;  %v748_v6 = vld [vmem:[%s20014_s29 + $0x9b0] sm:$0xff]  ;;  %v749_v8 = vld [vmem:[%s20014_s29 + $0x9b8] sm:$0xff] }
 0x3ca   : > { %7666 = vmatprep.subr.bf16.mxu0 %v15870_v25  ;;  %7830 = vmatprep.subr.bf16.mxu1 %v15872_v28  ;;  %v15966_v25 = vcombine.high %v668_v16, %v676_v17  ;;  %v15968_v28 = vcombine.high %v669_v18, %v677_v20  ;;  %v756_v7 = vld [vmem:[%s20014_s29 + $0x9f0] sm:$0xff]  ;;  %v757_v9 = vld [vmem:[%s20014_s29 + $0x9f8] sm:$0xff] }
 0x3cd   : > { %7667 = vmatpush1.bf16.msra.mxu0 %v15869_v35  ;;  %7831 = vmatpush1.bf16.msra.mxu1 %v15871_v37  ;;  %v15965_v35 = vcombine.low %v668_v16, %v676_v17  ;;  %v15967_v37 = vcombine.low %v669_v18, %v677_v20  ;;  %v772_v16 = vld [vmem:[%s20014_s29 + $0xa70] sm:$0xff]  ;;  %v765_v17 = vld [vmem:[%s20014_s29 + $0xa38] sm:$0xff]  ;;  %v16045_v20 = vcombine.low %v748_v6, %v756_v7 }
 0x3ce   : > { %7668 = vmatprep.subr.bf16.mxu0 %v15886_v38  ;;  %7832 = vmatprep.subr.bf16.mxu1 %v15888_v39  ;;  %v15982_v38 = vcombine.high %v684_v30, %v692_v31  ;;  %v15984_v39 = vcombine.high %v685_v33, %v693_v34  ;;  %v773_v18 = vld [vmem:[%s20014_s29 + $0xa78] sm:$0xff] }
 0x3d1   : > { %7669 = vmatpush1.bf16.msra.mxu0 %v15885_v44  ;;  %7833 = vmatpush1.bf16.msra.mxu1 %v15887_v57  ;;  %v15981_v44 = vcombine.low %v684_v30, %v692_v31  ;;  %v15983_v57 = vcombine.low %v685_v33, %v693_v34  ;;  %v781_v30 = vld [vmem:[%s20014_s29 + $0xab8] sm:$0xff]  ;;  %v16063_v34 = vcombine.low %v765_v17, %v773_v18 }
 0x3d2   : > { %7670 = vmatprep.subr.bf16.mxu0 %v15902_v45  ;;  %7834 = vmatprep.subr.bf16.mxu1 %v15904_v48  ;;  %v15998_v45 = vcombine.high %v700_v40, %v708_v41  ;;  %v16000_v48 = vcombine.high %v701_v42, %v709_v43  ;;  %v789_v31 = vld [vmem:[%s20014_s29 + $0xaf8] sm:$0xff] }
 0x3d5   : > { %7671 = vmatpush1.bf16.msra.mxu0 %v15901_v58  ;;  %7835 = vmatpush1.bf16.msra.mxu1 %v15903_v59  ;;  %v15997_v58 = vcombine.low %v700_v40, %v708_v41  ;;  %v15999_v59 = vcombine.low %v701_v42, %v709_v43  ;;  %v797_v40 = vld [vmem:[%s20014_s29 + $0xb38] sm:$0xff]  ;;  %v16079_v43 = vcombine.low %v781_v30, %v789_v31 }
 0x3d6   : > { %7672 = vmatprep.subr.bf16.mxu0 %v15918_v60  ;;  %7836 = vmatprep.subr.bf16.mxu1 %v15920_v61  ;;  %v16014_v60 = vcombine.high %v716_v49, %v724_v50  ;;  %v16016_v61 = vcombine.high %v717_v53, %v725_v56  ;;  %v805_v41 = vld [vmem:[%s20014_s29 + $0xb78] sm:$0xff] }
 0x3d9   : > { %7673 = vmatpush1.bf16.msra.mxu0 %v15917_v2  ;;  %7837 = vmatpush1.bf16.msra.mxu1 %v15919_v3  ;;  %v16013_v2 = vcombine.low %v716_v49, %v724_v50  ;;  %v16015_v3 = vcombine.low %v717_v53, %v725_v56  ;;  %v813_v49 = vld [vmem:[%s20014_s29 + $0xbb8] sm:$0xff]  ;;  %v16095_v56 = vcombine.low %v797_v40, %v805_v41 }
 0x3da   : > { %7674 = vmatprep.subr.bf16.mxu0 %v15934_v4  ;;  %7838 = vmatprep.subr.bf16.mxu1 %v15936_v5  ;;  %v16030_v4 = vcombine.high %v732_v62, %v740_v63  ;;  %v16032_v5 = vcombine.high %v733_v0, %v741_v1  ;;  %v821_v50 = vld [vmem:[%s20014_s29 + $0xbf8] sm:$0xff] }
 0x3dd   : > { %7675 = vmatpush1.bf16.msra.mxu0 %v15933_v10  ;;  %7839 = vmatpush1.bf16.msra.mxu1 %v15935_v13  ;;  %v16031_v10 = vcombine.low %v733_v0, %v741_v1  ;;  %v16046_v13 = vcombine.high %v748_v6, %v756_v7  ;;  %v16111_v1 = vcombine.low %v813_v49, %v821_v50  ;;  %v845_v6 = vld [vmem:[%s20014_s29 + $0xcb8] sm:$0xff] }
 0x3de   : > { %7676 = vmatprep.subr.bf16.mxu0 %v15950_v14  ;;  %7840 = vmatprep.subr.bf16.mxu1 %v15952_v15  ;;  %v16048_v14 = vcombine.high %v749_v8, %v757_v9  ;;  %v764_v15 = vld [vmem:[%s20014_s29 + $0xa30] sm:$0xff]  ;;  %v853_v7 = vld [vmem:[%s20014_s29 + $0xcf8] sm:$0xff] }
 0x3df   : > { %v16061_v33 = vcombine.low %v764_v15, %v772_v16 }
 0x3e1   : > { %7677 = vmatpush1.bf16.msra.mxu0 %v15949_v23  ;;  %7841 = vmatpush1.bf16.msra.mxu1 %v15951_v24  ;;  %v16062_v23 = vcombine.high %v764_v15, %v772_v16  ;;  %v16064_v24 = vcombine.high %v765_v17, %v773_v18  ;;  %v861_v15 = vld [vmem:[%s20014_s29 + $0xd38] sm:$0xff]  ;;  %v16143_v18 = vcombine.low %v845_v6, %v853_v7 }
 0x3e2   : > { %7678 = vmatprep.subr.bf16.mxu0 %v15966_v25  ;;  %7842 = vmatprep.subr.bf16.mxu1 %v15968_v28  ;;  %v780_v25 = vld [vmem:[%s20014_s29 + $0xab0] sm:$0xff]  ;;  %v869_v16 = vld [vmem:[%s20014_s29 + $0xd78] sm:$0xff] }
 0x3e3   : > { %v788_v28 = vld [vmem:[%s20014_s29 + $0xaf0] sm:$0xff] }
 0x3e4   : > { %v16077_v42 = vcombine.low %v780_v25, %v788_v28 }
 0x3e5   : > { %7679 = vmatpush1.bf16.msra.mxu0 %v15965_v35  ;;  %7843 = vmatpush1.bf16.msra.mxu1 %v15967_v37  ;;  %v16078_v35 = vcombine.high %v780_v25, %v788_v28  ;;  %v16080_v37 = vcombine.high %v781_v30, %v789_v31  ;;  %v877_v25 = vld [vmem:[%s20014_s29 + $0xdb8] sm:$0xff]  ;;  %v16159_v31 = vcombine.low %v861_v15, %v869_v16 }
 0x3e6   : > { %7680 = vmatprep.subr.bf16.mxu0 %v15982_v38  ;;  %7844 = vmatprep.subr.bf16.mxu1 %v15984_v39  ;;  %v796_v38 = vld [vmem:[%s20014_s29 + $0xb30] sm:$0xff]  ;;  %v885_v28 = vld [vmem:[%s20014_s29 + $0xdf8] sm:$0xff] }
 0x3e7   : > { %v804_v39 = vld [vmem:[%s20014_s29 + $0xb70] sm:$0xff] }
 0x3e8   : > { %v16093_v53 = vcombine.low %v796_v38, %v804_v39 }
 0x3e9   : > { %7681 = vmatpush1.bf16.msra.mxu0 %v15981_v44  ;;  %7845 = vmatpush1.bf16.msra.mxu1 %v15983_v57  ;;  %v16094_v44 = vcombine.high %v796_v38, %v804_v39  ;;  %v16096_v57 = vcombine.high %v797_v40, %v805_v41  ;;  %v893_v38 = vld [vmem:[%s20014_s29 + $0xe38] sm:$0xff]  ;;  %v16175_v41 = vcombine.low %v877_v25, %v885_v28 }
 0x3ea   : > { %7691 = vmatprep.subr.bf16.mxu0 %v15998_v45  ;;  %7855 = vmatprep.subr.bf16.mxu1 %v16000_v48  ;;  %v812_v45 = vld [vmem:[%s20014_s29 + $0xbb0] sm:$0xff]  ;;  %v901_v39 = vld [vmem:[%s20014_s29 + $0xe78] sm:$0xff] }
 0x3eb   : > { %v820_v48 = vld [vmem:[%s20014_s29 + $0xbf0] sm:$0xff] }
 0x3ec   : > { %7683 = vmatmul.mubr.bf16.vlgmr.msra.gmra.mrb[12].mxu0 %v20127_v12  ;;  %7847 = vmatmul.mubr.bf16.vlgmr.msra.gmra.mrb[12].mxu1 %v20127_v12  ;;  %v16029_v12 = vcombine.low %v732_v62, %v740_v63  ;;  %v829_v62 = vld [vmem:[%s20014_s29 + $0xc38] sm:$0xff]  ;;  %v16109_v0 = vcombine.low %v812_v45, %v820_v48 }
 0x3ed   : > { %7692 = vmatpush1.bf16.msra.mxu0 %v15997_v58  ;;  %7856 = vmatpush1.bf16.msra.mxu1 %v15999_v59  ;;  %v16110_v58 = vcombine.high %v812_v45, %v820_v48  ;;  %v16112_v59 = vcombine.high %v813_v49, %v821_v50  ;;  %v837_v63 = vld [vmem:[%s20014_s29 + $0xc78] sm:$0xff]  ;;  %v16191_v50 = vcombine.low %v893_v38, %v901_v39 }
 0x3ee   : > { %7693 = vmatprep.subr.bf16.mxu0 %v16014_v60  ;;  %7857 = vmatprep.subr.bf16.mxu1 %v16016_v61  ;;  %v828_v60 = vld [vmem:[%s20014_s29 + $0xc30] sm:$0xff]  ;;  %v909_v45 = vld [vmem:[%s20014_s29 + $0xeb8] sm:$0xff] }
 0x3ef   : > { %7723 = vmatprep.mubr.bf16.mxu0 %v20136_v22  ;;  %7887 = vmatprep.mubr.bf16.mxu1 %v20136_v22  ;;  %v16047_v22 = vcombine.low %v749_v8, %v757_v9  ;;  %v836_v61 = vld [vmem:[%s20014_s29 + $0xc70] sm:$0xff]  ;;  %v16127_v9 = vcombine.low %v829_v62, %v837_v63  ;;  %v917_v48 = vld [vmem:[%s20014_s29 + $0xef8] sm:$0xff] }
 0x3f0   : > { %v16125_v8 = vcombine.low %v828_v60, %v836_v61 }
 0x3f1   : > { %7694 = vmatpush1.bf16.msra.mxu0 %v16013_v2  ;;  %7858 = vmatpush1.bf16.msra.mxu1 %v16015_v3  ;;  %v16126_v2 = vcombine.high %v828_v60, %v836_v61  ;;  %v16128_v3 = vcombine.high %v829_v62, %v837_v63  ;;  %v925_v60 = vld [vmem:[%s20014_s29 + $0xf38] sm:$0xff]  ;;  %v16207_v63 = vcombine.low %v909_v45, %v917_v48 }
 0x3f2   : > { %7695 = vmatprep.subr.bf16.mxu0 %v16030_v4  ;;  %7859 = vmatprep.subr.bf16.mxu1 %v16032_v5  ;;  %v844_v4 = vld [vmem:[%s20014_s29 + $0xcb0] sm:$0xff]  ;;  %v933_v61 = vld [vmem:[%s20014_s29 + $0xf78] sm:$0xff] }
 0x3f3   : > { %v852_v5 = vld [vmem:[%s20014_s29 + $0xcf0] sm:$0xff] }
 0x3f4   : > { %v16141_v17 = vcombine.low %v844_v4, %v852_v5 }
 0x3f5   : > { %7696 = vmatpush1.bf16.msra.mxu0 %v16029_v12  ;;  %7860 = vmatpush1.bf16.msra.mxu1 %v16031_v10  ;;  %v16142_v12 = vcombine.high %v844_v4, %v852_v5  ;;  %v16144_v10 = vcombine.high %v845_v6, %v853_v7  ;;  %v941_v4 = vld [vmem:[%s20014_s29 + $0xfb8] sm:$0xff]  ;;  %v16223_v7 = vcombine.low %v925_v60, %v933_v61 }
 0x3f6   : > { %7697 = vmatprep.subr.bf16.mxu0 %v16046_v13  ;;  %7861 = vmatprep.subr.bf16.mxu1 %v16048_v14  ;;  %v860_v13 = vld [vmem:[%s20014_s29 + $0xd30] sm:$0xff]  ;;  %v949_v5 = vld [vmem:[%s20014_s29 + $0xff8] sm:$0xff] }
 0x3f7   : > { %v868_v14 = vld [vmem:[%s20014_s29 + $0xd70] sm:$0xff] }
 0x3f8   : > { %v16157_v30 = vcombine.low %v860_v13, %v868_v14 }
 0x3f9   : > { %7698 = vmatpush1.bf16.msra.mxu0 %v16045_v20  ;;  %7862 = vmatpush1.bf16.msra.mxu1 %v16047_v22  ;;  %v16158_v20 = vcombine.high %v860_v13, %v868_v14  ;;  %v16160_v22 = vcombine.high %v861_v15, %v869_v16  ;;  %v957_v13 = vld [vmem:[%s20014_s29 + $0x1038] sm:$0xff]  ;;  %v16239_v16 = vcombine.low %v941_v4, %v949_v5 }
 0x3fa   : > { %7699 = vmatprep.subr.bf16.mxu0 %v16062_v23  ;;  %7863 = vmatprep.subr.bf16.mxu1 %v16064_v24  ;;  %v876_v23 = vld [vmem:[%s20014_s29 + $0xdb0] sm:$0xff]  ;;  %v965_v14 = vld [vmem:[%s20014_s29 + $0x1078] sm:$0xff] }
 0x3fb   : > { %v884_v24 = vld [vmem:[%s20014_s29 + $0xdf0] sm:$0xff] }
 0x3fc   : > { %v16173_v40 = vcombine.low %v876_v23, %v884_v24 }
 0x3fd   : > { %7700 = vmatpush1.bf16.msra.mxu0 %v16061_v33  ;;  %7864 = vmatpush1.bf16.msra.mxu1 %v16063_v34  ;;  %v16174_v33 = vcombine.high %v876_v23, %v884_v24  ;;  %v16176_v34 = vcombine.high %v877_v25, %v885_v28  ;;  %v973_v23 = vld [vmem:[%s20014_s29 + $0x10b8] sm:$0xff]  ;;  %v16255_v28 = vcombine.low %v957_v13, %v965_v14 }
 0x3fe   : > { %7701 = vmatprep.subr.bf16.mxu0 %v16078_v35  ;;  %7865 = vmatprep.subr.bf16.mxu1 %v16080_v37  ;;  %v892_v35 = vld [vmem:[%s20014_s29 + $0xe30] sm:$0xff]  ;;  %v981_v24 = vld [vmem:[%s20014_s29 + $0x10f8] sm:$0xff] }
 0x3ff   : > { %v900_v37 = vld [vmem:[%s20014_s29 + $0xe70] sm:$0xff] }
 0x400   : > { %v16189_v49 = vcombine.low %v892_v35, %v900_v37 }
 0x401   : > { %7702 = vmatpush1.bf16.msra.mxu0 %v16077_v42  ;;  %7866 = vmatpush1.bf16.msra.mxu1 %v16079_v43  ;;  %v16190_v42 = vcombine.high %v892_v35, %v900_v37  ;;  %v16192_v43 = vcombine.high %v893_v38, %v901_v39  ;;  %v989_v35 = vld [vmem:[%s20014_s29 + $0x1138] sm:$0xff]  ;;  %v16271_v39 = vcombine.low %v973_v23, %v981_v24 }
 0x402   : > { %7703 = vmatprep.subr.bf16.mxu0 %v16094_v44  ;;  %7867 = vmatprep.subr.bf16.mxu1 %v16096_v57  ;;  %v908_v44 = vld [vmem:[%s20014_s29 + $0xeb0] sm:$0xff]  ;;  %v997_v37 = vld [vmem:[%s20014_s29 + $0x1178] sm:$0xff] }
 0x403   : > { %v916_v57 = vld [vmem:[%s20014_s29 + $0xef0] sm:$0xff] }
 0x404   : > { %v16205_v62 = vcombine.low %v908_v44, %v916_v57 }
 0x405   : > { %7704 = vmatpush1.bf16.msra.mxu0 %v16093_v53  ;;  %7868 = vmatpush1.bf16.msra.mxu1 %v16095_v56  ;;  %v16206_v53 = vcombine.high %v908_v44, %v916_v57  ;;  %v16208_v56 = vcombine.high %v909_v45, %v917_v48  ;;  %v1005_v44 = vld [vmem:[%s20014_s29 + $0x11b8] sm:$0xff]  ;;  %v16287_v45 = vcombine.low %v989_v35, %v997_v37 }
 0x406   : > { %7705 = vmatprep.subr.bf16.mxu0 %v16110_v58  ;;  %7869 = vmatprep.subr.bf16.mxu1 %v16112_v59  ;;  %v924_v58 = vld [vmem:[%s20014_s29 + $0xf30] sm:$0xff]  ;;  %v1013_v57 = vld [vmem:[%s20014_s29 + $0x11f8] sm:$0xff] }
 0x407   : > { %v932_v59 = vld [vmem:[%s20014_s29 + $0xf70] sm:$0xff] }
 0x408   : > { %v16221_v6 = vcombine.low %v924_v58, %v932_v59 }
 0x409   : > { %7706 = vmatpush1.bf16.msra.mxu0 %v16109_v0  ;;  %7870 = vmatpush1.bf16.msra.mxu1 %v16111_v1  ;;  %v16222_v0 = vcombine.high %v924_v58, %v932_v59  ;;  %v16224_v1 = vcombine.high %v925_v60, %v933_v61  ;;  %v1029_v58 = vld [vmem:[%s20014_s29 + $0x1278] sm:$0xff] }
 0x40a   : > { %7707 = vmatprep.subr.bf16.mxu0 %v16126_v2  ;;  %7871 = vmatprep.subr.bf16.mxu1 %v16128_v3  ;;  %v940_v2 = vld [vmem:[%s20014_s29 + $0xfb0] sm:$0xff] }
 0x40b   : > { %v948_v3 = vld [vmem:[%s20014_s29 + $0xff0] sm:$0xff] }
 0x40c   : > { %v16237_v15 = vcombine.low %v940_v2, %v948_v3 }
 0x40d   : > { %7708 = vmatpush1.bf16.msra.mxu0 %v16125_v8  ;;  %7872 = vmatpush1.bf16.msra.mxu1 %v16127_v9  ;;  %v16238_v8 = vcombine.high %v940_v2, %v948_v3  ;;  %v16240_v9 = vcombine.high %v941_v4, %v949_v5 }
 0x40e   : > { %7709 = vmatprep.subr.bf16.mxu0 %v16142_v12  ;;  %7873 = vmatprep.subr.bf16.mxu1 %v16144_v10  ;;  %v956_v12 = vld [vmem:[%s20014_s29 + $0x1030] sm:$0xff] }
 0x40f   : > { %v964_v10 = vld [vmem:[%s20014_s29 + $0x1070] sm:$0xff] }
 0x410   : > { %v16253_v25 = vcombine.low %v956_v12, %v964_v10 }
 0x411   : > { %7710 = vmatpush1.bf16.msra.mxu0 %v16141_v17  ;;  %7874 = vmatpush1.bf16.msra.mxu1 %v16143_v18  ;;  %v16254_v17 = vcombine.high %v956_v12, %v964_v10  ;;  %v16256_v18 = vcombine.high %v957_v13, %v965_v14 }
 0x412   : > { %7711 = vmatprep.subr.bf16.mxu0 %v16158_v20  ;;  %7875 = vmatprep.subr.bf16.mxu1 %v16160_v22  ;;  %v972_v20 = vld [vmem:[%s20014_s29 + $0x10b0] sm:$0xff] }
 0x413   : > { %v980_v22 = vld [vmem:[%s20014_s29 + $0x10f0] sm:$0xff] }
 0x414   : > { %v16269_v38 = vcombine.low %v972_v20, %v980_v22 }
 0x415   : > { %7712 = vmatpush1.bf16.msra.mxu0 %v16157_v30  ;;  %7876 = vmatpush1.bf16.msra.mxu1 %v16159_v31  ;;  %v16270_v30 = vcombine.high %v972_v20, %v980_v22  ;;  %v16272_v31 = vcombine.high %v973_v23, %v981_v24 }
 0x416   : > { %7713 = vmatprep.subr.bf16.mxu0 %v16174_v33  ;;  %7877 = vmatprep.subr.bf16.mxu1 %v16176_v34  ;;  %v988_v33 = vld [vmem:[%s20014_s29 + $0x1130] sm:$0xff] }
 0x417   : > { %v996_v34 = vld [vmem:[%s20014_s29 + $0x1170] sm:$0xff] }
 0x419   : > { %7714 = vmatpush1.bf16.msra.mxu0 %v16173_v40  ;;  %7878 = vmatpush1.bf16.msra.mxu1 %v16175_v41  ;;  %v16286_v40 = vcombine.high %v988_v33, %v996_v34  ;;  %v16288_v41 = vcombine.high %v989_v35, %v997_v37 }
 0x41a   : > { %7715 = vmatprep.subr.bf16.mxu0 %v16190_v42  ;;  %7879 = vmatprep.subr.bf16.mxu1 %v16192_v43  ;;  %v1004_v42 = vld [vmem:[%s20014_s29 + $0x11b0] sm:$0xff] }
 0x41b   : > { %v1012_v43 = vld [vmem:[%s20014_s29 + $0x11f0] sm:$0xff] }
 0x41c   : > { %v16302_v48 = vcombine.high %v1004_v42, %v1012_v43  ;;  %v16301_v59 = vcombine.low %v1004_v42, %v1012_v43 }
 0x41d   : > { %7716 = vmatpush1.bf16.msra.mxu0 %v16189_v49  ;;  %7880 = vmatpush1.bf16.msra.mxu1 %v16191_v50  ;;  %v16304_v49 = vcombine.high %v1005_v44, %v1013_v57  ;;  %v1020_v50 = vld [vmem:[%s20014_s29 + $0x1230] sm:$0xff] }
 0x41e   : > { %7717 = vmatprep.subr.bf16.mxu0 %v16206_v53  ;;  %7881 = vmatprep.subr.bf16.mxu1 %v16208_v56  ;;  %v1028_v53 = vld [vmem:[%s20014_s29 + $0x1270] sm:$0xff]  ;;  %v1021_v56 = vld [vmem:[%s20014_s29 + $0x1238] sm:$0xff] }
 0x41f   : > { %v16318_v60 = vcombine.high %v1020_v50, %v1028_v53  ;;  %v16320_v61 = vcombine.high %v1021_v56, %v1029_v58  ;;  %v16317_v2 = vcombine.low %v1020_v50, %v1028_v53  ;;  %v16319_v3 = vcombine.low %v1021_v56, %v1029_v58 }
 0x421   : > { %7718 = vmatpush1.bf16.msra.mxu0 %v16205_v62  ;;  %7882 = vmatpush1.bf16.msra.mxu1 %v16207_v63  ;;  %v1036_v62 = vld [vmem:[%s20014_s29 + $0x12b0] sm:$0xff] }
 0x422   : > { %7719 = vmatprep.subr.bf16.mxu0 %v16222_v0  ;;  %7883 = vmatprep.subr.bf16.mxu1 %v16224_v1  ;;  %v1044_v63 = vld [vmem:[%s20014_s29 + $0x12f0] sm:$0xff]  ;;  %v1037_v0 = vld [vmem:[%s20014_s29 + $0x12b8] sm:$0xff] }
 0x423   : > { %v1045_v1 = vld [vmem:[%s20014_s29 + $0x12f8] sm:$0xff]  ;;  %v16334_v4 = vcombine.high %v1036_v62, %v1044_v63  ;;  %v16333_v12 = vcombine.low %v1036_v62, %v1044_v63 }
 0x424   : > { %v16336_v5 = vcombine.high %v1037_v0, %v1045_v1  ;;  %v16335_v10 = vcombine.low %v1037_v0, %v1045_v1 }
 0x425   : > { %7720 = vmatpush1.bf16.msra.mxu0 %v16221_v6  ;;  %7884 = vmatpush1.bf16.msra.mxu1 %v16223_v7  ;;  %v1052_v6 = vld [vmem:[%s20014_s29 + $0x1330] sm:$0xff] }
 0x426   : > { %7721 = vmatprep.subr.bf16.mxu0 %v16238_v8  ;;  %7885 = vmatprep.subr.bf16.mxu1 %v16240_v9  ;;  %v1060_v7 = vld [vmem:[%s20014_s29 + $0x1370] sm:$0xff]  ;;  %v1053_v8 = vld [vmem:[%s20014_s29 + $0x1338] sm:$0xff] }
 0x427   : > { %v1061_v9 = vld [vmem:[%s20014_s29 + $0x1378] sm:$0xff]  ;;  %v16350_v13 = vcombine.high %v1052_v6, %v1060_v7  ;;  %v16349_v20 = vcombine.low %v1052_v6, %v1060_v7 }
 0x428   : > { %v16352_v14 = vcombine.high %v1053_v8, %v1061_v9  ;;  %v16351_v22 = vcombine.low %v1053_v8, %v1061_v9 }
 0x429   : > { %7722 = vmatpush1.bf16.msra.mxu0 %v16237_v15  ;;  %7886 = vmatpush1.bf16.msra.mxu1 %v16239_v16  ;;  %v1068_v15 = vld [vmem:[%s20014_s29 + $0x13b0] sm:$0xff] }
 0x42a   : > { %7732 = vmatprep.subr.bf16.mxu0 %v16254_v17  ;;  %7896 = vmatprep.subr.bf16.mxu1 %v16256_v18  ;;  %v1076_v16 = vld [vmem:[%s20014_s29 + $0x13f0] sm:$0xff]  ;;  %v1069_v17 = vld [vmem:[%s20014_s29 + $0x13b8] sm:$0xff] }
 0x42b   : > { %v1077_v18 = vld [vmem:[%s20014_s29 + $0x13f8] sm:$0xff]  ;;  %v16366_v23 = vcombine.high %v1068_v15, %v1076_v16 }
 0x42c   : > { %7724 = vmatmul.mubr.bf16.vlgmr.msra.gmra.mrb[12].mxu0 %v20205_v21  ;;  %7888 = vmatmul.mubr.bf16.vlgmr.msra.gmra.mrb[12].mxu1 %v20205_v21  ;;  %v16285_v21 = vcombine.low %v988_v33, %v996_v34  ;;  %v16368_v24 = vcombine.high %v1069_v17, %v1077_v18  ;;  %v16365_v33 = vcombine.low %v1068_v15, %v1076_v16 }
 0x42d   : > { %7733 = vmatpush1.bf16.msra.mxu0 %v16253_v25  ;;  %7897 = vmatpush1.bf16.msra.mxu1 %v16255_v28  ;;  %v1084_v25 = vld [vmem:[%s20014_s29 + $0x1430] sm:$0xff]  ;;  %v16367_v34 = vcombine.low %v1069_v17, %v1077_v18 }
 0x42e   : > { %7734 = vmatprep.subr.bf16.mxu0 %v16270_v30  ;;  %7898 = vmatprep.subr.bf16.mxu1 %v16272_v31  ;;  %v1092_v28 = vld [vmem:[%s20014_s29 + $0x1470] sm:$0xff]  ;;  %v1085_v30 = vld [vmem:[%s20014_s29 + $0x1438] sm:$0xff] }
 0x42f   : > { %7764 = vmatprep.mubr.bf16.mxu0 %v20214_v32  ;;  %7928 = vmatprep.mubr.bf16.mxu1 %v20214_v32  ;;  %v16303_v32 = vcombine.low %v1005_v44, %v1013_v57  ;;  %v1093_v31 = vld [vmem:[%s20014_s29 + $0x1478] sm:$0xff]  ;;  %v16382_v35 = vcombine.high %v1084_v25, %v1092_v28  ;;  %v16381_v42 = vcombine.low %v1084_v25, %v1092_v28 }
 0x430   : > { %v16384_v37 = vcombine.high %v1085_v30, %v1093_v31  ;;  %v16383_v43 = vcombine.low %v1085_v30, %v1093_v31 }
 0x431   : > { %7735 = vmatpush1.bf16.msra.mxu0 %v16269_v38  ;;  %7899 = vmatpush1.bf16.msra.mxu1 %v16271_v39  ;;  %v1100_v38 = vld [vmem:[%s20014_s29 + $0x14b0] sm:$0xff] }
 0x432   : > { %7736 = vmatprep.subr.bf16.mxu0 %v16286_v40  ;;  %7900 = vmatprep.subr.bf16.mxu1 %v16288_v41  ;;  %v1108_v39 = vld [vmem:[%s20014_s29 + $0x14f0] sm:$0xff]  ;;  %v1101_v40 = vld [vmem:[%s20014_s29 + $0x14b8] sm:$0xff] }
 0x433   : > { %v1109_v41 = vld [vmem:[%s20014_s29 + $0x14f8] sm:$0xff]  ;;  %v16398_v44 = vcombine.high %v1100_v38, %v1108_v39  ;;  %v16397_v50 = vcombine.low %v1100_v38, %v1108_v39 }
 0x434   : > { %v16400_v57 = vcombine.high %v1101_v40, %v1109_v41  ;;  %v16399_v53 = vcombine.low %v1101_v40, %v1109_v41 }
 0x435   : > { %7737 = vmatpush1.bf16.msra.mxu0 %v16285_v21  ;;  %7901 = vmatpush1.bf16.msra.mxu1 %v16287_v45  ;;  %v1116_v21 = vld [vmem:[%s20014_s29 + $0x1530] sm:$0xff] }
 0x436   : > { %7738 = vmatprep.subr.bf16.mxu0 %v16302_v48  ;;  %7902 = vmatprep.subr.bf16.mxu1 %v16304_v49  ;;  %v1124_v45 = vld [vmem:[%s20014_s29 + $0x1570] sm:$0xff]  ;;  %v1117_v48 = vld [vmem:[%s20014_s29 + $0x1538] sm:$0xff] }
 0x437   : > { %v1125_v49 = vld [vmem:[%s20014_s29 + $0x1578] sm:$0xff]  ;;  %v16414_v56 = vcombine.high %v1116_v21, %v1124_v45  ;;  %v16413_v62 = vcombine.low %v1116_v21, %v1124_v45 }
 0x438   : > { %v16416_v58 = vcombine.high %v1117_v48, %v1125_v49  ;;  %v16415_v63 = vcombine.low %v1117_v48, %v1125_v49 }
 0x439   : > { %7739 = vmatpush1.bf16.msra.mxu0 %v16301_v59  ;;  %7903 = vmatpush1.bf16.msra.mxu1 %v16303_v32  ;;  %v1132_v59 = vld [vmem:[%s20014_s29 + $0x15b0] sm:$0xff] }
 0x43a   : > { %7740 = vmatprep.subr.bf16.mxu0 %v16318_v60  ;;  %7904 = vmatprep.subr.bf16.mxu1 %v16320_v61  ;;  %v1140_v32 = vld [vmem:[%s20014_s29 + $0x15f0] sm:$0xff]  ;;  %v1133_v60 = vld [vmem:[%s20014_s29 + $0x15b8] sm:$0xff] }
 0x43b   : > { %v1141_v61 = vld [vmem:[%s20014_s29 + $0x15f8] sm:$0xff]  ;;  %v16430_v0 = vcombine.high %v1132_v59, %v1140_v32  ;;  %v16429_v6 = vcombine.low %v1132_v59, %v1140_v32 }
 0x43c   : > { %v16432_v1 = vcombine.high %v1133_v60, %v1141_v61  ;;  %v16431_v7 = vcombine.low %v1133_v60, %v1141_v61 }
 0x43d   : > { %7741 = vmatpush1.bf16.msra.mxu0 %v16317_v2  ;;  %7905 = vmatpush1.bf16.msra.mxu1 %v16319_v3  ;;  %v1148_v2 = vld [vmem:[%s20014_s29 + $0x1630] sm:$0xff] }
 0x43e   : > { %7742 = vmatprep.subr.bf16.mxu0 %v16334_v4  ;;  %7906 = vmatprep.subr.bf16.mxu1 %v16336_v5  ;;  %v1156_v3 = vld [vmem:[%s20014_s29 + $0x1670] sm:$0xff]  ;;  %v1149_v4 = vld [vmem:[%s20014_s29 + $0x1638] sm:$0xff] }
 0x43f   : > { %v1157_v5 = vld [vmem:[%s20014_s29 + $0x1678] sm:$0xff]  ;;  %v16446_v8 = vcombine.high %v1148_v2, %v1156_v3  ;;  %v16445_v15 = vcombine.low %v1148_v2, %v1156_v3 }
 0x440   : > { %v16448_v9 = vcombine.high %v1149_v4, %v1157_v5  ;;  %v16447_v16 = vcombine.low %v1149_v4, %v1157_v5 }
 0x441   : > { %7743 = vmatpush1.bf16.msra.mxu0 %v16333_v12  ;;  %7907 = vmatpush1.bf16.msra.mxu1 %v16335_v10  ;;  %v1164_v12 = vld [vmem:[%s20014_s29 + $0x16b0] sm:$0xff] }
 0x442   : > { %7744 = vmatprep.subr.bf16.mxu0 %v16350_v13  ;;  %7908 = vmatprep.subr.bf16.mxu1 %v16352_v14  ;;  %v1172_v10 = vld [vmem:[%s20014_s29 + $0x16f0] sm:$0xff]  ;;  %v1165_v13 = vld [vmem:[%s20014_s29 + $0x16b8] sm:$0xff] }
 0x443   : > { %v1173_v14 = vld [vmem:[%s20014_s29 + $0x16f8] sm:$0xff]  ;;  %v16462_v17 = vcombine.high %v1164_v12, %v1172_v10  ;;  %v16461_v25 = vcombine.low %v1164_v12, %v1172_v10 }
 0x444   : > { %v16464_v18 = vcombine.high %v1165_v13, %v1173_v14  ;;  %v16463_v28 = vcombine.low %v1165_v13, %v1173_v14  ;;  %v1276_v14 = vld [vmem:[%s20014_s29 + $0x1a30] sm:$0xff] }
 0x445   : > { %7745 = vmatpush1.bf16.msra.mxu0 %v16349_v20  ;;  %7909 = vmatpush1.bf16.msra.mxu1 %v16351_v22  ;;  %v1180_v20 = vld [vmem:[%s20014_s29 + $0x1730] sm:$0xff] }
 0x446   : > { %7746 = vmatprep.subr.bf16.mxu0 %v16366_v23  ;;  %7910 = vmatprep.subr.bf16.mxu1 %v16368_v24  ;;  %v1188_v22 = vld [vmem:[%s20014_s29 + $0x1770] sm:$0xff]  ;;  %v1181_v23 = vld [vmem:[%s20014_s29 + $0x1738] sm:$0xff] }
 0x447   : > { %v1189_v24 = vld [vmem:[%s20014_s29 + $0x1778] sm:$0xff]  ;;  %v16478_v30 = vcombine.high %v1180_v20, %v1188_v22  ;;  %v16477_v38 = vcombine.low %v1180_v20, %v1188_v22 }
 0x448   : > { %v16480_v31 = vcombine.high %v1181_v23, %v1189_v24  ;;  %v16479_v39 = vcombine.low %v1181_v23, %v1189_v24  ;;  %v1292_v23 = vld [vmem:[%s20014_s29 + $0x1ab0] sm:$0xff] }
 0x449   : > { %7747 = vmatpush1.bf16.msra.mxu0 %v16365_v33  ;;  %7911 = vmatpush1.bf16.msra.mxu1 %v16367_v34  ;;  %v1196_v33 = vld [vmem:[%s20014_s29 + $0x17b0] sm:$0xff] }
 0x44a   : > { %7748 = vmatprep.subr.bf16.mxu0 %v16382_v35  ;;  %7912 = vmatprep.subr.bf16.mxu1 %v16384_v37  ;;  %v1204_v34 = vld [vmem:[%s20014_s29 + $0x17f0] sm:$0xff]  ;;  %v1197_v35 = vld [vmem:[%s20014_s29 + $0x17b8] sm:$0xff] }
 0x44b   : > { %v1205_v37 = vld [vmem:[%s20014_s29 + $0x17f8] sm:$0xff]  ;;  %v16494_v40 = vcombine.high %v1196_v33, %v1204_v34  ;;  %v16493_v21 = vcombine.low %v1196_v33, %v1204_v34  ;;  %v1300_v24 = vld [vmem:[%s20014_s29 + $0x1af0] sm:$0xff] }
 0x44c   : > { %v16496_v41 = vcombine.high %v1197_v35, %v1205_v37  ;;  %v16495_v45 = vcombine.low %v1197_v35, %v1205_v37  ;;  %v16590_v34 = vcombine.high %v1292_v23, %v1300_v24  ;;  %v1308_v37 = vld [vmem:[%s20014_s29 + $0x1b30] sm:$0xff] }
 0x44d   : > { %7749 = vmatpush1.bf16.msra.mxu0 %v16381_v42  ;;  %7913 = vmatpush1.bf16.msra.mxu1 %v16383_v43  ;;  %v1212_v42 = vld [vmem:[%s20014_s29 + $0x1830] sm:$0xff] }
 0x44e   : > { %7750 = vmatprep.subr.bf16.mxu0 %v16398_v44  ;;  %7914 = vmatprep.subr.bf16.mxu1 %v16400_v57  ;;  %v1220_v43 = vld [vmem:[%s20014_s29 + $0x1870] sm:$0xff]  ;;  %v1213_v44 = vld [vmem:[%s20014_s29 + $0x1838] sm:$0xff] }
 0x44f   : > { %v1221_v57 = vld [vmem:[%s20014_s29 + $0x1878] sm:$0xff]  ;;  %v16510_v48 = vcombine.high %v1212_v42, %v1220_v43  ;;  %v16509_v59 = vcombine.low %v1212_v42, %v1220_v43 }
 0x450   : > { %v16512_v49 = vcombine.high %v1213_v44, %v1221_v57  ;;  %v16511_v32 = vcombine.low %v1213_v44, %v1221_v57  ;;  %v16589_v44 = vcombine.low %v1292_v23, %v1300_v24  ;;  %v1380_v23 = vld [vmem:[%s20014_s29 + $0x1d70] sm:$0xff]  ;;  %v1373_v24 = vld [vmem:[%s20014_s29 + $0x1d38] sm:$0xff] }
 0x451   : > { %7751 = vmatpush1.bf16.msra.mxu0 %v16397_v50  ;;  %7915 = vmatpush1.bf16.msra.mxu1 %v16399_v53  ;;  %v1228_v50 = vld [vmem:[%s20014_s29 + $0x18b0] sm:$0xff] }
 0x452   : > { %7752 = vmatprep.subr.bf16.mxu0 %v16414_v56  ;;  %7916 = vmatprep.subr.bf16.mxu1 %v16416_v58  ;;  %v1236_v53 = vld [vmem:[%s20014_s29 + $0x18f0] sm:$0xff]  ;;  %v1229_v56 = vld [vmem:[%s20014_s29 + $0x18b8] sm:$0xff] }
 0x453   : > { %v1237_v58 = vld [vmem:[%s20014_s29 + $0x18f8] sm:$0xff]  ;;  %v16526_v60 = vcombine.high %v1228_v50, %v1236_v53  ;;  %v16525_v2 = vcombine.low %v1228_v50, %v1236_v53 }
 0x454   : > { %v16528_v61 = vcombine.high %v1229_v56, %v1237_v58  ;;  %v16527_v3 = vcombine.low %v1229_v56, %v1237_v58  ;;  %v1333_v58 = vld [vmem:[%s20014_s29 + $0x1bf8] sm:$0xff] }
 0x455   : > { %7753 = vmatpush1.bf16.msra.mxu0 %v16413_v62  ;;  %7917 = vmatpush1.bf16.msra.mxu1 %v16415_v63  ;;  %v1244_v62 = vld [vmem:[%s20014_s29 + $0x1930] sm:$0xff] }
 0x456   : > { %7754 = vmatprep.subr.bf16.mxu0 %v16430_v0  ;;  %7918 = vmatprep.subr.bf16.mxu1 %v16432_v1  ;;  %v1252_v63 = vld [vmem:[%s20014_s29 + $0x1970] sm:$0xff]  ;;  %v1245_v0 = vld [vmem:[%s20014_s29 + $0x1938] sm:$0xff] }
 0x457   : > { %v1253_v1 = vld [vmem:[%s20014_s29 + $0x1978] sm:$0xff]  ;;  %v16542_v4 = vcombine.high %v1244_v62, %v1252_v63 }
 0x458   : > { %v16544_v5 = vcombine.high %v1245_v0, %v1253_v1  ;;  %v16543_v12 = vcombine.low %v1245_v0, %v1253_v1 }
 0x459   : > { %7755 = vmatpush1.bf16.msra.mxu0 %v16429_v6  ;;  %7919 = vmatpush1.bf16.msra.mxu1 %v16431_v7  ;;  %v1260_v6 = vld [vmem:[%s20014_s29 + $0x19b0] sm:$0xff] }
 0x45a   : > { %7756 = vmatprep.subr.bf16.mxu0 %v16446_v8  ;;  %7920 = vmatprep.subr.bf16.mxu1 %v16448_v9  ;;  %v1268_v7 = vld [vmem:[%s20014_s29 + $0x19f0] sm:$0xff]  ;;  %v1261_v8 = vld [vmem:[%s20014_s29 + $0x19b8] sm:$0xff] }
 0x45b   : > { %v1269_v9 = vld [vmem:[%s20014_s29 + $0x19f8] sm:$0xff]  ;;  %v16558_v10 = vcombine.high %v1260_v6, %v1268_v7 }
 0x45c   : > { %v16560_v13 = vcombine.high %v1261_v8, %v1269_v9 }
 0x45d   : > { %7757 = vmatpush1.bf16.msra.mxu0 %v16445_v15  ;;  %7921 = vmatpush1.bf16.msra.mxu1 %v16447_v16  ;;  %v1284_v15 = vld [vmem:[%s20014_s29 + $0x1a70] sm:$0xff]  ;;  %v1277_v16 = vld [vmem:[%s20014_s29 + $0x1a38] sm:$0xff] }
 0x45e   : > { %7758 = vmatprep.subr.bf16.mxu0 %v16462_v17  ;;  %7922 = vmatprep.subr.bf16.mxu1 %v16464_v18  ;;  %v1285_v17 = vld [vmem:[%s20014_s29 + $0x1a78] sm:$0xff]  ;;  %v16557_v18 = vcombine.low %v1260_v6, %v1268_v7  ;;  %v16574_v20 = vcombine.high %v1276_v14, %v1284_v15  ;;  %v1348_v6 = vld [vmem:[%s20014_s29 + $0x1c70] sm:$0xff] }
 0x45f   : > { %v16576_v22 = vcombine.high %v1277_v16, %v1285_v17  ;;  %v16575_v33 = vcombine.low %v1277_v16, %v1285_v17  ;;  %v1341_v7 = vld [vmem:[%s20014_s29 + $0x1c38] sm:$0xff] }
 0x460   : > { %v1365_v16 = vld [vmem:[%s20014_s29 + $0x1cf8] sm:$0xff] }
 0x461   : > { %7759 = vmatpush1.bf16.msra.mxu0 %v16461_v25  ;;  %7923 = vmatpush1.bf16.msra.mxu1 %v16463_v28  ;;  %v1293_v25 = vld [vmem:[%s20014_s29 + $0x1ab8] sm:$0xff] }
 0x462   : > { %7760 = vmatprep.subr.bf16.mxu0 %v16478_v30  ;;  %7924 = vmatprep.subr.bf16.mxu1 %v16480_v31  ;;  %v1301_v28 = vld [vmem:[%s20014_s29 + $0x1af8] sm:$0xff]  ;;  %v16573_v30 = vcombine.low %v1276_v14, %v1284_v15  ;;  %v1364_v14 = vld [vmem:[%s20014_s29 + $0x1cf0] sm:$0xff] }
 0x463   : > { %v21173_v31 = vld [vmem:[%s20021_s6 + $0x8] sm:$0xff]  ;;  %v16592_v35 = vcombine.high %v1293_v25, %v1301_v28  ;;  %v16591_v57 = vcombine.low %v1293_v25, %v1301_v28 }
 0x464   : > { %v1509_v42 = vrot.slane %v21173_v31, %v1476_v26  ;;  %v1505_v43 = vrot.slane %v21173_v31, %v1472_v27  ;;  %v1324_v26 = vld [vmem:[%s20014_s29 + $0x1bb0] sm:$0xff]  ;;  %v1325_v27 = vld [vmem:[%s20014_s29 + $0x1bb8] sm:$0xff] }
 0x465   : > { %7761 = vmatpush1.bf16.msra.mxu0 %v16477_v38  ;;  %7925 = vmatpush1.bf16.msra.mxu1 %v16479_v39  ;;  %v1316_v38 = vld [vmem:[%s20014_s29 + $0x1b70] sm:$0xff]  ;;  %v1501_v39 = vrot.slane %v21173_v31, %v1468_v19  ;;  %v1513_v19 = vrot.slane %v21173_v31, %v1480_v29  ;;  %v1357_v15 = vld [vmem:[%s20014_s29 + $0x1cb8] sm:$0xff] }
 0x466   : > { %7762 = vmatprep.subr.bf16.mxu0 %v16494_v40  ;;  %7926 = vmatprep.subr.bf16.mxu1 %v16496_v41  ;;  %v1309_v40 = vld [vmem:[%s20014_s29 + $0x1b38] sm:$0xff] }
 0x467   : > { %v1317_v41 = vld [vmem:[%s20014_s29 + $0x1b78] sm:$0xff] }
 0x468   : > { %v16607_v1 = vcombine.low %v1309_v40, %v1317_v41  ;;  %v1381_v25 = vld [vmem:[%s20014_s29 + $0x1d78] sm:$0xff] }
 0x469   : > { %7763 = vmatpush1.bf16.msra.mxu0 %v16493_v21  ;;  %7927 = vmatpush1.bf16.msra.mxu1 %v16495_v45  ;;  %v16606_v21 = vcombine.high %v1308_v37, %v1316_v38 }
 0x46a   : > { %7773 = vmatprep.subr.bf16.mxu0 %v16510_v48  ;;  %7937 = vmatprep.subr.bf16.mxu1 %v16512_v49  ;;  %v16608_v48 = vcombine.high %v1309_v40, %v1317_v41  ;;  %v1332_v49 = vld [vmem:[%s20014_s29 + $0x1bf0] sm:$0xff]  ;;  %v16671_v41 = vcombine.low %v1373_v24, %v1381_v25 }
 0x46c   : > { %7765 = vmatmul.mubr.bf16.vlgmr.msra.gmra.mrb[12].mxu0 %v20283_v36  ;;  %7929 = vmatmul.mubr.bf16.vlgmr.msra.gmra.mrb[12].mxu1 %v20283_v36  ;;  %v16541_v36 = vcombine.low %v1244_v62, %v1252_v63 }
 0x46d   : > { %7774 = vmatpush1.bf16.msra.mxu0 %v16509_v59  ;;  %7938 = vmatpush1.bf16.msra.mxu1 %v16511_v32 }
 0x46e   : > { %7775 = vmatprep.subr.bf16.mxu0 %v16526_v60  ;;  %7939 = vmatprep.subr.bf16.mxu1 %v16528_v61  ;;  %v16605_v61 = vcombine.low %v1308_v37, %v1316_v38  ;;  %v1396_v37 = vld [vmem:[%s20014_s29 + $0x1df0] sm:$0xff]  ;;  %v1389_v38 = vld [vmem:[%s20014_s29 + $0x1db8] sm:$0xff] }
 0x46f   : > { %7805 = vmatprep.mubr.bf16.mxu0 %v20292_v46  ;;  %7969 = vmatprep.mubr.bf16.mxu1 %v20292_v46  ;;  %v16559_v46 = vcombine.low %v1261_v8, %v1269_v9  ;;  %v1349_v8 = vld [vmem:[%s20014_s29 + $0x1c78] sm:$0xff]  ;;  %v16621_v9 = vcombine.low %v1324_v26, %v1332_v49 }
 0x471   : > { %7776 = vmatpush1.bf16.msra.mxu0 %v16525_v2  ;;  %7940 = vmatpush1.bf16.msra.mxu1 %v16527_v3  ;;  %v16622_v2 = vcombine.high %v1324_v26, %v1332_v49 }
 0x472   : > { %7777 = vmatprep.subr.bf16.mxu0 %v16542_v4  ;;  %7941 = vmatprep.subr.bf16.mxu1 %v16544_v5  ;;  %v16624_v4 = vcombine.high %v1325_v27, %v1333_v58  ;;  %v1340_v5 = vld [vmem:[%s20014_s29 + $0x1c30] sm:$0xff] }
 0x473   : > { %v16637_v17 = vcombine.low %v1340_v5, %v1348_v6 }
 0x475   : > { %7778 = vmatpush1.bf16.msra.mxu0 %v16541_v36  ;;  %7942 = vmatpush1.bf16.msra.mxu1 %v16543_v12  ;;  %v16623_v36 = vcombine.low %v1325_v27, %v1333_v58  ;;  %v16638_v12 = vcombine.high %v1340_v5, %v1348_v6  ;;  %v1429_v27 = vld [vmem:[%s20014_s29 + $0x1ef8] sm:$0xff]  ;;  %v1460_v5 = vld [vmem:[%s20014_s29 + $0x1ff0] sm:$0xff] }
 0x476   : > { %7779 = vmatprep.subr.bf16.mxu0 %v16558_v10  ;;  %7943 = vmatprep.subr.bf16.mxu1 %v16560_v13  ;;  %v16640_v10 = vcombine.high %v1341_v7, %v1349_v8  ;;  %v1356_v13 = vld [vmem:[%s20014_s29 + $0x1cb0] sm:$0xff]  ;;  %v1453_v6 = vld [vmem:[%s20014_s29 + $0x1fb8] sm:$0xff] }
 0x477   : > { %v16653_v28 = vcombine.low %v1356_v13, %v1364_v14 }
 0x479   : > { %7780 = vmatpush1.bf16.msra.mxu0 %v16557_v18  ;;  %7944 = vmatpush1.bf16.msra.mxu1 %v16559_v46  ;;  %v16639_v18 = vcombine.low %v1341_v7, %v1349_v8  ;;  %v16654_v46 = vcombine.high %v1356_v13, %v1364_v14  ;;  %v1461_v7 = vld [vmem:[%s20014_s29 + $0x1ff8] sm:$0xff]  ;;  %v1517_v14 = vrot.slane %v21173_v31, %v1484_v47 }
 0x47a   : > { %7781 = vmatprep.subr.bf16.mxu0 %v16574_v20  ;;  %7945 = vmatprep.subr.bf16.mxu1 %v16576_v22  ;;  %v16656_v20 = vcombine.high %v1357_v15, %v1365_v16  ;;  %v1372_v22 = vld [vmem:[%s20014_s29 + $0x1d30] sm:$0xff]  ;;  %v16751_v13 = vcombine.low %v1453_v6, %v1461_v7 }
 0x47b   : > { %v16669_v40 = vcombine.low %v1372_v22, %v1380_v23 }
 0x47d   : > { %7782 = vmatpush1.bf16.msra.mxu0 %v16573_v30  ;;  %7946 = vmatpush1.bf16.msra.mxu1 %v16575_v33  ;;  %v16655_v30 = vcombine.low %v1357_v15, %v1365_v16  ;;  %v16670_v33 = vcombine.high %v1372_v22, %v1380_v23  ;;  %v1525_v15 = vrot.slane %v21173_v31, %v1492_v51 }
 0x47e   : > { %7783 = vmatprep.subr.bf16.mxu0 %v16590_v34  ;;  %7947 = vmatprep.subr.bf16.mxu1 %v16592_v35  ;;  %v16672_v34 = vcombine.high %v1373_v24, %v1381_v25  ;;  %v1388_v35 = vld [vmem:[%s20014_s29 + $0x1db0] sm:$0xff]  ;;  %v1521_v16 = vrot.slane %v21173_v31, %v1488_v52 }
 0x47f   : > { %v7479_v45 = vpop.f32.mrb[8].mxu0  ;;  %v7643_v53 = vpop.f32.mrb[8].mxu1 }
 0x480   : > { %v17795_v50 = vadd.f32 %v7479_v45, %v1501_v39  ;;  %v7481_v56 = vpop.f32.mrb[9].mxu0  ;;  %v17797_v59 = vadd.f32 %v7643_v53, %v1509_v42  ;;  %v7645_v60 = vpop.f32.mrb[9].mxu1  ;;  %v1397_v39 = vld [vmem:[%s20014_s29 + $0x1df8] sm:$0xff]  ;;  %v16686_v42 = vcombine.high %v1388_v35, %v1396_v37  ;;  %v16685_v45 = vcombine.low %v1388_v35, %v1396_v37  ;;  %v1428_v53 = vld [vmem:[%s20014_s29 + $0x1ef0] sm:$0xff] }
 0x481   : > { %v17796_v32 = vadd.f32 %v7481_v56, %v1505_v43  ;;  %v7483_v29 = vpop.f32.mrb[10].mxu0  ;;  %7784 = vmatpush1.bf16.msra.mxu0 %v16589_v44  ;;  %v17798_v62 = vadd.f32 %v7645_v60, %v1513_v19  ;;  %v7647_v63 = vpop.f32.mrb[10].mxu1  ;;  %7948 = vmatpush1.bf16.msra.mxu1 %v16591_v57  ;;  %v16688_v43 = vcombine.high %v1389_v38, %v1397_v39  ;;  %v1404_v44 = vld [vmem:[%s20014_s29 + $0x1e30] sm:$0xff]  ;;  %v1405_v57 = vld [vmem:[%s20014_s29 + $0x1e38] sm:$0xff] }
 0x482   : > { %7989 = vst [vmem:[%s20613_s1 + $0x40] sm:$0xff] %v17795_v50  ;;  %v7484_v0 = vpop.f32.mrb[11].mxu0  ;;  %7785 = vmatprep.subr.bf16.mxu0 %v16606_v21  ;;  %7991 = vst [vmem:[%s20613_s1 + $0x50] sm:$0xff] %v17797_v59  ;;  %v7648_v3 = vpop.f32.mrb[11].mxu1  ;;  %7949 = vmatprep.subr.bf16.mxu1 %v16608_v48  ;;  %v1412_v19 = vld [vmem:[%s20014_s29 + $0x1e70] sm:$0xff]  ;;  %v1413_v21 = vld [vmem:[%s20014_s29 + $0x1e78] sm:$0xff]  ;;  %v16687_v48 = vcombine.low %v1389_v38, %v1397_v39 }
 0x483   : > { %7990 = vst [vmem:[%s20613_s1 + $0x48] sm:$0xff] %v17796_v32  ;;  %7992 = vst [vmem:[%s20613_s1 + $0x58] sm:$0xff] %v17798_v62  ;;  %v16702_v26 = vcombine.high %v1404_v44, %v1412_v19  ;;  %v16704_v49 = vcombine.high %v1405_v57, %v1413_v21  ;;  %v1420_v50 = vld [vmem:[%s20014_s29 + $0x1eb0] sm:$0xff]  ;;  %v1421_v56 = vld [vmem:[%s20014_s29 + $0x1eb8] sm:$0xff]  ;;  %v16701_v58 = vcombine.low %v1404_v44, %v1412_v19 }
 0x484   : > { %v16703_v59 = vcombine.low %v1405_v57, %v1413_v21  ;;  %v16718_v32 = vcombine.high %v1420_v50, %v1428_v53  ;;  %v16720_v60 = vcombine.high %v1421_v56, %v1429_v27  ;;  %v1436_v29 = vld [vmem:[%s20014_s29 + $0x1f30] sm:$0xff]  ;;  %v1437_v62 = vld [vmem:[%s20014_s29 + $0x1f38] sm:$0xff]  ;;  %v16717_v0 = vcombine.low %v1420_v50, %v1428_v53 }
 0x485   : > { %7786 = vmatpush1.bf16.msra.mxu0 %v16605_v61  ;;  %7950 = vmatpush1.bf16.msra.mxu1 %v16607_v1  ;;  %v1444_v61 = vld [vmem:[%s20014_s29 + $0x1f70] sm:$0xff]  ;;  %v1445_v63 = vld [vmem:[%s20014_s29 + $0x1f78] sm:$0xff]  ;;  %v16719_v1 = vcombine.low %v1421_v56, %v1429_v27 }
 0x486   : > { %7787 = vmatprep.subr.bf16.mxu0 %v16622_v2  ;;  %7951 = vmatprep.subr.bf16.mxu1 %v16624_v4  ;;  %v16734_v2 = vcombine.high %v1436_v29, %v1444_v61  ;;  %v16736_v3 = vcombine.high %v1437_v62, %v1445_v63  ;;  %v1452_v4 = vld [vmem:[%s20014_s29 + $0x1fb0] sm:$0xff]  ;;  %v16733_v8 = vcombine.low %v1436_v29, %v1444_v61 }
 0x489   : > { %7788 = vmatpush1.bf16.msra.mxu0 %v16621_v9  ;;  %7952 = vmatpush1.bf16.msra.mxu1 %v16623_v36  ;;  %v16735_v9 = vcombine.low %v1437_v62, %v1445_v63  ;;  %v16750_v36 = vcombine.high %v1452_v4, %v1460_v5 }
 0x48a   : > { %7789 = vmatprep.subr.bf16.mxu0 %v16638_v12  ;;  %7953 = vmatprep.subr.bf16.mxu1 %v16640_v10  ;;  %v16752_v12 = vcombine.high %v1453_v6, %v1461_v7  ;;  %v16749_v10 = vcombine.low %v1452_v4, %v1460_v5 }
 0x48d   : > { %7790 = vmatpush1.bf16.msra.mxu0 %v16637_v17  ;;  %7954 = vmatpush1.bf16.msra.mxu1 %v16639_v18  ;;  %v1529_v17 = vrot.slane %v21173_v31, %v1496_v55 }
 0x48e   : > { %7791 = vmatprep.subr.bf16.mxu0 %v16654_v46  ;;  %7955 = vmatprep.subr.bf16.mxu1 %v16656_v20 }
 0x491   : > { %7792 = vmatpush1.bf16.msra.mxu0 %v16653_v28  ;;  %7956 = vmatpush1.bf16.msra.mxu1 %v16655_v30 }
 0x492   : > { %7793 = vmatprep.subr.bf16.mxu0 %v16670_v33  ;;  %7957 = vmatprep.subr.bf16.mxu1 %v16672_v34 }
 0x495   : > { %7794 = vmatpush1.bf16.msra.mxu0 %v16669_v40  ;;  %7958 = vmatpush1.bf16.msra.mxu1 %v16671_v41 }
 0x496   : > { %7795 = vmatprep.subr.bf16.mxu0 %v16686_v42  ;;  %7959 = vmatprep.subr.bf16.mxu1 %v16688_v43 }
 0x499   : > { %7796 = vmatpush1.bf16.msra.mxu0 %v16685_v45  ;;  %7960 = vmatpush1.bf16.msra.mxu1 %v16687_v48 }
 0x49a   : > { %7797 = vmatprep.subr.bf16.mxu0 %v16702_v26  ;;  %7961 = vmatprep.subr.bf16.mxu1 %v16704_v49 }
 0x49d   : > { %7798 = vmatpush1.bf16.msra.mxu0 %v16701_v58  ;;  %7962 = vmatpush1.bf16.msra.mxu1 %v16703_v59 }
 0x49e   : > { %7799 = vmatprep.subr.bf16.mxu0 %v16718_v32  ;;  %7963 = vmatprep.subr.bf16.mxu1 %v16720_v60 }
 0x4a1   : > { %7800 = vmatpush1.bf16.msra.mxu0 %v16717_v0  ;;  %7964 = vmatpush1.bf16.msra.mxu1 %v16719_v1 }
 0x4a2   : > { %7801 = vmatprep.subr.bf16.mxu0 %v16734_v2  ;;  %7965 = vmatprep.subr.bf16.mxu1 %v16736_v3 }
 0x4a5   : > { %7802 = vmatpush1.bf16.msra.mxu0 %v16733_v8  ;;  %7966 = vmatpush1.bf16.msra.mxu1 %v16735_v9 }
 0x4a6   : > { %7803 = vmatprep.subr.bf16.mxu0 %v16750_v36  ;;  %7967 = vmatprep.subr.bf16.mxu1 %v16752_v12 }
 0x4a9   : > { %7804 = vmatpush1.bf16.msra.mxu0 %v16749_v10  ;;  %7968 = vmatpush1.bf16.msra.mxu1 %v16751_v13 }
 0x4ac   : > { %7806 = vmatmul.mubr.bf16.vlgmr.msra.gmra.mrb[12].mxu0 %v20361_v54  ;;  %7970 = vmatmul.mubr.bf16.vlgmr.msra.gmra.mrb[12].mxu1 %v20361_v54 }
 0x57f   : > { %v7807_v54 = vpop.f32.mrb[12].mxu0  ;;  %v7971_v46 = vpop.f32.mrb[12].mxu1 }
 0x580   : > { %v17799_v18 = vadd.f32 %v7807_v54, %v1517_v14  ;;  %v7809_v20 = vpop.f32.mrb[13].mxu0  ;;  %v17801_v47 = vadd.f32 %v7971_v46, %v1525_v15  ;;  %v7973_v23 = vpop.f32.mrb[13].mxu1 }
 0x581   : > { %v17800_v22 = vadd.f32 %v7809_v20, %v1521_v16  ;;  %v7811_v24 = vpop.f32.mrb[14].mxu0  ;;  %v17802_v51 = vadd.f32 %v7973_v23, %v1529_v17  ;;  %v7975_v25 = vpop.f32.mrb[14].mxu1 }
 0x582   : > { %7993 = vst [vmem:[%s20613_s1 + $0x60] sm:$0xff] %v17799_v18  ;;  %v7812_v28 = vpop.f32.mrb[15].mxu0  ;;  %7995 = vst [vmem:[%s20613_s1 + $0x70] sm:$0xff] %v17801_v47  ;;  %v7976_v52 = vpop.f32.mrb[15].mxu1 }
 0x583   : > { %7994 = vst [vmem:[%s20613_s1 + $0x68] sm:$0xff] %v17800_v22  ;;  %7996 = vst [vmem:[%s20613_s1 + $0x78] sm:$0xff] %v17802_v51 }
 0x584 PF: > { %p16755_p1 = scmp.lt.s32.totalorder %s19786_s25, 2 }
 0x585   : > { %v17984_v11 = vld [vmem:[%s20028_s17 + $0x1004] ss:$16 sps:$4 sm:$0xff] (!%p16755_p1)   ;;  %v17988_v31 = vld [vmem:[%s20028_s17 + $0x1000] ss:$16 sps:$4 sm:$0xff] (!%p16755_p1)  }
 0x586   : > { %8000 = sbr.rel (%p16755_p1) target bundleno = 2658 (0xa62), region = 64  ;;  %v17986_v55 = vld [vmem:[%s20028_s17 + $0x1204] ss:$16 sps:$4 sm:$0xff] (!%p16755_p1)   ;;  %11650 = vmatprep.subr.bf16.mxu0 (!%p16755_p1), %v17984_v11  ;;  %v17989_v30 = vld [vmem:[%s20028_s17 + $0x1200] ss:$16 sps:$4 sm:$0xff] (!%p16755_p1)  }
 0x587   : > { %11691 = vmatprep.subr.bf16.mxu1 (!%p16755_p1), %v17986_v55  ;;  %v17990_v33 = vld [vmem:[%s20028_s17 + $0x1024] ss:$16 sps:$4 sm:$0xff] (!%p16755_p1)   ;;  %11651 = vmatpush1.bf16.msra.mxu0 (!%p16755_p1), %v17988_v31  ;;  %v17994_v35 = vld [vmem:[%s20028_s17 + $0x1020] ss:$16 sps:$4 sm:$0xff] (!%p16755_p1)  }
 0x588   : > { %11692 = vmatpush1.bf16.msra.mxu1 (!%p16755_p1), %v17989_v30  ;;  %v17992_v34 = vld [vmem:[%s20028_s17 + $0x1224] ss:$16 sps:$4 sm:$0xff] (!%p16755_p1)   ;;  %11652 = vmatprep.subr.bf16.mxu0 (!%p16755_p1), %v17990_v33  ;;  %v17995_v37 = vld [vmem:[%s20028_s17 + $0x1220] ss:$16 sps:$4 sm:$0xff] (!%p16755_p1)  }
 0x589   : > { %11693 = vmatprep.subr.bf16.mxu1 (!%p16755_p1), %v17992_v34  ;;  %v17996_v38 = vld [vmem:[%s20028_s17 + $0x1044] ss:$16 sps:$4 sm:$0xff] (!%p16755_p1)   ;;  %v18000_v40 = vld [vmem:[%s20028_s17 + $0x1040] ss:$16 sps:$4 sm:$0xff] (!%p16755_p1)  }
 0x58a   : > { %v17998_v39 = vld [vmem:[%s20028_s17 + $0x1244] ss:$16 sps:$4 sm:$0xff] (!%p16755_p1)   ;;  %v18001_v41 = vld [vmem:[%s20028_s17 + $0x1240] ss:$16 sps:$4 sm:$0xff] (!%p16755_p1)   ;;  %v8547_v10 = vld [vmem:[#allocation2 + $0x88] sm:$0xff] (!%p16755_p1) }
 0x58b   : > { %11653 = vmatpush1.bf16.msra.mxu0 (!%p16755_p1), %v17994_v35  ;;  %v18002_v42 = vld [vmem:[%s20028_s17 + $0x1064] ss:$16 sps:$4 sm:$0xff] (!%p16755_p1)   ;;  %v18006_v44 = vld [vmem:[%s20028_s17 + $0x1060] ss:$16 sps:$4 sm:$0xff] (!%p16755_p1)   ;;  %v21298_v15 = vpack.c.bf16 (!%p16755_p1), %v8547_v10, %v8547_v10  ;;  %v8549_v16 = vld [vmem:[#allocation2 + $0x98] sm:$0xff] (!%p16755_p1) }
 0x58c   : > { %11694 = vmatpush1.bf16.msra.mxu1 (!%p16755_p1), %v17995_v37  ;;  %11654 = vmatprep.subr.bf16.mxu0 (!%p16755_p1), %v17996_v38  ;;  %v18004_v43 = vld [vmem:[%s20028_s17 + $0x1264] ss:$16 sps:$4 sm:$0xff] (!%p16755_p1)   ;;  %v18007_v19 = vld [vmem:[%s20028_s17 + $0x1260] ss:$16 sps:$4 sm:$0xff] (!%p16755_p1)   ;;  %v21301_v54 = vpack.c.bf16 (!%p16755_p1), %v8549_v16, %v8549_v16 }
 0x58d   : > { %11695 = vmatprep.subr.bf16.mxu1 %v17998_v39  ;;  %v18008_v57 = vld [vmem:[%s20028_s17 + $0x1084] ss:$16 sps:$4 sm:$0xff]   ;;  %v18012_v45 = vld [vmem:[%s20028_s17 + $0x1080] ss:$16 sps:$4 sm:$0xff]   ;;  %11682 = vmatprep.mubr.bf16.mxu0 %v21298_v15 }
 0x58e   : > { %v18010_v21 = vld [vmem:[%s20028_s17 + $0x1284] ss:$16 sps:$4 sm:$0xff]   ;;  %v18013_v48 = vld [vmem:[%s20028_s17 + $0x1280] ss:$16 sps:$4 sm:$0xff]   ;;  %11723 = vmatprep.mubr.bf16.mxu1 %v21301_v54 }
 0x58f   : > { %11655 = vmatpush1.bf16.msra.mxu0 %v18000_v40  ;;  %v18014_v26 = vld [vmem:[%s20028_s17 + $0x10a4] ss:$16 sps:$4 sm:$0xff]   ;;  %v18018_v50 = vld [vmem:[%s20028_s17 + $0x10a0] ss:$16 sps:$4 sm:$0xff]  }
 0x590   : > { %11696 = vmatpush1.bf16.msra.mxu1 %v18001_v41  ;;  %11656 = vmatprep.subr.bf16.mxu0 %v18002_v42  ;;  %v18016_v49 = vld [vmem:[%s20028_s17 + $0x12a4] ss:$16 sps:$4 sm:$0xff]   ;;  %v18019_v53 = vld [vmem:[%s20028_s17 + $0x12a0] ss:$16 sps:$4 sm:$0xff]  }
 0x591   : > { %11697 = vmatprep.subr.bf16.mxu1 %v18004_v43  ;;  %v18020_v56 = vld [vmem:[%s20028_s17 + $0x10c4] ss:$16 sps:$4 sm:$0xff]   ;;  %v18024_v58 = vld [vmem:[%s20028_s17 + $0x10c0] ss:$16 sps:$4 sm:$0xff]  }
 0x592   : > { %v18022_v27 = vld [vmem:[%s20028_s17 + $0x12c4] ss:$16 sps:$4 sm:$0xff]   ;;  %v18025_v59 = vld [vmem:[%s20028_s17 + $0x12c0] ss:$16 sps:$4 sm:$0xff]  }
 0x593   : > { %11657 = vmatpush1.bf16.msra.mxu0 %v18006_v44  ;;  %v18026_v32 = vld [vmem:[%s20028_s17 + $0x10e4] ss:$16 sps:$4 sm:$0xff]   ;;  %v18030_v29 = vld [vmem:[%s20028_s17 + $0x10e0] ss:$16 sps:$4 sm:$0xff]  }
 0x594   : > { %11698 = vmatpush1.bf16.msra.mxu1 %v18007_v19  ;;  %11658 = vmatprep.subr.bf16.mxu0 %v18008_v57  ;;  %v18028_v60 = vld [vmem:[%s20028_s17 + $0x12e4] ss:$16 sps:$4 sm:$0xff]   ;;  %v18031_v61 = vld [vmem:[%s20028_s17 + $0x12e0] ss:$16 sps:$4 sm:$0xff]  }
 0x595   : > { %11699 = vmatprep.subr.bf16.mxu1 %v18010_v21  ;;  %v18032_v62 = vld [vmem:[%s20028_s17 + $0x1104] ss:$16 sps:$4 sm:$0xff]   ;;  %v18036_v0 = vld [vmem:[%s20028_s17 + $0x1100] ss:$16 sps:$4 sm:$0xff]  }
 0x596   : > { %v18034_v63 = vld [vmem:[%s20028_s17 + $0x1304] ss:$16 sps:$4 sm:$0xff]   ;;  %v18037_v1 = vld [vmem:[%s20028_s17 + $0x1300] ss:$16 sps:$4 sm:$0xff]  }
 0x597   : > { %11659 = vmatpush1.bf16.msra.mxu0 %v18012_v45  ;;  %v18038_v2 = vld [vmem:[%s20028_s17 + $0x1124] ss:$16 sps:$4 sm:$0xff]   ;;  %v18042_v4 = vld [vmem:[%s20028_s17 + $0x1120] ss:$16 sps:$4 sm:$0xff]  }
 0x598   : > { %11700 = vmatpush1.bf16.msra.mxu1 %v18013_v48  ;;  %11660 = vmatprep.subr.bf16.mxu0 %v18014_v26  ;;  %v18040_v3 = vld [vmem:[%s20028_s17 + $0x1324] ss:$16 sps:$4 sm:$0xff]   ;;  %v18043_v5 = vld [vmem:[%s20028_s17 + $0x1320] ss:$16 sps:$4 sm:$0xff]  }
 0x599   : > { %11701 = vmatprep.subr.bf16.mxu1 %v18016_v49  ;;  %v18044_v6 = vld [vmem:[%s20028_s17 + $0x1144] ss:$16 sps:$4 sm:$0xff]   ;;  %v18048_v8 = vld [vmem:[%s20028_s17 + $0x1140] ss:$16 sps:$4 sm:$0xff]  }
 0x59a   : > { %v18046_v7 = vld [vmem:[%s20028_s17 + $0x1344] ss:$16 sps:$4 sm:$0xff]   ;;  %v18049_v9 = vld [vmem:[%s20028_s17 + $0x1340] ss:$16 sps:$4 sm:$0xff]  }
 0x59b   : > { %11661 = vmatpush1.bf16.msra.mxu0 %v18018_v50  ;;  %v18050_v36 = vld [vmem:[%s20028_s17 + $0x1164] ss:$16 sps:$4 sm:$0xff]   ;;  %v18054_v13 = vld [vmem:[%s20028_s17 + $0x1160] ss:$16 sps:$4 sm:$0xff]  }
 0x59c   : > { %11702 = vmatpush1.bf16.msra.mxu1 %v18019_v53  ;;  %11662 = vmatprep.subr.bf16.mxu0 %v18020_v56  ;;  %v18052_v12 = vld [vmem:[%s20028_s17 + $0x1364] ss:$16 sps:$4 sm:$0xff]   ;;  %v18055_v14 = vld [vmem:[%s20028_s17 + $0x1360] ss:$16 sps:$4 sm:$0xff]  }
 0x59d   : > { %11703 = vmatprep.subr.bf16.mxu1 %v18022_v27  ;;  %v18056_v17 = vld [vmem:[%s20028_s17 + $0x1184] ss:$16 sps:$4 sm:$0xff]   ;;  %v18060_v46 = vld [vmem:[%s20028_s17 + $0x1180] ss:$16 sps:$4 sm:$0xff]  }
 0x59e   : > { %v18058_v18 = vld [vmem:[%s20028_s17 + $0x1384] ss:$16 sps:$4 sm:$0xff]   ;;  %v18061_v20 = vld [vmem:[%s20028_s17 + $0x1380] ss:$16 sps:$4 sm:$0xff]  }
 0x59f   : > { %11663 = vmatpush1.bf16.msra.mxu0 %v18024_v58  ;;  %v18062_v47 = vld [vmem:[%s20028_s17 + $0x11a4] ss:$16 sps:$4 sm:$0xff]   ;;  %v18066_v23 = vld [vmem:[%s20028_s17 + $0x11a0] ss:$16 sps:$4 sm:$0xff]  }
 0x5a0   : > { %11704 = vmatpush1.bf16.msra.mxu1 %v18025_v59  ;;  %11664 = vmatprep.subr.bf16.mxu0 %v18026_v32  ;;  %v18064_v22 = vld [vmem:[%s20028_s17 + $0x13a4] ss:$16 sps:$4 sm:$0xff]   ;;  %v18067_v24 = vld [vmem:[%s20028_s17 + $0x13a0] ss:$16 sps:$4 sm:$0xff]  }
 0x5a1   : > { %11705 = vmatprep.subr.bf16.mxu1 %v18028_v60  ;;  %v18068_v51 = vld [vmem:[%s20028_s17 + $0x11c4] ss:$16 sps:$4 sm:$0xff]   ;;  %v18072_v28 = vld [vmem:[%s20028_s17 + $0x11c0] ss:$16 sps:$4 sm:$0xff]  }
 0x5a2   : > { %v18070_v25 = vld [vmem:[%s20028_s17 + $0x13c4] ss:$16 sps:$4 sm:$0xff]   ;;  %v18073_v52 = vld [vmem:[%s20028_s17 + $0x13c0] ss:$16 sps:$4 sm:$0xff]  }
 0x5a3   : > { %11665 = vmatpush1.bf16.msra.mxu0 %v18030_v29  ;;  %v18074_v11 = vld [vmem:[%s20028_s17 + $0x11e4] ss:$16 sps:$4 sm:$0xff]   ;;  %v18078_v31 = vld [vmem:[%s20028_s17 + $0x11e0] ss:$16 sps:$4 sm:$0xff]  }
 0x5a4   : > { %11706 = vmatpush1.bf16.msra.mxu1 %v18031_v61  ;;  %11666 = vmatprep.subr.bf16.mxu0 %v18032_v62  ;;  %v18076_v55 = vld [vmem:[%s20028_s17 + $0x13e4] ss:$16 sps:$4 sm:$0xff]   ;;  %v18079_v30 = vld [vmem:[%s20028_s17 + $0x13e0] ss:$16 sps:$4 sm:$0xff]  }
 0x5a5   : > { %11707 = vmatprep.subr.bf16.mxu1 %v18034_v63  ;;  %v8546_v33 = vld [vmem:[#allocation2 + $0x80] sm:$0xff]  ;;  %v8548_v34 = vld [vmem:[#allocation2 + $0x90] sm:$0xff] }
 0x5a6   : > { %v18082_v35 = vld [vmem:[%s20028_s17 + $0x1404] ss:$16 sps:$4 sm:$0xff]   ;;  %v21322_v38 = vpack.c.bf16 %v8546_v33, %v8546_v33  ;;  %v21324_v39 = vpack.c.bf16 %v8548_v34, %v8548_v34  ;;  %v18080_v40 = vld [vmem:[%s20028_s17 + $0x1400] ss:$16 sps:$4 sm:$0xff]  }
 0x5a7   : > { %11667 = vmatpush1.bf16.msra.mxu0 %v18036_v0  ;;  %v18085_v37 = vld [vmem:[%s20028_s17 + $0x1604] ss:$16 sps:$4 sm:$0xff]   ;;  %v18083_v41 = vld [vmem:[%s20028_s17 + $0x1600] ss:$16 sps:$4 sm:$0xff]   ;;  %v8551_v0 = vld [vmem:[#allocation2 + $0xa8] sm:$0xff] }
 0x5a8   : > { %11708 = vmatpush1.bf16.msra.mxu1 %v18037_v1  ;;  %11668 = vmatprep.subr.bf16.mxu0 %v18038_v2  ;;  %v18088_v42 = vld [vmem:[%s20028_s17 + $0x1424] ss:$16 sps:$4 sm:$0xff]   ;;  %v18086_v44 = vld [vmem:[%s20028_s17 + $0x1420] ss:$16 sps:$4 sm:$0xff]  }
 0x5a9   : > { %11709 = vmatprep.subr.bf16.mxu1 %v18040_v3  ;;  %v18091_v43 = vld [vmem:[%s20028_s17 + $0x1624] ss:$16 sps:$4 sm:$0xff]   ;;  %v18089_v19 = vld [vmem:[%s20028_s17 + $0x1620] ss:$16 sps:$4 sm:$0xff]   ;;  %v21354_v3 = vpack.c.bf16 %v8551_v0, %v8551_v0 }
 0x5aa   : > { %v18094_v57 = vld [vmem:[%s20028_s17 + $0x1444] ss:$16 sps:$4 sm:$0xff]   ;;  %v18092_v45 = vld [vmem:[%s20028_s17 + $0x1440] ss:$16 sps:$4 sm:$0xff]  }
 0x5ab   : > { %11669 = vmatpush1.bf16.msra.mxu0 %v18042_v4  ;;  %v18097_v21 = vld [vmem:[%s20028_s17 + $0x1644] ss:$16 sps:$4 sm:$0xff]   ;;  %v18095_v48 = vld [vmem:[%s20028_s17 + $0x1640] ss:$16 sps:$4 sm:$0xff]   ;;  %v8553_v4 = vld [vmem:[#allocation2 + $0xb8] sm:$0xff] }
 0x5ac   : > { %11710 = vmatpush1.bf16.msra.mxu1 %v18043_v5  ;;  %11670 = vmatprep.subr.bf16.mxu0 %v18044_v6  ;;  %v18100_v26 = vld [vmem:[%s20028_s17 + $0x1464] ss:$16 sps:$4 sm:$0xff]   ;;  %v18098_v50 = vld [vmem:[%s20028_s17 + $0x1460] ss:$16 sps:$4 sm:$0xff]   ;;  %v21357_v6 = vpack.c.bf16 %v8553_v4, %v8553_v4 }
 0x5ad   : > { %11711 = vmatprep.subr.bf16.mxu1 %v18046_v7  ;;  %v18103_v49 = vld [vmem:[%s20028_s17 + $0x1664] ss:$16 sps:$4 sm:$0xff]   ;;  %v18101_v53 = vld [vmem:[%s20028_s17 + $0x1660] ss:$16 sps:$4 sm:$0xff]  }
 0x5ae   : > { %v18106_v56 = vld [vmem:[%s20028_s17 + $0x1484] ss:$16 sps:$4 sm:$0xff]   ;;  %v18104_v58 = vld [vmem:[%s20028_s17 + $0x1480] ss:$16 sps:$4 sm:$0xff]  }
 0x5af   : > { %11671 = vmatpush1.bf16.msra.mxu0 %v18048_v8  ;;  %v18109_v27 = vld [vmem:[%s20028_s17 + $0x1684] ss:$16 sps:$4 sm:$0xff]   ;;  %v18107_v59 = vld [vmem:[%s20028_s17 + $0x1680] ss:$16 sps:$4 sm:$0xff]  }
 0x5b0   : > { %11712 = vmatpush1.bf16.msra.mxu1 %v18049_v9  ;;  %11672 = vmatprep.subr.bf16.mxu0 %v18050_v36  ;;  %v18112_v32 = vld [vmem:[%s20028_s17 + $0x14a4] ss:$16 sps:$4 sm:$0xff]   ;;  %v18110_v29 = vld [vmem:[%s20028_s17 + $0x14a0] ss:$16 sps:$4 sm:$0xff]  }
 0x5b1   : > { %11713 = vmatprep.subr.bf16.mxu1 %v18052_v12  ;;  %v18115_v60 = vld [vmem:[%s20028_s17 + $0x16a4] ss:$16 sps:$4 sm:$0xff]   ;;  %v18113_v61 = vld [vmem:[%s20028_s17 + $0x16a0] ss:$16 sps:$4 sm:$0xff]  }
 0x5b2   : > { %v18118_v62 = vld [vmem:[%s20028_s17 + $0x14c4] ss:$16 sps:$4 sm:$0xff]   ;;  %v18116_v1 = vld [vmem:[%s20028_s17 + $0x14c0] ss:$16 sps:$4 sm:$0xff]  }
 0x5b3   : > { %11673 = vmatpush1.bf16.msra.mxu0 %v18054_v13  ;;  %v18121_v63 = vld [vmem:[%s20028_s17 + $0x16c4] ss:$16 sps:$4 sm:$0xff]   ;;  %v18119_v2 = vld [vmem:[%s20028_s17 + $0x16c0] ss:$16 sps:$4 sm:$0xff]  }
 0x5b4   : > { %11714 = vmatpush1.bf16.msra.mxu1 %v18055_v14  ;;  %11674 = vmatprep.subr.bf16.mxu0 %v18056_v17  ;;  %v18124_v5 = vld [vmem:[%s20028_s17 + $0x14e4] ss:$16 sps:$4 sm:$0xff]   ;;  %v18122_v8 = vld [vmem:[%s20028_s17 + $0x14e0] ss:$16 sps:$4 sm:$0xff]  }
 0x5b5   : > { %11715 = vmatprep.subr.bf16.mxu1 %v18058_v18  ;;  %v18127_v7 = vld [vmem:[%s20028_s17 + $0x16e4] ss:$16 sps:$4 sm:$0xff]   ;;  %v18125_v9 = vld [vmem:[%s20028_s17 + $0x16e0] ss:$16 sps:$4 sm:$0xff]  }
 0x5b6   : > { %v18130_v36 = vld [vmem:[%s20028_s17 + $0x1504] ss:$16 sps:$4 sm:$0xff]   ;;  %v18128_v10 = vld [vmem:[%s20028_s17 + $0x1500] ss:$16 sps:$4 sm:$0xff]  }
 0x5b7   : > { %11675 = vmatpush1.bf16.msra.mxu0 %v18060_v46  ;;  %v18133_v12 = vld [vmem:[%s20028_s17 + $0x1704] ss:$16 sps:$4 sm:$0xff]   ;;  %v18131_v13 = vld [vmem:[%s20028_s17 + $0x1700] ss:$16 sps:$4 sm:$0xff]  }
 0x5b8   : > { %11716 = vmatpush1.bf16.msra.mxu1 %v18061_v20  ;;  %11676 = vmatprep.subr.bf16.mxu0 %v18062_v47  ;;  %v18136_v14 = vld [vmem:[%s20028_s17 + $0x1524] ss:$16 sps:$4 sm:$0xff]   ;;  %v18134_v17 = vld [vmem:[%s20028_s17 + $0x1520] ss:$16 sps:$4 sm:$0xff]  }
 0x5b9   : > { %11717 = vmatprep.subr.bf16.mxu1 %v18064_v22  ;;  %v18139_v16 = vld [vmem:[%s20028_s17 + $0x1724] ss:$16 sps:$4 sm:$0xff]   ;;  %v18137_v18 = vld [vmem:[%s20028_s17 + $0x1720] ss:$16 sps:$4 sm:$0xff]  }
 0x5ba   : > { %v18142_v46 = vld [vmem:[%s20028_s17 + $0x1544] ss:$16 sps:$4 sm:$0xff]   ;;  %v18140_v47 = vld [vmem:[%s20028_s17 + $0x1540] ss:$16 sps:$4 sm:$0xff]  }
 0x5bb   : > { %11677 = vmatpush1.bf16.msra.mxu0 %v18066_v23  ;;  %v18145_v20 = vld [vmem:[%s20028_s17 + $0x1744] ss:$16 sps:$4 sm:$0xff]   ;;  %v18143_v22 = vld [vmem:[%s20028_s17 + $0x1740] ss:$16 sps:$4 sm:$0xff]  }
 0x5bc   : > { %11718 = vmatpush1.bf16.msra.mxu1 %v18067_v24  ;;  %11678 = vmatprep.subr.bf16.mxu0 %v18068_v51  ;;  %v18148_v23 = vld [vmem:[%s20028_s17 + $0x1564] ss:$16 sps:$4 sm:$0xff]   ;;  %v18146_v51 = vld [vmem:[%s20028_s17 + $0x1560] ss:$16 sps:$4 sm:$0xff]  }
 0x5bd   : > { %11719 = vmatprep.subr.bf16.mxu1 %v18070_v25  ;;  %v18151_v24 = vld [vmem:[%s20028_s17 + $0x1764] ss:$16 sps:$4 sm:$0xff]   ;;  %v18149_v25 = vld [vmem:[%s20028_s17 + $0x1760] ss:$16 sps:$4 sm:$0xff]  }
 0x5be   : > { %v18158_v33 = vld [vmem:[%s20028_s17 + $0x15a0] ss:$16 sps:$4 sm:$0xff]   ;;  %v18199_v4 = vld [vmem:[%s20028_s17 + $0x1a64] ss:$16 sps:$4 sm:$0xff]  }
 0x5bf   : > { %11679 = vmatpush1.bf16.msra.mxu0 %v18072_v28  ;;  %v18154_v28 = vld [vmem:[%s20028_s17 + $0x1584] ss:$16 sps:$4 sm:$0xff]   ;;  %v18161_v34 = vld [vmem:[%s20028_s17 + $0x17a0] ss:$16 sps:$4 sm:$0xff]  }
 0x5c0   : > { %11720 = vmatpush1.bf16.msra.mxu1 %v18073_v52  ;;  %11680 = vmatprep.subr.bf16.mxu0 %v18074_v11  ;;  %v18157_v52 = vld [vmem:[%s20028_s17 + $0x1784] ss:$16 sps:$4 sm:$0xff]   ;;  %v18152_v11 = vld [vmem:[%s20028_s17 + $0x1580] ss:$16 sps:$4 sm:$0xff]  }
 0x5c1   : > { %11721 = vmatprep.subr.bf16.mxu1 %v18076_v55  ;;  %v18155_v55 = vld [vmem:[%s20028_s17 + $0x1780] ss:$16 sps:$4 sm:$0xff]  }
 0x5c2   : > { %v18188_v0 = vld [vmem:[%s20028_s17 + $0x1840] ss:$16 sps:$4 sm:$0xff]  }
 0x5c3   : > { %11681 = vmatpush1.bf16.msra.mxu0 %v18078_v31  ;;  %v18160_v31 = vld [vmem:[%s20028_s17 + $0x15a4] ss:$16 sps:$4 sm:$0xff]  }
 0x5c4   : > { %11722 = vmatpush1.bf16.msra.mxu1 %v18079_v30  ;;  %11732 = vmatprep.subr.bf16.mxu0 %v18082_v35  ;;  %v18163_v30 = vld [vmem:[%s20028_s17 + $0x17a4] ss:$16 sps:$4 sm:$0xff]  }
 0x5c5   : > { %11773 = vmatprep.subr.bf16.mxu1 %v18085_v37  ;;  %v18166_v35 = vld [vmem:[%s20028_s17 + $0x15c4] ss:$16 sps:$4 sm:$0xff]  }
 0x5c6   : > { %11683 = vmatmul.mubr.bf16.vlgmr.msra.gmra.mrb[0].mxu0 %v21322_v38  ;;  %v18169_v37 = vld [vmem:[%s20028_s17 + $0x17c4] ss:$16 sps:$4 sm:$0xff]  }
 0x5c7   : > { %11724 = vmatmul.mubr.bf16.vlgmr.msra.gmra.mrb[0].mxu1 %v21324_v39  ;;  %11733 = vmatpush1.bf16.msra.mxu0 %v18080_v40  ;;  %v18164_v40 = vld [vmem:[%s20028_s17 + $0x15c0] ss:$16 sps:$4 sm:$0xff]  }
 0x5c8   : > { %11774 = vmatpush1.bf16.msra.mxu1 %v18083_v41  ;;  %11734 = vmatprep.subr.bf16.mxu0 %v18088_v42  ;;  %v18167_v41 = vld [vmem:[%s20028_s17 + $0x17c0] ss:$16 sps:$4 sm:$0xff]   ;;  %v18172_v42 = vld [vmem:[%s20028_s17 + $0x15e4] ss:$16 sps:$4 sm:$0xff]  }
 0x5c9   : > { %11775 = vmatprep.subr.bf16.mxu1 %v18091_v43  ;;  %11764 = vmatprep.mubr.bf16.mxu0 %v21354_v3  ;;  %v18175_v43 = vld [vmem:[%s20028_s17 + $0x17e4] ss:$16 sps:$4 sm:$0xff]  }
 0x5ca   : > { %11805 = vmatprep.mubr.bf16.mxu1 %v21357_v6 }
 0x5cb   : > { %11735 = vmatpush1.bf16.msra.mxu0 %v18086_v44  ;;  %v18170_v44 = vld [vmem:[%s20028_s17 + $0x15e0] ss:$16 sps:$4 sm:$0xff]  }
 0x5cc   : > { %11776 = vmatpush1.bf16.msra.mxu1 %v18089_v19  ;;  %11736 = vmatprep.subr.bf16.mxu0 %v18094_v57  ;;  %v18173_v19 = vld [vmem:[%s20028_s17 + $0x17e0] ss:$16 sps:$4 sm:$0xff]  }
 0x5cd   : > { %11777 = vmatprep.subr.bf16.mxu1 %v18097_v21  ;;  %v8550_v57 = vld [vmem:[#allocation2 + $0xa0] sm:$0xff]  ;;  %v8552_v21 = vld [vmem:[#allocation2 + $0xb0] sm:$0xff] }
 0x5cf   : > { %11737 = vmatpush1.bf16.msra.mxu0 %v18092_v45  ;;  %v18178_v45 = vld [vmem:[%s20028_s17 + $0x1804] ss:$16 sps:$4 sm:$0xff]  }
 0x5d0   : > { %11778 = vmatpush1.bf16.msra.mxu1 %v18095_v48  ;;  %11738 = vmatprep.subr.bf16.mxu0 %v18100_v26  ;;  %v18181_v48 = vld [vmem:[%s20028_s17 + $0x1a04] ss:$16 sps:$4 sm:$0xff]   ;;  %v21398_v26 = vpack.c.bf16 %v8550_v57, %v8550_v57  ;;  %v18248_v57 = vld [vmem:[%s20028_s17 + $0x1980] ss:$16 sps:$4 sm:$0xff]  }
 0x5d1   : > { %11779 = vmatprep.subr.bf16.mxu1 %v18103_v49  ;;  %v21400_v49 = vpack.c.bf16 %v8552_v21, %v8552_v21  ;;  %v18251_v21 = vld [vmem:[%s20028_s17 + $0x1b80] ss:$16 sps:$4 sm:$0xff]  }
 0x5d3   : > { %11739 = vmatpush1.bf16.msra.mxu0 %v18098_v50  ;;  %v18176_v50 = vld [vmem:[%s20028_s17 + $0x1800] ss:$16 sps:$4 sm:$0xff]  }
 0x5d4   : > { %11780 = vmatpush1.bf16.msra.mxu1 %v18101_v53  ;;  %11740 = vmatprep.subr.bf16.mxu0 %v18106_v56  ;;  %v18179_v53 = vld [vmem:[%s20028_s17 + $0x1a00] ss:$16 sps:$4 sm:$0xff]   ;;  %v18184_v56 = vld [vmem:[%s20028_s17 + $0x1824] ss:$16 sps:$4 sm:$0xff]  }
 0x5d5   : > { %11781 = vmatprep.subr.bf16.mxu1 %v18109_v27  ;;  %v18187_v27 = vld [vmem:[%s20028_s17 + $0x1a24] ss:$16 sps:$4 sm:$0xff]  }
 0x5d7   : > { %11741 = vmatpush1.bf16.msra.mxu0 %v18104_v58  ;;  %v8555_v58 = vld [vmem:[#allocation2 + $0xc8] sm:$0xff] }
 0x5d8   : > { %11782 = vmatpush1.bf16.msra.mxu1 %v18107_v59  ;;  %11742 = vmatprep.subr.bf16.mxu0 %v18112_v32  ;;  %v18182_v59 = vld [vmem:[%s20028_s17 + $0x1820] ss:$16 sps:$4 sm:$0xff]  }
 0x5d9   : > { %11783 = vmatprep.subr.bf16.mxu1 %v18115_v60  ;;  %v18185_v32 = vld [vmem:[%s20028_s17 + $0x1a20] ss:$16 sps:$4 sm:$0xff]   ;;  %v21410_v60 = vpack.c.bf16 %v8555_v58, %v8555_v58 }
 0x5da   : > { %v18260_v58 = vld [vmem:[%s20028_s17 + $0x19c0] ss:$16 sps:$4 sm:$0xff]  }
 0x5db   : > { %11743 = vmatpush1.bf16.msra.mxu0 %v18110_v29  ;;  %v8557_v29 = vld [vmem:[#allocation2 + $0xd8] sm:$0xff] }
 0x5dc   : > { %11784 = vmatpush1.bf16.msra.mxu1 %v18113_v61  ;;  %11744 = vmatprep.subr.bf16.mxu0 %v18118_v62  ;;  %v18190_v61 = vld [vmem:[%s20028_s17 + $0x1844] ss:$16 sps:$4 sm:$0xff]   ;;  %v21413_v62 = vpack.c.bf16 %v8557_v29, %v8557_v29 }
 0x5dd   : > { %11785 = vmatprep.subr.bf16.mxu1 %v18121_v63  ;;  %v18193_v63 = vld [vmem:[%s20028_s17 + $0x1a44] ss:$16 sps:$4 sm:$0xff]  }
 0x5de   : > { %v18271_v29 = vld [vmem:[%s20028_s17 + $0x1be4] ss:$16 sps:$4 sm:$0xff]  }
 0x5df   : > { %11745 = vmatpush1.bf16.msra.mxu0 %v18116_v1  ;;  %v18191_v1 = vld [vmem:[%s20028_s17 + $0x1a40] ss:$16 sps:$4 sm:$0xff]  }
 0x5e0   : > { %11786 = vmatpush1.bf16.msra.mxu1 %v18119_v2  ;;  %11746 = vmatprep.subr.bf16.mxu0 %v18124_v5  ;;  %v18196_v2 = vld [vmem:[%s20028_s17 + $0x1864] ss:$16 sps:$4 sm:$0xff]   ;;  %v18194_v5 = vld [vmem:[%s20028_s17 + $0x1860] ss:$16 sps:$4 sm:$0xff]  }
 0x5e1   : > { %11787 = vmatprep.subr.bf16.mxu1 %v18127_v7  ;;  %v18197_v7 = vld [vmem:[%s20028_s17 + $0x1a60] ss:$16 sps:$4 sm:$0xff]  }
 0x5e3   : > { %11747 = vmatpush1.bf16.msra.mxu0 %v18122_v8  ;;  %v18202_v8 = vld [vmem:[%s20028_s17 + $0x1884] ss:$16 sps:$4 sm:$0xff]  }
 0x5e4   : > { %11788 = vmatpush1.bf16.msra.mxu1 %v18125_v9  ;;  %11748 = vmatprep.subr.bf16.mxu0 %v18130_v36  ;;  %v18205_v9 = vld [vmem:[%s20028_s17 + $0x1a84] ss:$16 sps:$4 sm:$0xff]   ;;  %v18200_v36 = vld [vmem:[%s20028_s17 + $0x1880] ss:$16 sps:$4 sm:$0xff]  }
 0x5e5   : > { %11789 = vmatprep.subr.bf16.mxu1 %v18133_v12  ;;  %v18203_v12 = vld [vmem:[%s20028_s17 + $0x1a80] ss:$16 sps:$4 sm:$0xff]  }
 0x5e7   : > { %11749 = vmatpush1.bf16.msra.mxu0 %v18128_v10  ;;  %v18208_v10 = vld [vmem:[%s20028_s17 + $0x18a4] ss:$16 sps:$4 sm:$0xff]  }
 0x5e8   : > { %11790 = vmatpush1.bf16.msra.mxu1 %v18131_v13  ;;  %11750 = vmatprep.subr.bf16.mxu0 %v18136_v14  ;;  %v18211_v13 = vld [vmem:[%s20028_s17 + $0x1aa4] ss:$16 sps:$4 sm:$0xff]   ;;  %v18206_v14 = vld [vmem:[%s20028_s17 + $0x18a0] ss:$16 sps:$4 sm:$0xff]  }
 0x5e9   : > { %11791 = vmatprep.subr.bf16.mxu1 %v18139_v16  ;;  %v18209_v16 = vld [vmem:[%s20028_s17 + $0x1aa0] ss:$16 sps:$4 sm:$0xff]  }
 0x5eb   : > { %11751 = vmatpush1.bf16.msra.mxu0 %v18134_v17  ;;  %v18214_v17 = vld [vmem:[%s20028_s17 + $0x18c4] ss:$16 sps:$4 sm:$0xff]  }
 0x5ec   : > { %11792 = vmatpush1.bf16.msra.mxu1 %v18137_v18  ;;  %11752 = vmatprep.subr.bf16.mxu0 %v18142_v46  ;;  %v18217_v18 = vld [vmem:[%s20028_s17 + $0x1ac4] ss:$16 sps:$4 sm:$0xff]   ;;  %v18212_v46 = vld [vmem:[%s20028_s17 + $0x18c0] ss:$16 sps:$4 sm:$0xff]  }
 0x5ed   : > { %11793 = vmatprep.subr.bf16.mxu1 %v18145_v20  ;;  %v18215_v20 = vld [vmem:[%s20028_s17 + $0x1ac0] ss:$16 sps:$4 sm:$0xff]  }
 0x5ef   : > { %11753 = vmatpush1.bf16.msra.mxu0 %v18140_v47  ;;  %v18220_v47 = vld [vmem:[%s20028_s17 + $0x18e4] ss:$16 sps:$4 sm:$0xff]  }
 0x5f0   : > { %11794 = vmatpush1.bf16.msra.mxu1 %v18143_v22  ;;  %11754 = vmatprep.subr.bf16.mxu0 %v18148_v23  ;;  %v18223_v22 = vld [vmem:[%s20028_s17 + $0x1ae4] ss:$16 sps:$4 sm:$0xff]   ;;  %v18218_v23 = vld [vmem:[%s20028_s17 + $0x18e0] ss:$16 sps:$4 sm:$0xff]  }
 0x5f1   : > { %11795 = vmatprep.subr.bf16.mxu1 %v18151_v24  ;;  %v18221_v24 = vld [vmem:[%s20028_s17 + $0x1ae0] ss:$16 sps:$4 sm:$0xff]  }
 0x5f3   : > { %11755 = vmatpush1.bf16.msra.mxu0 %v18146_v51  ;;  %v18226_v51 = vld [vmem:[%s20028_s17 + $0x1904] ss:$16 sps:$4 sm:$0xff]  }
 0x5f4   : > { %11796 = vmatpush1.bf16.msra.mxu1 %v18149_v25  ;;  %11756 = vmatprep.subr.bf16.mxu0 %v18154_v28  ;;  %v18229_v25 = vld [vmem:[%s20028_s17 + $0x1b04] ss:$16 sps:$4 sm:$0xff]   ;;  %v18224_v28 = vld [vmem:[%s20028_s17 + $0x1900] ss:$16 sps:$4 sm:$0xff]  }
 0x5f5   : > { %11797 = vmatprep.subr.bf16.mxu1 %v18157_v52  ;;  %v18227_v52 = vld [vmem:[%s20028_s17 + $0x1b00] ss:$16 sps:$4 sm:$0xff]  }
 0x5f7   : > { %11757 = vmatpush1.bf16.msra.mxu0 %v18152_v11  ;;  %v18232_v11 = vld [vmem:[%s20028_s17 + $0x1924] ss:$16 sps:$4 sm:$0xff]  }
 0x5f8   : > { %11798 = vmatpush1.bf16.msra.mxu1 %v18155_v55  ;;  %11758 = vmatprep.subr.bf16.mxu0 %v18160_v31  ;;  %v18235_v55 = vld [vmem:[%s20028_s17 + $0x1b24] ss:$16 sps:$4 sm:$0xff]   ;;  %v18230_v31 = vld [vmem:[%s20028_s17 + $0x1920] ss:$16 sps:$4 sm:$0xff]  }
 0x5f9   : > { %11799 = vmatprep.subr.bf16.mxu1 %v18163_v30  ;;  %v18233_v30 = vld [vmem:[%s20028_s17 + $0x1b20] ss:$16 sps:$4 sm:$0xff]  }
 0x5fb   : > { %11759 = vmatpush1.bf16.msra.mxu0 %v18158_v33  ;;  %v18238_v33 = vld [vmem:[%s20028_s17 + $0x1944] ss:$16 sps:$4 sm:$0xff]  }
 0x5fc   : > { %11800 = vmatpush1.bf16.msra.mxu1 %v18161_v34  ;;  %11760 = vmatprep.subr.bf16.mxu0 %v18166_v35  ;;  %v18241_v34 = vld [vmem:[%s20028_s17 + $0x1b44] ss:$16 sps:$4 sm:$0xff]   ;;  %v18236_v35 = vld [vmem:[%s20028_s17 + $0x1940] ss:$16 sps:$4 sm:$0xff]  }
 0x5fd   : > { %11801 = vmatprep.subr.bf16.mxu1 %v18169_v37  ;;  %v18239_v37 = vld [vmem:[%s20028_s17 + $0x1b40] ss:$16 sps:$4 sm:$0xff]  }
 0x5ff   : > { %11761 = vmatpush1.bf16.msra.mxu0 %v18164_v40  ;;  %v18244_v40 = vld [vmem:[%s20028_s17 + $0x1964] ss:$16 sps:$4 sm:$0xff]  }
 0x600   : > { %11802 = vmatpush1.bf16.msra.mxu1 %v18167_v41  ;;  %11762 = vmatprep.subr.bf16.mxu0 %v18172_v42  ;;  %v18247_v41 = vld [vmem:[%s20028_s17 + $0x1b64] ss:$16 sps:$4 sm:$0xff]   ;;  %v18242_v42 = vld [vmem:[%s20028_s17 + $0x1960] ss:$16 sps:$4 sm:$0xff]  }
 0x601   : > { %11803 = vmatprep.subr.bf16.mxu1 %v18175_v43  ;;  %v18245_v43 = vld [vmem:[%s20028_s17 + $0x1b60] ss:$16 sps:$4 sm:$0xff]  }
 0x603   : > { %11763 = vmatpush1.bf16.msra.mxu0 %v18170_v44  ;;  %v18250_v44 = vld [vmem:[%s20028_s17 + $0x1984] ss:$16 sps:$4 sm:$0xff]  }
 0x604   : > { %11804 = vmatpush1.bf16.msra.mxu1 %v18173_v19  ;;  %11814 = vmatprep.subr.bf16.mxu0 %v18178_v45  ;;  %v18253_v19 = vld [vmem:[%s20028_s17 + $0x1b84] ss:$16 sps:$4 sm:$0xff]  }
 0x605   : > { %11855 = vmatprep.subr.bf16.mxu1 %v18181_v48  ;;  %v18256_v45 = vld [vmem:[%s20028_s17 + $0x19a4] ss:$16 sps:$4 sm:$0xff]  }
 0x606   : > { %11765 = vmatmul.mubr.bf16.vlgmr.msra.gmra.mrb[4].mxu0 %v21398_v26  ;;  %v18259_v48 = vld [vmem:[%s20028_s17 + $0x1ba4] ss:$16 sps:$4 sm:$0xff]  }
 0x607   : > { %11806 = vmatmul.mubr.bf16.vlgmr.msra.gmra.mrb[4].mxu1 %v21400_v49  ;;  %11815 = vmatpush1.bf16.msra.mxu0 %v18176_v50  ;;  %v18254_v50 = vld [vmem:[%s20028_s17 + $0x19a0] ss:$16 sps:$4 sm:$0xff]  }
 0x608   : > { %11856 = vmatpush1.bf16.msra.mxu1 %v18179_v53  ;;  %11816 = vmatprep.subr.bf16.mxu0 %v18184_v56  ;;  %v18257_v53 = vld [vmem:[%s20028_s17 + $0x1ba0] ss:$16 sps:$4 sm:$0xff]   ;;  %v18262_v56 = vld [vmem:[%s20028_s17 + $0x19c4] ss:$16 sps:$4 sm:$0xff]  }
 0x609   : > { %11857 = vmatprep.subr.bf16.mxu1 %v18187_v27  ;;  %11846 = vmatprep.mubr.bf16.mxu0 %v21410_v60  ;;  %v18265_v27 = vld [vmem:[%s20028_s17 + $0x1bc4] ss:$16 sps:$4 sm:$0xff]  }
 0x60a   : > { %11887 = vmatprep.mubr.bf16.mxu1 %v21413_v62 }
 0x60b   : > { %11817 = vmatpush1.bf16.msra.mxu0 %v18182_v59  ;;  %v18263_v59 = vld [vmem:[%s20028_s17 + $0x1bc0] ss:$16 sps:$4 sm:$0xff]  }
 0x60c   : > { %11858 = vmatpush1.bf16.msra.mxu1 %v18185_v32  ;;  %11818 = vmatprep.subr.bf16.mxu0 %v18190_v61  ;;  %v18268_v32 = vld [vmem:[%s20028_s17 + $0x19e4] ss:$16 sps:$4 sm:$0xff]   ;;  %v18266_v61 = vld [vmem:[%s20028_s17 + $0x19e0] ss:$16 sps:$4 sm:$0xff]  }
 0x60d   : > { %11859 = vmatprep.subr.bf16.mxu1 %v18193_v63  ;;  %v18269_v63 = vld [vmem:[%s20028_s17 + $0x1be0] ss:$16 sps:$4 sm:$0xff]  }
 0x60f   : > { %11819 = vmatpush1.bf16.msra.mxu0 %v18188_v0  ;;  %v8554_v0 = vld [vmem:[#allocation2 + $0xc0] sm:$0xff] }
 0x610   : > { %11860 = vmatpush1.bf16.msra.mxu1 %v18191_v1  ;;  %11820 = vmatprep.subr.bf16.mxu0 %v18196_v2  ;;  %v8556_v1 = vld [vmem:[#allocation2 + $0xd0] sm:$0xff] }
 0x611   : > { %11861 = vmatprep.subr.bf16.mxu1 %v18199_v4  ;;  %v18274_v2 = vld [vmem:[%s20028_s17 + $0x1c04] ss:$16 sps:$4 sm:$0xff]  }
 0x612   : > { %v18277_v4 = vld [vmem:[%s20028_s17 + $0x1e04] ss:$16 sps:$4 sm:$0xff]  }
 0x613   : > { %11821 = vmatpush1.bf16.msra.mxu0 %v18194_v5  ;;  %v18272_v5 = vld [vmem:[%s20028_s17 + $0x1c00] ss:$16 sps:$4 sm:$0xff]  }
 0x614   : > { %11862 = vmatpush1.bf16.msra.mxu1 %v18197_v7  ;;  %11822 = vmatprep.subr.bf16.mxu0 %v18202_v8  ;;  %v18275_v7 = vld [vmem:[%s20028_s17 + $0x1e00] ss:$16 sps:$4 sm:$0xff]   ;;  %v21476_v8 = vpack.c.bf16 %v8554_v0, %v8554_v0 }
 0x615   : > { %11863 = vmatprep.subr.bf16.mxu1 %v18205_v9  ;;  %v21478_v9 = vpack.c.bf16 %v8556_v1, %v8556_v1  ;;  %v18338_v0 = vld [vmem:[%s20028_s17 + $0x1d60] ss:$16 sps:$4 sm:$0xff]  }
 0x616   : > { %v18341_v1 = vld [vmem:[%s20028_s17 + $0x1f60] ss:$16 sps:$4 sm:$0xff]  }
 0x617   : > { %11823 = vmatpush1.bf16.msra.mxu0 %v18200_v36  ;;  %v8559_v36 = vld [vmem:[#allocation2 + $0xe8] sm:$0xff] }
 0x618   : > { %11864 = vmatpush1.bf16.msra.mxu1 %v18203_v12  ;;  %11824 = vmatprep.subr.bf16.mxu0 %v18208_v10  ;;  %v8561_v12 = vld [vmem:[#allocation2 + $0xf8] sm:$0xff]  ;;  %v18280_v10 = vld [vmem:[%s20028_s17 + $0x1c24] ss:$16 sps:$4 sm:$0xff]  }
 0x619   : > { %11865 = vmatprep.subr.bf16.mxu1 %v18211_v13  ;;  %v18283_v13 = vld [vmem:[%s20028_s17 + $0x1e24] ss:$16 sps:$4 sm:$0xff]  }
 0x61b   : > { %11825 = vmatpush1.bf16.msra.mxu0 %v18206_v14  ;;  %v21482_v14 = vpack.c.bf16 %v8559_v36, %v8559_v36  ;;  %v18352_v36 = vld [vmem:[%s20028_s17 + $0x1da4] ss:$16 sps:$4 sm:$0xff]  }
 0x61c   : > { %11866 = vmatpush1.bf16.msra.mxu1 %v18209_v16  ;;  %11826 = vmatprep.subr.bf16.mxu0 %v18214_v17  ;;  %v21484_v16 = vpack.c.bf16 %v8561_v12, %v8561_v12  ;;  %v18278_v17 = vld [vmem:[%s20028_s17 + $0x1c20] ss:$16 sps:$4 sm:$0xff]   ;;  %v18355_v12 = vld [vmem:[%s20028_s17 + $0x1fa4] ss:$16 sps:$4 sm:$0xff]  }
 0x61d   : > { %11867 = vmatprep.subr.bf16.mxu1 %v18217_v18  ;;  %v18281_v18 = vld [vmem:[%s20028_s17 + $0x1e20] ss:$16 sps:$4 sm:$0xff]  }
 0x61f   : > { %11827 = vmatpush1.bf16.msra.mxu0 %v18212_v46  ;;  %v18286_v46 = vld [vmem:[%s20028_s17 + $0x1c44] ss:$16 sps:$4 sm:$0xff]  }
 0x620   : > { %11868 = vmatpush1.bf16.msra.mxu1 %v18215_v20  ;;  %11828 = vmatprep.subr.bf16.mxu0 %v18220_v47  ;;  %v18289_v20 = vld [vmem:[%s20028_s17 + $0x1e44] ss:$16 sps:$4 sm:$0xff]   ;;  %v18284_v47 = vld [vmem:[%s20028_s17 + $0x1c40] ss:$16 sps:$4 sm:$0xff]  }
 0x621   : > { %11869 = vmatprep.subr.bf16.mxu1 %v18223_v22  ;;  %v18287_v22 = vld [vmem:[%s20028_s17 + $0x1e40] ss:$16 sps:$4 sm:$0xff]  }
 0x623   : > { %11829 = vmatpush1.bf16.msra.mxu0 %v18218_v23  ;;  %v18292_v23 = vld [vmem:[%s20028_s17 + $0x1c64] ss:$16 sps:$4 sm:$0xff]  }
 0x624   : > { %11870 = vmatpush1.bf16.msra.mxu1 %v18221_v24  ;;  %11830 = vmatprep.subr.bf16.mxu0 %v18226_v51  ;;  %v18295_v24 = vld [vmem:[%s20028_s17 + $0x1e64] ss:$16 sps:$4 sm:$0xff]   ;;  %v18290_v51 = vld [vmem:[%s20028_s17 + $0x1c60] ss:$16 sps:$4 sm:$0xff]  }
 0x625   : > { %11871 = vmatprep.subr.bf16.mxu1 %v18229_v25  ;;  %v18293_v25 = vld [vmem:[%s20028_s17 + $0x1e60] ss:$16 sps:$4 sm:$0xff]  }
 0x627   : > { %11831 = vmatpush1.bf16.msra.mxu0 %v18224_v28  ;;  %v18298_v28 = vld [vmem:[%s20028_s17 + $0x1c84] ss:$16 sps:$4 sm:$0xff]  }
 0x628   : > { %11872 = vmatpush1.bf16.msra.mxu1 %v18227_v52  ;;  %11832 = vmatprep.subr.bf16.mxu0 %v18232_v11  ;;  %v18301_v52 = vld [vmem:[%s20028_s17 + $0x1e84] ss:$16 sps:$4 sm:$0xff]   ;;  %v18296_v11 = vld [vmem:[%s20028_s17 + $0x1c80] ss:$16 sps:$4 sm:$0xff]  }
 0x629   : > { %11873 = vmatprep.subr.bf16.mxu1 %v18235_v55  ;;  %v18299_v55 = vld [vmem:[%s20028_s17 + $0x1e80] ss:$16 sps:$4 sm:$0xff]  }
 0x62b   : > { %11833 = vmatpush1.bf16.msra.mxu0 %v18230_v31  ;;  %v18304_v31 = vld [vmem:[%s20028_s17 + $0x1ca4] ss:$16 sps:$4 sm:$0xff]  }
 0x62c   : > { %11874 = vmatpush1.bf16.msra.mxu1 %v18233_v30  ;;  %11834 = vmatprep.subr.bf16.mxu0 %v18238_v33  ;;  %v18307_v30 = vld [vmem:[%s20028_s17 + $0x1ea4] ss:$16 sps:$4 sm:$0xff]   ;;  %v18302_v33 = vld [vmem:[%s20028_s17 + $0x1ca0] ss:$16 sps:$4 sm:$0xff]  }
 0x62d   : > { %11875 = vmatprep.subr.bf16.mxu1 %v18241_v34  ;;  %v18305_v34 = vld [vmem:[%s20028_s17 + $0x1ea0] ss:$16 sps:$4 sm:$0xff]  }
 0x62f   : > { %11835 = vmatpush1.bf16.msra.mxu0 %v18236_v35  ;;  %v18310_v35 = vld [vmem:[%s20028_s17 + $0x1cc4] ss:$16 sps:$4 sm:$0xff]  }
 0x630   : > { %11876 = vmatpush1.bf16.msra.mxu1 %v18239_v37  ;;  %11836 = vmatprep.subr.bf16.mxu0 %v18244_v40  ;;  %v18313_v37 = vld [vmem:[%s20028_s17 + $0x1ec4] ss:$16 sps:$4 sm:$0xff]   ;;  %v18308_v40 = vld [vmem:[%s20028_s17 + $0x1cc0] ss:$16 sps:$4 sm:$0xff]  }
 0x631   : > { %11877 = vmatprep.subr.bf16.mxu1 %v18247_v41  ;;  %v18311_v41 = vld [vmem:[%s20028_s17 + $0x1ec0] ss:$16 sps:$4 sm:$0xff]  }
 0x633   : > { %11837 = vmatpush1.bf16.msra.mxu0 %v18242_v42  ;;  %v18316_v42 = vld [vmem:[%s20028_s17 + $0x1ce4] ss:$16 sps:$4 sm:$0xff]  }
 0x634   : > { %11878 = vmatpush1.bf16.msra.mxu1 %v18245_v43  ;;  %11838 = vmatprep.subr.bf16.mxu0 %v18250_v44  ;;  %v18319_v43 = vld [vmem:[%s20028_s17 + $0x1ee4] ss:$16 sps:$4 sm:$0xff]   ;;  %v18314_v44 = vld [vmem:[%s20028_s17 + $0x1ce0] ss:$16 sps:$4 sm:$0xff]  }
 0x635   : > { %11879 = vmatprep.subr.bf16.mxu1 %v18253_v19  ;;  %v18317_v19 = vld [vmem:[%s20028_s17 + $0x1ee0] ss:$16 sps:$4 sm:$0xff]  }
 0x637   : > { %11839 = vmatpush1.bf16.msra.mxu0 %v18248_v57  ;;  %v18322_v57 = vld [vmem:[%s20028_s17 + $0x1d04] ss:$16 sps:$4 sm:$0xff]  }
 0x638   : > { %11880 = vmatpush1.bf16.msra.mxu1 %v18251_v21  ;;  %11840 = vmatprep.subr.bf16.mxu0 %v18256_v45  ;;  %v18325_v21 = vld [vmem:[%s20028_s17 + $0x1f04] ss:$16 sps:$4 sm:$0xff]   ;;  %v18320_v45 = vld [vmem:[%s20028_s17 + $0x1d00] ss:$16 sps:$4 sm:$0xff]  }
 0x639   : > { %11881 = vmatprep.subr.bf16.mxu1 %v18259_v48  ;;  %v18323_v48 = vld [vmem:[%s20028_s17 + $0x1f00] ss:$16 sps:$4 sm:$0xff]  }
 0x63b   : > { %11841 = vmatpush1.bf16.msra.mxu0 %v18254_v50  ;;  %v18328_v50 = vld [vmem:[%s20028_s17 + $0x1d24] ss:$16 sps:$4 sm:$0xff]  }
 0x63c   : > { %11882 = vmatpush1.bf16.msra.mxu1 %v18257_v53  ;;  %11842 = vmatprep.subr.bf16.mxu0 %v18262_v56  ;;  %v18331_v53 = vld [vmem:[%s20028_s17 + $0x1f24] ss:$16 sps:$4 sm:$0xff]   ;;  %v18326_v56 = vld [vmem:[%s20028_s17 + $0x1d20] ss:$16 sps:$4 sm:$0xff]  }
 0x63d   : > { %11883 = vmatprep.subr.bf16.mxu1 %v18265_v27  ;;  %v18329_v27 = vld [vmem:[%s20028_s17 + $0x1f20] ss:$16 sps:$4 sm:$0xff]  }
 0x63f   : > { %11843 = vmatpush1.bf16.msra.mxu0 %v18260_v58  ;;  %v18334_v58 = vld [vmem:[%s20028_s17 + $0x1d44] ss:$16 sps:$4 sm:$0xff]  }
 0x640   : > { %11884 = vmatpush1.bf16.msra.mxu1 %v18263_v59  ;;  %11844 = vmatprep.subr.bf16.mxu0 %v18268_v32  ;;  %v18337_v59 = vld [vmem:[%s20028_s17 + $0x1f44] ss:$16 sps:$4 sm:$0xff]   ;;  %v18332_v32 = vld [vmem:[%s20028_s17 + $0x1d40] ss:$16 sps:$4 sm:$0xff]  }
 0x641   : > { %11885 = vmatprep.subr.bf16.mxu1 %v18271_v29  ;;  %v18335_v29 = vld [vmem:[%s20028_s17 + $0x1f40] ss:$16 sps:$4 sm:$0xff]  }
 0x643   : > { %11845 = vmatpush1.bf16.msra.mxu0 %v18266_v61  ;;  %v18340_v61 = vld [vmem:[%s20028_s17 + $0x1d64] ss:$16 sps:$4 sm:$0xff]  }
 0x644   : > { %11886 = vmatpush1.bf16.msra.mxu1 %v18269_v63  ;;  %11896 = vmatprep.subr.bf16.mxu0 %v18274_v2  ;;  %v18343_v63 = vld [vmem:[%s20028_s17 + $0x1f64] ss:$16 sps:$4 sm:$0xff]  }
 0x645   : > { %11937 = vmatprep.subr.bf16.mxu1 %v18277_v4  ;;  %v18346_v2 = vld [vmem:[%s20028_s17 + $0x1d84] ss:$16 sps:$4 sm:$0xff]  }
 0x646   : > { %11847 = vmatmul.mubr.bf16.vlgmr.msra.gmra.mrb[8].mxu0 %v21476_v8  ;;  %v18349_v4 = vld [vmem:[%s20028_s17 + $0x1f84] ss:$16 sps:$4 sm:$0xff]  }
 0x647   : > { %11888 = vmatmul.mubr.bf16.vlgmr.msra.gmra.mrb[8].mxu1 %v21478_v9  ;;  %11897 = vmatpush1.bf16.msra.mxu0 %v18272_v5  ;;  %v18344_v5 = vld [vmem:[%s20028_s17 + $0x1d80] ss:$16 sps:$4 sm:$0xff]  }
 0x648   : > { %11938 = vmatpush1.bf16.msra.mxu1 %v18275_v7  ;;  %11898 = vmatprep.subr.bf16.mxu0 %v18280_v10  ;;  %v18347_v7 = vld [vmem:[%s20028_s17 + $0x1f80] ss:$16 sps:$4 sm:$0xff]  }
 0x649   : > { %11939 = vmatprep.subr.bf16.mxu1 %v18283_v13  ;;  %11928 = vmatprep.mubr.bf16.mxu0 %v21482_v14  ;;  %v18350_v10 = vld [vmem:[%s20028_s17 + $0x1da0] ss:$16 sps:$4 sm:$0xff]  }
 0x64a   : > { %11969 = vmatprep.mubr.bf16.mxu1 %v21484_v16  ;;  %v18353_v13 = vld [vmem:[%s20028_s17 + $0x1fa0] ss:$16 sps:$4 sm:$0xff]  }
 0x64b   : > { %11899 = vmatpush1.bf16.msra.mxu0 %v18278_v17  ;;  %v18358_v17 = vld [vmem:[%s20028_s17 + $0x1dc4] ss:$16 sps:$4 sm:$0xff]  }
 0x64c   : > { %11940 = vmatpush1.bf16.msra.mxu1 %v18281_v18  ;;  %11900 = vmatprep.subr.bf16.mxu0 %v18286_v46  ;;  %v18361_v18 = vld [vmem:[%s20028_s17 + $0x1fc4] ss:$16 sps:$4 sm:$0xff]   ;;  %v18356_v46 = vld [vmem:[%s20028_s17 + $0x1dc0] ss:$16 sps:$4 sm:$0xff]  }
 0x64d   : > { %11941 = vmatprep.subr.bf16.mxu1 %v18289_v20  ;;  %v18359_v20 = vld [vmem:[%s20028_s17 + $0x1fc0] ss:$16 sps:$4 sm:$0xff]  }
 0x64f   : > { %11901 = vmatpush1.bf16.msra.mxu0 %v18284_v47  ;;  %v18364_v47 = vld [vmem:[%s20028_s17 + $0x1de4] ss:$16 sps:$4 sm:$0xff]  }
 0x650   : > { %11942 = vmatpush1.bf16.msra.mxu1 %v18287_v22  ;;  %11902 = vmatprep.subr.bf16.mxu0 %v18292_v23  ;;  %v18367_v22 = vld [vmem:[%s20028_s17 + $0x1fe4] ss:$16 sps:$4 sm:$0xff]   ;;  %v18362_v23 = vld [vmem:[%s20028_s17 + $0x1de0] ss:$16 sps:$4 sm:$0xff]  }
 0x651   : > { %11943 = vmatprep.subr.bf16.mxu1 %v18295_v24  ;;  %v18365_v24 = vld [vmem:[%s20028_s17 + $0x1fe0] ss:$16 sps:$4 sm:$0xff]  }
 0x653   : > { %11903 = vmatpush1.bf16.msra.mxu0 %v18290_v51  ;;  %v8558_v51 = vld [vmem:[#allocation2 + $0xe0] sm:$0xff] }
 0x654   : > { %11944 = vmatpush1.bf16.msra.mxu1 %v18293_v25  ;;  %11904 = vmatprep.subr.bf16.mxu0 %v18298_v28  ;;  %v8560_v25 = vld [vmem:[#allocation2 + $0xf0] sm:$0xff]  ;;  %v18370_v28 = vld [vmem:[%s20028_s17 + $0x100c] ss:$16 sps:$4 sm:$0xff]  }
 0x655   : > { %11945 = vmatprep.subr.bf16.mxu1 %v18301_v52  ;;  %v18373_v52 = vld [vmem:[%s20028_s17 + $0x120c] ss:$16 sps:$4 sm:$0xff]  }
 0x657   : > { %11905 = vmatpush1.bf16.msra.mxu0 %v18296_v11  ;;  %v21550_v11 = vpack.c.bf16 %v8558_v51, %v8558_v51  ;;  %v18422_v51 = vld [vmem:[%s20028_s17 + $0x1128] ss:$16 sps:$4 sm:$0xff]  }
 0x658   : > { %11946 = vmatpush1.bf16.msra.mxu1 %v18299_v55  ;;  %11906 = vmatprep.subr.bf16.mxu0 %v18304_v31  ;;  %v21552_v55 = vpack.c.bf16 %v8560_v25, %v8560_v25  ;;  %v18368_v31 = vld [vmem:[%s20028_s17 + $0x1008] ss:$16 sps:$4 sm:$0xff]  }
 0x659   : > { %11947 = vmatprep.subr.bf16.mxu1 %v18307_v30  ;;  %v18371_v30 = vld [vmem:[%s20028_s17 + $0x1208] ss:$16 sps:$4 sm:$0xff]  }
 0x65a   : > { %v18425_v25 = vld [vmem:[%s20028_s17 + $0x1328] ss:$16 sps:$4 sm:$0xff]  }
 0x65b   : > { %11907 = vmatpush1.bf16.msra.mxu0 %v18302_v33  ;;  %v18376_v33 = vld [vmem:[%s20028_s17 + $0x102c] ss:$16 sps:$4 sm:$0xff]  }
 0x65c   : > { %11948 = vmatpush1.bf16.msra.mxu1 %v18305_v34  ;;  %11908 = vmatprep.subr.bf16.mxu0 %v18310_v35  ;;  %v18379_v34 = vld [vmem:[%s20028_s17 + $0x122c] ss:$16 sps:$4 sm:$0xff]   ;;  %v18374_v35 = vld [vmem:[%s20028_s17 + $0x1028] ss:$16 sps:$4 sm:$0xff]  }
 0x65d   : > { %11949 = vmatprep.subr.bf16.mxu1 %v18313_v37  ;;  %v18377_v37 = vld [vmem:[%s20028_s17 + $0x1228] ss:$16 sps:$4 sm:$0xff]  }
 0x65f   : > { %11909 = vmatpush1.bf16.msra.mxu0 %v18308_v40  ;;  %v18382_v40 = vld [vmem:[%s20028_s17 + $0x104c] ss:$16 sps:$4 sm:$0xff]  }
 0x660   : > { %11950 = vmatpush1.bf16.msra.mxu1 %v18311_v41  ;;  %11910 = vmatprep.subr.bf16.mxu0 %v18316_v42  ;;  %v18385_v41 = vld [vmem:[%s20028_s17 + $0x124c] ss:$16 sps:$4 sm:$0xff]   ;;  %v18380_v42 = vld [vmem:[%s20028_s17 + $0x1048] ss:$16 sps:$4 sm:$0xff]  }
 0x661   : > { %11951 = vmatprep.subr.bf16.mxu1 %v18319_v43  ;;  %v18383_v43 = vld [vmem:[%s20028_s17 + $0x1248] ss:$16 sps:$4 sm:$0xff]  }
 0x663   : > { %11911 = vmatpush1.bf16.msra.mxu0 %v18314_v44  ;;  %v18388_v44 = vld [vmem:[%s20028_s17 + $0x106c] ss:$16 sps:$4 sm:$0xff]  }
 0x664   : > { %11952 = vmatpush1.bf16.msra.mxu1 %v18317_v19  ;;  %11912 = vmatprep.subr.bf16.mxu0 %v18322_v57  ;;  %v18391_v19 = vld [vmem:[%s20028_s17 + $0x126c] ss:$16 sps:$4 sm:$0xff]   ;;  %v18386_v57 = vld [vmem:[%s20028_s17 + $0x1068] ss:$16 sps:$4 sm:$0xff]  }
 0x665   : > { %11953 = vmatprep.subr.bf16.mxu1 %v18325_v21  ;;  %v18389_v21 = vld [vmem:[%s20028_s17 + $0x1268] ss:$16 sps:$4 sm:$0xff]  }
 0x667   : > { %11913 = vmatpush1.bf16.msra.mxu0 %v18320_v45  ;;  %v18392_v45 = vld [vmem:[%s20028_s17 + $0x1088] ss:$16 sps:$4 sm:$0xff]  }
 0x668   : > { %11954 = vmatpush1.bf16.msra.mxu1 %v18323_v48  ;;  %11914 = vmatprep.subr.bf16.mxu0 %v18328_v50  ;;  %v18395_v48 = vld [vmem:[%s20028_s17 + $0x1288] ss:$16 sps:$4 sm:$0xff]   ;;  %v18400_v50 = vld [vmem:[%s20028_s17 + $0x10ac] ss:$16 sps:$4 sm:$0xff]  }
 0x669   : > { %11955 = vmatprep.subr.bf16.mxu1 %v18331_v53  ;;  %v18403_v53 = vld [vmem:[%s20028_s17 + $0x12ac] ss:$16 sps:$4 sm:$0xff]  }
 0x66b   : > { %11915 = vmatpush1.bf16.msra.mxu0 %v18326_v56  ;;  %v18398_v56 = vld [vmem:[%s20028_s17 + $0x10a8] ss:$16 sps:$4 sm:$0xff]  }
 0x66c   : > { %11956 = vmatpush1.bf16.msra.mxu1 %v18329_v27  ;;  %11916 = vmatprep.subr.bf16.mxu0 %v18334_v58  ;;  %v18401_v27 = vld [vmem:[%s20028_s17 + $0x12a8] ss:$16 sps:$4 sm:$0xff]   ;;  %v18406_v58 = vld [vmem:[%s20028_s17 + $0x10cc] ss:$16 sps:$4 sm:$0xff]  }
 0x66d   : > { %11957 = vmatprep.subr.bf16.mxu1 %v18337_v59  ;;  %v18409_v59 = vld [vmem:[%s20028_s17 + $0x12cc] ss:$16 sps:$4 sm:$0xff]  }
 0x66f   : > { %11917 = vmatpush1.bf16.msra.mxu0 %v18332_v32 }
 0x670   : > { %11958 = vmatpush1.bf16.msra.mxu1 %v18335_v29  ;;  %11918 = vmatprep.subr.bf16.mxu0 %v18340_v61  ;;  %v18404_v61 = vld [vmem:[%s20028_s17 + $0x10c8] ss:$16 sps:$4 sm:$0xff]  }
 0x671   : > { %11959 = vmatprep.subr.bf16.mxu1 %v18343_v63  ;;  %v18407_v63 = vld [vmem:[%s20028_s17 + $0x12c8] ss:$16 sps:$4 sm:$0xff]  }
 0x673   : > { %11919 = vmatpush1.bf16.msra.mxu0 %v18338_v0 }
 0x674   : > { %11960 = vmatpush1.bf16.msra.mxu1 %v18341_v1  ;;  %11920 = vmatprep.subr.bf16.mxu0 %v18346_v2 }
 0x675   : > { %11961 = vmatprep.subr.bf16.mxu1 %v18349_v4 }
 0x677   : > { %11921 = vmatpush1.bf16.msra.mxu0 %v18344_v5 }
 0x678   : > { %11962 = vmatpush1.bf16.msra.mxu1 %v18347_v7  ;;  %11922 = vmatprep.subr.bf16.mxu0 %v18352_v36 }
 0x679   : > { %11963 = vmatprep.subr.bf16.mxu1 %v18355_v12 }
 0x67b   : > { %11923 = vmatpush1.bf16.msra.mxu0 %v18350_v10  ;;  %v18412_v10 = vld [vmem:[%s20028_s17 + $0x10ec] ss:$16 sps:$4 sm:$0xff]  }
 0x67c   : > { %11964 = vmatpush1.bf16.msra.mxu1 %v18353_v13  ;;  %11924 = vmatprep.subr.bf16.mxu0 %v18358_v17  ;;  %v18415_v13 = vld [vmem:[%s20028_s17 + $0x12ec] ss:$16 sps:$4 sm:$0xff]   ;;  %v18410_v17 = vld [vmem:[%s20028_s17 + $0x10e8] ss:$16 sps:$4 sm:$0xff]  }
 0x67d   : > { %11965 = vmatprep.subr.bf16.mxu1 %v18361_v18  ;;  %v18413_v18 = vld [vmem:[%s20028_s17 + $0x12e8] ss:$16 sps:$4 sm:$0xff]  }
 0x67f   : > { %11925 = vmatpush1.bf16.msra.mxu0 %v18356_v46  ;;  %v18418_v46 = vld [vmem:[%s20028_s17 + $0x110c] ss:$16 sps:$4 sm:$0xff]  }
 0x680   : > { %11966 = vmatpush1.bf16.msra.mxu1 %v18359_v20  ;;  %11926 = vmatprep.subr.bf16.mxu0 %v18364_v47  ;;  %v18421_v20 = vld [vmem:[%s20028_s17 + $0x130c] ss:$16 sps:$4 sm:$0xff]   ;;  %v18416_v47 = vld [vmem:[%s20028_s17 + $0x1108] ss:$16 sps:$4 sm:$0xff]  }
 0x681   : > { %11967 = vmatprep.subr.bf16.mxu1 %v18367_v22  ;;  %v18419_v22 = vld [vmem:[%s20028_s17 + $0x1308] ss:$16 sps:$4 sm:$0xff]  }
 0x683   : > { %11927 = vmatpush1.bf16.msra.mxu0 %v18362_v23  ;;  %v18424_v23 = vld [vmem:[%s20028_s17 + $0x112c] ss:$16 sps:$4 sm:$0xff]  }
 0x684   : > { %11968 = vmatpush1.bf16.msra.mxu1 %v18365_v24  ;;  %11978 = vmatprep.subr.bf16.mxu0 %v18370_v28  ;;  %v18427_v24 = vld [vmem:[%s20028_s17 + $0x132c] ss:$16 sps:$4 sm:$0xff]  }
 0x685   : > { %12019 = vmatprep.subr.bf16.mxu1 %v18373_v52  ;;  %v18430_v28 = vld [vmem:[%s20028_s17 + $0x114c] ss:$16 sps:$4 sm:$0xff]  }
 0x686   : > { %11929 = vmatmul.mubr.bf16.vlgmr.msra.gmra.mrb[12].mxu0 %v21550_v11  ;;  %v18433_v52 = vld [vmem:[%s20028_s17 + $0x134c] ss:$16 sps:$4 sm:$0xff]  }
 0x687   : > { %11970 = vmatmul.mubr.bf16.vlgmr.msra.gmra.mrb[12].mxu1 %v21552_v55  ;;  %11979 = vmatpush1.bf16.msra.mxu0 %v18368_v31  ;;  %v18428_v31 = vld [vmem:[%s20028_s17 + $0x1148] ss:$16 sps:$4 sm:$0xff]  }
 0x688   : > { %12020 = vmatpush1.bf16.msra.mxu1 %v18371_v30  ;;  %11980 = vmatprep.subr.bf16.mxu0 %v18376_v33  ;;  %v18431_v30 = vld [vmem:[%s20028_s17 + $0x1348] ss:$16 sps:$4 sm:$0xff]   ;;  %v18436_v33 = vld [vmem:[%s20028_s17 + $0x116c] ss:$16 sps:$4 sm:$0xff]  }
 0x689   : > { %12021 = vmatprep.subr.bf16.mxu1 %v18379_v34  ;;  %12010 = vmatprep.mubr.bf16.mxu0 %v21298_v15  ;;  %v18394_v15 = vld [vmem:[%s20028_s17 + $0x108c] ss:$16 sps:$4 sm:$0xff]  }
 0x68a   : > { %12051 = vmatprep.mubr.bf16.mxu1 %v21301_v54  ;;  %v18397_v54 = vld [vmem:[%s20028_s17 + $0x128c] ss:$16 sps:$4 sm:$0xff]  }
 0x68b   : > { %11981 = vmatpush1.bf16.msra.mxu0 %v18374_v35  ;;  %v18439_v34 = vld [vmem:[%s20028_s17 + $0x136c] ss:$16 sps:$4 sm:$0xff]   ;;  %v18434_v35 = vld [vmem:[%s20028_s17 + $0x1168] ss:$16 sps:$4 sm:$0xff]  }
 0x68c   : > { %12022 = vmatpush1.bf16.msra.mxu1 %v18377_v37  ;;  %11982 = vmatprep.subr.bf16.mxu0 %v18382_v40  ;;  %v18437_v37 = vld [vmem:[%s20028_s17 + $0x1368] ss:$16 sps:$4 sm:$0xff]   ;;  %v18442_v40 = vld [vmem:[%s20028_s17 + $0x118c] ss:$16 sps:$4 sm:$0xff]  }
 0x68d   : > { %12023 = vmatprep.subr.bf16.mxu1 %v18385_v41  ;;  %v18445_v41 = vld [vmem:[%s20028_s17 + $0x138c] ss:$16 sps:$4 sm:$0xff]  }
 0x68f   : > { %11983 = vmatpush1.bf16.msra.mxu0 %v18380_v42  ;;  %v18440_v42 = vld [vmem:[%s20028_s17 + $0x1188] ss:$16 sps:$4 sm:$0xff]  }
 0x690   : > { %12024 = vmatpush1.bf16.msra.mxu1 %v18383_v43  ;;  %11984 = vmatprep.subr.bf16.mxu0 %v18388_v44  ;;  %v18443_v43 = vld [vmem:[%s20028_s17 + $0x1388] ss:$16 sps:$4 sm:$0xff]   ;;  %v18448_v44 = vld [vmem:[%s20028_s17 + $0x11ac] ss:$16 sps:$4 sm:$0xff]  }
 0x691   : > { %12025 = vmatprep.subr.bf16.mxu1 %v18391_v19  ;;  %v18451_v19 = vld [vmem:[%s20028_s17 + $0x13ac] ss:$16 sps:$4 sm:$0xff]  }
 0x693   : > { %11985 = vmatpush1.bf16.msra.mxu0 %v18386_v57  ;;  %v18446_v57 = vld [vmem:[%s20028_s17 + $0x11a8] ss:$16 sps:$4 sm:$0xff]  }
 0x694   : > { %12026 = vmatpush1.bf16.msra.mxu1 %v18389_v21  ;;  %11986 = vmatprep.subr.bf16.mxu0 %v18394_v15  ;;  %v18449_v21 = vld [vmem:[%s20028_s17 + $0x13a8] ss:$16 sps:$4 sm:$0xff]   ;;  %v18454_v15 = vld [vmem:[%s20028_s17 + $0x11cc] ss:$16 sps:$4 sm:$0xff]  }
 0x695   : > { %12027 = vmatprep.subr.bf16.mxu1 %v18397_v54  ;;  %v18457_v54 = vld [vmem:[%s20028_s17 + $0x13cc] ss:$16 sps:$4 sm:$0xff]  }
 0x697   : > { %11987 = vmatpush1.bf16.msra.mxu0 %v18392_v45  ;;  %v18452_v45 = vld [vmem:[%s20028_s17 + $0x11c8] ss:$16 sps:$4 sm:$0xff]  }
 0x698   : > { %12028 = vmatpush1.bf16.msra.mxu1 %v18395_v48  ;;  %11988 = vmatprep.subr.bf16.mxu0 %v18400_v50  ;;  %v18455_v48 = vld [vmem:[%s20028_s17 + $0x13c8] ss:$16 sps:$4 sm:$0xff]   ;;  %v18460_v50 = vld [vmem:[%s20028_s17 + $0x11ec] ss:$16 sps:$4 sm:$0xff]  }
 0x699   : > { %12029 = vmatprep.subr.bf16.mxu1 %v18403_v53  ;;  %v11684_v32 = vpop.f32.mrb[0].mxu0  ;;  %v18463_v53 = vld [vmem:[%s20028_s17 + $0x13ec] ss:$16 sps:$4 sm:$0xff]  }
 0x69a   : > { %v11725_v29 = vpop.f32.mrb[0].mxu1  ;;  %v11686_v1 = vpop.f32.mrb[1].mxu0 }
 0x69b   : > { %v21584_v0 = vadd.f32 %v11725_v29, %v11684_v32  ;;  %v11727_v2 = vpop.f32.mrb[1].mxu1  ;;  %v11688_v5 = vpop.f32.mrb[2].mxu0  ;;  %11989 = vmatpush1.bf16.msra.mxu0 %v18398_v56  ;;  %v18458_v56 = vld [vmem:[%s20028_s17 + $0x11e8] ss:$16 sps:$4 sm:$0xff]  }
 0x69c   : > { %v21586_v4 = vadd.f32 %v11727_v2, %v11686_v1  ;;  %v11729_v7 = vpop.f32.mrb[2].mxu1  ;;  %12030 = vmatpush1.bf16.msra.mxu1 %v18401_v27  ;;  %v11689_v36 = vpop.f32.mrb[3].mxu0  ;;  %11990 = vmatprep.subr.bf16.mxu0 %v18406_v58  ;;  %v18461_v27 = vld [vmem:[%s20028_s17 + $0x13e8] ss:$16 sps:$4 sm:$0xff]   ;;  %v18466_v58 = vld [vmem:[%s20028_s17 + $0x140c] ss:$16 sps:$4 sm:$0xff]  }
 0x69d   : > { %v11730_v12 = vpop.f32.mrb[3].mxu1  ;;  %12031 = vmatprep.subr.bf16.mxu1 %v18409_v59  ;;  %v18469_v59 = vld [vmem:[%s20028_s17 + $0x160c] ss:$16 sps:$4 sm:$0xff]   ;;  %v18464_v32 = vld [vmem:[%s20028_s17 + $0x1408] ss:$16 sps:$4 sm:$0xff]  }
 0x69e   : > { %v18467_v29 = vld [vmem:[%s20028_s17 + $0x1608] ss:$16 sps:$4 sm:$0xff]   ;;  %v18478_v5 = vld [vmem:[%s20028_s17 + $0x144c] ss:$16 sps:$4 sm:$0xff]  }
 0x69f   : > { %11991 = vmatpush1.bf16.msra.mxu0 %v18404_v61  ;;  %v18472_v61 = vld [vmem:[%s20028_s17 + $0x142c] ss:$16 sps:$4 sm:$0xff]   ;;  %v18470_v1 = vld [vmem:[%s20028_s17 + $0x1428] ss:$16 sps:$4 sm:$0xff]  }
 0x6a0   : > { %12032 = vmatpush1.bf16.msra.mxu1 %v18407_v63  ;;  %11992 = vmatprep.subr.bf16.mxu0 %v18412_v10  ;;  %v18475_v63 = vld [vmem:[%s20028_s17 + $0x162c] ss:$16 sps:$4 sm:$0xff]   ;;  %v18473_v2 = vld [vmem:[%s20028_s17 + $0x1628] ss:$16 sps:$4 sm:$0xff]  }
 0x6a1   : > { %12033 = vmatprep.subr.bf16.mxu1 %v18415_v13  ;;  %v18481_v7 = vld [vmem:[%s20028_s17 + $0x164c] ss:$16 sps:$4 sm:$0xff]   ;;  %v18485_v10 = vld [vmem:[%s20028_s17 + $0x1668] ss:$16 sps:$4 sm:$0xff]  }
 0x6a2   : > { %v18484_v36 = vld [vmem:[%s20028_s17 + $0x146c] ss:$16 sps:$4 sm:$0xff]  }
 0x6a3   : > { %11993 = vmatpush1.bf16.msra.mxu0 %v18410_v17  ;;  %v18487_v12 = vld [vmem:[%s20028_s17 + $0x166c] ss:$16 sps:$4 sm:$0xff]   ;;  %v18488_v17 = vld [vmem:[%s20028_s17 + $0x1488] ss:$16 sps:$4 sm:$0xff]  }
 0x6a4   : > { %12034 = vmatpush1.bf16.msra.mxu1 %v18413_v18  ;;  %11994 = vmatprep.subr.bf16.mxu0 %v18418_v46  ;;  %v18493_v13 = vld [vmem:[%s20028_s17 + $0x168c] ss:$16 sps:$4 sm:$0xff]   ;;  %v18491_v18 = vld [vmem:[%s20028_s17 + $0x1688] ss:$16 sps:$4 sm:$0xff]  }
 0x6a5   : > { %12035 = vmatprep.subr.bf16.mxu1 %v18421_v20  ;;  %v18496_v46 = vld [vmem:[%s20028_s17 + $0x14ac] ss:$16 sps:$4 sm:$0xff]  }
 0x6a6   : > { %v18499_v20 = vld [vmem:[%s20028_s17 + $0x16ac] ss:$16 sps:$4 sm:$0xff]  }
 0x6a7   : > { %11995 = vmatpush1.bf16.msra.mxu0 %v18416_v47  ;;  %v18494_v47 = vld [vmem:[%s20028_s17 + $0x14a8] ss:$16 sps:$4 sm:$0xff]  }
 0x6a8   : > { %12036 = vmatpush1.bf16.msra.mxu1 %v18419_v22  ;;  %11996 = vmatprep.subr.bf16.mxu0 %v18424_v23  ;;  %v18497_v22 = vld [vmem:[%s20028_s17 + $0x16a8] ss:$16 sps:$4 sm:$0xff]   ;;  %v18502_v23 = vld [vmem:[%s20028_s17 + $0x14cc] ss:$16 sps:$4 sm:$0xff]  }
 0x6a9   : > { %12037 = vmatprep.subr.bf16.mxu1 %v18427_v24  ;;  %v18505_v24 = vld [vmem:[%s20028_s17 + $0x16cc] ss:$16 sps:$4 sm:$0xff]  }
 0x6ab   : > { %11997 = vmatpush1.bf16.msra.mxu0 %v18422_v51 }
 0x6ac   : > { %12038 = vmatpush1.bf16.msra.mxu1 %v18425_v25  ;;  %11998 = vmatprep.subr.bf16.mxu0 %v18430_v28  ;;  %v18500_v28 = vld [vmem:[%s20028_s17 + $0x14c8] ss:$16 sps:$4 sm:$0xff]  }
 0x6ad   : > { %12039 = vmatprep.subr.bf16.mxu1 %v18433_v52  ;;  %v18503_v52 = vld [vmem:[%s20028_s17 + $0x16c8] ss:$16 sps:$4 sm:$0xff]  }
 0x6af   : > { %11999 = vmatpush1.bf16.msra.mxu0 %v18428_v31 }
 0x6b0   : > { %12040 = vmatpush1.bf16.msra.mxu1 %v18431_v30  ;;  %12000 = vmatprep.subr.bf16.mxu0 %v18436_v33 }
 0x6b1   : > { %12041 = vmatprep.subr.bf16.mxu1 %v18439_v34 }
 0x6b3   : > { %12001 = vmatpush1.bf16.msra.mxu0 %v18434_v35 }
 0x6b4   : > { %12042 = vmatpush1.bf16.msra.mxu1 %v18437_v37  ;;  %12002 = vmatprep.subr.bf16.mxu0 %v18442_v40 }
 0x6b5   : > { %12043 = vmatprep.subr.bf16.mxu1 %v18445_v41 }
 0x6b7   : > { %12003 = vmatpush1.bf16.msra.mxu0 %v18440_v42 }
 0x6b8   : > { %12044 = vmatpush1.bf16.msra.mxu1 %v18443_v43  ;;  %12004 = vmatprep.subr.bf16.mxu0 %v18448_v44  ;;  %v18511_v43 = vld [vmem:[%s20028_s17 + $0x16ec] ss:$16 sps:$4 sm:$0xff]  }
 0x6b9   : > { %12045 = vmatprep.subr.bf16.mxu1 %v18451_v19  ;;  %v18509_v19 = vld [vmem:[%s20028_s17 + $0x16e8] ss:$16 sps:$4 sm:$0xff]  }
 0x6bb   : > { %12005 = vmatpush1.bf16.msra.mxu0 %v18446_v57  ;;  %v18514_v57 = vld [vmem:[%s20028_s17 + $0x150c] ss:$16 sps:$4 sm:$0xff]  }
 0x6bc   : > { %12046 = vmatpush1.bf16.msra.mxu1 %v18449_v21  ;;  %12006 = vmatprep.subr.bf16.mxu0 %v18454_v15  ;;  %v18517_v21 = vld [vmem:[%s20028_s17 + $0x170c] ss:$16 sps:$4 sm:$0xff]   ;;  %v18512_v15 = vld [vmem:[%s20028_s17 + $0x1508] ss:$16 sps:$4 sm:$0xff]  }
 0x6bd   : > { %12047 = vmatprep.subr.bf16.mxu1 %v18457_v54  ;;  %v18515_v54 = vld [vmem:[%s20028_s17 + $0x1708] ss:$16 sps:$4 sm:$0xff]  }
 0x6bf   : > { %12007 = vmatpush1.bf16.msra.mxu0 %v18452_v45  ;;  %v18520_v45 = vld [vmem:[%s20028_s17 + $0x152c] ss:$16 sps:$4 sm:$0xff]  }
 0x6c0   : > { %12048 = vmatpush1.bf16.msra.mxu1 %v18455_v48  ;;  %12008 = vmatprep.subr.bf16.mxu0 %v18460_v50  ;;  %v18523_v48 = vld [vmem:[%s20028_s17 + $0x172c] ss:$16 sps:$4 sm:$0xff]   ;;  %v18518_v50 = vld [vmem:[%s20028_s17 + $0x1528] ss:$16 sps:$4 sm:$0xff]  }
 0x6c1   : > { %12049 = vmatprep.subr.bf16.mxu1 %v18463_v53  ;;  %v18521_v53 = vld [vmem:[%s20028_s17 + $0x1728] ss:$16 sps:$4 sm:$0xff]  }
 0x6c3   : > { %12009 = vmatpush1.bf16.msra.mxu0 %v18458_v56  ;;  %v18526_v56 = vld [vmem:[%s20028_s17 + $0x154c] ss:$16 sps:$4 sm:$0xff]  }
 0x6c4   : > { %12050 = vmatpush1.bf16.msra.mxu1 %v18461_v27  ;;  %12060 = vmatprep.subr.bf16.mxu0 %v18466_v58  ;;  %v18529_v27 = vld [vmem:[%s20028_s17 + $0x174c] ss:$16 sps:$4 sm:$0xff]   ;;  %v18524_v58 = vld [vmem:[%s20028_s17 + $0x1548] ss:$16 sps:$4 sm:$0xff]  }
 0x6c5   : > { %12101 = vmatprep.subr.bf16.mxu1 %v18469_v59  ;;  %v18527_v59 = vld [vmem:[%s20028_s17 + $0x1748] ss:$16 sps:$4 sm:$0xff]  }
 0x6c6   : > { %12011 = vmatmul.mubr.bf16.vlgmr.msra.gmra.mrb[16].mxu0 %v21322_v38  ;;  %v18476_v38 = vld [vmem:[%s20028_s17 + $0x1448] ss:$16 sps:$4 sm:$0xff]  }
 0x6c7   : > { %12052 = vmatmul.mubr.bf16.vlgmr.msra.gmra.mrb[16].mxu1 %v21324_v39  ;;  %12061 = vmatpush1.bf16.msra.mxu0 %v18464_v32  ;;  %v18479_v39 = vld [vmem:[%s20028_s17 + $0x1648] ss:$16 sps:$4 sm:$0xff]   ;;  %v18532_v32 = vld [vmem:[%s20028_s17 + $0x156c] ss:$16 sps:$4 sm:$0xff]  }
 0x6c8   : > { %12102 = vmatpush1.bf16.msra.mxu1 %v18467_v29  ;;  %12062 = vmatprep.subr.bf16.mxu0 %v18472_v61  ;;  %v18535_v29 = vld [vmem:[%s20028_s17 + $0x176c] ss:$16 sps:$4 sm:$0xff]   ;;  %v18530_v61 = vld [vmem:[%s20028_s17 + $0x1568] ss:$16 sps:$4 sm:$0xff]  }
 0x6c9   : > { %12103 = vmatprep.subr.bf16.mxu1 %v18475_v63  ;;  %12092 = vmatprep.mubr.bf16.mxu0 %v21354_v3  ;;  %v18482_v3 = vld [vmem:[%s20028_s17 + $0x1468] ss:$16 sps:$4 sm:$0xff]  }
 0x6ca   : > { %12133 = vmatprep.mubr.bf16.mxu1 %v21357_v6  ;;  %v18490_v6 = vld [vmem:[%s20028_s17 + $0x148c] ss:$16 sps:$4 sm:$0xff]   ;;  %v18533_v63 = vld [vmem:[%s20028_s17 + $0x1768] ss:$16 sps:$4 sm:$0xff]  }
 0x6cb   : > { %12063 = vmatpush1.bf16.msra.mxu0 %v18470_v1  ;;  %v18538_v1 = vld [vmem:[%s20028_s17 + $0x158c] ss:$16 sps:$4 sm:$0xff]  }
 0x6cc   : > { %12104 = vmatpush1.bf16.msra.mxu1 %v18473_v2  ;;  %12064 = vmatprep.subr.bf16.mxu0 %v18478_v5  ;;  %v18541_v2 = vld [vmem:[%s20028_s17 + $0x178c] ss:$16 sps:$4 sm:$0xff]   ;;  %v18536_v5 = vld [vmem:[%s20028_s17 + $0x1588] ss:$16 sps:$4 sm:$0xff]  }
 0x6cd   : > { %12105 = vmatprep.subr.bf16.mxu1 %v18481_v7  ;;  %v18539_v7 = vld [vmem:[%s20028_s17 + $0x1788] ss:$16 sps:$4 sm:$0xff]  }
 0x6cf   : > { %12065 = vmatpush1.bf16.msra.mxu0 %v18476_v38  ;;  %v18544_v38 = vld [vmem:[%s20028_s17 + $0x15ac] ss:$16 sps:$4 sm:$0xff]  }
 0x6d0   : > { %12106 = vmatpush1.bf16.msra.mxu1 %v18479_v39  ;;  %12066 = vmatprep.subr.bf16.mxu0 %v18484_v36  ;;  %v18547_v39 = vld [vmem:[%s20028_s17 + $0x17ac] ss:$16 sps:$4 sm:$0xff]   ;;  %v18542_v36 = vld [vmem:[%s20028_s17 + $0x15a8] ss:$16 sps:$4 sm:$0xff]  }
 0x6d1   : > { %12107 = vmatprep.subr.bf16.mxu1 %v18487_v12  ;;  %v18545_v12 = vld [vmem:[%s20028_s17 + $0x17a8] ss:$16 sps:$4 sm:$0xff]  }
 0x6d3   : > { %12067 = vmatpush1.bf16.msra.mxu0 %v18482_v3  ;;  %v18550_v3 = vld [vmem:[%s20028_s17 + $0x15cc] ss:$16 sps:$4 sm:$0xff]  }
 0x6d4   : > { %12108 = vmatpush1.bf16.msra.mxu1 %v18485_v10  ;;  %12068 = vmatprep.subr.bf16.mxu0 %v18490_v6  ;;  %v18553_v10 = vld [vmem:[%s20028_s17 + $0x17cc] ss:$16 sps:$4 sm:$0xff]   ;;  %v18548_v6 = vld [vmem:[%s20028_s17 + $0x15c8] ss:$16 sps:$4 sm:$0xff]  }
 0x6d5   : > { %12109 = vmatprep.subr.bf16.mxu1 %v18493_v13  ;;  %v18551_v13 = vld [vmem:[%s20028_s17 + $0x17c8] ss:$16 sps:$4 sm:$0xff]  }
 0x6d7   : > { %12069 = vmatpush1.bf16.msra.mxu0 %v18488_v17  ;;  %v18556_v17 = vld [vmem:[%s20028_s17 + $0x15ec] ss:$16 sps:$4 sm:$0xff]  }
 0x6d8   : > { %12110 = vmatpush1.bf16.msra.mxu1 %v18491_v18  ;;  %12070 = vmatprep.subr.bf16.mxu0 %v18496_v46  ;;  %v18559_v18 = vld [vmem:[%s20028_s17 + $0x17ec] ss:$16 sps:$4 sm:$0xff]   ;;  %v18554_v46 = vld [vmem:[%s20028_s17 + $0x15e8] ss:$16 sps:$4 sm:$0xff]  }
 0x6d9   : > { %12111 = vmatprep.subr.bf16.mxu1 %v18499_v20  ;;  %v11766_v51 = vpop.f32.mrb[4].mxu0  ;;  %v18557_v20 = vld [vmem:[%s20028_s17 + $0x17e8] ss:$16 sps:$4 sm:$0xff]  }
 0x6da   : > { %v11807_v25 = vpop.f32.mrb[4].mxu1  ;;  %v11767_v31 = vadd.f32 %v11766_v51, %v21584_v0  ;;  %v11768_v30 = vpop.f32.mrb[5].mxu0  ;;  %v18508_v0 = vld [vmem:[%s20028_s17 + $0x14ec] ss:$16 sps:$4 sm:$0xff]  }
 0x6db   : > { %v11809_v33 = vpop.f32.mrb[5].mxu1  ;;  %v11769_v34 = vadd.f32 %v11768_v30, %v21586_v4  ;;  %v11770_v35 = vpop.f32.mrb[6].mxu0  ;;  %12071 = vmatpush1.bf16.msra.mxu0 %v18494_v47  ;;  %v18506_v4 = vld [vmem:[%s20028_s17 + $0x14e8] ss:$16 sps:$4 sm:$0xff]   ;;  %v18562_v47 = vld [vmem:[%s20028_s17 + $0x180c] ss:$16 sps:$4 sm:$0xff]  }
 0x6dc   : > { %v11811_v37 = vpop.f32.mrb[6].mxu1  ;;  %12112 = vmatpush1.bf16.msra.mxu1 %v18497_v22  ;;  %v21658_v40 = vadd.f32 %v11807_v25, %v11767_v31  ;;  %v11771_v41 = vpop.f32.mrb[7].mxu0  ;;  %12072 = vmatprep.subr.bf16.mxu0 %v18502_v23  ;;  %v18565_v22 = vld [vmem:[%s20028_s17 + $0x1a0c] ss:$16 sps:$4 sm:$0xff]   ;;  %v18560_v23 = vld [vmem:[%s20028_s17 + $0x1808] ss:$16 sps:$4 sm:$0xff]  }
 0x6dd   : > { %v11812_v42 = vpop.f32.mrb[7].mxu1  ;;  %12113 = vmatprep.subr.bf16.mxu1 %v18505_v24  ;;  %v21662_v44 = vadd.f32 %v11809_v33, %v11769_v34  ;;  %v18563_v24 = vld [vmem:[%s20028_s17 + $0x1a08] ss:$16 sps:$4 sm:$0xff]   ;;  %v18568_v51 = vld [vmem:[%s20028_s17 + $0x182c] ss:$16 sps:$4 sm:$0xff]  }
 0x6de   : > { %v18571_v25 = vld [vmem:[%s20028_s17 + $0x1a2c] ss:$16 sps:$4 sm:$0xff]   ;;  %v18581_v35 = vld [vmem:[%s20028_s17 + $0x1a68] ss:$16 sps:$4 sm:$0xff]  }
 0x6df   : > { %12073 = vmatpush1.bf16.msra.mxu0 %v18500_v28  ;;  %v18566_v28 = vld [vmem:[%s20028_s17 + $0x1828] ss:$16 sps:$4 sm:$0xff]   ;;  %v18574_v31 = vld [vmem:[%s20028_s17 + $0x184c] ss:$16 sps:$4 sm:$0xff]  }
 0x6e0   : > { %12114 = vmatpush1.bf16.msra.mxu1 %v18503_v52  ;;  %12074 = vmatprep.subr.bf16.mxu0 %v18508_v0  ;;  %v18569_v52 = vld [vmem:[%s20028_s17 + $0x1a28] ss:$16 sps:$4 sm:$0xff]   ;;  %v18577_v30 = vld [vmem:[%s20028_s17 + $0x1a4c] ss:$16 sps:$4 sm:$0xff]  }
 0x6e1   : > { %12115 = vmatprep.subr.bf16.mxu1 %v18511_v43  ;;  %v18580_v33 = vld [vmem:[%s20028_s17 + $0x186c] ss:$16 sps:$4 sm:$0xff]   ;;  %v18584_v41 = vld [vmem:[%s20028_s17 + $0x1888] ss:$16 sps:$4 sm:$0xff]  }
 0x6e2   : > { %v18583_v34 = vld [vmem:[%s20028_s17 + $0x1a6c] ss:$16 sps:$4 sm:$0xff]   ;;  %v18587_v42 = vld [vmem:[%s20028_s17 + $0x1a88] ss:$16 sps:$4 sm:$0xff]  }
 0x6e3   : > { %12075 = vmatpush1.bf16.msra.mxu0 %v18506_v4  ;;  %v18589_v37 = vld [vmem:[%s20028_s17 + $0x1a8c] ss:$16 sps:$4 sm:$0xff]   ;;  %v18590_v4 = vld [vmem:[%s20028_s17 + $0x18a8] ss:$16 sps:$4 sm:$0xff]  }
 0x6e4   : > { %12116 = vmatpush1.bf16.msra.mxu1 %v18509_v19  ;;  %12076 = vmatprep.subr.bf16.mxu0 %v18514_v57  ;;  %v18592_v0 = vld [vmem:[%s20028_s17 + $0x18ac] ss:$16 sps:$4 sm:$0xff]   ;;  %v18593_v19 = vld [vmem:[%s20028_s17 + $0x1aa8] ss:$16 sps:$4 sm:$0xff]  }
 0x6e5   : > { %12117 = vmatprep.subr.bf16.mxu1 %v18517_v21  ;;  %v18595_v43 = vld [vmem:[%s20028_s17 + $0x1aac] ss:$16 sps:$4 sm:$0xff]  }
 0x6e6   : > { %v18598_v57 = vld [vmem:[%s20028_s17 + $0x18cc] ss:$16 sps:$4 sm:$0xff]  }
 0x6e7   : > { %12077 = vmatpush1.bf16.msra.mxu0 %v18512_v15  ;;  %v18601_v21 = vld [vmem:[%s20028_s17 + $0x1acc] ss:$16 sps:$4 sm:$0xff]  }
 0x6e8   : > { %12118 = vmatpush1.bf16.msra.mxu1 %v18515_v54  ;;  %12078 = vmatprep.subr.bf16.mxu0 %v18520_v45  ;;  %v18596_v45 = vld [vmem:[%s20028_s17 + $0x18c8] ss:$16 sps:$4 sm:$0xff]  }
 0x6e9   : > { %12119 = vmatprep.subr.bf16.mxu1 %v18523_v48  ;;  %v18599_v48 = vld [vmem:[%s20028_s17 + $0x1ac8] ss:$16 sps:$4 sm:$0xff]  }
 0x6eb   : > { %12079 = vmatpush1.bf16.msra.mxu0 %v18518_v50 }
 0x6ec   : > { %12120 = vmatpush1.bf16.msra.mxu1 %v18521_v53  ;;  %12080 = vmatprep.subr.bf16.mxu0 %v18526_v56 }
 0x6ed   : > { %12121 = vmatprep.subr.bf16.mxu1 %v18529_v27 }
 0x6ef   : > { %12081 = vmatpush1.bf16.msra.mxu0 %v18524_v58 }
 0x6f0   : > { %12122 = vmatpush1.bf16.msra.mxu1 %v18527_v59  ;;  %12082 = vmatprep.subr.bf16.mxu0 %v18532_v32 }
 0x6f1   : > { %12123 = vmatprep.subr.bf16.mxu1 %v18535_v29 }
 0x6f3   : > { %12083 = vmatpush1.bf16.msra.mxu0 %v18530_v61 }
 0x6f4   : > { %12124 = vmatpush1.bf16.msra.mxu1 %v18533_v63  ;;  %12084 = vmatprep.subr.bf16.mxu0 %v18538_v1  ;;  %v18607_v63 = vld [vmem:[%s20028_s17 + $0x1aec] ss:$16 sps:$4 sm:$0xff]  }
 0x6f5   : > { %12125 = vmatprep.subr.bf16.mxu1 %v18541_v2  ;;  %v18605_v2 = vld [vmem:[%s20028_s17 + $0x1ae8] ss:$16 sps:$4 sm:$0xff]  }
 0x6f7   : > { %12085 = vmatpush1.bf16.msra.mxu0 %v18536_v5  ;;  %v18610_v5 = vld [vmem:[%s20028_s17 + $0x190c] ss:$16 sps:$4 sm:$0xff]  }
 0x6f8   : > { %12126 = vmatpush1.bf16.msra.mxu1 %v18539_v7  ;;  %12086 = vmatprep.subr.bf16.mxu0 %v18544_v38  ;;  %v18613_v7 = vld [vmem:[%s20028_s17 + $0x1b0c] ss:$16 sps:$4 sm:$0xff]   ;;  %v18608_v38 = vld [vmem:[%s20028_s17 + $0x1908] ss:$16 sps:$4 sm:$0xff]  }
 0x6f9   : > { %12127 = vmatprep.subr.bf16.mxu1 %v18547_v39  ;;  %v18611_v39 = vld [vmem:[%s20028_s17 + $0x1b08] ss:$16 sps:$4 sm:$0xff]  }
 0x6fb   : > { %12087 = vmatpush1.bf16.msra.mxu0 %v18542_v36  ;;  %v18616_v36 = vld [vmem:[%s20028_s17 + $0x192c] ss:$16 sps:$4 sm:$0xff]  }
 0x6fc   : > { %12128 = vmatpush1.bf16.msra.mxu1 %v18545_v12  ;;  %12088 = vmatprep.subr.bf16.mxu0 %v18550_v3  ;;  %v18619_v12 = vld [vmem:[%s20028_s17 + $0x1b2c] ss:$16 sps:$4 sm:$0xff]   ;;  %v18614_v3 = vld [vmem:[%s20028_s17 + $0x1928] ss:$16 sps:$4 sm:$0xff]  }
 0x6fd   : > { %12129 = vmatprep.subr.bf16.mxu1 %v18553_v10  ;;  %v18617_v10 = vld [vmem:[%s20028_s17 + $0x1b28] ss:$16 sps:$4 sm:$0xff]  }
 0x6ff   : > { %12089 = vmatpush1.bf16.msra.mxu0 %v18548_v6  ;;  %v18622_v6 = vld [vmem:[%s20028_s17 + $0x194c] ss:$16 sps:$4 sm:$0xff]  }
 0x700   : > { %12130 = vmatpush1.bf16.msra.mxu1 %v18551_v13  ;;  %12090 = vmatprep.subr.bf16.mxu0 %v18556_v17  ;;  %v18625_v13 = vld [vmem:[%s20028_s17 + $0x1b4c] ss:$16 sps:$4 sm:$0xff]   ;;  %v18620_v17 = vld [vmem:[%s20028_s17 + $0x1948] ss:$16 sps:$4 sm:$0xff]  }
 0x701   : > { %12131 = vmatprep.subr.bf16.mxu1 %v18559_v18  ;;  %v18623_v18 = vld [vmem:[%s20028_s17 + $0x1b48] ss:$16 sps:$4 sm:$0xff]  }
 0x703   : > { %12091 = vmatpush1.bf16.msra.mxu0 %v18554_v46  ;;  %v18628_v46 = vld [vmem:[%s20028_s17 + $0x196c] ss:$16 sps:$4 sm:$0xff]  }
 0x704   : > { %12132 = vmatpush1.bf16.msra.mxu1 %v18557_v20  ;;  %12142 = vmatprep.subr.bf16.mxu0 %v18562_v47  ;;  %v18631_v20 = vld [vmem:[%s20028_s17 + $0x1b6c] ss:$16 sps:$4 sm:$0xff]   ;;  %v18626_v47 = vld [vmem:[%s20028_s17 + $0x1968] ss:$16 sps:$4 sm:$0xff]  }
 0x705   : > { %12183 = vmatprep.subr.bf16.mxu1 %v18565_v22  ;;  %v18629_v22 = vld [vmem:[%s20028_s17 + $0x1b68] ss:$16 sps:$4 sm:$0xff]  }
 0x706   : > { %12093 = vmatmul.mubr.bf16.vlgmr.msra.gmra.mrb[20].mxu0 %v21398_v26  ;;  %v18572_v26 = vld [vmem:[%s20028_s17 + $0x1848] ss:$16 sps:$4 sm:$0xff]  }
 0x707   : > { %12134 = vmatmul.mubr.bf16.vlgmr.msra.gmra.mrb[20].mxu1 %v21400_v49  ;;  %12143 = vmatpush1.bf16.msra.mxu0 %v18560_v23  ;;  %v18575_v49 = vld [vmem:[%s20028_s17 + $0x1a48] ss:$16 sps:$4 sm:$0xff]   ;;  %v18634_v23 = vld [vmem:[%s20028_s17 + $0x198c] ss:$16 sps:$4 sm:$0xff]  }
 0x708   : > { %12184 = vmatpush1.bf16.msra.mxu1 %v18563_v24  ;;  %12144 = vmatprep.subr.bf16.mxu0 %v18568_v51  ;;  %v18637_v24 = vld [vmem:[%s20028_s17 + $0x1b8c] ss:$16 sps:$4 sm:$0xff]   ;;  %v18632_v51 = vld [vmem:[%s20028_s17 + $0x1988] ss:$16 sps:$4 sm:$0xff]  }
 0x709   : > { %12185 = vmatprep.subr.bf16.mxu1 %v18571_v25  ;;  %12174 = vmatprep.mubr.bf16.mxu0 %v21410_v60  ;;  %v18578_v60 = vld [vmem:[%s20028_s17 + $0x1868] ss:$16 sps:$4 sm:$0xff]  }
 0x70a   : > { %12215 = vmatprep.mubr.bf16.mxu1 %v21413_v62  ;;  %v18586_v62 = vld [vmem:[%s20028_s17 + $0x188c] ss:$16 sps:$4 sm:$0xff]   ;;  %v18635_v25 = vld [vmem:[%s20028_s17 + $0x1b88] ss:$16 sps:$4 sm:$0xff]  }
 0x70b   : > { %12145 = vmatpush1.bf16.msra.mxu0 %v18566_v28  ;;  %v18640_v28 = vld [vmem:[%s20028_s17 + $0x19ac] ss:$16 sps:$4 sm:$0xff]  }
 0x70c   : > { %12186 = vmatpush1.bf16.msra.mxu1 %v18569_v52  ;;  %12146 = vmatprep.subr.bf16.mxu0 %v18574_v31  ;;  %v18643_v52 = vld [vmem:[%s20028_s17 + $0x1bac] ss:$16 sps:$4 sm:$0xff]   ;;  %v18638_v31 = vld [vmem:[%s20028_s17 + $0x19a8] ss:$16 sps:$4 sm:$0xff]  }
 0x70d   : > { %12187 = vmatprep.subr.bf16.mxu1 %v18577_v30  ;;  %v18641_v30 = vld [vmem:[%s20028_s17 + $0x1ba8] ss:$16 sps:$4 sm:$0xff]  }
 0x70f   : > { %12147 = vmatpush1.bf16.msra.mxu0 %v18572_v26  ;;  %v18646_v26 = vld [vmem:[%s20028_s17 + $0x19cc] ss:$16 sps:$4 sm:$0xff]  }
 0x710   : > { %12188 = vmatpush1.bf16.msra.mxu1 %v18575_v49  ;;  %12148 = vmatprep.subr.bf16.mxu0 %v18580_v33  ;;  %v18649_v49 = vld [vmem:[%s20028_s17 + $0x1bcc] ss:$16 sps:$4 sm:$0xff]   ;;  %v18644_v33 = vld [vmem:[%s20028_s17 + $0x19c8] ss:$16 sps:$4 sm:$0xff]  }
 0x711   : > { %12189 = vmatprep.subr.bf16.mxu1 %v18583_v34  ;;  %v18647_v34 = vld [vmem:[%s20028_s17 + $0x1bc8] ss:$16 sps:$4 sm:$0xff]  }
 0x713   : > { %12149 = vmatpush1.bf16.msra.mxu0 %v18578_v60  ;;  %v18652_v60 = vld [vmem:[%s20028_s17 + $0x19ec] ss:$16 sps:$4 sm:$0xff]  }
 0x714   : > { %12190 = vmatpush1.bf16.msra.mxu1 %v18581_v35  ;;  %12150 = vmatprep.subr.bf16.mxu0 %v18586_v62  ;;  %v18655_v35 = vld [vmem:[%s20028_s17 + $0x1bec] ss:$16 sps:$4 sm:$0xff]   ;;  %v18650_v62 = vld [vmem:[%s20028_s17 + $0x19e8] ss:$16 sps:$4 sm:$0xff]  }
 0x715   : > { %12191 = vmatprep.subr.bf16.mxu1 %v18589_v37  ;;  %v18653_v37 = vld [vmem:[%s20028_s17 + $0x1be8] ss:$16 sps:$4 sm:$0xff]  }
 0x717   : > { %12151 = vmatpush1.bf16.msra.mxu0 %v18584_v41  ;;  %v18658_v41 = vld [vmem:[%s20028_s17 + $0x1c0c] ss:$16 sps:$4 sm:$0xff]  }
 0x718   : > { %12192 = vmatpush1.bf16.msra.mxu1 %v18587_v42  ;;  %12152 = vmatprep.subr.bf16.mxu0 %v18592_v0  ;;  %v18661_v42 = vld [vmem:[%s20028_s17 + $0x1e0c] ss:$16 sps:$4 sm:$0xff]   ;;  %v18656_v0 = vld [vmem:[%s20028_s17 + $0x1c08] ss:$16 sps:$4 sm:$0xff]  }
 0x719   : > { %12193 = vmatprep.subr.bf16.mxu1 %v18595_v43  ;;  %v11848_v15 = vpop.f32.mrb[8].mxu0  ;;  %v18659_v43 = vld [vmem:[%s20028_s17 + $0x1e08] ss:$16 sps:$4 sm:$0xff]  }
 0x71a   : > { %v11889_v54 = vpop.f32.mrb[8].mxu1  ;;  %v11849_v50 = vadd.f32 %v11848_v15, %v21658_v40  ;;  %v11850_v53 = vpop.f32.mrb[9].mxu0  ;;  %v18604_v40 = vld [vmem:[%s20028_s17 + $0x18ec] ss:$16 sps:$4 sm:$0xff]  }
 0x71b   : > { %v11891_v56 = vpop.f32.mrb[9].mxu1  ;;  %v11851_v27 = vadd.f32 %v11850_v53, %v21662_v44  ;;  %v11852_v58 = vpop.f32.mrb[10].mxu0  ;;  %12153 = vmatpush1.bf16.msra.mxu0 %v18590_v4  ;;  %v18602_v44 = vld [vmem:[%s20028_s17 + $0x18e8] ss:$16 sps:$4 sm:$0xff]   ;;  %v18664_v4 = vld [vmem:[%s20028_s17 + $0x1c2c] ss:$16 sps:$4 sm:$0xff]  }
 0x71c   : > { %v11893_v59 = vpop.f32.mrb[10].mxu1  ;;  %12194 = vmatpush1.bf16.msra.mxu1 %v18593_v19  ;;  %v21732_v32 = vadd.f32 %v11889_v54, %v11849_v50  ;;  %v11853_v29 = vpop.f32.mrb[11].mxu0  ;;  %12154 = vmatprep.subr.bf16.mxu0 %v18598_v57  ;;  %v18667_v19 = vld [vmem:[%s20028_s17 + $0x1e2c] ss:$16 sps:$4 sm:$0xff]   ;;  %v18662_v57 = vld [vmem:[%s20028_s17 + $0x1c28] ss:$16 sps:$4 sm:$0xff]  }
 0x71d   : > { %v11894_v61 = vpop.f32.mrb[11].mxu1  ;;  %12195 = vmatprep.subr.bf16.mxu1 %v18601_v21  ;;  %v21736_v1 = vadd.f32 %v11891_v56, %v11851_v27  ;;  %v18665_v21 = vld [vmem:[%s20028_s17 + $0x1e28] ss:$16 sps:$4 sm:$0xff]   ;;  %v18670_v15 = vld [vmem:[%s20028_s17 + $0x1c4c] ss:$16 sps:$4 sm:$0xff]  }
 0x71e   : > { %v18673_v54 = vld [vmem:[%s20028_s17 + $0x1e4c] ss:$16 sps:$4 sm:$0xff]   ;;  %v18677_v50 = vld [vmem:[%s20028_s17 + $0x1e68] ss:$16 sps:$4 sm:$0xff]  }
 0x71f   : > { %12155 = vmatpush1.bf16.msra.mxu0 %v18596_v45  ;;  %v18676_v45 = vld [vmem:[%s20028_s17 + $0x1c6c] ss:$16 sps:$4 sm:$0xff]   ;;  %v18680_v56 = vld [vmem:[%s20028_s17 + $0x1c88] ss:$16 sps:$4 sm:$0xff]  }
 0x720   : > { %12196 = vmatpush1.bf16.msra.mxu1 %v18599_v48  ;;  %12156 = vmatprep.subr.bf16.mxu0 %v18604_v40  ;;  %v18679_v48 = vld [vmem:[%s20028_s17 + $0x1e6c] ss:$16 sps:$4 sm:$0xff]   ;;  %v18683_v27 = vld [vmem:[%s20028_s17 + $0x1e88] ss:$16 sps:$4 sm:$0xff]  }
 0x721   : > { %12197 = vmatprep.subr.bf16.mxu1 %v18607_v63  ;;  %v18685_v53 = vld [vmem:[%s20028_s17 + $0x1e8c] ss:$16 sps:$4 sm:$0xff]   ;;  %v18686_v29 = vld [vmem:[%s20028_s17 + $0x1ca8] ss:$16 sps:$4 sm:$0xff]  }
 0x722   : > { %v18688_v58 = vld [vmem:[%s20028_s17 + $0x1cac] ss:$16 sps:$4 sm:$0xff]   ;;  %v18689_v61 = vld [vmem:[%s20028_s17 + $0x1ea8] ss:$16 sps:$4 sm:$0xff]  }
 0x723   : > { %12157 = vmatpush1.bf16.msra.mxu0 %v18602_v44  ;;  %v18691_v59 = vld [vmem:[%s20028_s17 + $0x1eac] ss:$16 sps:$4 sm:$0xff]  }
 0x724   : > { %12198 = vmatpush1.bf16.msra.mxu1 %v18605_v2  ;;  %12158 = vmatprep.subr.bf16.mxu0 %v18610_v5  ;;  %v18694_v40 = vld [vmem:[%s20028_s17 + $0x1ccc] ss:$16 sps:$4 sm:$0xff]   ;;  %v18692_v5 = vld [vmem:[%s20028_s17 + $0x1cc8] ss:$16 sps:$4 sm:$0xff]  }
 0x725   : > { %12199 = vmatprep.subr.bf16.mxu1 %v18613_v7  ;;  %v18697_v63 = vld [vmem:[%s20028_s17 + $0x1ecc] ss:$16 sps:$4 sm:$0xff]   ;;  %v18695_v7 = vld [vmem:[%s20028_s17 + $0x1ec8] ss:$16 sps:$4 sm:$0xff]  }
 0x727   : > { %12159 = vmatpush1.bf16.msra.mxu0 %v18608_v38 }
 0x728   : > { %12200 = vmatpush1.bf16.msra.mxu1 %v18611_v39  ;;  %12160 = vmatprep.subr.bf16.mxu0 %v18616_v36 }
 0x729   : > { %12201 = vmatprep.subr.bf16.mxu1 %v18619_v12 }
 0x72b   : > { %12161 = vmatpush1.bf16.msra.mxu0 %v18614_v3 }
 0x72c   : > { %12202 = vmatpush1.bf16.msra.mxu1 %v18617_v10  ;;  %12162 = vmatprep.subr.bf16.mxu0 %v18622_v6 }
 0x72d   : > { %12203 = vmatprep.subr.bf16.mxu1 %v18625_v13 }
 0x72f   : > { %12163 = vmatpush1.bf16.msra.mxu0 %v18620_v17 }
 0x730   : > { %12204 = vmatpush1.bf16.msra.mxu1 %v18623_v18  ;;  %12164 = vmatprep.subr.bf16.mxu0 %v18628_v46  ;;  %v18703_v18 = vld [vmem:[%s20028_s17 + $0x1eec] ss:$16 sps:$4 sm:$0xff]  }
 0x731   : > { %12205 = vmatprep.subr.bf16.mxu1 %v18631_v20  ;;  %v18701_v20 = vld [vmem:[%s20028_s17 + $0x1ee8] ss:$16 sps:$4 sm:$0xff]  }
 0x733   : > { %12165 = vmatpush1.bf16.msra.mxu0 %v18626_v47  ;;  %v18706_v47 = vld [vmem:[%s20028_s17 + $0x1d0c] ss:$16 sps:$4 sm:$0xff]  }
 0x734   : > { %12206 = vmatpush1.bf16.msra.mxu1 %v18629_v22  ;;  %12166 = vmatprep.subr.bf16.mxu0 %v18634_v23  ;;  %v18709_v22 = vld [vmem:[%s20028_s17 + $0x1f0c] ss:$16 sps:$4 sm:$0xff]   ;;  %v18704_v23 = vld [vmem:[%s20028_s17 + $0x1d08] ss:$16 sps:$4 sm:$0xff]  }
 0x735   : > { %12207 = vmatprep.subr.bf16.mxu1 %v18637_v24  ;;  %v18707_v24 = vld [vmem:[%s20028_s17 + $0x1f08] ss:$16 sps:$4 sm:$0xff]  }
 0x737   : > { %12167 = vmatpush1.bf16.msra.mxu0 %v18632_v51  ;;  %v18712_v51 = vld [vmem:[%s20028_s17 + $0x1d2c] ss:$16 sps:$4 sm:$0xff]  }
 0x738   : > { %12208 = vmatpush1.bf16.msra.mxu1 %v18635_v25  ;;  %12168 = vmatprep.subr.bf16.mxu0 %v18640_v28  ;;  %v18715_v25 = vld [vmem:[%s20028_s17 + $0x1f2c] ss:$16 sps:$4 sm:$0xff]   ;;  %v18710_v28 = vld [vmem:[%s20028_s17 + $0x1d28] ss:$16 sps:$4 sm:$0xff]  }
 0x739   : > { %12209 = vmatprep.subr.bf16.mxu1 %v18643_v52  ;;  %v18713_v52 = vld [vmem:[%s20028_s17 + $0x1f28] ss:$16 sps:$4 sm:$0xff]  }
 0x73b   : > { %12169 = vmatpush1.bf16.msra.mxu0 %v18638_v31  ;;  %v18718_v31 = vld [vmem:[%s20028_s17 + $0x1d4c] ss:$16 sps:$4 sm:$0xff]  }
 0x73c   : > { %12210 = vmatpush1.bf16.msra.mxu1 %v18641_v30  ;;  %12170 = vmatprep.subr.bf16.mxu0 %v18646_v26  ;;  %v18721_v30 = vld [vmem:[%s20028_s17 + $0x1f4c] ss:$16 sps:$4 sm:$0xff]   ;;  %v18716_v26 = vld [vmem:[%s20028_s17 + $0x1d48] ss:$16 sps:$4 sm:$0xff]  }
 0x73d   : > { %12211 = vmatprep.subr.bf16.mxu1 %v18649_v49  ;;  %v18719_v49 = vld [vmem:[%s20028_s17 + $0x1f48] ss:$16 sps:$4 sm:$0xff]  }
 0x73f   : > { %12171 = vmatpush1.bf16.msra.mxu0 %v18644_v33  ;;  %v18724_v33 = vld [vmem:[%s20028_s17 + $0x1d6c] ss:$16 sps:$4 sm:$0xff]  }
 0x740   : > { %12212 = vmatpush1.bf16.msra.mxu1 %v18647_v34  ;;  %12172 = vmatprep.subr.bf16.mxu0 %v18652_v60  ;;  %v18727_v34 = vld [vmem:[%s20028_s17 + $0x1f6c] ss:$16 sps:$4 sm:$0xff]   ;;  %v18722_v60 = vld [vmem:[%s20028_s17 + $0x1d68] ss:$16 sps:$4 sm:$0xff]  }
 0x741   : > { %12213 = vmatprep.subr.bf16.mxu1 %v18655_v35  ;;  %v18725_v35 = vld [vmem:[%s20028_s17 + $0x1f68] ss:$16 sps:$4 sm:$0xff]  }
 0x743   : > { %12173 = vmatpush1.bf16.msra.mxu0 %v18650_v62  ;;  %v18730_v62 = vld [vmem:[%s20028_s17 + $0x1d8c] ss:$16 sps:$4 sm:$0xff]  }
 0x744   : > { %12214 = vmatpush1.bf16.msra.mxu1 %v18653_v37  ;;  %12224 = vmatprep.subr.bf16.mxu0 %v18658_v41  ;;  %v18733_v37 = vld [vmem:[%s20028_s17 + $0x1f8c] ss:$16 sps:$4 sm:$0xff]   ;;  %v18728_v41 = vld [vmem:[%s20028_s17 + $0x1d88] ss:$16 sps:$4 sm:$0xff]  }
 0x745   : > { %12265 = vmatprep.subr.bf16.mxu1 %v18661_v42  ;;  %v18731_v42 = vld [vmem:[%s20028_s17 + $0x1f88] ss:$16 sps:$4 sm:$0xff]  }
 0x746   : > { %12175 = vmatmul.mubr.bf16.vlgmr.msra.gmra.mrb[24].mxu0 %v21476_v8  ;;  %v18668_v8 = vld [vmem:[%s20028_s17 + $0x1c48] ss:$16 sps:$4 sm:$0xff]  }
 0x747   : > { %12216 = vmatmul.mubr.bf16.vlgmr.msra.gmra.mrb[24].mxu1 %v21478_v9  ;;  %12225 = vmatpush1.bf16.msra.mxu0 %v18656_v0  ;;  %v18671_v9 = vld [vmem:[%s20028_s17 + $0x1e48] ss:$16 sps:$4 sm:$0xff]   ;;  %v18736_v0 = vld [vmem:[%s20028_s17 + $0x1dac] ss:$16 sps:$4 sm:$0xff]  }
 0x748   : > { %12266 = vmatpush1.bf16.msra.mxu1 %v18659_v43  ;;  %12226 = vmatprep.subr.bf16.mxu0 %v18664_v4  ;;  %v18739_v43 = vld [vmem:[%s20028_s17 + $0x1fac] ss:$16 sps:$4 sm:$0xff]   ;;  %v18734_v4 = vld [vmem:[%s20028_s17 + $0x1da8] ss:$16 sps:$4 sm:$0xff]  }
 0x749   : > { %12267 = vmatprep.subr.bf16.mxu1 %v18667_v19  ;;  %12256 = vmatprep.mubr.bf16.mxu0 %v21482_v14  ;;  %v18674_v14 = vld [vmem:[%s20028_s17 + $0x1c68] ss:$16 sps:$4 sm:$0xff]  }
 0x74a   : > { %12297 = vmatprep.mubr.bf16.mxu1 %v21484_v16  ;;  %v18682_v16 = vld [vmem:[%s20028_s17 + $0x1c8c] ss:$16 sps:$4 sm:$0xff]   ;;  %v18737_v19 = vld [vmem:[%s20028_s17 + $0x1fa8] ss:$16 sps:$4 sm:$0xff]  }
 0x74b   : > { %12227 = vmatpush1.bf16.msra.mxu0 %v18662_v57  ;;  %v18742_v57 = vld [vmem:[%s20028_s17 + $0x1dcc] ss:$16 sps:$4 sm:$0xff]  }
 0x74c   : > { %12268 = vmatpush1.bf16.msra.mxu1 %v18665_v21  ;;  %12228 = vmatprep.subr.bf16.mxu0 %v18670_v15  ;;  %v18745_v21 = vld [vmem:[%s20028_s17 + $0x1fcc] ss:$16 sps:$4 sm:$0xff]   ;;  %v18740_v15 = vld [vmem:[%s20028_s17 + $0x1dc8] ss:$16 sps:$4 sm:$0xff]  }
 0x74d   : > { %12269 = vmatprep.subr.bf16.mxu1 %v18673_v54  ;;  %v18743_v54 = vld [vmem:[%s20028_s17 + $0x1fc8] ss:$16 sps:$4 sm:$0xff]  }
 0x74f   : > { %12229 = vmatpush1.bf16.msra.mxu0 %v18668_v8  ;;  %v18748_v8 = vld [vmem:[%s20028_s17 + $0x1dec] ss:$16 sps:$4 sm:$0xff]  }
 0x750   : > { %12270 = vmatpush1.bf16.msra.mxu1 %v18671_v9  ;;  %12230 = vmatprep.subr.bf16.mxu0 %v18676_v45  ;;  %v18751_v9 = vld [vmem:[%s20028_s17 + $0x1fec] ss:$16 sps:$4 sm:$0xff]   ;;  %v18746_v45 = vld [vmem:[%s20028_s17 + $0x1de8] ss:$16 sps:$4 sm:$0xff]  }
 0x751   : > { %12271 = vmatprep.subr.bf16.mxu1 %v18679_v48  ;;  %v18749_v48 = vld [vmem:[%s20028_s17 + $0x1fe8] ss:$16 sps:$4 sm:$0xff]  }
 0x753   : > { %12231 = vmatpush1.bf16.msra.mxu0 %v18674_v14  ;;  %v18754_v14 = vld [vmem:[%s20028_s17 + $0x4] ss:$16 sps:$4 sm:$0xff]  }
 0x754   : > { %12272 = vmatpush1.bf16.msra.mxu1 %v18677_v50  ;;  %12232 = vmatprep.subr.bf16.mxu0 %v18682_v16  ;;  %v18757_v50 = vld [vmem:[%s20028_s17 + $0x204] ss:$16 sps:$4 sm:$0xff]   ;;  %v8002_v16 = vld [vmem:[#allocation2 + $0x8] sm:$0xff] }
 0x755   : > { %12273 = vmatprep.subr.bf16.mxu1 %v18685_v53  ;;  %v8004_v53 = vld [vmem:[#allocation2 + $0x18] sm:$0xff] }
 0x757   : > { %12233 = vmatpush1.bf16.msra.mxu0 %v18680_v56  ;;  %v18752_v56 = vld [vmem:[%s20028_s17] ss:$16 sps:$4 sm:$0xff]  }
 0x758   : > { %12274 = vmatpush1.bf16.msra.mxu1 %v18683_v27  ;;  %12234 = vmatprep.subr.bf16.mxu0 %v18688_v58  ;;  %v18755_v27 = vld [vmem:[%s20028_s17 + $0x200] ss:$16 sps:$4 sm:$0xff]   ;;  %v18760_v58 = vld [vmem:[%s20028_s17 + $0x24] ss:$16 sps:$4 sm:$0xff]  }
 0x759   : > { %12275 = vmatprep.subr.bf16.mxu1 %v18691_v59  ;;  %v11930_v44 = vpop.f32.mrb[12].mxu0  ;;  %v18763_v59 = vld [vmem:[%s20028_s17 + $0x224] ss:$16 sps:$4 sm:$0xff]  }
 0x75a   : > { %v11971_v2 = vpop.f32.mrb[12].mxu1  ;;  %v11931_v38 = vadd.f32 %v11930_v44, %v21732_v32  ;;  %v11932_v39 = vpop.f32.mrb[13].mxu0  ;;  %v18700_v32 = vld [vmem:[%s20028_s17 + $0x1cec] ss:$16 sps:$4 sm:$0xff]   ;;  %v18766_v44 = vld [vmem:[%s20028_s17 + $0x44] ss:$16 sps:$4 sm:$0xff]  }
 0x75b   : > { %v11973_v36 = vpop.f32.mrb[13].mxu1  ;;  %v11933_v12 = vadd.f32 %v11932_v39, %v21736_v1  ;;  %v11934_v3 = vpop.f32.mrb[14].mxu0  ;;  %12235 = vmatpush1.bf16.msra.mxu0 %v18686_v29  ;;  %v18698_v1 = vld [vmem:[%s20028_s17 + $0x1ce8] ss:$16 sps:$4 sm:$0xff]   ;;  %v21852_v29 = vpack.c.bf16 %v8002_v16, %v8002_v16  ;;  %v18773_v39 = vld [vmem:[%s20028_s17 + $0x260] ss:$16 sps:$4 sm:$0xff]  }
 0x75c   : > { %v11975_v10 = vpop.f32.mrb[14].mxu1  ;;  %12276 = vmatpush1.bf16.msra.mxu1 %v18689_v61  ;;  %v21806_v6 = vadd.f32 %v11971_v2, %v11931_v38  ;;  %v11935_v13 = vpop.f32.mrb[15].mxu0  ;;  %12236 = vmatprep.subr.bf16.mxu0 %v18694_v40  ;;  %v21854_v61 = vpack.c.bf16 %v8004_v53, %v8004_v53  ;;  %v18758_v40 = vld [vmem:[%s20028_s17 + $0x20] ss:$16 sps:$4 sm:$0xff]   ;;  %v18769_v2 = vld [vmem:[%s20028_s17 + $0x244] ss:$16 sps:$4 sm:$0xff]  }
 0x75d   : > { %v11976_v17 = vpop.f32.mrb[15].mxu1  ;;  %12277 = vmatprep.subr.bf16.mxu1 %v18697_v63  ;;  %v21810_v46 = vadd.f32 %v11973_v36, %v11933_v12  ;;  %v18761_v63 = vld [vmem:[%s20028_s17 + $0x220] ss:$16 sps:$4 sm:$0xff]   ;;  %v18778_v36 = vld [vmem:[%s20028_s17 + $0x84] ss:$16 sps:$4 sm:$0xff]  }
 0x75e   : > { %v18770_v38 = vld [vmem:[%s20028_s17 + $0x60] ss:$16 sps:$4 sm:$0xff]   ;;  %v18781_v12 = vld [vmem:[%s20028_s17 + $0x284] ss:$16 sps:$4 sm:$0xff]  }
 0x75f   : > { %12237 = vmatpush1.bf16.msra.mxu0 %v18692_v5  ;;  %v18772_v5 = vld [vmem:[%s20028_s17 + $0x64] ss:$16 sps:$4 sm:$0xff]   ;;  %v18776_v3 = vld [vmem:[%s20028_s17 + $0x80] ss:$16 sps:$4 sm:$0xff]  }
 0x760   : > { %12278 = vmatpush1.bf16.msra.mxu1 %v18695_v7  ;;  %12238 = vmatprep.subr.bf16.mxu0 %v18700_v32  ;;  %v18775_v7 = vld [vmem:[%s20028_s17 + $0x264] ss:$16 sps:$4 sm:$0xff]   ;;  %v18779_v10 = vld [vmem:[%s20028_s17 + $0x280] ss:$16 sps:$4 sm:$0xff]  }
 0x761   : > { %12279 = vmatprep.subr.bf16.mxu1 %v18703_v18  ;;  %v18784_v13 = vld [vmem:[%s20028_s17 + $0xa4] ss:$16 sps:$4 sm:$0xff]   ;;  %v18782_v32 = vld [vmem:[%s20028_s17 + $0xa0] ss:$16 sps:$4 sm:$0xff]  }
 0x762   : > { %v18787_v17 = vld [vmem:[%s20028_s17 + $0x2a4] ss:$16 sps:$4 sm:$0xff]   ;;  %v18785_v18 = vld [vmem:[%s20028_s17 + $0x2a0] ss:$16 sps:$4 sm:$0xff]  }
 0x763   : > { %12239 = vmatpush1.bf16.msra.mxu0 %v18698_v1  ;;  %v18790_v1 = vld [vmem:[%s20028_s17 + $0xc4] ss:$16 sps:$4 sm:$0xff]   ;;  %v18824_v16 = vld [vmem:[%s20028_s17 + $0x180] ss:$16 sps:$4 sm:$0xff]  }
 0x764   : > { %12280 = vmatpush1.bf16.msra.mxu1 %v18701_v20  ;;  %12240 = vmatprep.subr.bf16.mxu0 %v18706_v47  ;;  %v18793_v20 = vld [vmem:[%s20028_s17 + $0x2c4] ss:$16 sps:$4 sm:$0xff]   ;;  %v18827_v53 = vld [vmem:[%s20028_s17 + $0x380] ss:$16 sps:$4 sm:$0xff]  }
 0x765   : > { %12281 = vmatprep.subr.bf16.mxu1 %v18709_v22 }
 0x767   : > { %12241 = vmatpush1.bf16.msra.mxu0 %v18704_v23  ;;  %v18788_v23 = vld [vmem:[%s20028_s17 + $0xc0] ss:$16 sps:$4 sm:$0xff]  }
 0x768   : > { %12282 = vmatpush1.bf16.msra.mxu1 %v18707_v24  ;;  %12242 = vmatprep.subr.bf16.mxu0 %v18712_v51  ;;  %v18791_v24 = vld [vmem:[%s20028_s17 + $0x2c0] ss:$16 sps:$4 sm:$0xff]  }
 0x769   : > { %12283 = vmatprep.subr.bf16.mxu1 %v18715_v25 }
 0x76b   : > { %12243 = vmatpush1.bf16.msra.mxu0 %v18710_v28 }
 0x76c   : > { %12284 = vmatpush1.bf16.msra.mxu1 %v18713_v52  ;;  %12244 = vmatprep.subr.bf16.mxu0 %v18718_v31 }
 0x76d   : > { %12285 = vmatprep.subr.bf16.mxu1 %v18721_v30 }
 0x76f   : > { %12245 = vmatpush1.bf16.msra.mxu0 %v18716_v26 }
 0x770   : > { %12286 = vmatpush1.bf16.msra.mxu1 %v18719_v49  ;;  %12246 = vmatprep.subr.bf16.mxu0 %v18724_v33  ;;  %v18796_v33 = vld [vmem:[%s20028_s17 + $0xe4] ss:$16 sps:$4 sm:$0xff]  }
 0x771   : > { %12287 = vmatprep.subr.bf16.mxu1 %v18727_v34  ;;  %v18799_v34 = vld [vmem:[%s20028_s17 + $0x2e4] ss:$16 sps:$4 sm:$0xff]  }
 0x773   : > { %12247 = vmatpush1.bf16.msra.mxu0 %v18722_v60  ;;  %v18794_v60 = vld [vmem:[%s20028_s17 + $0xe0] ss:$16 sps:$4 sm:$0xff]  }
 0x774   : > { %12288 = vmatpush1.bf16.msra.mxu1 %v18725_v35  ;;  %12248 = vmatprep.subr.bf16.mxu0 %v18730_v62  ;;  %v18797_v35 = vld [vmem:[%s20028_s17 + $0x2e0] ss:$16 sps:$4 sm:$0xff]   ;;  %v18802_v62 = vld [vmem:[%s20028_s17 + $0x104] ss:$16 sps:$4 sm:$0xff]  }
 0x775   : > { %12289 = vmatprep.subr.bf16.mxu1 %v18733_v37  ;;  %v18805_v37 = vld [vmem:[%s20028_s17 + $0x304] ss:$16 sps:$4 sm:$0xff]  }
 0x777   : > { %12249 = vmatpush1.bf16.msra.mxu0 %v18728_v41  ;;  %v18800_v41 = vld [vmem:[%s20028_s17 + $0x100] ss:$16 sps:$4 sm:$0xff]  }
 0x778   : > { %12290 = vmatpush1.bf16.msra.mxu1 %v18731_v42  ;;  %12250 = vmatprep.subr.bf16.mxu0 %v18736_v0  ;;  %v18803_v42 = vld [vmem:[%s20028_s17 + $0x300] ss:$16 sps:$4 sm:$0xff]   ;;  %v18808_v0 = vld [vmem:[%s20028_s17 + $0x124] ss:$16 sps:$4 sm:$0xff]  }
 0x779   : > { %12291 = vmatprep.subr.bf16.mxu1 %v18739_v43  ;;  %v18811_v43 = vld [vmem:[%s20028_s17 + $0x324] ss:$16 sps:$4 sm:$0xff]  }
 0x77b   : > { %12251 = vmatpush1.bf16.msra.mxu0 %v18734_v4  ;;  %v18806_v4 = vld [vmem:[%s20028_s17 + $0x120] ss:$16 sps:$4 sm:$0xff]  }
 0x77c   : > { %12292 = vmatpush1.bf16.msra.mxu1 %v18737_v19  ;;  %12252 = vmatprep.subr.bf16.mxu0 %v18742_v57  ;;  %v18809_v19 = vld [vmem:[%s20028_s17 + $0x320] ss:$16 sps:$4 sm:$0xff]   ;;  %v18814_v57 = vld [vmem:[%s20028_s17 + $0x144] ss:$16 sps:$4 sm:$0xff]  }
 0x77d   : > { %12293 = vmatprep.subr.bf16.mxu1 %v18745_v21  ;;  %v18817_v21 = vld [vmem:[%s20028_s17 + $0x344] ss:$16 sps:$4 sm:$0xff]  }
 0x77f   : > { %12253 = vmatpush1.bf16.msra.mxu0 %v18740_v15  ;;  %v18812_v15 = vld [vmem:[%s20028_s17 + $0x140] ss:$16 sps:$4 sm:$0xff]  }
 0x780   : > { %12294 = vmatpush1.bf16.msra.mxu1 %v18743_v54  ;;  %12254 = vmatprep.subr.bf16.mxu0 %v18748_v8  ;;  %v18815_v54 = vld [vmem:[%s20028_s17 + $0x340] ss:$16 sps:$4 sm:$0xff]   ;;  %v18820_v8 = vld [vmem:[%s20028_s17 + $0x164] ss:$16 sps:$4 sm:$0xff]  }
 0x781   : > { %12295 = vmatprep.subr.bf16.mxu1 %v18751_v9  ;;  %v18823_v9 = vld [vmem:[%s20028_s17 + $0x364] ss:$16 sps:$4 sm:$0xff]  }
 0x783   : > { %12255 = vmatpush1.bf16.msra.mxu0 %v18746_v45  ;;  %v18818_v45 = vld [vmem:[%s20028_s17 + $0x160] ss:$16 sps:$4 sm:$0xff]  }
 0x784   : > { %12296 = vmatpush1.bf16.msra.mxu1 %v18749_v48  ;;  %14866 = vmatprep.subr.bf16.mxu0 %v18754_v14  ;;  %v18821_v48 = vld [vmem:[%s20028_s17 + $0x360] ss:$16 sps:$4 sm:$0xff]   ;;  %v18826_v14 = vld [vmem:[%s20028_s17 + $0x184] ss:$16 sps:$4 sm:$0xff]  }
 0x785   : > { %14907 = vmatprep.subr.bf16.mxu1 %v18757_v50  ;;  %v18829_v50 = vld [vmem:[%s20028_s17 + $0x384] ss:$16 sps:$4 sm:$0xff]  }
 0x786   : > { %12257 = vmatmul.mubr.bf16.vlgmr.msra.gmra.mrb[28].mxu0 %v21550_v11  ;;  %v18764_v11 = vld [vmem:[%s20028_s17 + $0x40] ss:$16 sps:$4 sm:$0xff]  }
 0x787   : > { %12298 = vmatmul.mubr.bf16.vlgmr.msra.gmra.mrb[28].mxu1 %v21552_v55  ;;  %14867 = vmatpush1.bf16.msra.mxu0 %v18752_v56  ;;  %v18767_v55 = vld [vmem:[%s20028_s17 + $0x240] ss:$16 sps:$4 sm:$0xff]   ;;  %v18832_v56 = vld [vmem:[%s20028_s17 + $0x1a4] ss:$16 sps:$4 sm:$0xff]  }
 0x788   : > { %14908 = vmatpush1.bf16.msra.mxu1 %v18755_v27  ;;  %14868 = vmatprep.subr.bf16.mxu0 %v18760_v58  ;;  %v18835_v27 = vld [vmem:[%s20028_s17 + $0x3a4] ss:$16 sps:$4 sm:$0xff]   ;;  %v18830_v58 = vld [vmem:[%s20028_s17 + $0x1a0] ss:$16 sps:$4 sm:$0xff]  }
 0x789   : > { %14909 = vmatprep.subr.bf16.mxu1 %v18763_v59  ;;  %14898 = vmatprep.mubr.bf16.mxu0 %v21852_v29  ;;  %v18833_v59 = vld [vmem:[%s20028_s17 + $0x3a0] ss:$16 sps:$4 sm:$0xff]  }
 0x78a   : > { %14939 = vmatprep.mubr.bf16.mxu1 %v21854_v61 }
 0x78b   : > { %14869 = vmatpush1.bf16.msra.mxu0 %v18758_v40  ;;  %v18838_v40 = vld [vmem:[%s20028_s17 + $0x1c4] ss:$16 sps:$4 sm:$0xff]  }
 0x78c   : > { %14910 = vmatpush1.bf16.msra.mxu1 %v18761_v63  ;;  %14870 = vmatprep.subr.bf16.mxu0 %v18766_v44  ;;  %v18841_v63 = vld [vmem:[%s20028_s17 + $0x3c4] ss:$16 sps:$4 sm:$0xff]   ;;  %v18836_v44 = vld [vmem:[%s20028_s17 + $0x1c0] ss:$16 sps:$4 sm:$0xff]  }
 0x78d   : > { %14911 = vmatprep.subr.bf16.mxu1 %v18769_v2  ;;  %v18839_v2 = vld [vmem:[%s20028_s17 + $0x3c0] ss:$16 sps:$4 sm:$0xff]  }
 0x78f   : > { %14871 = vmatpush1.bf16.msra.mxu0 %v18764_v11  ;;  %v18844_v11 = vld [vmem:[%s20028_s17 + $0x1e4] ss:$16 sps:$4 sm:$0xff]  }
 0x790   : > { %14912 = vmatpush1.bf16.msra.mxu1 %v18767_v55  ;;  %14872 = vmatprep.subr.bf16.mxu0 %v18772_v5  ;;  %v18847_v55 = vld [vmem:[%s20028_s17 + $0x3e4] ss:$16 sps:$4 sm:$0xff]   ;;  %v18842_v5 = vld [vmem:[%s20028_s17 + $0x1e0] ss:$16 sps:$4 sm:$0xff]  }
 0x791   : > { %14913 = vmatprep.subr.bf16.mxu1 %v18775_v7  ;;  %v18845_v7 = vld [vmem:[%s20028_s17 + $0x3e0] ss:$16 sps:$4 sm:$0xff]  }
 0x793   : > { %14873 = vmatpush1.bf16.msra.mxu0 %v18770_v38  ;;  %v8001_v38 = vld [vmem:[#allocation2] sm:$0xff] }
 0x794   : > { %14914 = vmatpush1.bf16.msra.mxu1 %v18773_v39  ;;  %14874 = vmatprep.subr.bf16.mxu0 %v18778_v36  ;;  %v8003_v39 = vld [vmem:[#allocation2 + $0x10] sm:$0xff] }
 0x795   : > { %14915 = vmatprep.subr.bf16.mxu1 %v18781_v12  ;;  %v18850_v36 = vld [vmem:[%s20028_s17 + $0x404] ss:$16 sps:$4 sm:$0xff]  }
 0x796   : > { %v18853_v12 = vld [vmem:[%s20028_s17 + $0x604] ss:$16 sps:$4 sm:$0xff]  }
 0x797   : > { %14875 = vmatpush1.bf16.msra.mxu0 %v18776_v3  ;;  %v21924_v3 = vpack.c.bf16 %v8001_v38, %v8001_v38  ;;  %v18910_v38 = vld [vmem:[%s20028_s17 + $0x544] ss:$16 sps:$4 sm:$0xff]  }
 0x798   : > { %14916 = vmatpush1.bf16.msra.mxu1 %v18779_v10  ;;  %14876 = vmatprep.subr.bf16.mxu0 %v18784_v13  ;;  %v21926_v10 = vpack.c.bf16 %v8003_v39, %v8003_v39  ;;  %v8006_v13 = vld [vmem:[#allocation2 + $0x28] sm:$0xff]  ;;  %v18913_v39 = vld [vmem:[%s20028_s17 + $0x744] ss:$16 sps:$4 sm:$0xff]  }
 0x799   : > { %14917 = vmatprep.subr.bf16.mxu1 %v18787_v17  ;;  %v12012_v47 = vpop.f32.mrb[16].mxu0  ;;  %v8008_v17 = vld [vmem:[#allocation2 + $0x38] sm:$0xff] }
 0x79a   : > { %v12053_v22 = vpop.f32.mrb[16].mxu1  ;;  %v12014_v25 = vpop.f32.mrb[17].mxu0 }
 0x79b   : > { %v21882_v51 = vadd.f32 %v12053_v22, %v12012_v47  ;;  %v12055_v28 = vpop.f32.mrb[17].mxu1  ;;  %v12016_v31 = vpop.f32.mrb[18].mxu0  ;;  %14877 = vmatpush1.bf16.msra.mxu0 %v18782_v32  ;;  %v18848_v32 = vld [vmem:[%s20028_s17 + $0x400] ss:$16 sps:$4 sm:$0xff]   ;;  %v21932_v47 = vpack.c.bf16 %v8006_v13, %v8006_v13  ;;  %v21934_v22 = vpack.c.bf16 %v8008_v17, %v8008_v17  ;;  %v18916_v13 = vld [vmem:[%s20028_s17 + $0x564] ss:$16 sps:$4 sm:$0xff]  }
 0x79c   : > { %v21884_v52 = vadd.f32 %v12055_v28, %v12014_v25  ;;  %v12057_v30 = vpop.f32.mrb[18].mxu1  ;;  %14918 = vmatpush1.bf16.msra.mxu1 %v18785_v18  ;;  %v12017_v26 = vpop.f32.mrb[19].mxu0  ;;  %14878 = vmatprep.subr.bf16.mxu0 %v18790_v1  ;;  %v18851_v18 = vld [vmem:[%s20028_s17 + $0x600] ss:$16 sps:$4 sm:$0xff]   ;;  %v18856_v1 = vld [vmem:[%s20028_s17 + $0x424] ss:$16 sps:$4 sm:$0xff]  }
 0x79d   : > { %v12058_v49 = vpop.f32.mrb[19].mxu1  ;;  %14919 = vmatprep.subr.bf16.mxu1 %v18793_v20  ;;  %v18859_v20 = vld [vmem:[%s20028_s17 + $0x624] ss:$16 sps:$4 sm:$0xff]   ;;  %v18860_v31 = vld [vmem:[%s20028_s17 + $0x440] ss:$16 sps:$4 sm:$0xff]  }
 0x79e   : > { %v18862_v25 = vld [vmem:[%s20028_s17 + $0x444] ss:$16 sps:$4 sm:$0xff]   ;;  %v18863_v30 = vld [vmem:[%s20028_s17 + $0x640] ss:$16 sps:$4 sm:$0xff]  }
 0x79f   : > { %14879 = vmatpush1.bf16.msra.mxu0 %v18788_v23  ;;  %v18854_v23 = vld [vmem:[%s20028_s17 + $0x420] ss:$16 sps:$4 sm:$0xff]   ;;  %v18865_v28 = vld [vmem:[%s20028_s17 + $0x644] ss:$16 sps:$4 sm:$0xff]  }
 0x7a0   : > { %14920 = vmatpush1.bf16.msra.mxu1 %v18791_v24  ;;  %14880 = vmatprep.subr.bf16.mxu0 %v18796_v33  ;;  %v18857_v24 = vld [vmem:[%s20028_s17 + $0x620] ss:$16 sps:$4 sm:$0xff]   ;;  %v18868_v26 = vld [vmem:[%s20028_s17 + $0x464] ss:$16 sps:$4 sm:$0xff]  }
 0x7a1   : > { %14921 = vmatprep.subr.bf16.mxu1 %v18799_v34  ;;  %v18871_v49 = vld [vmem:[%s20028_s17 + $0x664] ss:$16 sps:$4 sm:$0xff]   ;;  %v18866_v33 = vld [vmem:[%s20028_s17 + $0x460] ss:$16 sps:$4 sm:$0xff]  }
 0x7a2   : > { %v18869_v34 = vld [vmem:[%s20028_s17 + $0x660] ss:$16 sps:$4 sm:$0xff]   ;;  %v18919_v17 = vld [vmem:[%s20028_s17 + $0x764] ss:$16 sps:$4 sm:$0xff]  }
 0x7a3   : > { %14881 = vmatpush1.bf16.msra.mxu0 %v18794_v60  ;;  %v18874_v60 = vld [vmem:[%s20028_s17 + $0x484] ss:$16 sps:$4 sm:$0xff]  }
 0x7a4   : > { %14922 = vmatpush1.bf16.msra.mxu1 %v18797_v35  ;;  %14882 = vmatprep.subr.bf16.mxu0 %v18802_v62  ;;  %v18877_v35 = vld [vmem:[%s20028_s17 + $0x684] ss:$16 sps:$4 sm:$0xff]   ;;  %v18872_v62 = vld [vmem:[%s20028_s17 + $0x480] ss:$16 sps:$4 sm:$0xff]  }
 0x7a5   : > { %14923 = vmatprep.subr.bf16.mxu1 %v18805_v37  ;;  %v18875_v37 = vld [vmem:[%s20028_s17 + $0x680] ss:$16 sps:$4 sm:$0xff]  }
 0x7a7   : > { %14883 = vmatpush1.bf16.msra.mxu0 %v18800_v41  ;;  %v18880_v41 = vld [vmem:[%s20028_s17 + $0x4a4] ss:$16 sps:$4 sm:$0xff]  }
 0x7a8   : > { %14924 = vmatpush1.bf16.msra.mxu1 %v18803_v42  ;;  %14884 = vmatprep.subr.bf16.mxu0 %v18808_v0  ;;  %v18883_v42 = vld [vmem:[%s20028_s17 + $0x6a4] ss:$16 sps:$4 sm:$0xff]   ;;  %v18878_v0 = vld [vmem:[%s20028_s17 + $0x4a0] ss:$16 sps:$4 sm:$0xff]  }
 0x7a9   : > { %14925 = vmatprep.subr.bf16.mxu1 %v18811_v43  ;;  %v18881_v43 = vld [vmem:[%s20028_s17 + $0x6a0] ss:$16 sps:$4 sm:$0xff]  }
 0x7ab   : > { %14885 = vmatpush1.bf16.msra.mxu0 %v18806_v4  ;;  %v18886_v4 = vld [vmem:[%s20028_s17 + $0x4c4] ss:$16 sps:$4 sm:$0xff]  }
 0x7ac   : > { %14926 = vmatpush1.bf16.msra.mxu1 %v18809_v19  ;;  %14886 = vmatprep.subr.bf16.mxu0 %v18814_v57  ;;  %v18889_v19 = vld [vmem:[%s20028_s17 + $0x6c4] ss:$16 sps:$4 sm:$0xff]  }
 0x7ad   : > { %14927 = vmatprep.subr.bf16.mxu1 %v18817_v21 }
 0x7af   : > { %14887 = vmatpush1.bf16.msra.mxu0 %v18812_v15 }
 0x7b0   : > { %14928 = vmatpush1.bf16.msra.mxu1 %v18815_v54  ;;  %14888 = vmatprep.subr.bf16.mxu0 %v18820_v8 }
 0x7b1   : > { %14929 = vmatprep.subr.bf16.mxu1 %v18823_v9 }
 0x7b3   : > { %14889 = vmatpush1.bf16.msra.mxu0 %v18818_v45 }
 0x7b4   : > { %14930 = vmatpush1.bf16.msra.mxu1 %v18821_v48  ;;  %14890 = vmatprep.subr.bf16.mxu0 %v18826_v14  ;;  %v18884_v14 = vld [vmem:[%s20028_s17 + $0x4c0] ss:$16 sps:$4 sm:$0xff]  }
 0x7b5   : > { %14931 = vmatprep.subr.bf16.mxu1 %v18829_v50  ;;  %v18887_v50 = vld [vmem:[%s20028_s17 + $0x6c0] ss:$16 sps:$4 sm:$0xff]  }
 0x7b7   : > { %14891 = vmatpush1.bf16.msra.mxu0 %v18824_v16 }
 0x7b8   : > { %14932 = vmatpush1.bf16.msra.mxu1 %v18827_v53  ;;  %14892 = vmatprep.subr.bf16.mxu0 %v18832_v56 }
 0x7b9   : > { %14933 = vmatprep.subr.bf16.mxu1 %v18835_v27 }
 0x7bb   : > { %14893 = vmatpush1.bf16.msra.mxu0 %v18830_v58  ;;  %v18890_v58 = vld [vmem:[%s20028_s17 + $0x4e0] ss:$16 sps:$4 sm:$0xff]  }
 0x7bc   : > { %14934 = vmatpush1.bf16.msra.mxu1 %v18833_v59  ;;  %14894 = vmatprep.subr.bf16.mxu0 %v18838_v40  ;;  %v18893_v59 = vld [vmem:[%s20028_s17 + $0x6e0] ss:$16 sps:$4 sm:$0xff]   ;;  %v18898_v40 = vld [vmem:[%s20028_s17 + $0x504] ss:$16 sps:$4 sm:$0xff]  }
 0x7bd   : > { %14935 = vmatprep.subr.bf16.mxu1 %v18841_v63  ;;  %v18901_v63 = vld [vmem:[%s20028_s17 + $0x704] ss:$16 sps:$4 sm:$0xff]  }
 0x7bf   : > { %14895 = vmatpush1.bf16.msra.mxu0 %v18836_v44  ;;  %v18896_v44 = vld [vmem:[%s20028_s17 + $0x500] ss:$16 sps:$4 sm:$0xff]  }
 0x7c0   : > { %14936 = vmatpush1.bf16.msra.mxu1 %v18839_v2  ;;  %14896 = vmatprep.subr.bf16.mxu0 %v18844_v11  ;;  %v18899_v2 = vld [vmem:[%s20028_s17 + $0x700] ss:$16 sps:$4 sm:$0xff]   ;;  %v18904_v11 = vld [vmem:[%s20028_s17 + $0x524] ss:$16 sps:$4 sm:$0xff]  }
 0x7c1   : > { %14937 = vmatprep.subr.bf16.mxu1 %v18847_v55  ;;  %v18907_v55 = vld [vmem:[%s20028_s17 + $0x724] ss:$16 sps:$4 sm:$0xff]  }
 0x7c3   : > { %14897 = vmatpush1.bf16.msra.mxu0 %v18842_v5  ;;  %v18902_v5 = vld [vmem:[%s20028_s17 + $0x520] ss:$16 sps:$4 sm:$0xff]  }
 0x7c4   : > { %14938 = vmatpush1.bf16.msra.mxu1 %v18845_v7  ;;  %14948 = vmatprep.subr.bf16.mxu0 %v18850_v36  ;;  %v18905_v7 = vld [vmem:[%s20028_s17 + $0x720] ss:$16 sps:$4 sm:$0xff]  }
 0x7c5   : > { %14989 = vmatprep.subr.bf16.mxu1 %v18853_v12  ;;  %v18908_v36 = vld [vmem:[%s20028_s17 + $0x540] ss:$16 sps:$4 sm:$0xff]  }
 0x7c6   : > { %14899 = vmatmul.mubr.bf16.vlgmr.msra.gmra.mrb[32].mxu0 %v21924_v3  ;;  %v18911_v12 = vld [vmem:[%s20028_s17 + $0x740] ss:$16 sps:$4 sm:$0xff]  }
 0x7c7   : > { %14940 = vmatmul.mubr.bf16.vlgmr.msra.gmra.mrb[32].mxu1 %v21926_v10  ;;  %14949 = vmatpush1.bf16.msra.mxu0 %v18848_v32  ;;  %v18914_v32 = vld [vmem:[%s20028_s17 + $0x560] ss:$16 sps:$4 sm:$0xff]  }
 0x7c8   : > { %14990 = vmatpush1.bf16.msra.mxu1 %v18851_v18  ;;  %14950 = vmatprep.subr.bf16.mxu0 %v18856_v1  ;;  %v18917_v18 = vld [vmem:[%s20028_s17 + $0x760] ss:$16 sps:$4 sm:$0xff]   ;;  %v18922_v1 = vld [vmem:[%s20028_s17 + $0x584] ss:$16 sps:$4 sm:$0xff]  }
 0x7c9   : > { %14991 = vmatprep.subr.bf16.mxu1 %v18859_v20  ;;  %14980 = vmatprep.mubr.bf16.mxu0 %v21932_v47  ;;  %v18925_v20 = vld [vmem:[%s20028_s17 + $0x784] ss:$16 sps:$4 sm:$0xff]  }
 0x7ca   : > { %15021 = vmatprep.mubr.bf16.mxu1 %v21934_v22 }
 0x7cb   : > { %14951 = vmatpush1.bf16.msra.mxu0 %v18854_v23  ;;  %v18920_v23 = vld [vmem:[%s20028_s17 + $0x580] ss:$16 sps:$4 sm:$0xff]  }
 0x7cc   : > { %14992 = vmatpush1.bf16.msra.mxu1 %v18857_v24  ;;  %14952 = vmatprep.subr.bf16.mxu0 %v18862_v25  ;;  %v18923_v24 = vld [vmem:[%s20028_s17 + $0x780] ss:$16 sps:$4 sm:$0xff]   ;;  %v18928_v25 = vld [vmem:[%s20028_s17 + $0x5a4] ss:$16 sps:$4 sm:$0xff]  }
 0x7cd   : > { %14993 = vmatprep.subr.bf16.mxu1 %v18865_v28  ;;  %v18931_v28 = vld [vmem:[%s20028_s17 + $0x7a4] ss:$16 sps:$4 sm:$0xff]  }
 0x7cf   : > { %14953 = vmatpush1.bf16.msra.mxu0 %v18860_v31  ;;  %v18926_v31 = vld [vmem:[%s20028_s17 + $0x5a0] ss:$16 sps:$4 sm:$0xff]  }
 0x7d0   : > { %14994 = vmatpush1.bf16.msra.mxu1 %v18863_v30  ;;  %14954 = vmatprep.subr.bf16.mxu0 %v18868_v26  ;;  %v18929_v30 = vld [vmem:[%s20028_s17 + $0x7a0] ss:$16 sps:$4 sm:$0xff]   ;;  %v18934_v26 = vld [vmem:[%s20028_s17 + $0x5c4] ss:$16 sps:$4 sm:$0xff]  }
 0x7d1   : > { %14995 = vmatprep.subr.bf16.mxu1 %v18871_v49  ;;  %v18937_v49 = vld [vmem:[%s20028_s17 + $0x7c4] ss:$16 sps:$4 sm:$0xff]  }
 0x7d3   : > { %14955 = vmatpush1.bf16.msra.mxu0 %v18866_v33  ;;  %v18932_v33 = vld [vmem:[%s20028_s17 + $0x5c0] ss:$16 sps:$4 sm:$0xff]  }
 0x7d4   : > { %14996 = vmatpush1.bf16.msra.mxu1 %v18869_v34  ;;  %14956 = vmatprep.subr.bf16.mxu0 %v18874_v60  ;;  %v18935_v34 = vld [vmem:[%s20028_s17 + $0x7c0] ss:$16 sps:$4 sm:$0xff]   ;;  %v18940_v60 = vld [vmem:[%s20028_s17 + $0x5e4] ss:$16 sps:$4 sm:$0xff]  }
 0x7d5   : > { %14997 = vmatprep.subr.bf16.mxu1 %v18877_v35  ;;  %v18943_v35 = vld [vmem:[%s20028_s17 + $0x7e4] ss:$16 sps:$4 sm:$0xff]  }
 0x7d7   : > { %14957 = vmatpush1.bf16.msra.mxu0 %v18872_v62  ;;  %v18938_v62 = vld [vmem:[%s20028_s17 + $0x5e0] ss:$16 sps:$4 sm:$0xff]  }
 0x7d8   : > { %14998 = vmatpush1.bf16.msra.mxu1 %v18875_v37  ;;  %14958 = vmatprep.subr.bf16.mxu0 %v18880_v41  ;;  %v18941_v37 = vld [vmem:[%s20028_s17 + $0x7e0] ss:$16 sps:$4 sm:$0xff]  }
 0x7d9   : > { %14999 = vmatprep.subr.bf16.mxu1 %v18883_v42  ;;  %v12094_v57 = vpop.f32.mrb[20].mxu0  ;;  %v8005_v41 = vld [vmem:[#allocation2 + $0x20] sm:$0xff]  ;;  %v8007_v42 = vld [vmem:[#allocation2 + $0x30] sm:$0xff] }
 0x7da   : > { %v12135_v21 = vpop.f32.mrb[20].mxu1  ;;  %v12095_v15 = vadd.f32 %v12094_v57, %v21882_v51  ;;  %v12096_v54 = vpop.f32.mrb[21].mxu0  ;;  %v18892_v51 = vld [vmem:[%s20028_s17 + $0x4e4] ss:$16 sps:$4 sm:$0xff]   ;;  %v8010_v57 = vld [vmem:[#allocation2 + $0x48] sm:$0xff] }
 0x7db   : > { %v12137_v8 = vpop.f32.mrb[21].mxu1  ;;  %v12097_v9 = vadd.f32 %v12096_v54, %v21884_v52  ;;  %v12098_v45 = vpop.f32.mrb[22].mxu0  ;;  %14959 = vmatpush1.bf16.msra.mxu0 %v18878_v0  ;;  %v18895_v52 = vld [vmem:[%s20028_s17 + $0x6e4] ss:$16 sps:$4 sm:$0xff]   ;;  %v18947_v54 = vld [vmem:[%s20028_s17 + $0xa00] ss:$16 sps:$4 sm:$0xff]  }
 0x7dc   : > { %v12139_v48 = vpop.f32.mrb[22].mxu1  ;;  %15000 = vmatpush1.bf16.msra.mxu1 %v18881_v43  ;;  %v21964_v16 = vadd.f32 %v12135_v21, %v12095_v15  ;;  %v12099_v53 = vpop.f32.mrb[23].mxu0  ;;  %14960 = vmatprep.subr.bf16.mxu0 %v18886_v4  ;;  %v18946_v0 = vld [vmem:[%s20028_s17 + $0x804] ss:$16 sps:$4 sm:$0xff]   ;;  %v22006_v4 = vpack.c.bf16 %v8005_v41, %v8005_v41  ;;  %v8012_v21 = vld [vmem:[#allocation2 + $0x58] sm:$0xff]  ;;  %v22014_v45 = vpack.c.bf16 %v8010_v57, %v8010_v57 }
 0x7dd   : > { %v12140_v56 = vpop.f32.mrb[23].mxu1  ;;  %15001 = vmatprep.subr.bf16.mxu1 %v18889_v19  ;;  %v21968_v27 = vadd.f32 %v12137_v8, %v12097_v9  ;;  %v18949_v43 = vld [vmem:[%s20028_s17 + $0xa04] ss:$16 sps:$4 sm:$0xff]   ;;  %v22008_v19 = vpack.c.bf16 %v8007_v42, %v8007_v42  ;;  %v18944_v15 = vld [vmem:[%s20028_s17 + $0x800] ss:$16 sps:$4 sm:$0xff]   ;;  %v22016_v48 = vpack.c.bf16 %v8012_v21, %v8012_v21 }
 0x7de   : > { %v18952_v8 = vld [vmem:[%s20028_s17 + $0x824] ss:$16 sps:$4 sm:$0xff]  }
 0x7df   : > { %14961 = vmatpush1.bf16.msra.mxu0 %v18884_v14  ;;  %v18955_v9 = vld [vmem:[%s20028_s17 + $0xa24] ss:$16 sps:$4 sm:$0xff]   ;;  %v18950_v14 = vld [vmem:[%s20028_s17 + $0x820] ss:$16 sps:$4 sm:$0xff]  }
 0x7e0   : > { %15002 = vmatpush1.bf16.msra.mxu1 %v18887_v50  ;;  %14962 = vmatprep.subr.bf16.mxu0 %v18892_v51  ;;  %v18953_v50 = vld [vmem:[%s20028_s17 + $0xa20] ss:$16 sps:$4 sm:$0xff]   ;;  %v18958_v53 = vld [vmem:[%s20028_s17 + $0x844] ss:$16 sps:$4 sm:$0xff]  }
 0x7e1   : > { %15003 = vmatprep.subr.bf16.mxu1 %v18895_v52  ;;  %v18961_v56 = vld [vmem:[%s20028_s17 + $0xa44] ss:$16 sps:$4 sm:$0xff]   ;;  %v18956_v51 = vld [vmem:[%s20028_s17 + $0x840] ss:$16 sps:$4 sm:$0xff]  }
 0x7e2   : > { %v18959_v52 = vld [vmem:[%s20028_s17 + $0xa40] ss:$16 sps:$4 sm:$0xff]   ;;  %v19000_v41 = vld [vmem:[%s20028_s17 + $0x924] ss:$16 sps:$4 sm:$0xff]  }
 0x7e3   : > { %14963 = vmatpush1.bf16.msra.mxu0 %v18890_v58  ;;  %v18964_v58 = vld [vmem:[%s20028_s17 + $0x864] ss:$16 sps:$4 sm:$0xff]  }
 0x7e4   : > { %15004 = vmatpush1.bf16.msra.mxu1 %v18893_v59  ;;  %14964 = vmatprep.subr.bf16.mxu0 %v18898_v40  ;;  %v18967_v59 = vld [vmem:[%s20028_s17 + $0xa64] ss:$16 sps:$4 sm:$0xff]   ;;  %v18962_v40 = vld [vmem:[%s20028_s17 + $0x860] ss:$16 sps:$4 sm:$0xff]  }
 0x7e5   : > { %15005 = vmatprep.subr.bf16.mxu1 %v18901_v63  ;;  %v18965_v63 = vld [vmem:[%s20028_s17 + $0xa60] ss:$16 sps:$4 sm:$0xff]   ;;  %v19003_v42 = vld [vmem:[%s20028_s17 + $0xb24] ss:$16 sps:$4 sm:$0xff]  }
 0x7e6   : > { %v19006_v57 = vld [vmem:[%s20028_s17 + $0x944] ss:$16 sps:$4 sm:$0xff]  }
 0x7e7   : > { %14965 = vmatpush1.bf16.msra.mxu0 %v18896_v44  ;;  %v18970_v44 = vld [vmem:[%s20028_s17 + $0x884] ss:$16 sps:$4 sm:$0xff]  }
 0x7e8   : > { %15006 = vmatpush1.bf16.msra.mxu1 %v18899_v2  ;;  %14966 = vmatprep.subr.bf16.mxu0 %v18904_v11  ;;  %v18973_v2 = vld [vmem:[%s20028_s17 + $0xa84] ss:$16 sps:$4 sm:$0xff]   ;;  %v18968_v11 = vld [vmem:[%s20028_s17 + $0x880] ss:$16 sps:$4 sm:$0xff]  }
 0x7e9   : > { %15007 = vmatprep.subr.bf16.mxu1 %v18907_v55  ;;  %v18971_v55 = vld [vmem:[%s20028_s17 + $0xa80] ss:$16 sps:$4 sm:$0xff]   ;;  %v19009_v21 = vld [vmem:[%s20028_s17 + $0xb44] ss:$16 sps:$4 sm:$0xff]  }
 0x7eb   : > { %14967 = vmatpush1.bf16.msra.mxu0 %v18902_v5  ;;  %v18976_v5 = vld [vmem:[%s20028_s17 + $0x8a4] ss:$16 sps:$4 sm:$0xff]  }
 0x7ec   : > { %15008 = vmatpush1.bf16.msra.mxu1 %v18905_v7  ;;  %14968 = vmatprep.subr.bf16.mxu0 %v18910_v38  ;;  %v18979_v7 = vld [vmem:[%s20028_s17 + $0xaa4] ss:$16 sps:$4 sm:$0xff]   ;;  %v18974_v38 = vld [vmem:[%s20028_s17 + $0x8a0] ss:$16 sps:$4 sm:$0xff]  }
 0x7ed   : > { %15009 = vmatprep.subr.bf16.mxu1 %v18913_v39  ;;  %v18977_v39 = vld [vmem:[%s20028_s17 + $0xaa0] ss:$16 sps:$4 sm:$0xff]  }
 0x7ef   : > { %14969 = vmatpush1.bf16.msra.mxu0 %v18908_v36  ;;  %v18982_v36 = vld [vmem:[%s20028_s17 + $0x8c4] ss:$16 sps:$4 sm:$0xff]  }
 0x7f0   : > { %15010 = vmatpush1.bf16.msra.mxu1 %v18911_v12  ;;  %14970 = vmatprep.subr.bf16.mxu0 %v18916_v13  ;;  %v18985_v12 = vld [vmem:[%s20028_s17 + $0xac4] ss:$16 sps:$4 sm:$0xff]  }
 0x7f1   : > { %15011 = vmatprep.subr.bf16.mxu1 %v18919_v17 }
 0x7f3   : > { %14971 = vmatpush1.bf16.msra.mxu0 %v18914_v32 }
 0x7f4   : > { %15012 = vmatpush1.bf16.msra.mxu1 %v18917_v18  ;;  %14972 = vmatprep.subr.bf16.mxu0 %v18922_v1 }
 0x7f5   : > { %15013 = vmatprep.subr.bf16.mxu1 %v18925_v20 }
 0x7f7   : > { %14973 = vmatpush1.bf16.msra.mxu0 %v18920_v23 }
 0x7f8   : > { %15014 = vmatpush1.bf16.msra.mxu1 %v18923_v24  ;;  %14974 = vmatprep.subr.bf16.mxu0 %v18928_v25  ;;  %v18980_v25 = vld [vmem:[%s20028_s17 + $0x8c0] ss:$16 sps:$4 sm:$0xff]  }
 0x7f9   : > { %15015 = vmatprep.subr.bf16.mxu1 %v18931_v28  ;;  %v18983_v28 = vld [vmem:[%s20028_s17 + $0xac0] ss:$16 sps:$4 sm:$0xff]  }
 0x7fb   : > { %14975 = vmatpush1.bf16.msra.mxu0 %v18926_v31 }
 0x7fc   : > { %15016 = vmatpush1.bf16.msra.mxu1 %v18929_v30  ;;  %14976 = vmatprep.subr.bf16.mxu0 %v18934_v26 }
 0x7fd   : > { %15017 = vmatprep.subr.bf16.mxu1 %v18937_v49 }
 0x7ff   : > { %14977 = vmatpush1.bf16.msra.mxu0 %v18932_v33  ;;  %v18986_v33 = vld [vmem:[%s20028_s17 + $0x8e0] ss:$16 sps:$4 sm:$0xff]  }
 0x800   : > { %15018 = vmatpush1.bf16.msra.mxu1 %v18935_v34  ;;  %14978 = vmatprep.subr.bf16.mxu0 %v18940_v60  ;;  %v18989_v34 = vld [vmem:[%s20028_s17 + $0xae0] ss:$16 sps:$4 sm:$0xff]   ;;  %v18994_v60 = vld [vmem:[%s20028_s17 + $0x904] ss:$16 sps:$4 sm:$0xff]  }
 0x801   : > { %15019 = vmatprep.subr.bf16.mxu1 %v18943_v35  ;;  %v18997_v35 = vld [vmem:[%s20028_s17 + $0xb04] ss:$16 sps:$4 sm:$0xff]  }
 0x803   : > { %14979 = vmatpush1.bf16.msra.mxu0 %v18938_v62  ;;  %v18992_v62 = vld [vmem:[%s20028_s17 + $0x900] ss:$16 sps:$4 sm:$0xff]  }
 0x804   : > { %15020 = vmatpush1.bf16.msra.mxu1 %v18941_v37  ;;  %15030 = vmatprep.subr.bf16.mxu0 %v18946_v0  ;;  %v18995_v37 = vld [vmem:[%s20028_s17 + $0xb00] ss:$16 sps:$4 sm:$0xff]  }
 0x805   : > { %15071 = vmatprep.subr.bf16.mxu1 %v18949_v43  ;;  %v18998_v0 = vld [vmem:[%s20028_s17 + $0x920] ss:$16 sps:$4 sm:$0xff]  }
 0x806   : > { %14981 = vmatmul.mubr.bf16.vlgmr.msra.gmra.mrb[36].mxu0 %v22006_v4  ;;  %v19001_v43 = vld [vmem:[%s20028_s17 + $0xb20] ss:$16 sps:$4 sm:$0xff]  }
 0x807   : > { %15022 = vmatmul.mubr.bf16.vlgmr.msra.gmra.mrb[36].mxu1 %v22008_v19  ;;  %15031 = vmatpush1.bf16.msra.mxu0 %v18944_v15  ;;  %v19004_v15 = vld [vmem:[%s20028_s17 + $0x940] ss:$16 sps:$4 sm:$0xff]  }
 0x808   : > { %15072 = vmatpush1.bf16.msra.mxu1 %v18947_v54  ;;  %15032 = vmatprep.subr.bf16.mxu0 %v18952_v8  ;;  %v19007_v54 = vld [vmem:[%s20028_s17 + $0xb40] ss:$16 sps:$4 sm:$0xff]   ;;  %v19012_v8 = vld [vmem:[%s20028_s17 + $0x964] ss:$16 sps:$4 sm:$0xff]  }
 0x809   : > { %15073 = vmatprep.subr.bf16.mxu1 %v18955_v9  ;;  %15062 = vmatprep.mubr.bf16.mxu0 %v22014_v45  ;;  %v19015_v9 = vld [vmem:[%s20028_s17 + $0xb64] ss:$16 sps:$4 sm:$0xff]  }
 0x80a   : > { %15103 = vmatprep.mubr.bf16.mxu1 %v22016_v48 }
 0x80b   : > { %15033 = vmatpush1.bf16.msra.mxu0 %v18950_v14  ;;  %v19010_v14 = vld [vmem:[%s20028_s17 + $0x960] ss:$16 sps:$4 sm:$0xff]  }
 0x80c   : > { %15074 = vmatpush1.bf16.msra.mxu1 %v18953_v50  ;;  %15034 = vmatprep.subr.bf16.mxu0 %v18958_v53  ;;  %v19013_v50 = vld [vmem:[%s20028_s17 + $0xb60] ss:$16 sps:$4 sm:$0xff]   ;;  %v19018_v53 = vld [vmem:[%s20028_s17 + $0x984] ss:$16 sps:$4 sm:$0xff]  }
 0x80d   : > { %15075 = vmatprep.subr.bf16.mxu1 %v18961_v56  ;;  %v19021_v56 = vld [vmem:[%s20028_s17 + $0xb84] ss:$16 sps:$4 sm:$0xff]  }
 0x80f   : > { %15035 = vmatpush1.bf16.msra.mxu0 %v18956_v51  ;;  %v19016_v51 = vld [vmem:[%s20028_s17 + $0x980] ss:$16 sps:$4 sm:$0xff]  }
 0x810   : > { %15076 = vmatpush1.bf16.msra.mxu1 %v18959_v52  ;;  %15036 = vmatprep.subr.bf16.mxu0 %v18964_v58  ;;  %v19019_v52 = vld [vmem:[%s20028_s17 + $0xb80] ss:$16 sps:$4 sm:$0xff]   ;;  %v19024_v58 = vld [vmem:[%s20028_s17 + $0x9a4] ss:$16 sps:$4 sm:$0xff]  }
 0x811   : > { %15077 = vmatprep.subr.bf16.mxu1 %v18967_v59  ;;  %v19027_v59 = vld [vmem:[%s20028_s17 + $0xba4] ss:$16 sps:$4 sm:$0xff]  }
 0x813   : > { %15037 = vmatpush1.bf16.msra.mxu0 %v18962_v40  ;;  %v19022_v40 = vld [vmem:[%s20028_s17 + $0x9a0] ss:$16 sps:$4 sm:$0xff]  }
 0x814   : > { %15078 = vmatpush1.bf16.msra.mxu1 %v18965_v63  ;;  %15038 = vmatprep.subr.bf16.mxu0 %v18970_v44  ;;  %v19025_v63 = vld [vmem:[%s20028_s17 + $0xba0] ss:$16 sps:$4 sm:$0xff]   ;;  %v19030_v44 = vld [vmem:[%s20028_s17 + $0x9c4] ss:$16 sps:$4 sm:$0xff]  }
 0x815   : > { %15079 = vmatprep.subr.bf16.mxu1 %v18973_v2  ;;  %v19033_v2 = vld [vmem:[%s20028_s17 + $0xbc4] ss:$16 sps:$4 sm:$0xff]  }
 0x817   : > { %15039 = vmatpush1.bf16.msra.mxu0 %v18968_v11  ;;  %v19028_v11 = vld [vmem:[%s20028_s17 + $0x9c0] ss:$16 sps:$4 sm:$0xff]  }
 0x818   : > { %15080 = vmatpush1.bf16.msra.mxu1 %v18971_v55  ;;  %15040 = vmatprep.subr.bf16.mxu0 %v18976_v5  ;;  %v19031_v55 = vld [vmem:[%s20028_s17 + $0xbc0] ss:$16 sps:$4 sm:$0xff]   ;;  %v19036_v5 = vld [vmem:[%s20028_s17 + $0x9e4] ss:$16 sps:$4 sm:$0xff]  }
 0x819   : > { %15081 = vmatprep.subr.bf16.mxu1 %v18979_v7  ;;  %v12176_v13 = vpop.f32.mrb[24].mxu0  ;;  %v19039_v7 = vld [vmem:[%s20028_s17 + $0xbe4] ss:$16 sps:$4 sm:$0xff]  }
 0x81a   : > { %v12217_v17 = vpop.f32.mrb[24].mxu1  ;;  %v12177_v32 = vadd.f32 %v12176_v13, %v21964_v16  ;;  %v12178_v18 = vpop.f32.mrb[25].mxu0  ;;  %v18988_v16 = vld [vmem:[%s20028_s17 + $0x8e4] ss:$16 sps:$4 sm:$0xff]  }
 0x81b   : > { %v12219_v1 = vpop.f32.mrb[25].mxu1  ;;  %v12179_v20 = vadd.f32 %v12178_v18, %v21968_v27  ;;  %v12180_v23 = vpop.f32.mrb[26].mxu0  ;;  %15041 = vmatpush1.bf16.msra.mxu0 %v18974_v38  ;;  %v18991_v27 = vld [vmem:[%s20028_s17 + $0xae4] ss:$16 sps:$4 sm:$0xff]   ;;  %v19034_v38 = vld [vmem:[%s20028_s17 + $0x9e0] ss:$16 sps:$4 sm:$0xff]  }
 0x81c   : > { %v12221_v24 = vpop.f32.mrb[26].mxu1  ;;  %15082 = vmatpush1.bf16.msra.mxu1 %v18977_v39  ;;  %v22046_v31 = vadd.f32 %v12217_v17, %v12177_v32  ;;  %v12181_v30 = vpop.f32.mrb[27].mxu0  ;;  %15042 = vmatprep.subr.bf16.mxu0 %v18982_v36  ;;  %v19037_v39 = vld [vmem:[%s20028_s17 + $0xbe0] ss:$16 sps:$4 sm:$0xff]   ;;  %v19042_v13 = vld [vmem:[%s20028_s17 + $0xc04] ss:$16 sps:$4 sm:$0xff]  }
 0x81d   : > { %v12222_v26 = vpop.f32.mrb[27].mxu1  ;;  %15083 = vmatprep.subr.bf16.mxu1 %v18985_v12  ;;  %v22050_v49 = vadd.f32 %v12219_v1, %v12179_v20  ;;  %v8009_v36 = vld [vmem:[#allocation2 + $0x40] sm:$0xff]  ;;  %v8011_v12 = vld [vmem:[#allocation2 + $0x50] sm:$0xff]  ;;  %v8014_v1 = vld [vmem:[#allocation2 + $0x68] sm:$0xff] }
 0x81e   : > { %v19045_v17 = vld [vmem:[%s20028_s17 + $0xe04] ss:$16 sps:$4 sm:$0xff]   ;;  %v22088_v32 = vpack.c.bf16 %v8009_v36, %v8009_v36  ;;  %v22090_v18 = vpack.c.bf16 %v8011_v12, %v8011_v12  ;;  %v8016_v20 = vld [vmem:[#allocation2 + $0x78] sm:$0xff]  ;;  %v19040_v23 = vld [vmem:[%s20028_s17 + $0xc00] ss:$16 sps:$4 sm:$0xff]   ;;  %v22096_v30 = vpack.c.bf16 %v8014_v1, %v8014_v1 }
 0x81f   : > { %15043 = vmatpush1.bf16.msra.mxu0 %v18980_v25  ;;  %v19043_v24 = vld [vmem:[%s20028_s17 + $0xe00] ss:$16 sps:$4 sm:$0xff]   ;;  %v19048_v25 = vld [vmem:[%s20028_s17 + $0xc24] ss:$16 sps:$4 sm:$0xff]   ;;  %v22098_v26 = vpack.c.bf16 %v8016_v20, %v8016_v20 }
 0x820   : > { %15084 = vmatpush1.bf16.msra.mxu1 %v18983_v28  ;;  %15044 = vmatprep.subr.bf16.mxu0 %v18988_v16  ;;  %v19051_v28 = vld [vmem:[%s20028_s17 + $0xe24] ss:$16 sps:$4 sm:$0xff]   ;;  %v19046_v16 = vld [vmem:[%s20028_s17 + $0xc20] ss:$16 sps:$4 sm:$0xff]  }
 0x821   : > { %15085 = vmatprep.subr.bf16.mxu1 %v18991_v27  ;;  %v19049_v27 = vld [vmem:[%s20028_s17 + $0xe20] ss:$16 sps:$4 sm:$0xff]   ;;  %v19090_v36 = vld [vmem:[%s20028_s17 + $0xd04] ss:$16 sps:$4 sm:$0xff]  }
 0x822   : > { %v19093_v12 = vld [vmem:[%s20028_s17 + $0xf04] ss:$16 sps:$4 sm:$0xff]  }
 0x823   : > { %15045 = vmatpush1.bf16.msra.mxu0 %v18986_v33  ;;  %v19054_v33 = vld [vmem:[%s20028_s17 + $0xc44] ss:$16 sps:$4 sm:$0xff]  }
 0x824   : > { %15086 = vmatpush1.bf16.msra.mxu1 %v18989_v34  ;;  %15046 = vmatprep.subr.bf16.mxu0 %v18994_v60  ;;  %v19057_v34 = vld [vmem:[%s20028_s17 + $0xe44] ss:$16 sps:$4 sm:$0xff]   ;;  %v19052_v60 = vld [vmem:[%s20028_s17 + $0xc40] ss:$16 sps:$4 sm:$0xff]  }
 0x825   : > { %15087 = vmatprep.subr.bf16.mxu1 %v18997_v35  ;;  %v19055_v35 = vld [vmem:[%s20028_s17 + $0xe40] ss:$16 sps:$4 sm:$0xff]   ;;  %v19096_v1 = vld [vmem:[%s20028_s17 + $0xd24] ss:$16 sps:$4 sm:$0xff]  }
 0x826   : > { %v19099_v20 = vld [vmem:[%s20028_s17 + $0xf24] ss:$16 sps:$4 sm:$0xff]  }
 0x827   : > { %15047 = vmatpush1.bf16.msra.mxu0 %v18992_v62  ;;  %v19060_v62 = vld [vmem:[%s20028_s17 + $0xc64] ss:$16 sps:$4 sm:$0xff]  }
 0x828   : > { %15088 = vmatpush1.bf16.msra.mxu1 %v18995_v37  ;;  %15048 = vmatprep.subr.bf16.mxu0 %v19000_v41  ;;  %v19063_v37 = vld [vmem:[%s20028_s17 + $0xe64] ss:$16 sps:$4 sm:$0xff]   ;;  %v19058_v41 = vld [vmem:[%s20028_s17 + $0xc60] ss:$16 sps:$4 sm:$0xff]  }
 0x829   : > { %15089 = vmatprep.subr.bf16.mxu1 %v19003_v42  ;;  %v19061_v42 = vld [vmem:[%s20028_s17 + $0xe60] ss:$16 sps:$4 sm:$0xff]  }
 0x82b   : > { %15049 = vmatpush1.bf16.msra.mxu0 %v18998_v0  ;;  %v19066_v0 = vld [vmem:[%s20028_s17 + $0xc84] ss:$16 sps:$4 sm:$0xff]  }
 0x82c   : > { %15090 = vmatpush1.bf16.msra.mxu1 %v19001_v43  ;;  %15050 = vmatprep.subr.bf16.mxu0 %v19006_v57  ;;  %v19069_v43 = vld [vmem:[%s20028_s17 + $0xe84] ss:$16 sps:$4 sm:$0xff]   ;;  %v19064_v57 = vld [vmem:[%s20028_s17 + $0xc80] ss:$16 sps:$4 sm:$0xff]  }
 0x82d   : > { %15091 = vmatprep.subr.bf16.mxu1 %v19009_v21  ;;  %v19067_v21 = vld [vmem:[%s20028_s17 + $0xe80] ss:$16 sps:$4 sm:$0xff]  }
 0x82f   : > { %15051 = vmatpush1.bf16.msra.mxu0 %v19004_v15  ;;  %v19072_v15 = vld [vmem:[%s20028_s17 + $0xca4] ss:$16 sps:$4 sm:$0xff]  }
 0x830   : > { %15092 = vmatpush1.bf16.msra.mxu1 %v19007_v54  ;;  %15052 = vmatprep.subr.bf16.mxu0 %v19012_v8  ;;  %v19075_v54 = vld [vmem:[%s20028_s17 + $0xea4] ss:$16 sps:$4 sm:$0xff]   ;;  %v19070_v8 = vld [vmem:[%s20028_s17 + $0xca0] ss:$16 sps:$4 sm:$0xff]  }
 0x831   : > { %15093 = vmatprep.subr.bf16.mxu1 %v19015_v9  ;;  %v19073_v9 = vld [vmem:[%s20028_s17 + $0xea0] ss:$16 sps:$4 sm:$0xff]  }
 0x833   : > { %15053 = vmatpush1.bf16.msra.mxu0 %v19010_v14  ;;  %v19078_v14 = vld [vmem:[%s20028_s17 + $0xcc4] ss:$16 sps:$4 sm:$0xff]  }
 0x834   : > { %15094 = vmatpush1.bf16.msra.mxu1 %v19013_v50  ;;  %15054 = vmatprep.subr.bf16.mxu0 %v19018_v53  ;;  %v19081_v50 = vld [vmem:[%s20028_s17 + $0xec4] ss:$16 sps:$4 sm:$0xff]  }
 0x835   : > { %15095 = vmatprep.subr.bf16.mxu1 %v19021_v56 }
 0x837   : > { %15055 = vmatpush1.bf16.msra.mxu0 %v19016_v51 }
 0x838   : > { %15096 = vmatpush1.bf16.msra.mxu1 %v19019_v52  ;;  %15056 = vmatprep.subr.bf16.mxu0 %v19024_v58 }
 0x839   : > { %15097 = vmatprep.subr.bf16.mxu1 %v19027_v59 }
 0x83b   : > { %15057 = vmatpush1.bf16.msra.mxu0 %v19022_v40 }
 0x83c   : > { %15098 = vmatpush1.bf16.msra.mxu1 %v19025_v63  ;;  %15058 = vmatprep.subr.bf16.mxu0 %v19030_v44  ;;  %v19076_v44 = vld [vmem:[%s20028_s17 + $0xcc0] ss:$16 sps:$4 sm:$0xff]  }
 0x83d   : > { %15099 = vmatprep.subr.bf16.mxu1 %v19033_v2  ;;  %v19079_v2 = vld [vmem:[%s20028_s17 + $0xec0] ss:$16 sps:$4 sm:$0xff]  }
 0x83f   : > { %15059 = vmatpush1.bf16.msra.mxu0 %v19028_v11 }
 0x840   : > { %15100 = vmatpush1.bf16.msra.mxu1 %v19031_v55  ;;  %15060 = vmatprep.subr.bf16.mxu0 %v19036_v5 }
 0x841   : > { %15101 = vmatprep.subr.bf16.mxu1 %v19039_v7 }
 0x843   : > { %15061 = vmatpush1.bf16.msra.mxu0 %v19034_v38  ;;  %v19082_v38 = vld [vmem:[%s20028_s17 + $0xce0] ss:$16 sps:$4 sm:$0xff]  }
 0x844   : > { %15102 = vmatpush1.bf16.msra.mxu1 %v19037_v39  ;;  %15112 = vmatprep.subr.bf16.mxu0 %v19042_v13  ;;  %v19085_v39 = vld [vmem:[%s20028_s17 + $0xee0] ss:$16 sps:$4 sm:$0xff]  }
 0x845   : > { %15153 = vmatprep.subr.bf16.mxu1 %v19045_v17  ;;  %v19088_v13 = vld [vmem:[%s20028_s17 + $0xd00] ss:$16 sps:$4 sm:$0xff]  }
 0x846   : > { %15063 = vmatmul.mubr.bf16.vlgmr.msra.gmra.mrb[40].mxu0 %v22088_v32  ;;  %v19091_v17 = vld [vmem:[%s20028_s17 + $0xf00] ss:$16 sps:$4 sm:$0xff]  }
 0x847   : > { %15104 = vmatmul.mubr.bf16.vlgmr.msra.gmra.mrb[40].mxu1 %v22090_v18  ;;  %15113 = vmatpush1.bf16.msra.mxu0 %v19040_v23  ;;  %v19094_v23 = vld [vmem:[%s20028_s17 + $0xd20] ss:$16 sps:$4 sm:$0xff]  }
 0x848   : > { %15154 = vmatpush1.bf16.msra.mxu1 %v19043_v24  ;;  %15114 = vmatprep.subr.bf16.mxu0 %v19048_v25  ;;  %v19097_v24 = vld [vmem:[%s20028_s17 + $0xf20] ss:$16 sps:$4 sm:$0xff]   ;;  %v19102_v25 = vld [vmem:[%s20028_s17 + $0xd44] ss:$16 sps:$4 sm:$0xff]  }
 0x849   : > { %15155 = vmatprep.subr.bf16.mxu1 %v19051_v28  ;;  %15144 = vmatprep.mubr.bf16.mxu0 %v22096_v30  ;;  %v19105_v28 = vld [vmem:[%s20028_s17 + $0xf44] ss:$16 sps:$4 sm:$0xff]  }
 0x84a   : > { %15185 = vmatprep.mubr.bf16.mxu1 %v22098_v26 }
 0x84b   : > { %15115 = vmatpush1.bf16.msra.mxu0 %v19046_v16  ;;  %v19100_v16 = vld [vmem:[%s20028_s17 + $0xd40] ss:$16 sps:$4 sm:$0xff]  }
 0x84c   : > { %15156 = vmatpush1.bf16.msra.mxu1 %v19049_v27  ;;  %15116 = vmatprep.subr.bf16.mxu0 %v19054_v33  ;;  %v19103_v27 = vld [vmem:[%s20028_s17 + $0xf40] ss:$16 sps:$4 sm:$0xff]   ;;  %v19108_v33 = vld [vmem:[%s20028_s17 + $0xd64] ss:$16 sps:$4 sm:$0xff]  }
 0x84d   : > { %15157 = vmatprep.subr.bf16.mxu1 %v19057_v34  ;;  %v19111_v34 = vld [vmem:[%s20028_s17 + $0xf64] ss:$16 sps:$4 sm:$0xff]  }
 0x84f   : > { %15117 = vmatpush1.bf16.msra.mxu0 %v19052_v60  ;;  %v19106_v60 = vld [vmem:[%s20028_s17 + $0xd60] ss:$16 sps:$4 sm:$0xff]  }
 0x850   : > { %15158 = vmatpush1.bf16.msra.mxu1 %v19055_v35  ;;  %15118 = vmatprep.subr.bf16.mxu0 %v19060_v62  ;;  %v19109_v35 = vld [vmem:[%s20028_s17 + $0xf60] ss:$16 sps:$4 sm:$0xff]   ;;  %v19114_v62 = vld [vmem:[%s20028_s17 + $0xd84] ss:$16 sps:$4 sm:$0xff]  }
 0x851   : > { %15159 = vmatprep.subr.bf16.mxu1 %v19063_v37  ;;  %v19117_v37 = vld [vmem:[%s20028_s17 + $0xf84] ss:$16 sps:$4 sm:$0xff]  }
 0x853   : > { %15119 = vmatpush1.bf16.msra.mxu0 %v19058_v41  ;;  %v19112_v41 = vld [vmem:[%s20028_s17 + $0xd80] ss:$16 sps:$4 sm:$0xff]  }
 0x854   : > { %15160 = vmatpush1.bf16.msra.mxu1 %v19061_v42  ;;  %15120 = vmatprep.subr.bf16.mxu0 %v19066_v0  ;;  %v19115_v42 = vld [vmem:[%s20028_s17 + $0xf80] ss:$16 sps:$4 sm:$0xff]   ;;  %v19120_v0 = vld [vmem:[%s20028_s17 + $0xda4] ss:$16 sps:$4 sm:$0xff]  }
 0x855   : > { %15161 = vmatprep.subr.bf16.mxu1 %v19069_v43  ;;  %v19123_v43 = vld [vmem:[%s20028_s17 + $0xfa4] ss:$16 sps:$4 sm:$0xff]  }
 0x857   : > { %15121 = vmatpush1.bf16.msra.mxu0 %v19064_v57  ;;  %v19118_v57 = vld [vmem:[%s20028_s17 + $0xda0] ss:$16 sps:$4 sm:$0xff]  }
 0x858   : > { %15162 = vmatpush1.bf16.msra.mxu1 %v19067_v21  ;;  %15122 = vmatprep.subr.bf16.mxu0 %v19072_v15  ;;  %v19121_v21 = vld [vmem:[%s20028_s17 + $0xfa0] ss:$16 sps:$4 sm:$0xff]   ;;  %v19126_v15 = vld [vmem:[%s20028_s17 + $0xdc4] ss:$16 sps:$4 sm:$0xff]  }
 0x859   : > { %15163 = vmatprep.subr.bf16.mxu1 %v19075_v54  ;;  %v12258_v53 = vpop.f32.mrb[28].mxu0  ;;  %v19129_v54 = vld [vmem:[%s20028_s17 + $0xfc4] ss:$16 sps:$4 sm:$0xff]  }
 0x85a   : > { %v12299_v56 = vpop.f32.mrb[28].mxu1  ;;  %v12259_v51 = vadd.f32 %v12258_v53, %v22046_v31  ;;  %v12260_v52 = vpop.f32.mrb[29].mxu0  ;;  %v19084_v31 = vld [vmem:[%s20028_s17 + $0xce4] ss:$16 sps:$4 sm:$0xff]   ;;  %v19130_v53 = vld [vmem:[%s20028_s17 + $0xde0] ss:$16 sps:$4 sm:$0xff]  }
 0x85b   : > { %v12301_v58 = vpop.f32.mrb[29].mxu1  ;;  %v12261_v59 = vadd.f32 %v12260_v52, %v22050_v49  ;;  %v12262_v40 = vpop.f32.mrb[30].mxu0  ;;  %15123 = vmatpush1.bf16.msra.mxu0 %v19070_v8  ;;  %v19087_v49 = vld [vmem:[%s20028_s17 + $0xee4] ss:$16 sps:$4 sm:$0xff]   ;;  %v19124_v8 = vld [vmem:[%s20028_s17 + $0xdc0] ss:$16 sps:$4 sm:$0xff]  }
 0x85c   : > { %v12303_v63 = vpop.f32.mrb[30].mxu1  ;;  %15164 = vmatpush1.bf16.msra.mxu1 %v19073_v9  ;;  %v22128_v11 = vadd.f32 %v12299_v56, %v12259_v51  ;;  %v12263_v55 = vpop.f32.mrb[31].mxu0  ;;  %15124 = vmatprep.subr.bf16.mxu0 %v19078_v14  ;;  %v19127_v9 = vld [vmem:[%s20028_s17 + $0xfc0] ss:$16 sps:$4 sm:$0xff]   ;;  %v19132_v14 = vld [vmem:[%s20028_s17 + $0xde4] ss:$16 sps:$4 sm:$0xff]  }
 0x85d   : > { %v12304_v5 = vpop.f32.mrb[31].mxu1  ;;  %15165 = vmatprep.subr.bf16.mxu1 %v19081_v50  ;;  %v22132_v7 = vadd.f32 %v12301_v58, %v12261_v59  ;;  %v19135_v50 = vld [vmem:[%s20028_s17 + $0xfe4] ss:$16 sps:$4 sm:$0xff]   ;;  %v19133_v56 = vld [vmem:[%s20028_s17 + $0xfe0] ss:$16 sps:$4 sm:$0xff]  }
 0x85e   : > { %v8013_v51 = vld [vmem:[#allocation2 + $0x60] sm:$0xff]  ;;  %v8015_v52 = vld [vmem:[#allocation2 + $0x70] sm:$0xff]  ;;  %v19138_v58 = vld [vmem:[%s20028_s17 + $0xc] ss:$16 sps:$4 sm:$0xff]  }
 0x85f   : > { %15125 = vmatpush1.bf16.msra.mxu0 %v19076_v44  ;;  %v19141_v59 = vld [vmem:[%s20028_s17 + $0x20c] ss:$16 sps:$4 sm:$0xff]   ;;  %v22170_v40 = vpack.c.bf16 %v8013_v51, %v8013_v51  ;;  %v22172_v63 = vpack.c.bf16 %v8015_v52, %v8015_v52  ;;  %v19136_v44 = vld [vmem:[%s20028_s17 + $0x8] ss:$16 sps:$4 sm:$0xff]  }
 0x860   : > { %15166 = vmatpush1.bf16.msra.mxu1 %v19079_v2  ;;  %15126 = vmatprep.subr.bf16.mxu0 %v19084_v31  ;;  %v19139_v2 = vld [vmem:[%s20028_s17 + $0x208] ss:$16 sps:$4 sm:$0xff]   ;;  %v19144_v55 = vld [vmem:[%s20028_s17 + $0x2c] ss:$16 sps:$4 sm:$0xff]  }
 0x861   : > { %15167 = vmatprep.subr.bf16.mxu1 %v19087_v49  ;;  %v19147_v5 = vld [vmem:[%s20028_s17 + $0x22c] ss:$16 sps:$4 sm:$0xff]   ;;  %v19142_v31 = vld [vmem:[%s20028_s17 + $0x28] ss:$16 sps:$4 sm:$0xff]  }
 0x862   : > { %v19145_v49 = vld [vmem:[%s20028_s17 + $0x228] ss:$16 sps:$4 sm:$0xff]  }
 0x863   : > { %15127 = vmatpush1.bf16.msra.mxu0 %v19082_v38  ;;  %v19150_v38 = vld [vmem:[%s20028_s17 + $0x4c] ss:$16 sps:$4 sm:$0xff]   ;;  %v19184_v51 = vld [vmem:[%s20028_s17 + $0x108] ss:$16 sps:$4 sm:$0xff]  }
 0x864   : > { %15168 = vmatpush1.bf16.msra.mxu1 %v19085_v39  ;;  %15128 = vmatprep.subr.bf16.mxu0 %v19090_v36  ;;  %v19153_v39 = vld [vmem:[%s20028_s17 + $0x24c] ss:$16 sps:$4 sm:$0xff]   ;;  %v19148_v36 = vld [vmem:[%s20028_s17 + $0x48] ss:$16 sps:$4 sm:$0xff]  }
 0x865   : > { %15169 = vmatprep.subr.bf16.mxu1 %v19093_v12  ;;  %v19151_v12 = vld [vmem:[%s20028_s17 + $0x248] ss:$16 sps:$4 sm:$0xff]  }
 0x866   : > { %v19187_v52 = vld [vmem:[%s20028_s17 + $0x308] ss:$16 sps:$4 sm:$0xff]  }
 0x867   : > { %15129 = vmatpush1.bf16.msra.mxu0 %v19088_v13  ;;  %v19156_v13 = vld [vmem:[%s20028_s17 + $0x6c] ss:$16 sps:$4 sm:$0xff]  }
 0x868   : > { %15170 = vmatpush1.bf16.msra.mxu1 %v19091_v17  ;;  %15130 = vmatprep.subr.bf16.mxu0 %v19096_v1  ;;  %v19159_v17 = vld [vmem:[%s20028_s17 + $0x26c] ss:$16 sps:$4 sm:$0xff]   ;;  %v19154_v1 = vld [vmem:[%s20028_s17 + $0x68] ss:$16 sps:$4 sm:$0xff]  }
 0x869   : > { %15171 = vmatprep.subr.bf16.mxu1 %v19099_v20  ;;  %v19165_v20 = vld [vmem:[%s20028_s17 + $0x28c] ss:$16 sps:$4 sm:$0xff]  }
 0x86b   : > { %15131 = vmatpush1.bf16.msra.mxu0 %v19094_v23  ;;  %v19160_v23 = vld [vmem:[%s20028_s17 + $0x88] ss:$16 sps:$4 sm:$0xff]  }
 0x86c   : > { %15172 = vmatpush1.bf16.msra.mxu1 %v19097_v24  ;;  %15132 = vmatprep.subr.bf16.mxu0 %v19102_v25  ;;  %v19163_v24 = vld [vmem:[%s20028_s17 + $0x288] ss:$16 sps:$4 sm:$0xff]   ;;  %v19168_v25 = vld [vmem:[%s20028_s17 + $0xac] ss:$16 sps:$4 sm:$0xff]  }
 0x86d   : > { %15173 = vmatprep.subr.bf16.mxu1 %v19105_v28  ;;  %v19171_v28 = vld [vmem:[%s20028_s17 + $0x2ac] ss:$16 sps:$4 sm:$0xff]  }
 0x86f   : > { %15133 = vmatpush1.bf16.msra.mxu0 %v19100_v16  ;;  %v19166_v16 = vld [vmem:[%s20028_s17 + $0xa8] ss:$16 sps:$4 sm:$0xff]  }
 0x870   : > { %15174 = vmatpush1.bf16.msra.mxu1 %v19103_v27  ;;  %15134 = vmatprep.subr.bf16.mxu0 %v19108_v33  ;;  %v19169_v27 = vld [vmem:[%s20028_s17 + $0x2a8] ss:$16 sps:$4 sm:$0xff]   ;;  %v19174_v33 = vld [vmem:[%s20028_s17 + $0xcc] ss:$16 sps:$4 sm:$0xff]  }
 0x871   : > { %15175 = vmatprep.subr.bf16.mxu1 %v19111_v34  ;;  %v19177_v34 = vld [vmem:[%s20028_s17 + $0x2cc] ss:$16 sps:$4 sm:$0xff]  }
 0x873   : > { %15135 = vmatpush1.bf16.msra.mxu0 %v19106_v60 }
 0x874   : > { %15176 = vmatpush1.bf16.msra.mxu1 %v19109_v35  ;;  %15136 = vmatprep.subr.bf16.mxu0 %v19114_v62 }
 0x875   : > { %15177 = vmatprep.subr.bf16.mxu1 %v19117_v37 }
 0x877   : > { %15137 = vmatpush1.bf16.msra.mxu0 %v19112_v41 }
 0x878   : > { %15178 = vmatpush1.bf16.msra.mxu1 %v19115_v42  ;;  %15138 = vmatprep.subr.bf16.mxu0 %v19120_v0 }
 0x879   : > { %15179 = vmatprep.subr.bf16.mxu1 %v19123_v43 }
 0x87b   : > { %15139 = vmatpush1.bf16.msra.mxu0 %v19118_v57  ;;  %v19172_v57 = vld [vmem:[%s20028_s17 + $0xc8] ss:$16 sps:$4 sm:$0xff]  }
 0x87c   : > { %15180 = vmatpush1.bf16.msra.mxu1 %v19121_v21  ;;  %15140 = vmatprep.subr.bf16.mxu0 %v19126_v15  ;;  %v19175_v21 = vld [vmem:[%s20028_s17 + $0x2c8] ss:$16 sps:$4 sm:$0xff]  }
 0x87d   : > { %15181 = vmatprep.subr.bf16.mxu1 %v19129_v54 }
 0x87f   : > { %15141 = vmatpush1.bf16.msra.mxu0 %v19124_v8 }
 0x880   : > { %15182 = vmatpush1.bf16.msra.mxu1 %v19127_v9  ;;  %15142 = vmatprep.subr.bf16.mxu0 %v19132_v14  ;;  %v19178_v14 = vld [vmem:[%s20028_s17 + $0xe8] ss:$16 sps:$4 sm:$0xff]  }
 0x881   : > { %15183 = vmatprep.subr.bf16.mxu1 %v19135_v50  ;;  %v19181_v50 = vld [vmem:[%s20028_s17 + $0x2e8] ss:$16 sps:$4 sm:$0xff]  }
 0x883   : > { %15143 = vmatpush1.bf16.msra.mxu0 %v19130_v53  ;;  %v19186_v53 = vld [vmem:[%s20028_s17 + $0x10c] ss:$16 sps:$4 sm:$0xff]  }
 0x884   : > { %15184 = vmatpush1.bf16.msra.mxu1 %v19133_v56  ;;  %15194 = vmatprep.subr.bf16.mxu0 %v19138_v58  ;;  %v19189_v56 = vld [vmem:[%s20028_s17 + $0x30c] ss:$16 sps:$4 sm:$0xff]  }
 0x885   : > { %15235 = vmatprep.subr.bf16.mxu1 %v19141_v59  ;;  %v19192_v58 = vld [vmem:[%s20028_s17 + $0x12c] ss:$16 sps:$4 sm:$0xff]  }
 0x886   : > { %15145 = vmatmul.mubr.bf16.vlgmr.msra.gmra.mrb[44].mxu0 %v22170_v40  ;;  %v19195_v59 = vld [vmem:[%s20028_s17 + $0x32c] ss:$16 sps:$4 sm:$0xff]  }
 0x887   : > { %15186 = vmatmul.mubr.bf16.vlgmr.msra.gmra.mrb[44].mxu1 %v22172_v63  ;;  %15195 = vmatpush1.bf16.msra.mxu0 %v19136_v44  ;;  %v19190_v44 = vld [vmem:[%s20028_s17 + $0x128] ss:$16 sps:$4 sm:$0xff]  }
 0x888   : > { %15236 = vmatpush1.bf16.msra.mxu1 %v19139_v2  ;;  %15196 = vmatprep.subr.bf16.mxu0 %v19144_v55  ;;  %v19193_v2 = vld [vmem:[%s20028_s17 + $0x328] ss:$16 sps:$4 sm:$0xff]   ;;  %v19198_v55 = vld [vmem:[%s20028_s17 + $0x14c] ss:$16 sps:$4 sm:$0xff]  }
 0x889   : > { %15237 = vmatprep.subr.bf16.mxu1 %v19147_v5  ;;  %15226 = vmatprep.mubr.bf16.mxu0 %v21852_v29  ;;  %v19157_v29 = vld [vmem:[%s20028_s17 + $0x268] ss:$16 sps:$4 sm:$0xff]   ;;  %v19201_v5 = vld [vmem:[%s20028_s17 + $0x34c] ss:$16 sps:$4 sm:$0xff]  }
 0x88a   : > { %15267 = vmatprep.mubr.bf16.mxu1 %v21854_v61  ;;  %v19162_v61 = vld [vmem:[%s20028_s17 + $0x8c] ss:$16 sps:$4 sm:$0xff]  }
 0x88b   : > { %15197 = vmatpush1.bf16.msra.mxu0 %v19142_v31  ;;  %v19196_v31 = vld [vmem:[%s20028_s17 + $0x148] ss:$16 sps:$4 sm:$0xff]  }
 0x88c   : > { %15238 = vmatpush1.bf16.msra.mxu1 %v19145_v49  ;;  %15198 = vmatprep.subr.bf16.mxu0 %v19150_v38  ;;  %v19199_v49 = vld [vmem:[%s20028_s17 + $0x348] ss:$16 sps:$4 sm:$0xff]   ;;  %v19204_v38 = vld [vmem:[%s20028_s17 + $0x16c] ss:$16 sps:$4 sm:$0xff]  }
 0x88d   : > { %15239 = vmatprep.subr.bf16.mxu1 %v19153_v39  ;;  %v19207_v39 = vld [vmem:[%s20028_s17 + $0x36c] ss:$16 sps:$4 sm:$0xff]  }
 0x88f   : > { %15199 = vmatpush1.bf16.msra.mxu0 %v19148_v36  ;;  %v19202_v36 = vld [vmem:[%s20028_s17 + $0x168] ss:$16 sps:$4 sm:$0xff]  }
 0x890   : > { %15240 = vmatpush1.bf16.msra.mxu1 %v19151_v12  ;;  %15200 = vmatprep.subr.bf16.mxu0 %v19156_v13  ;;  %v19205_v12 = vld [vmem:[%s20028_s17 + $0x368] ss:$16 sps:$4 sm:$0xff]   ;;  %v19210_v13 = vld [vmem:[%s20028_s17 + $0x18c] ss:$16 sps:$4 sm:$0xff]  }
 0x891   : > { %15241 = vmatprep.subr.bf16.mxu1 %v19159_v17  ;;  %v19213_v17 = vld [vmem:[%s20028_s17 + $0x38c] ss:$16 sps:$4 sm:$0xff]  }
 0x893   : > { %15201 = vmatpush1.bf16.msra.mxu0 %v19154_v1  ;;  %v19208_v1 = vld [vmem:[%s20028_s17 + $0x188] ss:$16 sps:$4 sm:$0xff]  }
 0x894   : > { %15242 = vmatpush1.bf16.msra.mxu1 %v19157_v29  ;;  %15202 = vmatprep.subr.bf16.mxu0 %v19162_v61  ;;  %v19211_v29 = vld [vmem:[%s20028_s17 + $0x388] ss:$16 sps:$4 sm:$0xff]   ;;  %v19216_v61 = vld [vmem:[%s20028_s17 + $0x1ac] ss:$16 sps:$4 sm:$0xff]  }
 0x895   : > { %15243 = vmatprep.subr.bf16.mxu1 %v19165_v20  ;;  %v19219_v20 = vld [vmem:[%s20028_s17 + $0x3ac] ss:$16 sps:$4 sm:$0xff]  }
 0x897   : > { %15203 = vmatpush1.bf16.msra.mxu0 %v19160_v23  ;;  %v19214_v23 = vld [vmem:[%s20028_s17 + $0x1a8] ss:$16 sps:$4 sm:$0xff]  }
 0x898   : > { %15244 = vmatpush1.bf16.msra.mxu1 %v19163_v24  ;;  %15204 = vmatprep.subr.bf16.mxu0 %v19168_v25  ;;  %v19217_v24 = vld [vmem:[%s20028_s17 + $0x3a8] ss:$16 sps:$4 sm:$0xff]   ;;  %v19222_v25 = vld [vmem:[%s20028_s17 + $0x1cc] ss:$16 sps:$4 sm:$0xff]  }
 0x899   : > { %15245 = vmatprep.subr.bf16.mxu1 %v19171_v28  ;;  %v14900_v60 = vpop.f32.mrb[32].mxu0  ;;  %v19225_v28 = vld [vmem:[%s20028_s17 + $0x3cc] ss:$16 sps:$4 sm:$0xff]  }
 0x89a   : > { %v14941_v35 = vpop.f32.mrb[32].mxu1  ;;  %v14901_v62 = vadd.f32 %v14900_v60, %v21806_v6  ;;  %v14902_v37 = vpop.f32.mrb[33].mxu0  ;;  %v19180_v6 = vld [vmem:[%s20028_s17 + $0xec] ss:$16 sps:$4 sm:$0xff]   ;;  %v19226_v60 = vld [vmem:[%s20028_s17 + $0x1e8] ss:$16 sps:$4 sm:$0xff]  }
 0x89b   : > { %v14943_v41 = vpop.f32.mrb[33].mxu1  ;;  %v14903_v42 = vadd.f32 %v14902_v37, %v21810_v46  ;;  %v14904_v0 = vpop.f32.mrb[34].mxu0  ;;  %15205 = vmatpush1.bf16.msra.mxu0 %v19166_v16  ;;  %v19183_v46 = vld [vmem:[%s20028_s17 + $0x2ec] ss:$16 sps:$4 sm:$0xff]   ;;  %v19220_v16 = vld [vmem:[%s20028_s17 + $0x1c8] ss:$16 sps:$4 sm:$0xff]  }
 0x89c   : > { %v14945_v43 = vpop.f32.mrb[34].mxu1  ;;  %15246 = vmatpush1.bf16.msra.mxu1 %v19169_v27  ;;  %v22206_v15 = vadd.f32 %v14941_v35, %v14901_v62  ;;  %v14905_v54 = vpop.f32.mrb[35].mxu0  ;;  %15206 = vmatprep.subr.bf16.mxu0 %v19174_v33  ;;  %v19223_v27 = vld [vmem:[%s20028_s17 + $0x3c8] ss:$16 sps:$4 sm:$0xff]   ;;  %v19228_v33 = vld [vmem:[%s20028_s17 + $0x1ec] ss:$16 sps:$4 sm:$0xff]  }
 0x89d   : > { %v14946_v8 = vpop.f32.mrb[35].mxu1  ;;  %15247 = vmatprep.subr.bf16.mxu1 %v19177_v34  ;;  %v22210_v9 = vadd.f32 %v14943_v41, %v14903_v42  ;;  %v19231_v34 = vld [vmem:[%s20028_s17 + $0x3ec] ss:$16 sps:$4 sm:$0xff]   ;;  %v19229_v35 = vld [vmem:[%s20028_s17 + $0x3e8] ss:$16 sps:$4 sm:$0xff]  }
 0x89e   : > { %v19234_v62 = vld [vmem:[%s20028_s17 + $0x40c] ss:$16 sps:$4 sm:$0xff]   ;;  %v19232_v41 = vld [vmem:[%s20028_s17 + $0x408] ss:$16 sps:$4 sm:$0xff]  }
 0x89f   : > { %15207 = vmatpush1.bf16.msra.mxu0 %v19172_v57  ;;  %v19237_v37 = vld [vmem:[%s20028_s17 + $0x60c] ss:$16 sps:$4 sm:$0xff]   ;;  %v19235_v42 = vld [vmem:[%s20028_s17 + $0x608] ss:$16 sps:$4 sm:$0xff]  }
 0x8a0   : > { %15248 = vmatpush1.bf16.msra.mxu1 %v19175_v21  ;;  %15208 = vmatprep.subr.bf16.mxu0 %v19180_v6  ;;  %v19240_v0 = vld [vmem:[%s20028_s17 + $0x42c] ss:$16 sps:$4 sm:$0xff]   ;;  %v19238_v57 = vld [vmem:[%s20028_s17 + $0x428] ss:$16 sps:$4 sm:$0xff]  }
 0x8a1   : > { %15249 = vmatprep.subr.bf16.mxu1 %v19183_v46  ;;  %v19243_v43 = vld [vmem:[%s20028_s17 + $0x62c] ss:$16 sps:$4 sm:$0xff]   ;;  %v19241_v21 = vld [vmem:[%s20028_s17 + $0x628] ss:$16 sps:$4 sm:$0xff]  }
 0x8a2   : > { %v19246_v54 = vld [vmem:[%s20028_s17 + $0x44c] ss:$16 sps:$4 sm:$0xff]  }
 0x8a3   : > { %15209 = vmatpush1.bf16.msra.mxu0 %v19178_v14  ;;  %v19249_v8 = vld [vmem:[%s20028_s17 + $0x64c] ss:$16 sps:$4 sm:$0xff]   ;;  %v19250_v14 = vld [vmem:[%s20028_s17 + $0x468] ss:$16 sps:$4 sm:$0xff]  }
 0x8a4   : > { %15250 = vmatpush1.bf16.msra.mxu1 %v19181_v50  ;;  %15210 = vmatprep.subr.bf16.mxu0 %v19186_v53  ;;  %v19252_v6 = vld [vmem:[%s20028_s17 + $0x46c] ss:$16 sps:$4 sm:$0xff]   ;;  %v19256_v53 = vld [vmem:[%s20028_s17 + $0x488] ss:$16 sps:$4 sm:$0xff]  }
 0x8a5   : > { %15251 = vmatprep.subr.bf16.mxu1 %v19189_v56  ;;  %v19255_v46 = vld [vmem:[%s20028_s17 + $0x66c] ss:$16 sps:$4 sm:$0xff]   ;;  %v19259_v56 = vld [vmem:[%s20028_s17 + $0x688] ss:$16 sps:$4 sm:$0xff]  }
 0x8a6   : > { %v19261_v50 = vld [vmem:[%s20028_s17 + $0x68c] ss:$16 sps:$4 sm:$0xff]  }
 0x8a7   : > { %15211 = vmatpush1.bf16.msra.mxu0 %v19184_v51  ;;  %v19264_v51 = vld [vmem:[%s20028_s17 + $0x4ac] ss:$16 sps:$4 sm:$0xff]  }
 0x8a8   : > { %15252 = vmatpush1.bf16.msra.mxu1 %v19187_v52  ;;  %15212 = vmatprep.subr.bf16.mxu0 %v19192_v58  ;;  %v19267_v52 = vld [vmem:[%s20028_s17 + $0x6ac] ss:$16 sps:$4 sm:$0xff]   ;;  %v19262_v58 = vld [vmem:[%s20028_s17 + $0x4a8] ss:$16 sps:$4 sm:$0xff]  }
 0x8a9   : > { %15253 = vmatprep.subr.bf16.mxu1 %v19195_v59  ;;  %v19265_v59 = vld [vmem:[%s20028_s17 + $0x6a8] ss:$16 sps:$4 sm:$0xff]  }
 0x8ab   : > { %15213 = vmatpush1.bf16.msra.mxu0 %v19190_v44  ;;  %v19270_v44 = vld [vmem:[%s20028_s17 + $0x4cc] ss:$16 sps:$4 sm:$0xff]  }
 0x8ac   : > { %15254 = vmatpush1.bf16.msra.mxu1 %v19193_v2  ;;  %15214 = vmatprep.subr.bf16.mxu0 %v19198_v55  ;;  %v19273_v2 = vld [vmem:[%s20028_s17 + $0x6cc] ss:$16 sps:$4 sm:$0xff]  }
 0x8ad   : > { %15255 = vmatprep.subr.bf16.mxu1 %v19201_v5 }
 0x8af   : > { %15215 = vmatpush1.bf16.msra.mxu0 %v19196_v31 }
 0x8b0   : > { %15256 = vmatpush1.bf16.msra.mxu1 %v19199_v49  ;;  %15216 = vmatprep.subr.bf16.mxu0 %v19204_v38 }
 0x8b1   : > { %15257 = vmatprep.subr.bf16.mxu1 %v19207_v39 }
 0x8b3   : > { %15217 = vmatpush1.bf16.msra.mxu0 %v19202_v36 }
 0x8b4   : > { %15258 = vmatpush1.bf16.msra.mxu1 %v19205_v12  ;;  %15218 = vmatprep.subr.bf16.mxu0 %v19210_v13  ;;  %v19268_v13 = vld [vmem:[%s20028_s17 + $0x4c8] ss:$16 sps:$4 sm:$0xff]  }
 0x8b5   : > { %15259 = vmatprep.subr.bf16.mxu1 %v19213_v17  ;;  %v19271_v17 = vld [vmem:[%s20028_s17 + $0x6c8] ss:$16 sps:$4 sm:$0xff]  }
 0x8b7   : > { %15219 = vmatpush1.bf16.msra.mxu0 %v19208_v1 }
 0x8b8   : > { %15260 = vmatpush1.bf16.msra.mxu1 %v19211_v29  ;;  %15220 = vmatprep.subr.bf16.mxu0 %v19216_v61 }
 0x8b9   : > { %15261 = vmatprep.subr.bf16.mxu1 %v19219_v20 }
 0x8bb   : > { %15221 = vmatpush1.bf16.msra.mxu0 %v19214_v23  ;;  %v19274_v23 = vld [vmem:[%s20028_s17 + $0x4e8] ss:$16 sps:$4 sm:$0xff]  }
 0x8bc   : > { %15262 = vmatpush1.bf16.msra.mxu1 %v19217_v24  ;;  %15222 = vmatprep.subr.bf16.mxu0 %v19222_v25  ;;  %v19277_v24 = vld [vmem:[%s20028_s17 + $0x6e8] ss:$16 sps:$4 sm:$0xff]   ;;  %v19282_v25 = vld [vmem:[%s20028_s17 + $0x50c] ss:$16 sps:$4 sm:$0xff]  }
 0x8bd   : > { %15263 = vmatprep.subr.bf16.mxu1 %v19225_v28  ;;  %v19285_v28 = vld [vmem:[%s20028_s17 + $0x70c] ss:$16 sps:$4 sm:$0xff]  }
 0x8bf   : > { %15223 = vmatpush1.bf16.msra.mxu0 %v19220_v16  ;;  %v19280_v16 = vld [vmem:[%s20028_s17 + $0x508] ss:$16 sps:$4 sm:$0xff]  }
 0x8c0   : > { %15264 = vmatpush1.bf16.msra.mxu1 %v19223_v27  ;;  %15224 = vmatprep.subr.bf16.mxu0 %v19228_v33  ;;  %v19283_v27 = vld [vmem:[%s20028_s17 + $0x708] ss:$16 sps:$4 sm:$0xff]   ;;  %v19288_v33 = vld [vmem:[%s20028_s17 + $0x52c] ss:$16 sps:$4 sm:$0xff]  }
 0x8c1   : > { %15265 = vmatprep.subr.bf16.mxu1 %v19231_v34  ;;  %v19291_v34 = vld [vmem:[%s20028_s17 + $0x72c] ss:$16 sps:$4 sm:$0xff]  }
 0x8c3   : > { %15225 = vmatpush1.bf16.msra.mxu0 %v19226_v60  ;;  %v19286_v60 = vld [vmem:[%s20028_s17 + $0x528] ss:$16 sps:$4 sm:$0xff]  }
 0x8c4   : > { %15266 = vmatpush1.bf16.msra.mxu1 %v19229_v35  ;;  %15276 = vmatprep.subr.bf16.mxu0 %v19234_v62  ;;  %v19289_v35 = vld [vmem:[%s20028_s17 + $0x728] ss:$16 sps:$4 sm:$0xff]   ;;  %v19294_v62 = vld [vmem:[%s20028_s17 + $0x54c] ss:$16 sps:$4 sm:$0xff]  }
 0x8c5   : > { %15317 = vmatprep.subr.bf16.mxu1 %v19237_v37  ;;  %v19297_v37 = vld [vmem:[%s20028_s17 + $0x74c] ss:$16 sps:$4 sm:$0xff]  }
 0x8c6   : > { %15227 = vmatmul.mubr.bf16.vlgmr.msra.gmra.mrb[48].mxu0 %v21924_v3  ;;  %v19244_v3 = vld [vmem:[%s20028_s17 + $0x448] ss:$16 sps:$4 sm:$0xff]  }
 0x8c7   : > { %15268 = vmatmul.mubr.bf16.vlgmr.msra.gmra.mrb[48].mxu1 %v21926_v10  ;;  %15277 = vmatpush1.bf16.msra.mxu0 %v19232_v41  ;;  %v19247_v10 = vld [vmem:[%s20028_s17 + $0x648] ss:$16 sps:$4 sm:$0xff]  }
 0x8c8   : > { %15318 = vmatpush1.bf16.msra.mxu1 %v19235_v42  ;;  %15278 = vmatprep.subr.bf16.mxu0 %v19240_v0  ;;  %v19292_v41 = vld [vmem:[%s20028_s17 + $0x548] ss:$16 sps:$4 sm:$0xff]   ;;  %v19300_v0 = vld [vmem:[%s20028_s17 + $0x56c] ss:$16 sps:$4 sm:$0xff]  }
 0x8c9   : > { %15319 = vmatprep.subr.bf16.mxu1 %v19243_v43  ;;  %15308 = vmatprep.mubr.bf16.mxu0 %v21932_v47  ;;  %v19253_v47 = vld [vmem:[%s20028_s17 + $0x668] ss:$16 sps:$4 sm:$0xff]   ;;  %v19303_v43 = vld [vmem:[%s20028_s17 + $0x76c] ss:$16 sps:$4 sm:$0xff]  }
 0x8ca   : > { %15349 = vmatprep.mubr.bf16.mxu1 %v21934_v22  ;;  %v19258_v22 = vld [vmem:[%s20028_s17 + $0x48c] ss:$16 sps:$4 sm:$0xff]   ;;  %v19295_v42 = vld [vmem:[%s20028_s17 + $0x748] ss:$16 sps:$4 sm:$0xff]  }
 0x8cb   : > { %15279 = vmatpush1.bf16.msra.mxu0 %v19238_v57  ;;  %v19298_v57 = vld [vmem:[%s20028_s17 + $0x568] ss:$16 sps:$4 sm:$0xff]  }
 0x8cc   : > { %15320 = vmatpush1.bf16.msra.mxu1 %v19241_v21  ;;  %15280 = vmatprep.subr.bf16.mxu0 %v19246_v54  ;;  %v19301_v21 = vld [vmem:[%s20028_s17 + $0x768] ss:$16 sps:$4 sm:$0xff]   ;;  %v19306_v54 = vld [vmem:[%s20028_s17 + $0x58c] ss:$16 sps:$4 sm:$0xff]  }
 0x8cd   : > { %15321 = vmatprep.subr.bf16.mxu1 %v19249_v8  ;;  %v19309_v8 = vld [vmem:[%s20028_s17 + $0x78c] ss:$16 sps:$4 sm:$0xff]  }
 0x8cf   : > { %15281 = vmatpush1.bf16.msra.mxu0 %v19244_v3  ;;  %v19304_v3 = vld [vmem:[%s20028_s17 + $0x588] ss:$16 sps:$4 sm:$0xff]  }
 0x8d0   : > { %15322 = vmatpush1.bf16.msra.mxu1 %v19247_v10  ;;  %15282 = vmatprep.subr.bf16.mxu0 %v19252_v6  ;;  %v19307_v10 = vld [vmem:[%s20028_s17 + $0x788] ss:$16 sps:$4 sm:$0xff]   ;;  %v19312_v6 = vld [vmem:[%s20028_s17 + $0x5ac] ss:$16 sps:$4 sm:$0xff]  }
 0x8d1   : > { %15323 = vmatprep.subr.bf16.mxu1 %v19255_v46  ;;  %v19315_v46 = vld [vmem:[%s20028_s17 + $0x7ac] ss:$16 sps:$4 sm:$0xff]  }
 0x8d3   : > { %15283 = vmatpush1.bf16.msra.mxu0 %v19250_v14  ;;  %v19310_v14 = vld [vmem:[%s20028_s17 + $0x5a8] ss:$16 sps:$4 sm:$0xff]  }
 0x8d4   : > { %15324 = vmatpush1.bf16.msra.mxu1 %v19253_v47  ;;  %15284 = vmatprep.subr.bf16.mxu0 %v19258_v22  ;;  %v19313_v47 = vld [vmem:[%s20028_s17 + $0x7a8] ss:$16 sps:$4 sm:$0xff]   ;;  %v19318_v22 = vld [vmem:[%s20028_s17 + $0x5cc] ss:$16 sps:$4 sm:$0xff]  }
 0x8d5   : > { %15325 = vmatprep.subr.bf16.mxu1 %v19261_v50  ;;  %v19321_v50 = vld [vmem:[%s20028_s17 + $0x7cc] ss:$16 sps:$4 sm:$0xff]  }
 0x8d7   : > { %15285 = vmatpush1.bf16.msra.mxu0 %v19256_v53  ;;  %v19316_v53 = vld [vmem:[%s20028_s17 + $0x5c8] ss:$16 sps:$4 sm:$0xff]  }
 0x8d8   : > { %15326 = vmatpush1.bf16.msra.mxu1 %v19259_v56  ;;  %15286 = vmatprep.subr.bf16.mxu0 %v19264_v51  ;;  %v19319_v56 = vld [vmem:[%s20028_s17 + $0x7c8] ss:$16 sps:$4 sm:$0xff]   ;;  %v19324_v51 = vld [vmem:[%s20028_s17 + $0x5ec] ss:$16 sps:$4 sm:$0xff]  }
 0x8d9   : > { %15327 = vmatprep.subr.bf16.mxu1 %v19267_v52  ;;  %v14982_v55 = vpop.f32.mrb[36].mxu0  ;;  %v19327_v52 = vld [vmem:[%s20028_s17 + $0x7ec] ss:$16 sps:$4 sm:$0xff]  }
 0x8da   : > { %v15023_v5 = vpop.f32.mrb[36].mxu1  ;;  %v14983_v31 = vadd.f32 %v14982_v55, %v22206_v15  ;;  %v14984_v49 = vpop.f32.mrb[37].mxu0  ;;  %v19276_v15 = vld [vmem:[%s20028_s17 + $0x4ec] ss:$16 sps:$4 sm:$0xff]   ;;  %v19328_v55 = vld [vmem:[%s20028_s17 + $0x808] ss:$16 sps:$4 sm:$0xff]  }
 0x8db   : > { %v15025_v38 = vpop.f32.mrb[37].mxu1  ;;  %v14985_v39 = vadd.f32 %v14984_v49, %v22210_v9  ;;  %v14986_v36 = vpop.f32.mrb[38].mxu0  ;;  %15287 = vmatpush1.bf16.msra.mxu0 %v19262_v58  ;;  %v19279_v9 = vld [vmem:[%s20028_s17 + $0x6ec] ss:$16 sps:$4 sm:$0xff]   ;;  %v19322_v58 = vld [vmem:[%s20028_s17 + $0x5e8] ss:$16 sps:$4 sm:$0xff]  }
 0x8dc   : > { %v15027_v12 = vpop.f32.mrb[38].mxu1  ;;  %15328 = vmatpush1.bf16.msra.mxu1 %v19265_v59  ;;  %v22280_v1 = vadd.f32 %v15023_v5, %v14983_v31  ;;  %v14987_v29 = vpop.f32.mrb[39].mxu0  ;;  %15288 = vmatprep.subr.bf16.mxu0 %v19270_v44  ;;  %v19325_v59 = vld [vmem:[%s20028_s17 + $0x7e8] ss:$16 sps:$4 sm:$0xff]   ;;  %v19330_v44 = vld [vmem:[%s20028_s17 + $0x80c] ss:$16 sps:$4 sm:$0xff]  }
 0x8dd   : > { %v15028_v61 = vpop.f32.mrb[39].mxu1  ;;  %15329 = vmatprep.subr.bf16.mxu1 %v19273_v2  ;;  %v22284_v20 = vadd.f32 %v15025_v38, %v14985_v39  ;;  %v19333_v2 = vld [vmem:[%s20028_s17 + $0xa0c] ss:$16 sps:$4 sm:$0xff]   ;;  %v19331_v5 = vld [vmem:[%s20028_s17 + $0xa08] ss:$16 sps:$4 sm:$0xff]  }
 0x8de   : > { %v19336_v31 = vld [vmem:[%s20028_s17 + $0x82c] ss:$16 sps:$4 sm:$0xff]   ;;  %v19334_v38 = vld [vmem:[%s20028_s17 + $0x828] ss:$16 sps:$4 sm:$0xff]  }
 0x8df   : > { %15289 = vmatpush1.bf16.msra.mxu0 %v19268_v13  ;;  %v19339_v49 = vld [vmem:[%s20028_s17 + $0xa2c] ss:$16 sps:$4 sm:$0xff]   ;;  %v19337_v39 = vld [vmem:[%s20028_s17 + $0xa28] ss:$16 sps:$4 sm:$0xff]  }
 0x8e0   : > { %15330 = vmatpush1.bf16.msra.mxu1 %v19271_v17  ;;  %15290 = vmatprep.subr.bf16.mxu0 %v19276_v15  ;;  %v19342_v36 = vld [vmem:[%s20028_s17 + $0x84c] ss:$16 sps:$4 sm:$0xff]   ;;  %v19346_v29 = vld [vmem:[%s20028_s17 + $0x868] ss:$16 sps:$4 sm:$0xff]  }
 0x8e1   : > { %15331 = vmatprep.subr.bf16.mxu1 %v19279_v9  ;;  %v19345_v12 = vld [vmem:[%s20028_s17 + $0xa4c] ss:$16 sps:$4 sm:$0xff]   ;;  %v19352_v15 = vld [vmem:[%s20028_s17 + $0x888] ss:$16 sps:$4 sm:$0xff]  }
 0x8e2   : > { %v19348_v13 = vld [vmem:[%s20028_s17 + $0x86c] ss:$16 sps:$4 sm:$0xff]   ;;  %v19355_v9 = vld [vmem:[%s20028_s17 + $0xa88] ss:$16 sps:$4 sm:$0xff]  }
 0x8e3   : > { %15291 = vmatpush1.bf16.msra.mxu0 %v19274_v23  ;;  %v19351_v17 = vld [vmem:[%s20028_s17 + $0xa6c] ss:$16 sps:$4 sm:$0xff]  }
 0x8e4   : > { %15332 = vmatpush1.bf16.msra.mxu1 %v19277_v24  ;;  %15292 = vmatprep.subr.bf16.mxu0 %v19282_v25  ;;  %v19357_v61 = vld [vmem:[%s20028_s17 + $0xa8c] ss:$16 sps:$4 sm:$0xff]   ;;  %v19358_v25 = vld [vmem:[%s20028_s17 + $0x8a8] ss:$16 sps:$4 sm:$0xff]  }
 0x8e5   : > { %15333 = vmatprep.subr.bf16.mxu1 %v19285_v28  ;;  %v19360_v23 = vld [vmem:[%s20028_s17 + $0x8ac] ss:$16 sps:$4 sm:$0xff]   ;;  %v19361_v28 = vld [vmem:[%s20028_s17 + $0xaa8] ss:$16 sps:$4 sm:$0xff]  }
 0x8e6   : > { %v19363_v24 = vld [vmem:[%s20028_s17 + $0xaac] ss:$16 sps:$4 sm:$0xff]  }
 0x8e7   : > { %15293 = vmatpush1.bf16.msra.mxu0 %v19280_v16  ;;  %v19366_v16 = vld [vmem:[%s20028_s17 + $0x8cc] ss:$16 sps:$4 sm:$0xff]  }
 0x8e8   : > { %15334 = vmatpush1.bf16.msra.mxu1 %v19283_v27  ;;  %15294 = vmatprep.subr.bf16.mxu0 %v19288_v33  ;;  %v19369_v27 = vld [vmem:[%s20028_s17 + $0xacc] ss:$16 sps:$4 sm:$0xff]  }
 0x8e9   : > { %15335 = vmatprep.subr.bf16.mxu1 %v19291_v34 }
 0x8eb   : > { %15295 = vmatpush1.bf16.msra.mxu0 %v19286_v60 }
 0x8ec   : > { %15336 = vmatpush1.bf16.msra.mxu1 %v19289_v35  ;;  %15296 = vmatprep.subr.bf16.mxu0 %v19294_v62 }
 0x8ed   : > { %15337 = vmatprep.subr.bf16.mxu1 %v19297_v37 }
 0x8ef   : > { %15297 = vmatpush1.bf16.msra.mxu0 %v19292_v41 }
 0x8f0   : > { %15338 = vmatpush1.bf16.msra.mxu1 %v19295_v42  ;;  %15298 = vmatprep.subr.bf16.mxu0 %v19300_v0  ;;  %v19364_v0 = vld [vmem:[%s20028_s17 + $0x8c8] ss:$16 sps:$4 sm:$0xff]  }
 0x8f1   : > { %15339 = vmatprep.subr.bf16.mxu1 %v19303_v43  ;;  %v19367_v43 = vld [vmem:[%s20028_s17 + $0xac8] ss:$16 sps:$4 sm:$0xff]  }
 0x8f3   : > { %15299 = vmatpush1.bf16.msra.mxu0 %v19298_v57 }
 0x8f4   : > { %15340 = vmatpush1.bf16.msra.mxu1 %v19301_v21  ;;  %15300 = vmatprep.subr.bf16.mxu0 %v19306_v54 }
 0x8f5   : > { %15341 = vmatprep.subr.bf16.mxu1 %v19309_v8 }
 0x8f7   : > { %15301 = vmatpush1.bf16.msra.mxu0 %v19304_v3  ;;  %v19370_v3 = vld [vmem:[%s20028_s17 + $0x8e8] ss:$16 sps:$4 sm:$0xff]  }
 0x8f8   : > { %15342 = vmatpush1.bf16.msra.mxu1 %v19307_v10  ;;  %15302 = vmatprep.subr.bf16.mxu0 %v19312_v6  ;;  %v19373_v10 = vld [vmem:[%s20028_s17 + $0xae8] ss:$16 sps:$4 sm:$0xff]   ;;  %v19378_v6 = vld [vmem:[%s20028_s17 + $0x90c] ss:$16 sps:$4 sm:$0xff]  }
 0x8f9   : > { %15343 = vmatprep.subr.bf16.mxu1 %v19315_v46  ;;  %v19381_v46 = vld [vmem:[%s20028_s17 + $0xb0c] ss:$16 sps:$4 sm:$0xff]  }
 0x8fb   : > { %15303 = vmatpush1.bf16.msra.mxu0 %v19310_v14  ;;  %v19376_v14 = vld [vmem:[%s20028_s17 + $0x908] ss:$16 sps:$4 sm:$0xff]  }
 0x8fc   : > { %15344 = vmatpush1.bf16.msra.mxu1 %v19313_v47  ;;  %15304 = vmatprep.subr.bf16.mxu0 %v19318_v22  ;;  %v19379_v47 = vld [vmem:[%s20028_s17 + $0xb08] ss:$16 sps:$4 sm:$0xff]   ;;  %v19384_v22 = vld [vmem:[%s20028_s17 + $0x92c] ss:$16 sps:$4 sm:$0xff]  }
 0x8fd   : > { %15345 = vmatprep.subr.bf16.mxu1 %v19321_v50  ;;  %v19387_v50 = vld [vmem:[%s20028_s17 + $0xb2c] ss:$16 sps:$4 sm:$0xff]  }
 0x8ff   : > { %15305 = vmatpush1.bf16.msra.mxu0 %v19316_v53  ;;  %v19382_v53 = vld [vmem:[%s20028_s17 + $0x928] ss:$16 sps:$4 sm:$0xff]  }
 0x900   : > { %15346 = vmatpush1.bf16.msra.mxu1 %v19319_v56  ;;  %15306 = vmatprep.subr.bf16.mxu0 %v19324_v51  ;;  %v19385_v56 = vld [vmem:[%s20028_s17 + $0xb28] ss:$16 sps:$4 sm:$0xff]   ;;  %v19390_v51 = vld [vmem:[%s20028_s17 + $0x94c] ss:$16 sps:$4 sm:$0xff]  }
 0x901   : > { %15347 = vmatprep.subr.bf16.mxu1 %v19327_v52  ;;  %v19393_v52 = vld [vmem:[%s20028_s17 + $0xb4c] ss:$16 sps:$4 sm:$0xff]  }
 0x903   : > { %15307 = vmatpush1.bf16.msra.mxu0 %v19322_v58  ;;  %v19388_v58 = vld [vmem:[%s20028_s17 + $0x948] ss:$16 sps:$4 sm:$0xff]  }
 0x904   : > { %15348 = vmatpush1.bf16.msra.mxu1 %v19325_v59  ;;  %15358 = vmatprep.subr.bf16.mxu0 %v19330_v44  ;;  %v19391_v59 = vld [vmem:[%s20028_s17 + $0xb48] ss:$16 sps:$4 sm:$0xff]   ;;  %v19396_v44 = vld [vmem:[%s20028_s17 + $0x96c] ss:$16 sps:$4 sm:$0xff]  }
 0x905   : > { %15399 = vmatprep.subr.bf16.mxu1 %v19333_v2  ;;  %v19399_v2 = vld [vmem:[%s20028_s17 + $0xb6c] ss:$16 sps:$4 sm:$0xff]  }
 0x906   : > { %15309 = vmatmul.mubr.bf16.vlgmr.msra.gmra.mrb[52].mxu0 %v22006_v4  ;;  %v19340_v4 = vld [vmem:[%s20028_s17 + $0x848] ss:$16 sps:$4 sm:$0xff]  }
 0x907   : > { %15350 = vmatmul.mubr.bf16.vlgmr.msra.gmra.mrb[52].mxu1 %v22008_v19  ;;  %15359 = vmatpush1.bf16.msra.mxu0 %v19328_v55  ;;  %v19343_v19 = vld [vmem:[%s20028_s17 + $0xa48] ss:$16 sps:$4 sm:$0xff]  }
 0x908   : > { %15400 = vmatpush1.bf16.msra.mxu1 %v19331_v5  ;;  %15360 = vmatprep.subr.bf16.mxu0 %v19336_v31  ;;  %v19394_v55 = vld [vmem:[%s20028_s17 + $0x968] ss:$16 sps:$4 sm:$0xff]   ;;  %v19402_v31 = vld [vmem:[%s20028_s17 + $0x98c] ss:$16 sps:$4 sm:$0xff]  }
 0x909   : > { %15401 = vmatprep.subr.bf16.mxu1 %v19339_v49  ;;  %15390 = vmatprep.mubr.bf16.mxu0 %v22014_v45  ;;  %v19349_v45 = vld [vmem:[%s20028_s17 + $0xa68] ss:$16 sps:$4 sm:$0xff]   ;;  %v19405_v49 = vld [vmem:[%s20028_s17 + $0xb8c] ss:$16 sps:$4 sm:$0xff]  }
 0x90a   : > { %15431 = vmatprep.mubr.bf16.mxu1 %v22016_v48  ;;  %v19354_v48 = vld [vmem:[%s20028_s17 + $0x88c] ss:$16 sps:$4 sm:$0xff]   ;;  %v19397_v5 = vld [vmem:[%s20028_s17 + $0xb68] ss:$16 sps:$4 sm:$0xff]  }
 0x90b   : > { %15361 = vmatpush1.bf16.msra.mxu0 %v19334_v38  ;;  %v19400_v38 = vld [vmem:[%s20028_s17 + $0x988] ss:$16 sps:$4 sm:$0xff]  }
 0x90c   : > { %15402 = vmatpush1.bf16.msra.mxu1 %v19337_v39  ;;  %15362 = vmatprep.subr.bf16.mxu0 %v19342_v36  ;;  %v19403_v39 = vld [vmem:[%s20028_s17 + $0xb88] ss:$16 sps:$4 sm:$0xff]   ;;  %v19408_v36 = vld [vmem:[%s20028_s17 + $0x9ac] ss:$16 sps:$4 sm:$0xff]  }
 0x90d   : > { %15403 = vmatprep.subr.bf16.mxu1 %v19345_v12  ;;  %v19411_v12 = vld [vmem:[%s20028_s17 + $0xbac] ss:$16 sps:$4 sm:$0xff]  }
 0x90f   : > { %15363 = vmatpush1.bf16.msra.mxu0 %v19340_v4  ;;  %v19406_v4 = vld [vmem:[%s20028_s17 + $0x9a8] ss:$16 sps:$4 sm:$0xff]  }
 0x910   : > { %15404 = vmatpush1.bf16.msra.mxu1 %v19343_v19  ;;  %15364 = vmatprep.subr.bf16.mxu0 %v19348_v13  ;;  %v19409_v19 = vld [vmem:[%s20028_s17 + $0xba8] ss:$16 sps:$4 sm:$0xff]   ;;  %v19414_v13 = vld [vmem:[%s20028_s17 + $0x9cc] ss:$16 sps:$4 sm:$0xff]  }
 0x911   : > { %15405 = vmatprep.subr.bf16.mxu1 %v19351_v17  ;;  %v19417_v17 = vld [vmem:[%s20028_s17 + $0xbcc] ss:$16 sps:$4 sm:$0xff]  }
 0x913   : > { %15365 = vmatpush1.bf16.msra.mxu0 %v19346_v29  ;;  %v19412_v29 = vld [vmem:[%s20028_s17 + $0x9c8] ss:$16 sps:$4 sm:$0xff]  }
 0x914   : > { %15406 = vmatpush1.bf16.msra.mxu1 %v19349_v45  ;;  %15366 = vmatprep.subr.bf16.mxu0 %v19354_v48  ;;  %v19415_v45 = vld [vmem:[%s20028_s17 + $0xbc8] ss:$16 sps:$4 sm:$0xff]   ;;  %v19420_v48 = vld [vmem:[%s20028_s17 + $0x9ec] ss:$16 sps:$4 sm:$0xff]  }
 0x915   : > { %15407 = vmatprep.subr.bf16.mxu1 %v19357_v61  ;;  %v19423_v61 = vld [vmem:[%s20028_s17 + $0xbec] ss:$16 sps:$4 sm:$0xff]  }
 0x917   : > { %15367 = vmatpush1.bf16.msra.mxu0 %v19352_v15  ;;  %v19418_v15 = vld [vmem:[%s20028_s17 + $0x9e8] ss:$16 sps:$4 sm:$0xff]  }
 0x918   : > { %15408 = vmatpush1.bf16.msra.mxu1 %v19355_v9  ;;  %15368 = vmatprep.subr.bf16.mxu0 %v19360_v23  ;;  %v19421_v9 = vld [vmem:[%s20028_s17 + $0xbe8] ss:$16 sps:$4 sm:$0xff]   ;;  %v19426_v23 = vld [vmem:[%s20028_s17 + $0xc0c] ss:$16 sps:$4 sm:$0xff]  }
 0x919   : > { %15409 = vmatprep.subr.bf16.mxu1 %v19363_v24  ;;  %v15064_v33 = vpop.f32.mrb[40].mxu0  ;;  %v19429_v24 = vld [vmem:[%s20028_s17 + $0xe0c] ss:$16 sps:$4 sm:$0xff]  }
 0x91a   : > { %v15105_v34 = vpop.f32.mrb[40].mxu1  ;;  %v15065_v60 = vadd.f32 %v15064_v33, %v22280_v1  ;;  %v15066_v35 = vpop.f32.mrb[41].mxu0  ;;  %v19372_v1 = vld [vmem:[%s20028_s17 + $0x8ec] ss:$16 sps:$4 sm:$0xff]   ;;  %v19430_v33 = vld [vmem:[%s20028_s17 + $0xc28] ss:$16 sps:$4 sm:$0xff]  }
 0x91b   : > { %v15107_v62 = vpop.f32.mrb[41].mxu1  ;;  %v15067_v37 = vadd.f32 %v15066_v35, %v22284_v20  ;;  %v15068_v41 = vpop.f32.mrb[42].mxu0  ;;  %15369 = vmatpush1.bf16.msra.mxu0 %v19358_v25  ;;  %v19375_v20 = vld [vmem:[%s20028_s17 + $0xaec] ss:$16 sps:$4 sm:$0xff]   ;;  %v19424_v25 = vld [vmem:[%s20028_s17 + $0xc08] ss:$16 sps:$4 sm:$0xff]  }
 0x91c   : > { %v15109_v42 = vpop.f32.mrb[42].mxu1  ;;  %15410 = vmatpush1.bf16.msra.mxu1 %v19361_v28  ;;  %v22354_v57 = vadd.f32 %v15105_v34, %v15065_v60  ;;  %v15069_v21 = vpop.f32.mrb[43].mxu0  ;;  %15370 = vmatprep.subr.bf16.mxu0 %v19366_v16  ;;  %v19427_v28 = vld [vmem:[%s20028_s17 + $0xe08] ss:$16 sps:$4 sm:$0xff]   ;;  %v19432_v16 = vld [vmem:[%s20028_s17 + $0xc2c] ss:$16 sps:$4 sm:$0xff]   ;;  %v15524_v41 = vlaneseq }
 0x91d   : > { %v15110_v54 = vpop.f32.mrb[43].mxu1  ;;  %15411 = vmatprep.subr.bf16.mxu1 %v19369_v27  ;;  %v22358_v8 = vadd.f32 %v15107_v62, %v15067_v37  ;;  %v19435_v27 = vld [vmem:[%s20028_s17 + $0xe2c] ss:$16 sps:$4 sm:$0xff]   ;;  %v19433_v34 = vld [vmem:[%s20028_s17 + $0xe28] ss:$16 sps:$4 sm:$0xff]  }
 0x91e   : > { %v19438_v60 = vld [vmem:[%s20028_s17 + $0xc4c] ss:$16 sps:$4 sm:$0xff]   ;;  %v19448_v21 = vld [vmem:[%s20028_s17 + $0xc88] ss:$16 sps:$4 sm:$0xff]  }
 0x91f   : > { %15371 = vmatpush1.bf16.msra.mxu0 %v19364_v0  ;;  %v19441_v35 = vld [vmem:[%s20028_s17 + $0xe4c] ss:$16 sps:$4 sm:$0xff]   ;;  %v19451_v54 = vld [vmem:[%s20028_s17 + $0xe88] ss:$16 sps:$4 sm:$0xff]  }
 0x920   : > { %15412 = vmatpush1.bf16.msra.mxu1 %v19367_v43  ;;  %15372 = vmatprep.subr.bf16.mxu0 %v19372_v1  ;;  %v19444_v62 = vld [vmem:[%s20028_s17 + $0xc6c] ss:$16 sps:$4 sm:$0xff]   ;;  %v22416_v43 = vshrl.u32 %v15524_v41, 7 }
 0x921   : > { %15413 = vmatprep.subr.bf16.mxu1 %v19375_v20  ;;  %v19447_v37 = vld [vmem:[%s20028_s17 + $0xe6c] ss:$16 sps:$4 sm:$0xff]  }
 0x922   : > { %v19450_v42 = vld [vmem:[%s20028_s17 + $0xc8c] ss:$16 sps:$4 sm:$0xff]  }
 0x923   : > { %15373 = vmatpush1.bf16.msra.mxu0 %v19370_v3  ;;  %v19453_v0 = vld [vmem:[%s20028_s17 + $0xe8c] ss:$16 sps:$4 sm:$0xff]   ;;  %v15526_v3 = vsub.s32 0, %v22416_v43 }
 0x924   : > { %15414 = vmatpush1.bf16.msra.mxu1 %v19373_v10  ;;  %15374 = vmatprep.subr.bf16.mxu0 %v19378_v6  ;;  %v19456_v1 = vld [vmem:[%s20028_s17 + $0xcac] ss:$16 sps:$4 sm:$0xff]   ;;  %v19454_v10 = vld [vmem:[%s20028_s17 + $0xca8] ss:$16 sps:$4 sm:$0xff]   ;;  %v22425_v6 = vld [vmem:[%s20034_s18] sm:$0xf] }
 0x925   : > { %15415 = vmatprep.subr.bf16.mxu1 %v19381_v46  ;;  %v19459_v20 = vld [vmem:[%s20028_s17 + $0xeac] ss:$16 sps:$4 sm:$0xff]   ;;  %v15530_v46 = vsub.s32 1, %v22416_v43 }
 0x926   : > { %v19507_v41 = vld [vmem:[%s20028_s17 + $0xfac] ss:$16 sps:$4 sm:$0xff]  }
 0x927   : > { %15375 = vmatpush1.bf16.msra.mxu0 %v19376_v14  ;;  %v19457_v14 = vld [vmem:[%s20028_s17 + $0xea8] ss:$16 sps:$4 sm:$0xff]  }
 0x928   : > { %15416 = vmatpush1.bf16.msra.mxu1 %v19379_v47  ;;  %15376 = vmatprep.subr.bf16.mxu0 %v19384_v22  ;;  %v19462_v47 = vld [vmem:[%s20028_s17 + $0xccc] ss:$16 sps:$4 sm:$0xff]  }
 0x929   : > { %15417 = vmatprep.subr.bf16.mxu1 %v19387_v50  ;;  %v19465_v22 = vld [vmem:[%s20028_s17 + $0xecc] ss:$16 sps:$4 sm:$0xff]  }
 0x92b   : > { %15377 = vmatpush1.bf16.msra.mxu0 %v19382_v53 }
 0x92c   : > { %15418 = vmatpush1.bf16.msra.mxu1 %v19385_v56  ;;  %15378 = vmatprep.subr.bf16.mxu0 %v19390_v51  ;;  %v15527_v51 = vrot.slane %v22425_v6, %v15526_v3  ;;  %v19514_v3 = vld [vmem:[%s20028_s17 + $0xde8] ss:$16 sps:$4 sm:$0xff]  }
 0x92d   : > { %15419 = vmatprep.subr.bf16.mxu1 %v19393_v52 }
 0x92f   : > { %15379 = vmatpush1.bf16.msra.mxu0 %v19388_v58 }
 0x930   : > { %15420 = vmatpush1.bf16.msra.mxu1 %v19391_v59  ;;  %15380 = vmatprep.subr.bf16.mxu0 %v19396_v44  ;;  %v15531_v44 = vrot.slane %v22425_v6, %v15530_v46 }
 0x931   : > { %15421 = vmatprep.subr.bf16.mxu1 %v19399_v2 }
 0x933   : > { %15381 = vmatpush1.bf16.msra.mxu0 %v19394_v55 }
 0x934   : > { %15422 = vmatpush1.bf16.msra.mxu1 %v19397_v5  ;;  %15382 = vmatprep.subr.bf16.mxu0 %v19402_v31  ;;  %v19460_v5 = vld [vmem:[%s20028_s17 + $0xcc8] ss:$16 sps:$4 sm:$0xff]  }
 0x935   : > { %15423 = vmatprep.subr.bf16.mxu1 %v19405_v49  ;;  %v19463_v31 = vld [vmem:[%s20028_s17 + $0xec8] ss:$16 sps:$4 sm:$0xff]  }
 0x937   : > { %15383 = vmatpush1.bf16.msra.mxu0 %v19400_v38 }
 0x938   : > { %15424 = vmatpush1.bf16.msra.mxu1 %v19403_v39  ;;  %15384 = vmatprep.subr.bf16.mxu0 %v19408_v36  ;;  %v19471_v39 = vld [vmem:[%s20028_s17 + $0xeec] ss:$16 sps:$4 sm:$0xff]  }
 0x939   : > { %15425 = vmatprep.subr.bf16.mxu1 %v19411_v12 }
 0x93b   : > { %15385 = vmatpush1.bf16.msra.mxu0 %v19406_v4 }
 0x93c   : > { %15426 = vmatpush1.bf16.msra.mxu1 %v19409_v19  ;;  %15386 = vmatprep.subr.bf16.mxu0 %v19414_v13  ;;  %v19466_v19 = vld [vmem:[%s20028_s17 + $0xce8] ss:$16 sps:$4 sm:$0xff]  }
 0x93d   : > { %15427 = vmatprep.subr.bf16.mxu1 %v19417_v17  ;;  %v19469_v13 = vld [vmem:[%s20028_s17 + $0xee8] ss:$16 sps:$4 sm:$0xff]   ;;  %v19474_v17 = vld [vmem:[%s20028_s17 + $0xd0c] ss:$16 sps:$4 sm:$0xff]  }
 0x93f   : > { %15387 = vmatpush1.bf16.msra.mxu0 %v19412_v29  ;;  %v19477_v29 = vld [vmem:[%s20028_s17 + $0xf0c] ss:$16 sps:$4 sm:$0xff]  }
 0x940   : > { %15428 = vmatpush1.bf16.msra.mxu1 %v19415_v45  ;;  %15388 = vmatprep.subr.bf16.mxu0 %v19420_v48  ;;  %v19472_v45 = vld [vmem:[%s20028_s17 + $0xd08] ss:$16 sps:$4 sm:$0xff]  }
 0x941   : > { %15429 = vmatprep.subr.bf16.mxu1 %v19423_v61  ;;  %v19475_v48 = vld [vmem:[%s20028_s17 + $0xf08] ss:$16 sps:$4 sm:$0xff]   ;;  %v19480_v61 = vld [vmem:[%s20028_s17 + $0xd2c] ss:$16 sps:$4 sm:$0xff]  }
 0x943   : > { %15389 = vmatpush1.bf16.msra.mxu0 %v19418_v15  ;;  %v19483_v15 = vld [vmem:[%s20028_s17 + $0xf2c] ss:$16 sps:$4 sm:$0xff]  }
 0x944   : > { %15430 = vmatpush1.bf16.msra.mxu1 %v19421_v9  ;;  %15440 = vmatprep.subr.bf16.mxu0 %v19426_v23  ;;  %v19478_v9 = vld [vmem:[%s20028_s17 + $0xd28] ss:$16 sps:$4 sm:$0xff]  }
 0x945   : > { %15481 = vmatprep.subr.bf16.mxu1 %v19429_v24  ;;  %v19481_v23 = vld [vmem:[%s20028_s17 + $0xf28] ss:$16 sps:$4 sm:$0xff]   ;;  %v19486_v24 = vld [vmem:[%s20028_s17 + $0xd4c] ss:$16 sps:$4 sm:$0xff]  }
 0x946   : > { %15391 = vmatmul.mubr.bf16.vlgmr.msra.gmra.mrb[56].mxu0 %v22088_v32  ;;  %v19436_v32 = vld [vmem:[%s20028_s17 + $0xc48] ss:$16 sps:$4 sm:$0xff]  }
 0x947   : > { %15432 = vmatmul.mubr.bf16.vlgmr.msra.gmra.mrb[56].mxu1 %v22090_v18  ;;  %15441 = vmatpush1.bf16.msra.mxu0 %v19424_v25  ;;  %v19439_v18 = vld [vmem:[%s20028_s17 + $0xe48] ss:$16 sps:$4 sm:$0xff]   ;;  %v19489_v25 = vld [vmem:[%s20028_s17 + $0xf4c] ss:$16 sps:$4 sm:$0xff]  }
 0x948   : > { %15482 = vmatpush1.bf16.msra.mxu1 %v19427_v28  ;;  %15442 = vmatprep.subr.bf16.mxu0 %v19432_v16  ;;  %v19484_v28 = vld [vmem:[%s20028_s17 + $0xd48] ss:$16 sps:$4 sm:$0xff]  }
 0x949   : > { %15483 = vmatprep.subr.bf16.mxu1 %v19435_v27  ;;  %15472 = vmatprep.mubr.bf16.mxu0 %v22096_v30  ;;  %v19442_v30 = vld [vmem:[%s20028_s17 + $0xc68] ss:$16 sps:$4 sm:$0xff]   ;;  %v19492_v27 = vld [vmem:[%s20028_s17 + $0xd6c] ss:$16 sps:$4 sm:$0xff]  }
 0x94a   : > { %15513 = vmatprep.mubr.bf16.mxu1 %v22098_v26  ;;  %v19445_v26 = vld [vmem:[%s20028_s17 + $0xe68] ss:$16 sps:$4 sm:$0xff]  }
 0x94b   : > { %15443 = vmatpush1.bf16.msra.mxu0 %v19430_v33  ;;  %v19487_v16 = vld [vmem:[%s20028_s17 + $0xf48] ss:$16 sps:$4 sm:$0xff]   ;;  %v19495_v33 = vld [vmem:[%s20028_s17 + $0xf6c] ss:$16 sps:$4 sm:$0xff]  }
 0x94c   : > { %15484 = vmatpush1.bf16.msra.mxu1 %v19433_v34  ;;  %15444 = vmatprep.subr.bf16.mxu0 %v19438_v60  ;;  %v19490_v34 = vld [vmem:[%s20028_s17 + $0xd68] ss:$16 sps:$4 sm:$0xff]  }
 0x94d   : > { %15485 = vmatprep.subr.bf16.mxu1 %v19441_v35  ;;  %v19493_v60 = vld [vmem:[%s20028_s17 + $0xf68] ss:$16 sps:$4 sm:$0xff]   ;;  %v19498_v35 = vld [vmem:[%s20028_s17 + $0xd8c] ss:$16 sps:$4 sm:$0xff]  }
 0x94f   : > { %15445 = vmatpush1.bf16.msra.mxu0 %v19436_v32  ;;  %v19501_v32 = vld [vmem:[%s20028_s17 + $0xf8c] ss:$16 sps:$4 sm:$0xff]  }
 0x950   : > { %15486 = vmatpush1.bf16.msra.mxu1 %v19439_v18  ;;  %15446 = vmatprep.subr.bf16.mxu0 %v19444_v62  ;;  %v19496_v18 = vld [vmem:[%s20028_s17 + $0xd88] ss:$16 sps:$4 sm:$0xff]  }
 0x951   : > { %15487 = vmatprep.subr.bf16.mxu1 %v19447_v37  ;;  %v19499_v62 = vld [vmem:[%s20028_s17 + $0xf88] ss:$16 sps:$4 sm:$0xff]   ;;  %v19504_v37 = vld [vmem:[%s20028_s17 + $0xdac] ss:$16 sps:$4 sm:$0xff]  }
 0x953   : > { %15447 = vmatpush1.bf16.msra.mxu0 %v19442_v30  ;;  %v19502_v30 = vld [vmem:[%s20028_s17 + $0xda8] ss:$16 sps:$4 sm:$0xff]  }
 0x954   : > { %15488 = vmatpush1.bf16.msra.mxu1 %v19445_v26  ;;  %15448 = vmatprep.subr.bf16.mxu0 %v19450_v42  ;;  %v19505_v26 = vld [vmem:[%s20028_s17 + $0xfa8] ss:$16 sps:$4 sm:$0xff]   ;;  %v19510_v42 = vld [vmem:[%s20028_s17 + $0xdcc] ss:$16 sps:$4 sm:$0xff]  }
 0x955   : > { %15489 = vmatprep.subr.bf16.mxu1 %v19453_v0  ;;  %v19513_v0 = vld [vmem:[%s20028_s17 + $0xfcc] ss:$16 sps:$4 sm:$0xff]  }
 0x957   : > { %15449 = vmatpush1.bf16.msra.mxu0 %v19448_v21  ;;  %v19508_v21 = vld [vmem:[%s20028_s17 + $0xdc8] ss:$16 sps:$4 sm:$0xff]  }
 0x958   : > { %15490 = vmatpush1.bf16.msra.mxu1 %v19451_v54  ;;  %15450 = vmatprep.subr.bf16.mxu0 %v19456_v1  ;;  %v19511_v54 = vld [vmem:[%s20028_s17 + $0xfc8] ss:$16 sps:$4 sm:$0xff]   ;;  %v19516_v1 = vld [vmem:[%s20028_s17 + $0xdec] ss:$16 sps:$4 sm:$0xff]  }
 0x959   : > { %15491 = vmatprep.subr.bf16.mxu1 %v19459_v20  ;;  %v15146_v50 = vpop.f32.mrb[44].mxu0  ;;  %v19519_v20 = vld [vmem:[%s20028_s17 + $0xfec] ss:$16 sps:$4 sm:$0xff]  }
 0x95a   : > { %v15187_v53 = vpop.f32.mrb[44].mxu1  ;;  %v15147_v56 = vadd.f32 %v15146_v50, %v22354_v57  ;;  %v15148_v52 = vpop.f32.mrb[45].mxu0 }
 0x95b   : > { %v15189_v58 = vpop.f32.mrb[45].mxu1  ;;  %v15149_v59 = vadd.f32 %v15148_v52, %v22358_v8  ;;  %v15150_v2 = vpop.f32.mrb[46].mxu0  ;;  %15451 = vmatpush1.bf16.msra.mxu0 %v19454_v10  ;;  %v19468_v8 = vld [vmem:[%s20028_s17 + $0xcec] ss:$16 sps:$4 sm:$0xff]   ;;  %v19517_v10 = vld [vmem:[%s20028_s17 + $0xfe8] ss:$16 sps:$4 sm:$0xff]  }
 0x95c   : > { %v15191_v55 = vpop.f32.mrb[46].mxu1  ;;  %15492 = vmatpush1.bf16.msra.mxu1 %v19457_v14  ;;  %v15188_v57 = vadd.f32 %v15187_v53, %v15147_v56  ;;  %v15151_v49 = vpop.f32.mrb[47].mxu0  ;;  %15452 = vmatprep.subr.bf16.mxu0 %v19462_v47 }
 0x95d   : > { %v15192_v38 = vpop.f32.mrb[47].mxu1  ;;  %15493 = vmatprep.subr.bf16.mxu1 %v19465_v22  ;;  %v15190_v36 = vadd.f32 %v15189_v58, %v15149_v59 }
 0x95e   : > { %v15544_v12 = vadd.f32 %v15527_v51, %v15188_v57 }
 0x95f   : > { %v15545_v4 = vadd.f32 %v15531_v44, %v15190_v36  ;;  %15453 = vmatpush1.bf16.msra.mxu0 %v19460_v5 }
 0x960   : > { %15494 = vmatpush1.bf16.msra.mxu1 %v19463_v31  ;;  %15548 = vst [vmem:[%s20044_s8] sm:$0xff] %v15544_v12  ;;  %15454 = vmatprep.subr.bf16.mxu0 %v19468_v8 }
 0x961   : > { %15495 = vmatprep.subr.bf16.mxu1 %v19471_v39  ;;  %15549 = vst [vmem:[%s20044_s8 + $0x8] sm:$0xff] %v15545_v4 }
 0x963   : > { %15455 = vmatpush1.bf16.msra.mxu0 %v19466_v19 }
 0x964   : > { %15496 = vmatpush1.bf16.msra.mxu1 %v19469_v13  ;;  %15456 = vmatprep.subr.bf16.mxu0 %v19474_v17 }
 0x965   : > { %15497 = vmatprep.subr.bf16.mxu1 %v19477_v29 }
 0x967   : > { %15457 = vmatpush1.bf16.msra.mxu0 %v19472_v45 }
 0x968   : > { %15498 = vmatpush1.bf16.msra.mxu1 %v19475_v48  ;;  %15458 = vmatprep.subr.bf16.mxu0 %v19480_v61 }
 0x969   : > { %15499 = vmatprep.subr.bf16.mxu1 %v19483_v15 }
 0x96b   : > { %15459 = vmatpush1.bf16.msra.mxu0 %v19478_v9  ;;  %v15534_v9 = vsub.s32 2, %v22416_v43 }
 0x96c   : > { %15500 = vmatpush1.bf16.msra.mxu1 %v19481_v23  ;;  %15460 = vmatprep.subr.bf16.mxu0 %v19486_v24  ;;  %v15538_v23 = vsub.s32 3, %v22416_v43 }
 0x96d   : > { %15501 = vmatprep.subr.bf16.mxu1 %v19489_v25 }
 0x96f   : > { %15461 = vmatpush1.bf16.msra.mxu0 %v19484_v28 }
 0x970   : > { %15502 = vmatpush1.bf16.msra.mxu1 %v19487_v16  ;;  %15462 = vmatprep.subr.bf16.mxu0 %v19492_v27  ;;  %v15535_v16 = vrot.slane %v22425_v6, %v15534_v9 }
 0x971   : > { %15503 = vmatprep.subr.bf16.mxu1 %v19495_v33 }
 0x973   : > { %15463 = vmatpush1.bf16.msra.mxu0 %v19490_v34 }
 0x974   : > { %15504 = vmatpush1.bf16.msra.mxu1 %v19493_v60  ;;  %15464 = vmatprep.subr.bf16.mxu0 %v19498_v35  ;;  %v15539_v60 = vrot.slane %v22425_v6, %v15538_v23 }
 0x975   : > { %15505 = vmatprep.subr.bf16.mxu1 %v19501_v32 }
 0x977   : > { %15465 = vmatpush1.bf16.msra.mxu0 %v19496_v18 }
 0x978   : > { %15506 = vmatpush1.bf16.msra.mxu1 %v19499_v62  ;;  %15466 = vmatprep.subr.bf16.mxu0 %v19504_v37 }
 0x979   : > { %15507 = vmatprep.subr.bf16.mxu1 %v19507_v41 }
 0x97b   : > { %15467 = vmatpush1.bf16.msra.mxu0 %v19502_v30 }
 0x97c   : > { %15508 = vmatpush1.bf16.msra.mxu1 %v19505_v26  ;;  %15468 = vmatprep.subr.bf16.mxu0 %v19510_v42 }
 0x97d   : > { %15509 = vmatprep.subr.bf16.mxu1 %v19513_v0 }
 0x97f   : > { %15469 = vmatpush1.bf16.msra.mxu0 %v19508_v21 }
 0x980   : > { %15510 = vmatpush1.bf16.msra.mxu1 %v19511_v54  ;;  %15470 = vmatprep.subr.bf16.mxu0 %v19516_v1 }
 0x981   : > { %15511 = vmatprep.subr.bf16.mxu1 %v19519_v20 }
 0x983   : > { %15471 = vmatpush1.bf16.msra.mxu0 %v19514_v3 }
 0x984   : > { %15512 = vmatpush1.bf16.msra.mxu1 %v19517_v10 }
 0x986   : > { %15473 = vmatmul.mubr.bf16.vlgmr.msra.gmra.mrb[60].mxu0 %v22170_v40 }
 0x987   : > { %15514 = vmatmul.mubr.bf16.vlgmr.msra.gmra.mrb[60].mxu1 %v22172_v63 }
 0x999   : > { %v15228_v46 = vpop.f32.mrb[48].mxu0 }
 0x99a   : > { %v15269_v14 = vpop.f32.mrb[48].mxu1  ;;  %v15229_v47 = vadd.f32 %v15228_v46, %v22128_v11  ;;  %v15230_v22 = vpop.f32.mrb[49].mxu0 }
 0x99b   : > { %v15271_v50 = vpop.f32.mrb[49].mxu1  ;;  %v15231_v53 = vadd.f32 %v15230_v22, %v22132_v7  ;;  %v15232_v56 = vpop.f32.mrb[50].mxu0 }
 0x99c   : > { %v15273_v51 = vpop.f32.mrb[50].mxu1  ;;  %v15270_v52 = vadd.f32 %v15269_v14, %v15229_v47  ;;  %v15233_v58 = vpop.f32.mrb[51].mxu0 }
 0x99d   : > { %v15274_v59 = vpop.f32.mrb[51].mxu1  ;;  %v15272_v44 = vadd.f32 %v15271_v50, %v15231_v53 }
 0x9d9   : > { %v15310_v2 = vpop.f32.mrb[52].mxu0 }
 0x9da   : > { %v15351_v55 = vpop.f32.mrb[52].mxu1  ;;  %v15311_v5 = vadd.f32 %v15310_v2, %v15270_v52  ;;  %v15312_v40 = vpop.f32.mrb[53].mxu0 }
 0x9db   : > { %v15353_v31 = vpop.f32.mrb[53].mxu1  ;;  %v15313_v63 = vadd.f32 %v15312_v40, %v15272_v44  ;;  %v15314_v57 = vpop.f32.mrb[54].mxu0 }
 0x9dc   : > { %v15355_v49 = vpop.f32.mrb[54].mxu1  ;;  %v15352_v38 = vadd.f32 %v15351_v55, %v15311_v5  ;;  %v15315_v11 = vpop.f32.mrb[55].mxu0 }
 0x9dd   : > { %v15356_v8 = vpop.f32.mrb[55].mxu1  ;;  %v15354_v39 = vadd.f32 %v15353_v31, %v15313_v63 }
 0xa19   : > { %v15392_v36 = vpop.f32.mrb[56].mxu0 }
 0xa1a   : > { %v15433_v7 = vpop.f32.mrb[56].mxu1  ;;  %v15393_v12 = vadd.f32 %v15392_v36, %v15352_v38  ;;  %v15394_v4 = vpop.f32.mrb[57].mxu0 }
 0xa1b   : > { %v15435_v19 = vpop.f32.mrb[57].mxu1  ;;  %v15395_v13 = vadd.f32 %v15394_v4, %v15354_v39  ;;  %v15396_v17 = vpop.f32.mrb[58].mxu0 }
 0xa1c   : > { %v15437_v29 = vpop.f32.mrb[58].mxu1  ;;  %v15434_v45 = vadd.f32 %v15433_v7, %v15393_v12  ;;  %v15397_v48 = vpop.f32.mrb[59].mxu0 }
 0xa1d   : > { %v15438_v61 = vpop.f32.mrb[59].mxu1  ;;  %v15436_v15 = vadd.f32 %v15435_v19, %v15395_v13 }
 0xa59   : > { %v15474_v24 = vpop.f32.mrb[60].mxu0 }
 0xa5a   : > { %v15515_v25 = vpop.f32.mrb[60].mxu1  ;;  %v15475_v28 = vadd.f32 %v15474_v24, %v15434_v45  ;;  %v15476_v27 = vpop.f32.mrb[61].mxu0 }
 0xa5b   : > { %v15517_v33 = vpop.f32.mrb[61].mxu1  ;;  %v15477_v34 = vadd.f32 %v15476_v27, %v15436_v15  ;;  %v15478_v35 = vpop.f32.mrb[62].mxu0 }
 0xa5c   : > { %v15519_v32 = vpop.f32.mrb[62].mxu1  ;;  %v15516_v18 = vadd.f32 %v15515_v25, %v15475_v28  ;;  %v15479_v62 = vpop.f32.mrb[63].mxu0 }
 0xa5d   : > { %v15520_v37 = vpop.f32.mrb[63].mxu1  ;;  %v15518_v41 = vadd.f32 %v15517_v33, %v15477_v34 }
 0xa5e   : > { %v15546_v30 = vadd.f32 %v15535_v16, %v15516_v18 }
 0xa5f   : > { %v15547_v43 = vadd.f32 %v15539_v60, %v15518_v41 }
 0xa60   : > { %15550 = vst [vmem:[%s20044_s8 + $0x10] sm:$0xff] %v15546_v30 }
 0xa61   : > { %15551 = vst [vmem:[%s20044_s8 + $0x18] sm:$0xff] %v15547_v43 }
 0xa62 PF: > { %s22534_s25 = sld [smem:[#allocation14_spill]]  ;;  %s22535_s23 = sld [smem:[#allocation15_spill]] }
 0xa63   : > { %p21_p10 = scmp.ge.s32.totalorder %s19789_s26, 6   ;;  %s22536_s18 = smov %s19690_s19 }
 0xa64   : > { %s22537_s19 = smov %s19694_s20  ;;  %s22538_s20 = smov %s19956_s21 }
 0xa65   : > { %s22539_s21 = smov %s19702_s22  ;;  %s22541_s24 = smov %s19789_s26 }
 0xa66   :  { %23 = sbr.rel (!%p21_p10) target bundleno = 12 (0xc), region = 127 }
 0xa68   : > { %s22540_s22 = smov %s22534_s25 }
 0xa6d   :  { %15583 = vsyncpa [#allocation4], 1 }
 0xa6e   :  { %15585 = vsyncpa [#allocation4 + $0x1], 1 }
 0xa6f   :  { %15586 = vsyncpa [#allocation6], 1 }
 0xa70   :  { %15588 = vsyncpa [#allocation6 + $0x1], 1 }
 0xa71   :  { %15589 = vsyncpa [#allocation9], 1 }
 0xa72   :  { %15591 = vsyncpa [#allocation9 + $0x1], 1 }

</bundles_post_ra>
